<compile_context>
chip_gen: v6e
topology: v6e:2x2x1
jax: 0.10.0
libtpu: 0.0.40
codegen_flags: <defaults>
</compile_context>

<pallas_src>
import functools
import math

import jax
import jax.numpy as jnp
from jax import lax
from jax.experimental import pallas as pl
from jax.experimental.pallas import tpu as pltpu

# ----------------------------- model config ---------------------------------
VOCAB = 32
D_MODEL = 32
N_HEADS = 4
D_HEAD = D_MODEL // N_HEADS
D_FF = 64
N_LAYERS = 2
PAD_IDX = 1
LN_EPS = 1e-5
NEG_INF = -1e9
PE_LEN = 64
ATTN_SCALE = 1.0 / math.sqrt(float(D_HEAD))
EMB_SCALE = math.sqrt(float(D_MODEL))

# the generator weight is packed into the embedding slab (requires V == D)
assert VOCAB == D_MODEL

# ------------------------- packed-slab bookkeeping ---------------------------
# attention blocks: [0,L) enc self | [L,2L) dec self | [2L,3L) dec cross
N_ATTN = 3 * N_LAYERS
N_FF = 2 * N_LAYERS            # enc FF blocks then dec FF blocks
N_LN = 5 * N_LAYERS            # 2 per enc layer + 3 per dec layer

# vec32 slab: every [1, D_MODEL] vector parameter, stacked on the leading axis
VEC_LN_G = 0
VEC_LN_B = VEC_LN_G + N_LN
VEC_ATTN_BO = VEC_LN_B + N_LN
VEC_FF_B2 = VEC_ATTN_BO + N_ATTN
VEC_GEN_B = VEC_FF_B2 + N_FF
N_VEC32 = VEC_GEN_B + 1

PARAM_ORDER = ("attn_wqkv", "attn_bqkv", "attn_wo",
               "ff_w1", "ff_b1", "ff_w2",
               "emb", "pe", "vec32")


# --------------------------- the fused kernel --------------------------------
def _transformer_kernel(src_col_ref, tgt_col_ref, src_row_ref, tgt_row_ref,
                        wqkv_ref, bqkv_ref, wo_ref,
                        ffw1_ref, ffb1_ref, ffw2_ref,
                        emb_ref, pe_ref, vec_ref,
                        out_ref, dec_out_ref, *, s_src, s_tgt):
    f32 = jnp.float32
    bs_src = src_col_ref.shape[0]   # B * s_src  (batch folded into rows)
    bs_tgt = tgt_col_ref.shape[0]   # B * s_tgt

    # ---- tiny int metadata: columns [token | batch | pos], rows transposed --
    src_tok_c = src_col_ref[:, 0:1]
    src_bat_c = src_col_ref[:, 1:2]
    src_pos_c = src_col_ref[:, 2:3]
    tgt_tok_c = tgt_col_ref[:, 0:1]
    tgt_bat_c = tgt_col_ref[:, 1:2]
    tgt_pos_c = tgt_col_ref[:, 2:3]
    src_tok_r = src_row_ref[0:1, :]
    src_bat_r = src_row_ref[1:2, :]
    tgt_tok_r = tgt_row_ref[0:1, :]
    tgt_bat_r = tgt_row_ref[1:2, :]

    # ---- attention masks (VPU iota+compare; batch block-diagonal) ----------
    def make_mask(q_tok_c, q_bat_c, k_tok_r, k_bat_r, causal):
        sq = q_tok_c.shape[0]
        sk = k_tok_r.shape[1]
        same = (q_bat_c == k_bat_r)                                   # [sq,sk]
        keep = (q_tok_c != PAD_IDX) & (k_tok_r != PAD_IDX) & same
        if causal:
            ri = lax.broadcasted_iota(jnp.int32, (sq, sk), 0)
            ci = lax.broadcasted_iota(jnp.int32, (sq, sk), 1)
            keep = keep & (ri >= ci)                 # within-batch causal
        # masked_fill semantics: masked entries become exactly -1e9; entries in
        # a different batch get an extra -1e9 so fully-masked (pad-query) rows
        # reduce to a uniform distribution over their own batch only.
        add = (jnp.where(keep, 0.0, NEG_INF)
               + jnp.where(same, 0.0, NEG_INF)).astype(f32)
        return keep.astype(f32), add

    src_keep, src_add = make_mask(src_tok_c, src_bat_c, src_tok_r, src_bat_r, False)
    tgt_keep, tgt_add = make_mask(tgt_tok_c, tgt_bat_c, tgt_tok_r, tgt_bat_r, True)
    st_keep, st_add = make_mask(tgt_tok_c, tgt_bat_c, src_tok_r, src_bat_r, False)

    # ---- embeddings: one-hot / position-select matmuls (MXU, no gathers) ---
    def embed(tok_c, pos_c, seq_len, emb_idx, n_rows):
        oh = (lax.broadcasted_iota(jnp.int32, (n_rows, VOCAB), 1)
              == tok_c).astype(f32)
        ps = (lax.broadcasted_iota(jnp.int32, (n_rows, seq_len), 1)
              == pos_c).astype(f32)
        e = jnp.dot(oh, emb_ref[emb_idx], preferred_element_type=f32) * EMB_SCALE
        return e + jnp.dot(ps, pe_ref[0:seq_len, :], preferred_element_type=f32)

    x = embed(src_tok_c, src_pos_c, s_src, 0, bs_src)    # [B*Ss, D]
    y = embed(tgt_tok_c, tgt_pos_c, s_tgt, 1, bs_tgt)    # [B*St, D]

    # ---- building blocks -----------------------------------------------------
    def softmax_rows(s):
        m = jnp.max(s, axis=-1, keepdims=True)
        e = jnp.exp(s - m)
        return e / jnp.sum(e, axis=-1, keepdims=True)     # exact divide

    def attention(xq, xkv, keep, add, blk):
        o = vec_ref[VEC_ATTN_BO + blk]                    # output-proj bias [1,D]
        for h in range(N_HEADS):                          # heads on leading axis
            iq = (blk * 3 + 0) * N_HEADS + h
            ik = (blk * 3 + 1) * N_HEADS + h
            iv = (blk * 3 + 2) * N_HEADS + h
            q = jnp.dot(xq, wqkv_ref[iq], preferred_element_type=f32) + bqkv_ref[iq]
            k = jnp.dot(xkv, wqkv_ref[ik], preferred_element_type=f32) + bqkv_ref[ik]
            v = jnp.dot(xkv, wqkv_ref[iv], preferred_element_type=f32) + bqkv_ref[iv]
            s = lax.dot_general(q, k, (((1,), (1,)), ((), ())),
                                preferred_element_type=f32)           # [sq, sk]
            p = softmax_rows(s * ATTN_SCALE * keep + add)
            ctx = jnp.dot(p, v, preferred_element_type=f32)           # [sq, Dh]
            o = o + jnp.dot(ctx, wo_ref[blk * N_HEADS + h],
                            preferred_element_type=f32)               # [sq, D]
        return o

    def layer_norm(x_, idx):
        mu = jnp.mean(x_, axis=-1, keepdims=True)
        xc = x_ - mu
        var = jnp.mean(xc * xc, axis=-1, keepdims=True)
        return (xc * lax.rsqrt(var + LN_EPS) * vec_ref[VEC_LN_G + idx]
                + vec_ref[VEC_LN_B + idx])

    def feed_forward(x_, idx):
        h = jnp.dot(x_, ffw1_ref[idx], preferred_element_type=f32) + ffb1_ref[idx]
        h = jnp.maximum(h, 0.0)
        return (jnp.dot(h, ffw2_ref[idx], preferred_element_type=f32)
                + vec_ref[VEC_FF_B2 + idx])

    # ---- encoder stack (post-LN) --------------------------------------------
    for i in range(N_LAYERS):
        a = attention(x, x, src_keep, src_add, i)
        x = layer_norm(x + a, 2 * i)
        f = feed_forward(x, i)
        x = layer_norm(x + f, 2 * i + 1)

    # ---- decoder stack (post-LN) --------------------------------------------
    for i in range(N_LAYERS):
        a = attention(y, y, tgt_keep, tgt_add, N_LAYERS + i)
        y = layer_norm(y + a, 2 * N_LAYERS + 3 * i)
        c = attention(y, x, st_keep, st_add, 2 * N_LAYERS + i)
        y = layer_norm(y + c, 2 * N_LAYERS + 3 * i + 1)
        f = feed_forward(y, N_LAYERS + i)
        y = layer_norm(y + f, 2 * N_LAYERS + 3 * i + 2)

    dec_out_ref[...] = y

    # ---- generator + log_softmax (fused) -------------------------------------
    logits = jnp.dot(y, emb_ref[2], preferred_element_type=f32) + vec_ref[VEC_GEN_B]
    z = logits - jnp.max(logits, axis=-1, keepdims=True)
    out_ref[...] = z - jnp.log(jnp.sum(jnp.exp(z), axis=-1, keepdims=True))


# ------------------------------- forward -------------------------------------
def transformer_forward(params, src, tgt):
    B, s_src = src.shape
    _, s_tgt = tgt.shape

    # tiny int32 metadata in both layouts (so the kernel never transposes):
    # columns [B*S, 3] = [token, batch, pos];  rows [3, B*S] transposed.
    def make_meta(tok):
        b, s = tok.shape
        bat = jnp.broadcast_to(jnp.arange(b, dtype=jnp.int32)[:, None], (b, s))
        pos = jnp.broadcast_to(jnp.arange(s, dtype=jnp.int32)[None, :], (b, s))
        col = jnp.stack([tok.astype(jnp.int32), bat, pos], axis=-1).reshape(b * s, 3)
        return col, col.T

    src_col, src_row = make_meta(src)
    tgt_col, tgt_row = make_meta(tgt)

    kernel = functools.partial(_transformer_kernel, s_src=s_src, s_tgt=s_tgt)

    vmem = pltpu.MemorySpace.VMEM
    n_inputs = 4 + len(PARAM_ORDER)
    out_shape = (
        jax.ShapeDtypeStruct((B * s_tgt, VOCAB), jnp.float32),
        jax.ShapeDtypeStruct((B * s_tgt, D_MODEL), jnp.float32),
    )

    out, dec_out = pl.pallas_call(
        kernel,
        out_shape=out_shape,
        in_specs=[pl.BlockSpec(memory_space=vmem) for _ in range(n_inputs)],
        out_specs=(pl.BlockSpec(memory_space=vmem),
                   pl.BlockSpec(memory_space=vmem)),
    )(src_col, tgt_col, src_row, tgt_row,
      *[params[name] for name in PARAM_ORDER])

    return (out.reshape(B, s_tgt, VOCAB),
            dec_out.reshape(B, s_tgt, D_MODEL))


# --------------------------- parameter init -----------------------------------
def sinusoidal_pe(max_len, d_model):
    pos = jnp.arange(max_len, dtype=jnp.float32)[:, None]
    i = jnp.arange(0, d_model, 2, dtype=jnp.float32)[None, :]
    angle = pos / jnp.power(10000.0, i / d_model)
    pe = jnp.zeros((max_len, d_model), dtype=jnp.float32)
    pe = pe.at[:, 0::2].set(jnp.sin(angle))
    pe = pe.at[:, 1::2].set(jnp.cos(angle))
    return pe


def init_params(key):
    keys = jax.random.split(key, 8)

    def w(k, shape, scale=0.02):
        return jax.random.normal(k, shape, dtype=jnp.float32) * scale

    D, F, V, H, Dh = D_MODEL, D_FF, VOCAB, N_HEADS, D_HEAD
    params = {
        # per-head q/k/v projections, stacked over (attn block, proj, head)
        "attn_wqkv": w(keys[0], (N_ATTN * 3 * H, D, Dh)),
        "attn_bqkv": jnp.zeros((N_ATTN * 3 * H, 1, Dh), jnp.float32),
        # per-head output projections, stacked over (attn block, head)
        "attn_wo": w(keys[1], (N_ATTN * H, Dh, D)),
        "ff_w1": w(keys[2], (N_FF, D, F)),
        "ff_b1": jnp.zeros((N_FF, 1, F), jnp.float32),
        "ff_w2": w(keys[3], (N_FF, F, D)),
        # emb[0] = src embedding, emb[1] = tgt embedding, emb[2] = generator W
        "emb": w(keys[4], (3, V, D)),
        "pe": sinusoidal_pe(PE_LEN, D),
        # all [1, D] vector parameters in one slab
        "vec32": jnp.concatenate([
            jnp.ones((N_LN, 1, D), jnp.float32),      # LN gamma
            jnp.zeros((N_LN, 1, D), jnp.float32),     # LN beta
            jnp.zeros((N_ATTN, 1, D), jnp.float32),   # attention output bias
            jnp.zeros((N_FF, 1, D), jnp.float32),     # FF second bias
            jnp.zeros((1, 1, D), jnp.float32),        # generator bias
        ], axis=0),
    }
    assert params["vec32"].shape[0] == N_VEC32
    return params


# --------------------------------- main ---------------------------------------
if __name__ == "__main__":
    key = jax.random.PRNGKey(0)
    k_param, k_src, k_tgt = jax.random.split(key, 3)

    params = init_params(k_param)

    B, S_SRC, S_TGT = 2, 8, 8
    src = jax.random.randint(k_src, (B, S_SRC), 0, VOCAB, dtype=jnp.int32)
    tgt = jax.random.randint(k_tgt, (B, S_TGT), 0, VOCAB, dtype=jnp.int32)
    # ensure some pad tokens (pad_idx=1) so the masks are exercised
    src = src.at[:, -1].set(PAD_IDX)
    tgt = tgt.at[:, -1].set(PAD_IDX)

    fwd = jax.jit(transformer_forward)
    out, decoder_out = fwd(params, src, tgt)
    out = jax.block_until_ready(out)
    decoder_out = jax.block_until_ready(decoder_out)

    assert out.shape == (B, S_TGT, VOCAB)
    assert decoder_out.shape == (B, S_TGT, D_MODEL)
    assert bool(jnp.all(jnp.isfinite(out)))
    # log_softmax sanity: probabilities sum to 1 along the vocab axis
    assert jnp.allclose(jnp.exp(out).sum(-1), 1.0, atol=1e-4)

    print("KERNEL_OK")
</pallas_src>

<mosaic_0001>
module attributes {stable_mosaic.version = 11 : i64} {
  func.func @_transformer_kernel(%arg0: memref<16x3xi32, #tpu.memory_space<vmem>>, %arg1: memref<16x3xi32, #tpu.memory_space<vmem>>, %arg2: memref<3x16xi32, #tpu.memory_space<vmem>>, %arg3: memref<3x16xi32, #tpu.memory_space<vmem>>, %arg4: memref<72x32x8xf32, #tpu.memory_space<vmem>>, %arg5: memref<72x1x8xf32, #tpu.memory_space<vmem>>, %arg6: memref<24x8x32xf32, #tpu.memory_space<vmem>>, %arg7: memref<4x32x64xf32, #tpu.memory_space<vmem>>, %arg8: memref<4x1x64xf32, #tpu.memory_space<vmem>>, %arg9: memref<4x64x32xf32, #tpu.memory_space<vmem>>, %arg10: memref<3x32x32xf32, #tpu.memory_space<vmem>>, %arg11: memref<64x32xf32, #tpu.memory_space<vmem>>, %arg12: memref<31x1x32xf32, #tpu.memory_space<vmem>>, %arg13: memref<16x32xf32, #tpu.memory_space<vmem>>, %arg14: memref<16x32xf32, #tpu.memory_space<vmem>>) attributes {dimension_semantics = [], scalar_prefetch = 0 : i64, scratch_operands = 0 : i64, tpu.core_type = #tpu.core_type<tc>} {
    %c0 = arith.constant 0 : index
    %c0_0 = arith.constant 0 : index
    %0 = vector.load %arg0[%c0, %c0_0] : memref<16x3xi32, #tpu.memory_space<vmem>>, vector<16x1xi32>
    %c0_1 = arith.constant 0 : index
    %c1 = arith.constant 1 : index
    %1 = vector.load %arg0[%c0_1, %c1] : memref<16x3xi32, #tpu.memory_space<vmem>>, vector<16x1xi32>
    %c0_2 = arith.constant 0 : index
    %c2 = arith.constant 2 : index
    %2 = vector.load %arg0[%c0_2, %c2] : memref<16x3xi32, #tpu.memory_space<vmem>>, vector<16x1xi32>
    %c0_3 = arith.constant 0 : index
    %c0_4 = arith.constant 0 : index
    %3 = vector.load %arg1[%c0_3, %c0_4] : memref<16x3xi32, #tpu.memory_space<vmem>>, vector<16x1xi32>
    %c0_5 = arith.constant 0 : index
    %c1_6 = arith.constant 1 : index
    %4 = vector.load %arg1[%c0_5, %c1_6] : memref<16x3xi32, #tpu.memory_space<vmem>>, vector<16x1xi32>
    %c0_7 = arith.constant 0 : index
    %c2_8 = arith.constant 2 : index
    %5 = vector.load %arg1[%c0_7, %c2_8] : memref<16x3xi32, #tpu.memory_space<vmem>>, vector<16x1xi32>
    %c0_9 = arith.constant 0 : index
    %c0_10 = arith.constant 0 : index
    %6 = vector.load %arg2[%c0_9, %c0_10] : memref<3x16xi32, #tpu.memory_space<vmem>>, vector<1x16xi32>
    %c1_11 = arith.constant 1 : index
    %c0_12 = arith.constant 0 : index
    %7 = vector.load %arg2[%c1_11, %c0_12] : memref<3x16xi32, #tpu.memory_space<vmem>>, vector<1x16xi32>
    %c0_13 = arith.constant 0 : index
    %c0_14 = arith.constant 0 : index
    %8 = vector.load %arg3[%c0_13, %c0_14] : memref<3x16xi32, #tpu.memory_space<vmem>>, vector<1x16xi32>
    %c1_15 = arith.constant 1 : index
    %c0_16 = arith.constant 0 : index
    %9 = vector.load %arg3[%c1_15, %c0_16] : memref<3x16xi32, #tpu.memory_space<vmem>>, vector<1x16xi32>
    %10 = vector.broadcast %1 : vector<16x1xi32> to vector<16x16xi32>
    %11 = vector.broadcast %7 : vector<1x16xi32> to vector<16x16xi32>
    %12 = arith.cmpi eq, %10, %11 : vector<16x16xi32>
    %c1_i32 = arith.constant 1 : i32
    %13 = vector.broadcast %c1_i32 : i32 to vector<16x1xi32>
    %14 = arith.cmpi ne, %0, %13 : vector<16x1xi32>
    %c1_i32_17 = arith.constant 1 : i32
    %15 = vector.broadcast %c1_i32_17 : i32 to vector<1x16xi32>
    %16 = arith.cmpi ne, %6, %15 : vector<1x16xi32>
    %17 = vector.broadcast %14 : vector<16x1xi1> to vector<16x16xi1>
    %18 = vector.broadcast %16 : vector<1x16xi1> to vector<16x16xi1>
    %19 = arith.andi %17, %18 : vector<16x16xi1>
    %20 = arith.andi %19, %12 : vector<16x16xi1>
    %cst = arith.constant 0.000000e+00 : f32
    %cst_18 = arith.constant -1.000000e+09 : f32
    %21 = vector.broadcast %cst : f32 to vector<16x16xf32>
    %22 = vector.broadcast %cst_18 : f32 to vector<16x16xf32>
    %23 = arith.select %20, %21, %22 : vector<16x16xi1>, vector<16x16xf32>
    %cst_19 = arith.constant 0.000000e+00 : f32
    %cst_20 = arith.constant -1.000000e+09 : f32
    %24 = vector.broadcast %cst_19 : f32 to vector<16x16xf32>
    %25 = vector.broadcast %cst_20 : f32 to vector<16x16xf32>
    %26 = arith.select %12, %24, %25 : vector<16x16xi1>, vector<16x16xf32>
    %27 = arith.addf %23, %26 : vector<16x16xf32>
    %28 = arith.extui %20 : vector<16x16xi1> to vector<16x16xi32>
    %29 = arith.sitofp %28 : vector<16x16xi32> to vector<16x16xf32>
    %30 = vector.broadcast %4 : vector<16x1xi32> to vector<16x16xi32>
    %31 = vector.broadcast %9 : vector<1x16xi32> to vector<16x16xi32>
    %32 = arith.cmpi eq, %30, %31 : vector<16x16xi32>
    %c1_i32_21 = arith.constant 1 : i32
    %33 = vector.broadcast %c1_i32_21 : i32 to vector<16x1xi32>
    %34 = arith.cmpi ne, %3, %33 : vector<16x1xi32>
    %c1_i32_22 = arith.constant 1 : i32
    %35 = vector.broadcast %c1_i32_22 : i32 to vector<1x16xi32>
    %36 = arith.cmpi ne, %8, %35 : vector<1x16xi32>
    %37 = vector.broadcast %34 : vector<16x1xi1> to vector<16x16xi1>
    %38 = vector.broadcast %36 : vector<1x16xi1> to vector<16x16xi1>
    %39 = arith.andi %37, %38 : vector<16x16xi1>
    %40 = arith.andi %39, %32 : vector<16x16xi1>
    %41 = tpu.iota {dimensions = array<i32: 0>} : vector<16x16xi32>
    %42 = tpu.iota {dimensions = array<i32: 1>} : vector<16x16xi32>
    %43 = arith.cmpi sge, %41, %42 : vector<16x16xi32>
    %44 = arith.andi %40, %43 : vector<16x16xi1>
    %cst_23 = arith.constant 0.000000e+00 : f32
    %cst_24 = arith.constant -1.000000e+09 : f32
    %45 = vector.broadcast %cst_23 : f32 to vector<16x16xf32>
    %46 = vector.broadcast %cst_24 : f32 to vector<16x16xf32>
    %47 = arith.select %44, %45, %46 : vector<16x16xi1>, vector<16x16xf32>
    %cst_25 = arith.constant 0.000000e+00 : f32
    %cst_26 = arith.constant -1.000000e+09 : f32
    %48 = vector.broadcast %cst_25 : f32 to vector<16x16xf32>
    %49 = vector.broadcast %cst_26 : f32 to vector<16x16xf32>
    %50 = arith.select %32, %48, %49 : vector<16x16xi1>, vector<16x16xf32>
    %51 = arith.addf %47, %50 : vector<16x16xf32>
    %52 = arith.extui %44 : vector<16x16xi1> to vector<16x16xi32>
    %53 = arith.sitofp %52 : vector<16x16xi32> to vector<16x16xf32>
    %54 = vector.broadcast %4 : vector<16x1xi32> to vector<16x16xi32>
    %55 = vector.broadcast %7 : vector<1x16xi32> to vector<16x16xi32>
    %56 = arith.cmpi eq, %54, %55 : vector<16x16xi32>
    %c1_i32_27 = arith.constant 1 : i32
    %57 = vector.broadcast %c1_i32_27 : i32 to vector<16x1xi32>
    %58 = arith.cmpi ne, %3, %57 : vector<16x1xi32>
    %c1_i32_28 = arith.constant 1 : i32
    %59 = vector.broadcast %c1_i32_28 : i32 to vector<1x16xi32>
    %60 = arith.cmpi ne, %6, %59 : vector<1x16xi32>
    %61 = vector.broadcast %58 : vector<16x1xi1> to vector<16x16xi1>
    %62 = vector.broadcast %60 : vector<1x16xi1> to vector<16x16xi1>
    %63 = arith.andi %61, %62 : vector<16x16xi1>
    %64 = arith.andi %63, %56 : vector<16x16xi1>
    %cst_29 = arith.constant 0.000000e+00 : f32
    %cst_30 = arith.constant -1.000000e+09 : f32
    %65 = vector.broadcast %cst_29 : f32 to vector<16x16xf32>
    %66 = vector.broadcast %cst_30 : f32 to vector<16x16xf32>
    %67 = arith.select %64, %65, %66 : vector<16x16xi1>, vector<16x16xf32>
    %cst_31 = arith.constant 0.000000e+00 : f32
    %cst_32 = arith.constant -1.000000e+09 : f32
    %68 = vector.broadcast %cst_31 : f32 to vector<16x16xf32>
    %69 = vector.broadcast %cst_32 : f32 to vector<16x16xf32>
    %70 = arith.select %56, %68, %69 : vector<16x16xi1>, vector<16x16xf32>
    %71 = arith.addf %67, %70 : vector<16x16xf32>
    %72 = arith.extui %64 : vector<16x16xi1> to vector<16x16xi32>
    %73 = arith.sitofp %72 : vector<16x16xi32> to vector<16x16xf32>
    %74 = tpu.iota {dimensions = array<i32: 1>} : vector<16x32xi32>
    %75 = vector.broadcast %0 : vector<16x1xi32> to vector<16x32xi32>
    %76 = arith.cmpi eq, %74, %75 : vector<16x32xi32>
    %77 = arith.extui %76 : vector<16x32xi1> to vector<16x32xi32>
    %78 = arith.sitofp %77 : vector<16x32xi32> to vector<16x32xf32>
    %79 = tpu.iota {dimensions = array<i32: 1>} : vector<16x8xi32>
    %80 = vector.broadcast %2 : vector<16x1xi32> to vector<16x8xi32>
    %81 = arith.cmpi eq, %79, %80 : vector<16x8xi32>
    %82 = arith.extui %81 : vector<16x8xi1> to vector<16x8xi32>
    %83 = arith.sitofp %82 : vector<16x8xi32> to vector<16x8xf32>
    %c0_33 = arith.constant 0 : index
    %c0_34 = arith.constant 0 : index
    %c0_35 = arith.constant 0 : index
    %84 = vector.load %arg10[%c0_33, %c0_34, %c0_35] : memref<3x32x32xf32, #tpu.memory_space<vmem>>, vector<1x32x32xf32>
    %85 = vector.shape_cast %84 : vector<1x32x32xf32> to vector<32x32xf32>
    %cst_36 = arith.constant dense<0.000000e+00> : vector<16x32xf32>
    %86 = tpu.matmul %78, %85, %cst_36 {dimension_numbers = #tpu.dot_dimension_numbers<[1], [0], [0], [1], [0, 0, 1, 1], [], []>} : vector<16x32xf32>, vector<32x32xf32>, vector<16x32xf32> -> vector<16x32xf32>
    %cst_37 = arith.constant 5.65685415 : f32
    %87 = vector.broadcast %cst_37 : f32 to vector<16x32xf32>
    %88 = arith.mulf %86, %87 : vector<16x32xf32>
    %c0_38 = arith.constant 0 : index
    %c0_39 = arith.constant 0 : index
    %89 = vector.load %arg11[%c0_38, %c0_39] : memref<64x32xf32, #tpu.memory_space<vmem>>, vector<8x32xf32>
    %cst_40 = arith.constant dense<0.000000e+00> : vector<16x32xf32>
    %90 = tpu.matmul %83, %89, %cst_40 {dimension_numbers = #tpu.dot_dimension_numbers<[1], [0], [0], [1], [0, 0, 1, 1], [], []>} : vector<16x8xf32>, vector<8x32xf32>, vector<16x32xf32> -> vector<16x32xf32>
    %91 = arith.addf %88, %90 : vector<16x32xf32>
    %92 = tpu.iota {dimensions = array<i32: 1>} : vector<16x32xi32>
    %93 = vector.broadcast %3 : vector<16x1xi32> to vector<16x32xi32>
    %94 = arith.cmpi eq, %92, %93 : vector<16x32xi32>
    %95 = arith.extui %94 : vector<16x32xi1> to vector<16x32xi32>
    %96 = arith.sitofp %95 : vector<16x32xi32> to vector<16x32xf32>
    %97 = tpu.iota {dimensions = array<i32: 1>} : vector<16x8xi32>
    %98 = vector.broadcast %5 : vector<16x1xi32> to vector<16x8xi32>
    %99 = arith.cmpi eq, %97, %98 : vector<16x8xi32>
    %100 = arith.extui %99 : vector<16x8xi1> to vector<16x8xi32>
    %101 = arith.sitofp %100 : vector<16x8xi32> to vector<16x8xf32>
    %c1_41 = arith.constant 1 : index
    %c0_42 = arith.constant 0 : index
    %c0_43 = arith.constant 0 : index
    %102 = vector.load %arg10[%c1_41, %c0_42, %c0_43] : memref<3x32x32xf32, #tpu.memory_space<vmem>>, vector<1x32x32xf32>
    %103 = vector.shape_cast %102 : vector<1x32x32xf32> to vector<32x32xf32>
    %cst_44 = arith.constant dense<0.000000e+00> : vector<16x32xf32>
    %104 = tpu.matmul %96, %103, %cst_44 {dimension_numbers = #tpu.dot_dimension_numbers<[1], [0], [0], [1], [0, 0, 1, 1], [], []>} : vector<16x32xf32>, vector<32x32xf32>, vector<16x32xf32> -> vector<16x32xf32>
    %cst_45 = arith.constant 5.65685415 : f32
    %105 = vector.broadcast %cst_45 : f32 to vector<16x32xf32>
    %106 = arith.mulf %104, %105 : vector<16x32xf32>
    %c0_46 = arith.constant 0 : index
    %c0_47 = arith.constant 0 : index
    %107 = vector.load %arg11[%c0_46, %c0_47] : memref<64x32xf32, #tpu.memory_space<vmem>>, vector<8x32xf32>
    %cst_48 = arith.constant dense<0.000000e+00> : vector<16x32xf32>
    %108 = tpu.matmul %101, %107, %cst_48 {dimension_numbers = #tpu.dot_dimension_numbers<[1], [0], [0], [1], [0, 0, 1, 1], [], []>} : vector<16x8xf32>, vector<8x32xf32>, vector<16x32xf32> -> vector<16x32xf32>
    %109 = arith.addf %106, %108 : vector<16x32xf32>
    %c20 = arith.constant 20 : index
    %c0_49 = arith.constant 0 : index
    %c0_50 = arith.constant 0 : index
    %110 = vector.load %arg12[%c20, %c0_49, %c0_50] : memref<31x1x32xf32, #tpu.memory_space<vmem>>, vector<1x1x32xf32>
    %111 = vector.shape_cast %110 : vector<1x1x32xf32> to vector<1x32xf32>
    %c0_51 = arith.constant 0 : index
    %c0_52 = arith.constant 0 : index
    %c0_53 = arith.constant 0 : index
    %112 = vector.load %arg4[%c0_51, %c0_52, %c0_53] : memref<72x32x8xf32, #tpu.memory_space<vmem>>, vector<1x32x8xf32>
    %113 = vector.shape_cast %112 : vector<1x32x8xf32> to vector<32x8xf32>
    %cst_54 = arith.constant dense<0.000000e+00> : vector<16x8xf32>
    %114 = tpu.matmul %91, %113, %cst_54 {dimension_numbers = #tpu.dot_dimension_numbers<[1], [0], [0], [1], [0, 0, 1, 1], [], []>} : vector<16x32xf32>, vector<32x8xf32>, vector<16x8xf32> -> vector<16x8xf32>
    %c0_55 = arith.constant 0 : index
    %c0_56 = arith.constant 0 : index
    %c0_57 = arith.constant 0 : index
    %115 = vector.load %arg5[%c0_55, %c0_56, %c0_57] : memref<72x1x8xf32, #tpu.memory_space<vmem>>, vector<1x1x8xf32>
    %116 = vector.shape_cast %115 : vector<1x1x8xf32> to vector<1x8xf32>
    %117 = vector.broadcast %116 : vector<1x8xf32> to vector<16x8xf32>
    %118 = arith.addf %114, %117 : vector<16x8xf32>
    %c4 = arith.constant 4 : index
    %c0_58 = arith.constant 0 : index
    %c0_59 = arith.constant 0 : index
    %119 = vector.load %arg4[%c4, %c0_58, %c0_59] : memref<72x32x8xf32, #tpu.memory_space<vmem>>, vector<1x32x8xf32>
    %120 = vector.shape_cast %119 : vector<1x32x8xf32> to vector<32x8xf32>
    %cst_60 = arith.constant dense<0.000000e+00> : vector<16x8xf32>
    %121 = tpu.matmul %91, %120, %cst_60 {dimension_numbers = #tpu.dot_dimension_numbers<[1], [0], [0], [1], [0, 0, 1, 1], [], []>} : vector<16x32xf32>, vector<32x8xf32>, vector<16x8xf32> -> vector<16x8xf32>
    %c4_61 = arith.constant 4 : index
    %c0_62 = arith.constant 0 : index
    %c0_63 = arith.constant 0 : index
    %122 = vector.load %arg5[%c4_61, %c0_62, %c0_63] : memref<72x1x8xf32, #tpu.memory_space<vmem>>, vector<1x1x8xf32>
    %123 = vector.shape_cast %122 : vector<1x1x8xf32> to vector<1x8xf32>
    %124 = vector.broadcast %123 : vector<1x8xf32> to vector<16x8xf32>
    %125 = arith.addf %121, %124 : vector<16x8xf32>
    %c8 = arith.constant 8 : index
    %c0_64 = arith.constant 0 : index
    %c0_65 = arith.constant 0 : index
    %126 = vector.load %arg4[%c8, %c0_64, %c0_65] : memref<72x32x8xf32, #tpu.memory_space<vmem>>, vector<1x32x8xf32>
    %127 = vector.shape_cast %126 : vector<1x32x8xf32> to vector<32x8xf32>
    %cst_66 = arith.constant dense<0.000000e+00> : vector<16x8xf32>
    %128 = tpu.matmul %91, %127, %cst_66 {dimension_numbers = #tpu.dot_dimension_numbers<[1], [0], [0], [1], [0, 0, 1, 1], [], []>} : vector<16x32xf32>, vector<32x8xf32>, vector<16x8xf32> -> vector<16x8xf32>
    %c8_67 = arith.constant 8 : index
    %c0_68 = arith.constant 0 : index
    %c0_69 = arith.constant 0 : index
    %129 = vector.load %arg5[%c8_67, %c0_68, %c0_69] : memref<72x1x8xf32, #tpu.memory_space<vmem>>, vector<1x1x8xf32>
    %130 = vector.shape_cast %129 : vector<1x1x8xf32> to vector<1x8xf32>
    %131 = vector.broadcast %130 : vector<1x8xf32> to vector<16x8xf32>
    %132 = arith.addf %128, %131 : vector<16x8xf32>
    %cst_70 = arith.constant dense<0.000000e+00> : vector<16x16xf32>
    %133 = tpu.matmul %118, %125, %cst_70 {dimension_numbers = #tpu.dot_dimension_numbers<[1], [1], [0], [0], [0, 0, 1, 0], [], []>} : vector<16x8xf32>, vector<16x8xf32>, vector<16x16xf32> -> vector<16x16xf32>
    %cst_71 = arith.constant 0.353553385 : f32
    %134 = vector.broadcast %cst_71 : f32 to vector<16x16xf32>
    %135 = arith.mulf %133, %134 : vector<16x16xf32>
    %136 = arith.mulf %135, %29 : vector<16x16xf32>
    %137 = arith.addf %136, %27 : vector<16x16xf32>
    %cst_72 = arith.constant dense<0xFF800000> : vector<16xf32>
    %138 = vector.multi_reduction <maximumf>, %137, %cst_72 [1] : vector<16x16xf32> to vector<16xf32>
    %139 = vector.shape_cast %138 : vector<16xf32> to vector<16x1xf32>
    %140 = vector.broadcast %139 : vector<16x1xf32> to vector<16x16xf32>
    %141 = arith.subf %137, %140 : vector<16x16xf32>
    %142 = math.exp %141 : vector<16x16xf32>
    %cst_73 = arith.constant dense<0.000000e+00> : vector<16xf32>
    %143 = vector.multi_reduction <add>, %142, %cst_73 [1] : vector<16x16xf32> to vector<16xf32>
    %144 = vector.shape_cast %143 : vector<16xf32> to vector<16x1xf32>
    %145 = vector.broadcast %144 : vector<16x1xf32> to vector<16x16xf32>
    %146 = arith.divf %142, %145 : vector<16x16xf32>
    %cst_74 = arith.constant dense<0.000000e+00> : vector<16x8xf32>
    %147 = tpu.matmul %146, %132, %cst_74 {dimension_numbers = #tpu.dot_dimension_numbers<[1], [0], [0], [1], [0, 0, 1, 1], [], []>} : vector<16x16xf32>, vector<16x8xf32>, vector<16x8xf32> -> vector<16x8xf32>
    %c0_75 = arith.constant 0 : index
    %c0_76 = arith.constant 0 : index
    %c0_77 = arith.constant 0 : index
    %148 = vector.load %arg6[%c0_75, %c0_76, %c0_77] : memref<24x8x32xf32, #tpu.memory_space<vmem>>, vector<1x8x32xf32>
    %149 = vector.shape_cast %148 : vector<1x8x32xf32> to vector<8x32xf32>
    %cst_78 = arith.constant dense<0.000000e+00> : vector<16x32xf32>
    %150 = tpu.matmul %147, %149, %cst_78 {dimension_numbers = #tpu.dot_dimension_numbers<[1], [0], [0], [1], [0, 0, 1, 1], [], []>} : vector<16x8xf32>, vector<8x32xf32>, vector<16x32xf32> -> vector<16x32xf32>
    %151 = vector.broadcast %111 : vector<1x32xf32> to vector<16x32xf32>
    %152 = arith.addf %151, %150 : vector<16x32xf32>
    %c1_79 = arith.constant 1 : index
    %c0_80 = arith.constant 0 : index
    %c0_81 = arith.constant 0 : index
    %153 = vector.load %arg4[%c1_79, %c0_80, %c0_81] : memref<72x32x8xf32, #tpu.memory_space<vmem>>, vector<1x32x8xf32>
    %154 = vector.shape_cast %153 : vector<1x32x8xf32> to vector<32x8xf32>
    %cst_82 = arith.constant dense<0.000000e+00> : vector<16x8xf32>
    %155 = tpu.matmul %91, %154, %cst_82 {dimension_numbers = #tpu.dot_dimension_numbers<[1], [0], [0], [1], [0, 0, 1, 1], [], []>} : vector<16x32xf32>, vector<32x8xf32>, vector<16x8xf32> -> vector<16x8xf32>
    %c1_83 = arith.constant 1 : index
    %c0_84 = arith.constant 0 : index
    %c0_85 = arith.constant 0 : index
    %156 = vector.load %arg5[%c1_83, %c0_84, %c0_85] : memref<72x1x8xf32, #tpu.memory_space<vmem>>, vector<1x1x8xf32>
    %157 = vector.shape_cast %156 : vector<1x1x8xf32> to vector<1x8xf32>
    %158 = vector.broadcast %157 : vector<1x8xf32> to vector<16x8xf32>
    %159 = arith.addf %155, %158 : vector<16x8xf32>
    %c5 = arith.constant 5 : index
    %c0_86 = arith.constant 0 : index
    %c0_87 = arith.constant 0 : index
    %160 = vector.load %arg4[%c5, %c0_86, %c0_87] : memref<72x32x8xf32, #tpu.memory_space<vmem>>, vector<1x32x8xf32>
    %161 = vector.shape_cast %160 : vector<1x32x8xf32> to vector<32x8xf32>
    %cst_88 = arith.constant dense<0.000000e+00> : vector<16x8xf32>
    %162 = tpu.matmul %91, %161, %cst_88 {dimension_numbers = #tpu.dot_dimension_numbers<[1], [0], [0], [1], [0, 0, 1, 1], [], []>} : vector<16x32xf32>, vector<32x8xf32>, vector<16x8xf32> -> vector<16x8xf32>
    %c5_89 = arith.constant 5 : index
    %c0_90 = arith.constant 0 : index
    %c0_91 = arith.constant 0 : index
    %163 = vector.load %arg5[%c5_89, %c0_90, %c0_91] : memref<72x1x8xf32, #tpu.memory_space<vmem>>, vector<1x1x8xf32>
    %164 = vector.shape_cast %163 : vector<1x1x8xf32> to vector<1x8xf32>
    %165 = vector.broadcast %164 : vector<1x8xf32> to vector<16x8xf32>
    %166 = arith.addf %162, %165 : vector<16x8xf32>
    %c9 = arith.constant 9 : index
    %c0_92 = arith.constant 0 : index
    %c0_93 = arith.constant 0 : index
    %167 = vector.load %arg4[%c9, %c0_92, %c0_93] : memref<72x32x8xf32, #tpu.memory_space<vmem>>, vector<1x32x8xf32>
    %168 = vector.shape_cast %167 : vector<1x32x8xf32> to vector<32x8xf32>
    %cst_94 = arith.constant dense<0.000000e+00> : vector<16x8xf32>
    %169 = tpu.matmul %91, %168, %cst_94 {dimension_numbers = #tpu.dot_dimension_numbers<[1], [0], [0], [1], [0, 0, 1, 1], [], []>} : vector<16x32xf32>, vector<32x8xf32>, vector<16x8xf32> -> vector<16x8xf32>
    %c9_95 = arith.constant 9 : index
    %c0_96 = arith.constant 0 : index
    %c0_97 = arith.constant 0 : index
    %170 = vector.load %arg5[%c9_95, %c0_96, %c0_97] : memref<72x1x8xf32, #tpu.memory_space<vmem>>, vector<1x1x8xf32>
    %171 = vector.shape_cast %170 : vector<1x1x8xf32> to vector<1x8xf32>
    %172 = vector.broadcast %171 : vector<1x8xf32> to vector<16x8xf32>
    %173 = arith.addf %169, %172 : vector<16x8xf32>
    %cst_98 = arith.constant dense<0.000000e+00> : vector<16x16xf32>
    %174 = tpu.matmul %159, %166, %cst_98 {dimension_numbers = #tpu.dot_dimension_numbers<[1], [1], [0], [0], [0, 0, 1, 0], [], []>} : vector<16x8xf32>, vector<16x8xf32>, vector<16x16xf32> -> vector<16x16xf32>
    %cst_99 = arith.constant 0.353553385 : f32
    %175 = vector.broadcast %cst_99 : f32 to vector<16x16xf32>
    %176 = arith.mulf %174, %175 : vector<16x16xf32>
    %177 = arith.mulf %176, %29 : vector<16x16xf32>
    %178 = arith.addf %177, %27 : vector<16x16xf32>
    %cst_100 = arith.constant dense<0xFF800000> : vector<16xf32>
    %179 = vector.multi_reduction <maximumf>, %178, %cst_100 [1] : vector<16x16xf32> to vector<16xf32>
    %180 = vector.shape_cast %179 : vector<16xf32> to vector<16x1xf32>
    %181 = vector.broadcast %180 : vector<16x1xf32> to vector<16x16xf32>
    %182 = arith.subf %178, %181 : vector<16x16xf32>
    %183 = math.exp %182 : vector<16x16xf32>
    %cst_101 = arith.constant dense<0.000000e+00> : vector<16xf32>
    %184 = vector.multi_reduction <add>, %183, %cst_101 [1] : vector<16x16xf32> to vector<16xf32>
    %185 = vector.shape_cast %184 : vector<16xf32> to vector<16x1xf32>
    %186 = vector.broadcast %185 : vector<16x1xf32> to vector<16x16xf32>
    %187 = arith.divf %183, %186 : vector<16x16xf32>
    %cst_102 = arith.constant dense<0.000000e+00> : vector<16x8xf32>
    %188 = tpu.matmul %187, %173, %cst_102 {dimension_numbers = #tpu.dot_dimension_numbers<[1], [0], [0], [1], [0, 0, 1, 1], [], []>} : vector<16x16xf32>, vector<16x8xf32>, vector<16x8xf32> -> vector<16x8xf32>
    %c1_103 = arith.constant 1 : index
    %c0_104 = arith.constant 0 : index
    %c0_105 = arith.constant 0 : index
    %189 = vector.load %arg6[%c1_103, %c0_104, %c0_105] : memref<24x8x32xf32, #tpu.memory_space<vmem>>, vector<1x8x32xf32>
    %190 = vector.shape_cast %189 : vector<1x8x32xf32> to vector<8x32xf32>
    %cst_106 = arith.constant dense<0.000000e+00> : vector<16x32xf32>
    %191 = tpu.matmul %188, %190, %cst_106 {dimension_numbers = #tpu.dot_dimension_numbers<[1], [0], [0], [1], [0, 0, 1, 1], [], []>} : vector<16x8xf32>, vector<8x32xf32>, vector<16x32xf32> -> vector<16x32xf32>
    %192 = arith.addf %152, %191 : vector<16x32xf32>
    %c2_107 = arith.constant 2 : index
    %c0_108 = arith.constant 0 : index
    %c0_109 = arith.constant 0 : index
    %193 = vector.load %arg4[%c2_107, %c0_108, %c0_109] : memref<72x32x8xf32, #tpu.memory_space<vmem>>, vector<1x32x8xf32>
    %194 = vector.shape_cast %193 : vector<1x32x8xf32> to vector<32x8xf32>
    %cst_110 = arith.constant dense<0.000000e+00> : vector<16x8xf32>
    %195 = tpu.matmul %91, %194, %cst_110 {dimension_numbers = #tpu.dot_dimension_numbers<[1], [0], [0], [1], [0, 0, 1, 1], [], []>} : vector<16x32xf32>, vector<32x8xf32>, vector<16x8xf32> -> vector<16x8xf32>
    %c2_111 = arith.constant 2 : index
    %c0_112 = arith.constant 0 : index
    %c0_113 = arith.constant 0 : index
    %196 = vector.load %arg5[%c2_111, %c0_112, %c0_113] : memref<72x1x8xf32, #tpu.memory_space<vmem>>, vector<1x1x8xf32>
    %197 = vector.shape_cast %196 : vector<1x1x8xf32> to vector<1x8xf32>
    %198 = vector.broadcast %197 : vector<1x8xf32> to vector<16x8xf32>
    %199 = arith.addf %195, %198 : vector<16x8xf32>
    %c6 = arith.constant 6 : index
    %c0_114 = arith.constant 0 : index
    %c0_115 = arith.constant 0 : index
    %200 = vector.load %arg4[%c6, %c0_114, %c0_115] : memref<72x32x8xf32, #tpu.memory_space<vmem>>, vector<1x32x8xf32>
    %201 = vector.shape_cast %200 : vector<1x32x8xf32> to vector<32x8xf32>
    %cst_116 = arith.constant dense<0.000000e+00> : vector<16x8xf32>
    %202 = tpu.matmul %91, %201, %cst_116 {dimension_numbers = #tpu.dot_dimension_numbers<[1], [0], [0], [1], [0, 0, 1, 1], [], []>} : vector<16x32xf32>, vector<32x8xf32>, vector<16x8xf32> -> vector<16x8xf32>
    %c6_117 = arith.constant 6 : index
    %c0_118 = arith.constant 0 : index
    %c0_119 = arith.constant 0 : index
    %203 = vector.load %arg5[%c6_117, %c0_118, %c0_119] : memref<72x1x8xf32, #tpu.memory_space<vmem>>, vector<1x1x8xf32>
    %204 = vector.shape_cast %203 : vector<1x1x8xf32> to vector<1x8xf32>
    %205 = vector.broadcast %204 : vector<1x8xf32> to vector<16x8xf32>
    %206 = arith.addf %202, %205 : vector<16x8xf32>
    %c10 = arith.constant 10 : index
    %c0_120 = arith.constant 0 : index
    %c0_121 = arith.constant 0 : index
    %207 = vector.load %arg4[%c10, %c0_120, %c0_121] : memref<72x32x8xf32, #tpu.memory_space<vmem>>, vector<1x32x8xf32>
    %208 = vector.shape_cast %207 : vector<1x32x8xf32> to vector<32x8xf32>
    %cst_122 = arith.constant dense<0.000000e+00> : vector<16x8xf32>
    %209 = tpu.matmul %91, %208, %cst_122 {dimension_numbers = #tpu.dot_dimension_numbers<[1], [0], [0], [1], [0, 0, 1, 1], [], []>} : vector<16x32xf32>, vector<32x8xf32>, vector<16x8xf32> -> vector<16x8xf32>
    %c10_123 = arith.constant 10 : index
    %c0_124 = arith.constant 0 : index
    %c0_125 = arith.constant 0 : index
    %210 = vector.load %arg5[%c10_123, %c0_124, %c0_125] : memref<72x1x8xf32, #tpu.memory_space<vmem>>, vector<1x1x8xf32>
    %211 = vector.shape_cast %210 : vector<1x1x8xf32> to vector<1x8xf32>
    %212 = vector.broadcast %211 : vector<1x8xf32> to vector<16x8xf32>
    %213 = arith.addf %209, %212 : vector<16x8xf32>
    %cst_126 = arith.constant dense<0.000000e+00> : vector<16x16xf32>
    %214 = tpu.matmul %199, %206, %cst_126 {dimension_numbers = #tpu.dot_dimension_numbers<[1], [1], [0], [0], [0, 0, 1, 0], [], []>} : vector<16x8xf32>, vector<16x8xf32>, vector<16x16xf32> -> vector<16x16xf32>
    %cst_127 = arith.constant 0.353553385 : f32
    %215 = vector.broadcast %cst_127 : f32 to vector<16x16xf32>
    %216 = arith.mulf %214, %215 : vector<16x16xf32>
    %217 = arith.mulf %216, %29 : vector<16x16xf32>
    %218 = arith.addf %217, %27 : vector<16x16xf32>
    %cst_128 = arith.constant dense<0xFF800000> : vector<16xf32>
    %219 = vector.multi_reduction <maximumf>, %218, %cst_128 [1] : vector<16x16xf32> to vector<16xf32>
    %220 = vector.shape_cast %219 : vector<16xf32> to vector<16x1xf32>
    %221 = vector.broadcast %220 : vector<16x1xf32> to vector<16x16xf32>
    %222 = arith.subf %218, %221 : vector<16x16xf32>
    %223 = math.exp %222 : vector<16x16xf32>
    %cst_129 = arith.constant dense<0.000000e+00> : vector<16xf32>
    %224 = vector.multi_reduction <add>, %223, %cst_129 [1] : vector<16x16xf32> to vector<16xf32>
    %225 = vector.shape_cast %224 : vector<16xf32> to vector<16x1xf32>
    %226 = vector.broadcast %225 : vector<16x1xf32> to vector<16x16xf32>
    %227 = arith.divf %223, %226 : vector<16x16xf32>
    %cst_130 = arith.constant dense<0.000000e+00> : vector<16x8xf32>
    %228 = tpu.matmul %227, %213, %cst_130 {dimension_numbers = #tpu.dot_dimension_numbers<[1], [0], [0], [1], [0, 0, 1, 1], [], []>} : vector<16x16xf32>, vector<16x8xf32>, vector<16x8xf32> -> vector<16x8xf32>
    %c2_131 = arith.constant 2 : index
    %c0_132 = arith.constant 0 : index
    %c0_133 = arith.constant 0 : index
    %229 = vector.load %arg6[%c2_131, %c0_132, %c0_133] : memref<24x8x32xf32, #tpu.memory_space<vmem>>, vector<1x8x32xf32>
    %230 = vector.shape_cast %229 : vector<1x8x32xf32> to vector<8x32xf32>
    %cst_134 = arith.constant dense<0.000000e+00> : vector<16x32xf32>
    %231 = tpu.matmul %228, %230, %cst_134 {dimension_numbers = #tpu.dot_dimension_numbers<[1], [0], [0], [1], [0, 0, 1, 1], [], []>} : vector<16x8xf32>, vector<8x32xf32>, vector<16x32xf32> -> vector<16x32xf32>
    %232 = arith.addf %192, %231 : vector<16x32xf32>
    %c3 = arith.constant 3 : index
    %c0_135 = arith.constant 0 : index
    %c0_136 = arith.constant 0 : index
    %233 = vector.load %arg4[%c3, %c0_135, %c0_136] : memref<72x32x8xf32, #tpu.memory_space<vmem>>, vector<1x32x8xf32>
    %234 = vector.shape_cast %233 : vector<1x32x8xf32> to vector<32x8xf32>
    %cst_137 = arith.constant dense<0.000000e+00> : vector<16x8xf32>
    %235 = tpu.matmul %91, %234, %cst_137 {dimension_numbers = #tpu.dot_dimension_numbers<[1], [0], [0], [1], [0, 0, 1, 1], [], []>} : vector<16x32xf32>, vector<32x8xf32>, vector<16x8xf32> -> vector<16x8xf32>
    %c3_138 = arith.constant 3 : index
    %c0_139 = arith.constant 0 : index
    %c0_140 = arith.constant 0 : index
    %236 = vector.load %arg5[%c3_138, %c0_139, %c0_140] : memref<72x1x8xf32, #tpu.memory_space<vmem>>, vector<1x1x8xf32>
    %237 = vector.shape_cast %236 : vector<1x1x8xf32> to vector<1x8xf32>
    %238 = vector.broadcast %237 : vector<1x8xf32> to vector<16x8xf32>
    %239 = arith.addf %235, %238 : vector<16x8xf32>
    %c7 = arith.constant 7 : index
    %c0_141 = arith.constant 0 : index
    %c0_142 = arith.constant 0 : index
    %240 = vector.load %arg4[%c7, %c0_141, %c0_142] : memref<72x32x8xf32, #tpu.memory_space<vmem>>, vector<1x32x8xf32>
    %241 = vector.shape_cast %240 : vector<1x32x8xf32> to vector<32x8xf32>
    %cst_143 = arith.constant dense<0.000000e+00> : vector<16x8xf32>
    %242 = tpu.matmul %91, %241, %cst_143 {dimension_numbers = #tpu.dot_dimension_numbers<[1], [0], [0], [1], [0, 0, 1, 1], [], []>} : vector<16x32xf32>, vector<32x8xf32>, vector<16x8xf32> -> vector<16x8xf32>
    %c7_144 = arith.constant 7 : index
    %c0_145 = arith.constant 0 : index
    %c0_146 = arith.constant 0 : index
    %243 = vector.load %arg5[%c7_144, %c0_145, %c0_146] : memref<72x1x8xf32, #tpu.memory_space<vmem>>, vector<1x1x8xf32>
    %244 = vector.shape_cast %243 : vector<1x1x8xf32> to vector<1x8xf32>
    %245 = vector.broadcast %244 : vector<1x8xf32> to vector<16x8xf32>
    %246 = arith.addf %242, %245 : vector<16x8xf32>
    %c11 = arith.constant 11 : index
    %c0_147 = arith.constant 0 : index
    %c0_148 = arith.constant 0 : index
    %247 = vector.load %arg4[%c11, %c0_147, %c0_148] : memref<72x32x8xf32, #tpu.memory_space<vmem>>, vector<1x32x8xf32>
    %248 = vector.shape_cast %247 : vector<1x32x8xf32> to vector<32x8xf32>
    %cst_149 = arith.constant dense<0.000000e+00> : vector<16x8xf32>
    %249 = tpu.matmul %91, %248, %cst_149 {dimension_numbers = #tpu.dot_dimension_numbers<[1], [0], [0], [1], [0, 0, 1, 1], [], []>} : vector<16x32xf32>, vector<32x8xf32>, vector<16x8xf32> -> vector<16x8xf32>
    %c11_150 = arith.constant 11 : index
    %c0_151 = arith.constant 0 : index
    %c0_152 = arith.constant 0 : index
    %250 = vector.load %arg5[%c11_150, %c0_151, %c0_152] : memref<72x1x8xf32, #tpu.memory_space<vmem>>, vector<1x1x8xf32>
    %251 = vector.shape_cast %250 : vector<1x1x8xf32> to vector<1x8xf32>
    %252 = vector.broadcast %251 : vector<1x8xf32> to vector<16x8xf32>
    %253 = arith.addf %249, %252 : vector<16x8xf32>
    %cst_153 = arith.constant dense<0.000000e+00> : vector<16x16xf32>
    %254 = tpu.matmul %239, %246, %cst_153 {dimension_numbers = #tpu.dot_dimension_numbers<[1], [1], [0], [0], [0, 0, 1, 0], [], []>} : vector<16x8xf32>, vector<16x8xf32>, vector<16x16xf32> -> vector<16x16xf32>
    %cst_154 = arith.constant 0.353553385 : f32
    %255 = vector.broadcast %cst_154 : f32 to vector<16x16xf32>
    %256 = arith.mulf %254, %255 : vector<16x16xf32>
    %257 = arith.mulf %256, %29 : vector<16x16xf32>
    %258 = arith.addf %257, %27 : vector<16x16xf32>
    %cst_155 = arith.constant dense<0xFF800000> : vector<16xf32>
    %259 = vector.multi_reduction <maximumf>, %258, %cst_155 [1] : vector<16x16xf32> to vector<16xf32>
    %260 = vector.shape_cast %259 : vector<16xf32> to vector<16x1xf32>
    %261 = vector.broadcast %260 : vector<16x1xf32> to vector<16x16xf32>
    %262 = arith.subf %258, %261 : vector<16x16xf32>
    %263 = math.exp %262 : vector<16x16xf32>
    %cst_156 = arith.constant dense<0.000000e+00> : vector<16xf32>
    %264 = vector.multi_reduction <add>, %263, %cst_156 [1] : vector<16x16xf32> to vector<16xf32>
    %265 = vector.shape_cast %264 : vector<16xf32> to vector<16x1xf32>
    %266 = vector.broadcast %265 : vector<16x1xf32> to vector<16x16xf32>
    %267 = arith.divf %263, %266 : vector<16x16xf32>
    %cst_157 = arith.constant dense<0.000000e+00> : vector<16x8xf32>
    %268 = tpu.matmul %267, %253, %cst_157 {dimension_numbers = #tpu.dot_dimension_numbers<[1], [0], [0], [1], [0, 0, 1, 1], [], []>} : vector<16x16xf32>, vector<16x8xf32>, vector<16x8xf32> -> vector<16x8xf32>
    %c3_158 = arith.constant 3 : index
    %c0_159 = arith.constant 0 : index
    %c0_160 = arith.constant 0 : index
    %269 = vector.load %arg6[%c3_158, %c0_159, %c0_160] : memref<24x8x32xf32, #tpu.memory_space<vmem>>, vector<1x8x32xf32>
    %270 = vector.shape_cast %269 : vector<1x8x32xf32> to vector<8x32xf32>
    %cst_161 = arith.constant dense<0.000000e+00> : vector<16x32xf32>
    %271 = tpu.matmul %268, %270, %cst_161 {dimension_numbers = #tpu.dot_dimension_numbers<[1], [0], [0], [1], [0, 0, 1, 1], [], []>} : vector<16x8xf32>, vector<8x32xf32>, vector<16x32xf32> -> vector<16x32xf32>
    %272 = arith.addf %232, %271 : vector<16x32xf32>
    %273 = arith.addf %91, %272 : vector<16x32xf32>
    %cst_162 = arith.constant dense<0.000000e+00> : vector<16xf32>
    %274 = vector.multi_reduction <add>, %273, %cst_162 [1] : vector<16x32xf32> to vector<16xf32>
    %275 = vector.shape_cast %274 : vector<16xf32> to vector<16x1xf32>
    %cst_163 = arith.constant 3.200000e+01 : f32
    %276 = vector.broadcast %cst_163 : f32 to vector<16x1xf32>
    %277 = arith.divf %275, %276 : vector<16x1xf32>
    %278 = vector.broadcast %277 : vector<16x1xf32> to vector<16x32xf32>
    %279 = arith.subf %273, %278 : vector<16x32xf32>
    %280 = arith.mulf %279, %279 : vector<16x32xf32>
    %cst_164 = arith.constant dense<0.000000e+00> : vector<16xf32>
    %281 = vector.multi_reduction <add>, %280, %cst_164 [1] : vector<16x32xf32> to vector<16xf32>
    %282 = vector.shape_cast %281 : vector<16xf32> to vector<16x1xf32>
    %cst_165 = arith.constant 3.200000e+01 : f32
    %283 = vector.broadcast %cst_165 : f32 to vector<16x1xf32>
    %284 = arith.divf %282, %283 : vector<16x1xf32>
    %cst_166 = arith.constant 9.99999974E-6 : f32
    %285 = vector.broadcast %cst_166 : f32 to vector<16x1xf32>
    %286 = arith.addf %284, %285 : vector<16x1xf32>
    %287 = math.rsqrt %286 : vector<16x1xf32>
    %288 = vector.broadcast %287 : vector<16x1xf32> to vector<16x32xf32>
    %289 = arith.mulf %279, %288 : vector<16x32xf32>
    %c0_167 = arith.constant 0 : index
    %c0_168 = arith.constant 0 : index
    %c0_169 = arith.constant 0 : index
    %290 = vector.load %arg12[%c0_167, %c0_168, %c0_169] : memref<31x1x32xf32, #tpu.memory_space<vmem>>, vector<1x1x32xf32>
    %291 = vector.shape_cast %290 : vector<1x1x32xf32> to vector<1x32xf32>
    %292 = vector.broadcast %291 : vector<1x32xf32> to vector<16x32xf32>
    %293 = arith.mulf %289, %292 : vector<16x32xf32>
    %c10_170 = arith.constant 10 : index
    %c0_171 = arith.constant 0 : index
    %c0_172 = arith.constant 0 : index
    %294 = vector.load %arg12[%c10_170, %c0_171, %c0_172] : memref<31x1x32xf32, #tpu.memory_space<vmem>>, vector<1x1x32xf32>
    %295 = vector.shape_cast %294 : vector<1x1x32xf32> to vector<1x32xf32>
    %296 = vector.broadcast %295 : vector<1x32xf32> to vector<16x32xf32>
    %297 = arith.addf %293, %296 : vector<16x32xf32>
    %c0_173 = arith.constant 0 : index
    %c0_174 = arith.constant 0 : index
    %c0_175 = arith.constant 0 : index
    %298 = vector.load %arg7[%c0_173, %c0_174, %c0_175] : memref<4x32x64xf32, #tpu.memory_space<vmem>>, vector<1x32x64xf32>
    %299 = vector.shape_cast %298 : vector<1x32x64xf32> to vector<32x64xf32>
    %cst_176 = arith.constant dense<0.000000e+00> : vector<16x64xf32>
    %300 = tpu.matmul %297, %299, %cst_176 {dimension_numbers = #tpu.dot_dimension_numbers<[1], [0], [0], [1], [0, 0, 1, 1], [], []>} : vector<16x32xf32>, vector<32x64xf32>, vector<16x64xf32> -> vector<16x64xf32>
    %c0_177 = arith.constant 0 : index
    %c0_178 = arith.constant 0 : index
    %c0_179 = arith.constant 0 : index
    %301 = vector.load %arg8[%c0_177, %c0_178, %c0_179] : memref<4x1x64xf32, #tpu.memory_space<vmem>>, vector<1x1x64xf32>
    %302 = vector.shape_cast %301 : vector<1x1x64xf32> to vector<1x64xf32>
    %303 = vector.broadcast %302 : vector<1x64xf32> to vector<16x64xf32>
    %304 = arith.addf %300, %303 : vector<16x64xf32>
    %cst_180 = arith.constant 0.000000e+00 : f32
    %305 = vector.broadcast %cst_180 : f32 to vector<16x64xf32>
    %306 = arith.maximumf %304, %305 : vector<16x64xf32>
    %c0_181 = arith.constant 0 : index
    %c0_182 = arith.constant 0 : index
    %c0_183 = arith.constant 0 : index
    %307 = vector.load %arg9[%c0_181, %c0_182, %c0_183] : memref<4x64x32xf32, #tpu.memory_space<vmem>>, vector<1x64x32xf32>
    %308 = vector.shape_cast %307 : vector<1x64x32xf32> to vector<64x32xf32>
    %cst_184 = arith.constant dense<0.000000e+00> : vector<16x32xf32>
    %309 = tpu.matmul %306, %308, %cst_184 {dimension_numbers = #tpu.dot_dimension_numbers<[1], [0], [0], [1], [0, 0, 1, 1], [], []>} : vector<16x64xf32>, vector<64x32xf32>, vector<16x32xf32> -> vector<16x32xf32>
    %c26 = arith.constant 26 : index
    %c0_185 = arith.constant 0 : index
    %c0_186 = arith.constant 0 : index
    %310 = vector.load %arg12[%c26, %c0_185, %c0_186] : memref<31x1x32xf32, #tpu.memory_space<vmem>>, vector<1x1x32xf32>
    %311 = vector.shape_cast %310 : vector<1x1x32xf32> to vector<1x32xf32>
    %312 = vector.broadcast %311 : vector<1x32xf32> to vector<16x32xf32>
    %313 = arith.addf %309, %312 : vector<16x32xf32>
    %314 = arith.addf %297, %313 : vector<16x32xf32>
    %cst_187 = arith.constant dense<0.000000e+00> : vector<16xf32>
    %315 = vector.multi_reduction <add>, %314, %cst_187 [1] : vector<16x32xf32> to vector<16xf32>
    %316 = vector.shape_cast %315 : vector<16xf32> to vector<16x1xf32>
    %cst_188 = arith.constant 3.200000e+01 : f32
    %317 = vector.broadcast %cst_188 : f32 to vector<16x1xf32>
    %318 = arith.divf %316, %317 : vector<16x1xf32>
    %319 = vector.broadcast %318 : vector<16x1xf32> to vector<16x32xf32>
    %320 = arith.subf %314, %319 : vector<16x32xf32>
    %321 = arith.mulf %320, %320 : vector<16x32xf32>
    %cst_189 = arith.constant dense<0.000000e+00> : vector<16xf32>
    %322 = vector.multi_reduction <add>, %321, %cst_189 [1] : vector<16x32xf32> to vector<16xf32>
    %323 = vector.shape_cast %322 : vector<16xf32> to vector<16x1xf32>
    %cst_190 = arith.constant 3.200000e+01 : f32
    %324 = vector.broadcast %cst_190 : f32 to vector<16x1xf32>
    %325 = arith.divf %323, %324 : vector<16x1xf32>
    %cst_191 = arith.constant 9.99999974E-6 : f32
    %326 = vector.broadcast %cst_191 : f32 to vector<16x1xf32>
    %327 = arith.addf %325, %326 : vector<16x1xf32>
    %328 = math.rsqrt %327 : vector<16x1xf32>
    %329 = vector.broadcast %328 : vector<16x1xf32> to vector<16x32xf32>
    %330 = arith.mulf %320, %329 : vector<16x32xf32>
    %c1_192 = arith.constant 1 : index
    %c0_193 = arith.constant 0 : index
    %c0_194 = arith.constant 0 : index
    %331 = vector.load %arg12[%c1_192, %c0_193, %c0_194] : memref<31x1x32xf32, #tpu.memory_space<vmem>>, vector<1x1x32xf32>
    %332 = vector.shape_cast %331 : vector<1x1x32xf32> to vector<1x32xf32>
    %333 = vector.broadcast %332 : vector<1x32xf32> to vector<16x32xf32>
    %334 = arith.mulf %330, %333 : vector<16x32xf32>
    %c11_195 = arith.constant 11 : index
    %c0_196 = arith.constant 0 : index
    %c0_197 = arith.constant 0 : index
    %335 = vector.load %arg12[%c11_195, %c0_196, %c0_197] : memref<31x1x32xf32, #tpu.memory_space<vmem>>, vector<1x1x32xf32>
    %336 = vector.shape_cast %335 : vector<1x1x32xf32> to vector<1x32xf32>
    %337 = vector.broadcast %336 : vector<1x32xf32> to vector<16x32xf32>
    %338 = arith.addf %334, %337 : vector<16x32xf32>
    %c21 = arith.constant 21 : index
    %c0_198 = arith.constant 0 : index
    %c0_199 = arith.constant 0 : index
    %339 = vector.load %arg12[%c21, %c0_198, %c0_199] : memref<31x1x32xf32, #tpu.memory_space<vmem>>, vector<1x1x32xf32>
    %340 = vector.shape_cast %339 : vector<1x1x32xf32> to vector<1x32xf32>
    %c12 = arith.constant 12 : index
    %c0_200 = arith.constant 0 : index
    %c0_201 = arith.constant 0 : index
    %341 = vector.load %arg4[%c12, %c0_200, %c0_201] : memref<72x32x8xf32, #tpu.memory_space<vmem>>, vector<1x32x8xf32>
    %342 = vector.shape_cast %341 : vector<1x32x8xf32> to vector<32x8xf32>
    %cst_202 = arith.constant dense<0.000000e+00> : vector<16x8xf32>
    %343 = tpu.matmul %338, %342, %cst_202 {dimension_numbers = #tpu.dot_dimension_numbers<[1], [0], [0], [1], [0, 0, 1, 1], [], []>} : vector<16x32xf32>, vector<32x8xf32>, vector<16x8xf32> -> vector<16x8xf32>
    %c12_203 = arith.constant 12 : index
    %c0_204 = arith.constant 0 : index
    %c0_205 = arith.constant 0 : index
    %344 = vector.load %arg5[%c12_203, %c0_204, %c0_205] : memref<72x1x8xf32, #tpu.memory_space<vmem>>, vector<1x1x8xf32>
    %345 = vector.shape_cast %344 : vector<1x1x8xf32> to vector<1x8xf32>
    %346 = vector.broadcast %345 : vector<1x8xf32> to vector<16x8xf32>
    %347 = arith.addf %343, %346 : vector<16x8xf32>
    %c16 = arith.constant 16 : index
    %c0_206 = arith.constant 0 : index
    %c0_207 = arith.constant 0 : index
    %348 = vector.load %arg4[%c16, %c0_206, %c0_207] : memref<72x32x8xf32, #tpu.memory_space<vmem>>, vector<1x32x8xf32>
    %349 = vector.shape_cast %348 : vector<1x32x8xf32> to vector<32x8xf32>
    %cst_208 = arith.constant dense<0.000000e+00> : vector<16x8xf32>
    %350 = tpu.matmul %338, %349, %cst_208 {dimension_numbers = #tpu.dot_dimension_numbers<[1], [0], [0], [1], [0, 0, 1, 1], [], []>} : vector<16x32xf32>, vector<32x8xf32>, vector<16x8xf32> -> vector<16x8xf32>
    %c16_209 = arith.constant 16 : index
    %c0_210 = arith.constant 0 : index
    %c0_211 = arith.constant 0 : index
    %351 = vector.load %arg5[%c16_209, %c0_210, %c0_211] : memref<72x1x8xf32, #tpu.memory_space<vmem>>, vector<1x1x8xf32>
    %352 = vector.shape_cast %351 : vector<1x1x8xf32> to vector<1x8xf32>
    %353 = vector.broadcast %352 : vector<1x8xf32> to vector<16x8xf32>
    %354 = arith.addf %350, %353 : vector<16x8xf32>
    %c20_212 = arith.constant 20 : index
    %c0_213 = arith.constant 0 : index
    %c0_214 = arith.constant 0 : index
    %355 = vector.load %arg4[%c20_212, %c0_213, %c0_214] : memref<72x32x8xf32, #tpu.memory_space<vmem>>, vector<1x32x8xf32>
    %356 = vector.shape_cast %355 : vector<1x32x8xf32> to vector<32x8xf32>
    %cst_215 = arith.constant dense<0.000000e+00> : vector<16x8xf32>
    %357 = tpu.matmul %338, %356, %cst_215 {dimension_numbers = #tpu.dot_dimension_numbers<[1], [0], [0], [1], [0, 0, 1, 1], [], []>} : vector<16x32xf32>, vector<32x8xf32>, vector<16x8xf32> -> vector<16x8xf32>
    %c20_216 = arith.constant 20 : index
    %c0_217 = arith.constant 0 : index
    %c0_218 = arith.constant 0 : index
    %358 = vector.load %arg5[%c20_216, %c0_217, %c0_218] : memref<72x1x8xf32, #tpu.memory_space<vmem>>, vector<1x1x8xf32>
    %359 = vector.shape_cast %358 : vector<1x1x8xf32> to vector<1x8xf32>
    %360 = vector.broadcast %359 : vector<1x8xf32> to vector<16x8xf32>
    %361 = arith.addf %357, %360 : vector<16x8xf32>
    %cst_219 = arith.constant dense<0.000000e+00> : vector<16x16xf32>
    %362 = tpu.matmul %347, %354, %cst_219 {dimension_numbers = #tpu.dot_dimension_numbers<[1], [1], [0], [0], [0, 0, 1, 0], [], []>} : vector<16x8xf32>, vector<16x8xf32>, vector<16x16xf32> -> vector<16x16xf32>
    %cst_220 = arith.constant 0.353553385 : f32
    %363 = vector.broadcast %cst_220 : f32 to vector<16x16xf32>
    %364 = arith.mulf %362, %363 : vector<16x16xf32>
    %365 = arith.mulf %364, %29 : vector<16x16xf32>
    %366 = arith.addf %365, %27 : vector<16x16xf32>
    %cst_221 = arith.constant dense<0xFF800000> : vector<16xf32>
    %367 = vector.multi_reduction <maximumf>, %366, %cst_221 [1] : vector<16x16xf32> to vector<16xf32>
    %368 = vector.shape_cast %367 : vector<16xf32> to vector<16x1xf32>
    %369 = vector.broadcast %368 : vector<16x1xf32> to vector<16x16xf32>
    %370 = arith.subf %366, %369 : vector<16x16xf32>
    %371 = math.exp %370 : vector<16x16xf32>
    %cst_222 = arith.constant dense<0.000000e+00> : vector<16xf32>
    %372 = vector.multi_reduction <add>, %371, %cst_222 [1] : vector<16x16xf32> to vector<16xf32>
    %373 = vector.shape_cast %372 : vector<16xf32> to vector<16x1xf32>
    %374 = vector.broadcast %373 : vector<16x1xf32> to vector<16x16xf32>
    %375 = arith.divf %371, %374 : vector<16x16xf32>
    %cst_223 = arith.constant dense<0.000000e+00> : vector<16x8xf32>
    %376 = tpu.matmul %375, %361, %cst_223 {dimension_numbers = #tpu.dot_dimension_numbers<[1], [0], [0], [1], [0, 0, 1, 1], [], []>} : vector<16x16xf32>, vector<16x8xf32>, vector<16x8xf32> -> vector<16x8xf32>
    %c4_224 = arith.constant 4 : index
    %c0_225 = arith.constant 0 : index
    %c0_226 = arith.constant 0 : index
    %377 = vector.load %arg6[%c4_224, %c0_225, %c0_226] : memref<24x8x32xf32, #tpu.memory_space<vmem>>, vector<1x8x32xf32>
    %378 = vector.shape_cast %377 : vector<1x8x32xf32> to vector<8x32xf32>
    %cst_227 = arith.constant dense<0.000000e+00> : vector<16x32xf32>
    %379 = tpu.matmul %376, %378, %cst_227 {dimension_numbers = #tpu.dot_dimension_numbers<[1], [0], [0], [1], [0, 0, 1, 1], [], []>} : vector<16x8xf32>, vector<8x32xf32>, vector<16x32xf32> -> vector<16x32xf32>
    %380 = vector.broadcast %340 : vector<1x32xf32> to vector<16x32xf32>
    %381 = arith.addf %380, %379 : vector<16x32xf32>
    %c13 = arith.constant 13 : index
    %c0_228 = arith.constant 0 : index
    %c0_229 = arith.constant 0 : index
    %382 = vector.load %arg4[%c13, %c0_228, %c0_229] : memref<72x32x8xf32, #tpu.memory_space<vmem>>, vector<1x32x8xf32>
    %383 = vector.shape_cast %382 : vector<1x32x8xf32> to vector<32x8xf32>
    %cst_230 = arith.constant dense<0.000000e+00> : vector<16x8xf32>
    %384 = tpu.matmul %338, %383, %cst_230 {dimension_numbers = #tpu.dot_dimension_numbers<[1], [0], [0], [1], [0, 0, 1, 1], [], []>} : vector<16x32xf32>, vector<32x8xf32>, vector<16x8xf32> -> vector<16x8xf32>
    %c13_231 = arith.constant 13 : index
    %c0_232 = arith.constant 0 : index
    %c0_233 = arith.constant 0 : index
    %385 = vector.load %arg5[%c13_231, %c0_232, %c0_233] : memref<72x1x8xf32, #tpu.memory_space<vmem>>, vector<1x1x8xf32>
    %386 = vector.shape_cast %385 : vector<1x1x8xf32> to vector<1x8xf32>
    %387 = vector.broadcast %386 : vector<1x8xf32> to vector<16x8xf32>
    %388 = arith.addf %384, %387 : vector<16x8xf32>
    %c17 = arith.constant 17 : index
    %c0_234 = arith.constant 0 : index
    %c0_235 = arith.constant 0 : index
    %389 = vector.load %arg4[%c17, %c0_234, %c0_235] : memref<72x32x8xf32, #tpu.memory_space<vmem>>, vector<1x32x8xf32>
    %390 = vector.shape_cast %389 : vector<1x32x8xf32> to vector<32x8xf32>
    %cst_236 = arith.constant dense<0.000000e+00> : vector<16x8xf32>
    %391 = tpu.matmul %338, %390, %cst_236 {dimension_numbers = #tpu.dot_dimension_numbers<[1], [0], [0], [1], [0, 0, 1, 1], [], []>} : vector<16x32xf32>, vector<32x8xf32>, vector<16x8xf32> -> vector<16x8xf32>
    %c17_237 = arith.constant 17 : index
    %c0_238 = arith.constant 0 : index
    %c0_239 = arith.constant 0 : index
    %392 = vector.load %arg5[%c17_237, %c0_238, %c0_239] : memref<72x1x8xf32, #tpu.memory_space<vmem>>, vector<1x1x8xf32>
    %393 = vector.shape_cast %392 : vector<1x1x8xf32> to vector<1x8xf32>
    %394 = vector.broadcast %393 : vector<1x8xf32> to vector<16x8xf32>
    %395 = arith.addf %391, %394 : vector<16x8xf32>
    %c21_240 = arith.constant 21 : index
    %c0_241 = arith.constant 0 : index
    %c0_242 = arith.constant 0 : index
    %396 = vector.load %arg4[%c21_240, %c0_241, %c0_242] : memref<72x32x8xf32, #tpu.memory_space<vmem>>, vector<1x32x8xf32>
    %397 = vector.shape_cast %396 : vector<1x32x8xf32> to vector<32x8xf32>
    %cst_243 = arith.constant dense<0.000000e+00> : vector<16x8xf32>
    %398 = tpu.matmul %338, %397, %cst_243 {dimension_numbers = #tpu.dot_dimension_numbers<[1], [0], [0], [1], [0, 0, 1, 1], [], []>} : vector<16x32xf32>, vector<32x8xf32>, vector<16x8xf32> -> vector<16x8xf32>
    %c21_244 = arith.constant 21 : index
    %c0_245 = arith.constant 0 : index
    %c0_246 = arith.constant 0 : index
    %399 = vector.load %arg5[%c21_244, %c0_245, %c0_246] : memref<72x1x8xf32, #tpu.memory_space<vmem>>, vector<1x1x8xf32>
    %400 = vector.shape_cast %399 : vector<1x1x8xf32> to vector<1x8xf32>
    %401 = vector.broadcast %400 : vector<1x8xf32> to vector<16x8xf32>
    %402 = arith.addf %398, %401 : vector<16x8xf32>
    %cst_247 = arith.constant dense<0.000000e+00> : vector<16x16xf32>
    %403 = tpu.matmul %388, %395, %cst_247 {dimension_numbers = #tpu.dot_dimension_numbers<[1], [1], [0], [0], [0, 0, 1, 0], [], []>} : vector<16x8xf32>, vector<16x8xf32>, vector<16x16xf32> -> vector<16x16xf32>
    %cst_248 = arith.constant 0.353553385 : f32
    %404 = vector.broadcast %cst_248 : f32 to vector<16x16xf32>
    %405 = arith.mulf %403, %404 : vector<16x16xf32>
    %406 = arith.mulf %405, %29 : vector<16x16xf32>
    %407 = arith.addf %406, %27 : vector<16x16xf32>
    %cst_249 = arith.constant dense<0xFF800000> : vector<16xf32>
    %408 = vector.multi_reduction <maximumf>, %407, %cst_249 [1] : vector<16x16xf32> to vector<16xf32>
    %409 = vector.shape_cast %408 : vector<16xf32> to vector<16x1xf32>
    %410 = vector.broadcast %409 : vector<16x1xf32> to vector<16x16xf32>
    %411 = arith.subf %407, %410 : vector<16x16xf32>
    %412 = math.exp %411 : vector<16x16xf32>
    %cst_250 = arith.constant dense<0.000000e+00> : vector<16xf32>
    %413 = vector.multi_reduction <add>, %412, %cst_250 [1] : vector<16x16xf32> to vector<16xf32>
    %414 = vector.shape_cast %413 : vector<16xf32> to vector<16x1xf32>
    %415 = vector.broadcast %414 : vector<16x1xf32> to vector<16x16xf32>
    %416 = arith.divf %412, %415 : vector<16x16xf32>
    %cst_251 = arith.constant dense<0.000000e+00> : vector<16x8xf32>
    %417 = tpu.matmul %416, %402, %cst_251 {dimension_numbers = #tpu.dot_dimension_numbers<[1], [0], [0], [1], [0, 0, 1, 1], [], []>} : vector<16x16xf32>, vector<16x8xf32>, vector<16x8xf32> -> vector<16x8xf32>
    %c5_252 = arith.constant 5 : index
    %c0_253 = arith.constant 0 : index
    %c0_254 = arith.constant 0 : index
    %418 = vector.load %arg6[%c5_252, %c0_253, %c0_254] : memref<24x8x32xf32, #tpu.memory_space<vmem>>, vector<1x8x32xf32>
    %419 = vector.shape_cast %418 : vector<1x8x32xf32> to vector<8x32xf32>
    %cst_255 = arith.constant dense<0.000000e+00> : vector<16x32xf32>
    %420 = tpu.matmul %417, %419, %cst_255 {dimension_numbers = #tpu.dot_dimension_numbers<[1], [0], [0], [1], [0, 0, 1, 1], [], []>} : vector<16x8xf32>, vector<8x32xf32>, vector<16x32xf32> -> vector<16x32xf32>
    %421 = arith.addf %381, %420 : vector<16x32xf32>
    %c14 = arith.constant 14 : index
    %c0_256 = arith.constant 0 : index
    %c0_257 = arith.constant 0 : index
    %422 = vector.load %arg4[%c14, %c0_256, %c0_257] : memref<72x32x8xf32, #tpu.memory_space<vmem>>, vector<1x32x8xf32>
    %423 = vector.shape_cast %422 : vector<1x32x8xf32> to vector<32x8xf32>
    %cst_258 = arith.constant dense<0.000000e+00> : vector<16x8xf32>
    %424 = tpu.matmul %338, %423, %cst_258 {dimension_numbers = #tpu.dot_dimension_numbers<[1], [0], [0], [1], [0, 0, 1, 1], [], []>} : vector<16x32xf32>, vector<32x8xf32>, vector<16x8xf32> -> vector<16x8xf32>
    %c14_259 = arith.constant 14 : index
    %c0_260 = arith.constant 0 : index
    %c0_261 = arith.constant 0 : index
    %425 = vector.load %arg5[%c14_259, %c0_260, %c0_261] : memref<72x1x8xf32, #tpu.memory_space<vmem>>, vector<1x1x8xf32>
    %426 = vector.shape_cast %425 : vector<1x1x8xf32> to vector<1x8xf32>
    %427 = vector.broadcast %426 : vector<1x8xf32> to vector<16x8xf32>
    %428 = arith.addf %424, %427 : vector<16x8xf32>
    %c18 = arith.constant 18 : index
    %c0_262 = arith.constant 0 : index
    %c0_263 = arith.constant 0 : index
    %429 = vector.load %arg4[%c18, %c0_262, %c0_263] : memref<72x32x8xf32, #tpu.memory_space<vmem>>, vector<1x32x8xf32>
    %430 = vector.shape_cast %429 : vector<1x32x8xf32> to vector<32x8xf32>
    %cst_264 = arith.constant dense<0.000000e+00> : vector<16x8xf32>
    %431 = tpu.matmul %338, %430, %cst_264 {dimension_numbers = #tpu.dot_dimension_numbers<[1], [0], [0], [1], [0, 0, 1, 1], [], []>} : vector<16x32xf32>, vector<32x8xf32>, vector<16x8xf32> -> vector<16x8xf32>
    %c18_265 = arith.constant 18 : index
    %c0_266 = arith.constant 0 : index
    %c0_267 = arith.constant 0 : index
    %432 = vector.load %arg5[%c18_265, %c0_266, %c0_267] : memref<72x1x8xf32, #tpu.memory_space<vmem>>, vector<1x1x8xf32>
    %433 = vector.shape_cast %432 : vector<1x1x8xf32> to vector<1x8xf32>
    %434 = vector.broadcast %433 : vector<1x8xf32> to vector<16x8xf32>
    %435 = arith.addf %431, %434 : vector<16x8xf32>
    %c22 = arith.constant 22 : index
    %c0_268 = arith.constant 0 : index
    %c0_269 = arith.constant 0 : index
    %436 = vector.load %arg4[%c22, %c0_268, %c0_269] : memref<72x32x8xf32, #tpu.memory_space<vmem>>, vector<1x32x8xf32>
    %437 = vector.shape_cast %436 : vector<1x32x8xf32> to vector<32x8xf32>
    %cst_270 = arith.constant dense<0.000000e+00> : vector<16x8xf32>
    %438 = tpu.matmul %338, %437, %cst_270 {dimension_numbers = #tpu.dot_dimension_numbers<[1], [0], [0], [1], [0, 0, 1, 1], [], []>} : vector<16x32xf32>, vector<32x8xf32>, vector<16x8xf32> -> vector<16x8xf32>
    %c22_271 = arith.constant 22 : index
    %c0_272 = arith.constant 0 : index
    %c0_273 = arith.constant 0 : index
    %439 = vector.load %arg5[%c22_271, %c0_272, %c0_273] : memref<72x1x8xf32, #tpu.memory_space<vmem>>, vector<1x1x8xf32>
    %440 = vector.shape_cast %439 : vector<1x1x8xf32> to vector<1x8xf32>
    %441 = vector.broadcast %440 : vector<1x8xf32> to vector<16x8xf32>
    %442 = arith.addf %438, %441 : vector<16x8xf32>
    %cst_274 = arith.constant dense<0.000000e+00> : vector<16x16xf32>
    %443 = tpu.matmul %428, %435, %cst_274 {dimension_numbers = #tpu.dot_dimension_numbers<[1], [1], [0], [0], [0, 0, 1, 0], [], []>} : vector<16x8xf32>, vector<16x8xf32>, vector<16x16xf32> -> vector<16x16xf32>
    %cst_275 = arith.constant 0.353553385 : f32
    %444 = vector.broadcast %cst_275 : f32 to vector<16x16xf32>
    %445 = arith.mulf %443, %444 : vector<16x16xf32>
    %446 = arith.mulf %445, %29 : vector<16x16xf32>
    %447 = arith.addf %446, %27 : vector<16x16xf32>
    %cst_276 = arith.constant dense<0xFF800000> : vector<16xf32>
    %448 = vector.multi_reduction <maximumf>, %447, %cst_276 [1] : vector<16x16xf32> to vector<16xf32>
    %449 = vector.shape_cast %448 : vector<16xf32> to vector<16x1xf32>
    %450 = vector.broadcast %449 : vector<16x1xf32> to vector<16x16xf32>
    %451 = arith.subf %447, %450 : vector<16x16xf32>
    %452 = math.exp %451 : vector<16x16xf32>
    %cst_277 = arith.constant dense<0.000000e+00> : vector<16xf32>
    %453 = vector.multi_reduction <add>, %452, %cst_277 [1] : vector<16x16xf32> to vector<16xf32>
    %454 = vector.shape_cast %453 : vector<16xf32> to vector<16x1xf32>
    %455 = vector.broadcast %454 : vector<16x1xf32> to vector<16x16xf32>
    %456 = arith.divf %452, %455 : vector<16x16xf32>
    %cst_278 = arith.constant dense<0.000000e+00> : vector<16x8xf32>
    %457 = tpu.matmul %456, %442, %cst_278 {dimension_numbers = #tpu.dot_dimension_numbers<[1], [0], [0], [1], [0, 0, 1, 1], [], []>} : vector<16x16xf32>, vector<16x8xf32>, vector<16x8xf32> -> vector<16x8xf32>
    %c6_279 = arith.constant 6 : index
    %c0_280 = arith.constant 0 : index
    %c0_281 = arith.constant 0 : index
    %458 = vector.load %arg6[%c6_279, %c0_280, %c0_281] : memref<24x8x32xf32, #tpu.memory_space<vmem>>, vector<1x8x32xf32>
    %459 = vector.shape_cast %458 : vector<1x8x32xf32> to vector<8x32xf32>
    %cst_282 = arith.constant dense<0.000000e+00> : vector<16x32xf32>
    %460 = tpu.matmul %457, %459, %cst_282 {dimension_numbers = #tpu.dot_dimension_numbers<[1], [0], [0], [1], [0, 0, 1, 1], [], []>} : vector<16x8xf32>, vector<8x32xf32>, vector<16x32xf32> -> vector<16x32xf32>
    %461 = arith.addf %421, %460 : vector<16x32xf32>
    %c15 = arith.constant 15 : index
    %c0_283 = arith.constant 0 : index
    %c0_284 = arith.constant 0 : index
    %462 = vector.load %arg4[%c15, %c0_283, %c0_284] : memref<72x32x8xf32, #tpu.memory_space<vmem>>, vector<1x32x8xf32>
    %463 = vector.shape_cast %462 : vector<1x32x8xf32> to vector<32x8xf32>
    %cst_285 = arith.constant dense<0.000000e+00> : vector<16x8xf32>
    %464 = tpu.matmul %338, %463, %cst_285 {dimension_numbers = #tpu.dot_dimension_numbers<[1], [0], [0], [1], [0, 0, 1, 1], [], []>} : vector<16x32xf32>, vector<32x8xf32>, vector<16x8xf32> -> vector<16x8xf32>
    %c15_286 = arith.constant 15 : index
    %c0_287 = arith.constant 0 : index
    %c0_288 = arith.constant 0 : index
    %465 = vector.load %arg5[%c15_286, %c0_287, %c0_288] : memref<72x1x8xf32, #tpu.memory_space<vmem>>, vector<1x1x8xf32>
    %466 = vector.shape_cast %465 : vector<1x1x8xf32> to vector<1x8xf32>
    %467 = vector.broadcast %466 : vector<1x8xf32> to vector<16x8xf32>
    %468 = arith.addf %464, %467 : vector<16x8xf32>
    %c19 = arith.constant 19 : index
    %c0_289 = arith.constant 0 : index
    %c0_290 = arith.constant 0 : index
    %469 = vector.load %arg4[%c19, %c0_289, %c0_290] : memref<72x32x8xf32, #tpu.memory_space<vmem>>, vector<1x32x8xf32>
    %470 = vector.shape_cast %469 : vector<1x32x8xf32> to vector<32x8xf32>
    %cst_291 = arith.constant dense<0.000000e+00> : vector<16x8xf32>
    %471 = tpu.matmul %338, %470, %cst_291 {dimension_numbers = #tpu.dot_dimension_numbers<[1], [0], [0], [1], [0, 0, 1, 1], [], []>} : vector<16x32xf32>, vector<32x8xf32>, vector<16x8xf32> -> vector<16x8xf32>
    %c19_292 = arith.constant 19 : index
    %c0_293 = arith.constant 0 : index
    %c0_294 = arith.constant 0 : index
    %472 = vector.load %arg5[%c19_292, %c0_293, %c0_294] : memref<72x1x8xf32, #tpu.memory_space<vmem>>, vector<1x1x8xf32>
    %473 = vector.shape_cast %472 : vector<1x1x8xf32> to vector<1x8xf32>
    %474 = vector.broadcast %473 : vector<1x8xf32> to vector<16x8xf32>
    %475 = arith.addf %471, %474 : vector<16x8xf32>
    %c23 = arith.constant 23 : index
    %c0_295 = arith.constant 0 : index
    %c0_296 = arith.constant 0 : index
    %476 = vector.load %arg4[%c23, %c0_295, %c0_296] : memref<72x32x8xf32, #tpu.memory_space<vmem>>, vector<1x32x8xf32>
    %477 = vector.shape_cast %476 : vector<1x32x8xf32> to vector<32x8xf32>
    %cst_297 = arith.constant dense<0.000000e+00> : vector<16x8xf32>
    %478 = tpu.matmul %338, %477, %cst_297 {dimension_numbers = #tpu.dot_dimension_numbers<[1], [0], [0], [1], [0, 0, 1, 1], [], []>} : vector<16x32xf32>, vector<32x8xf32>, vector<16x8xf32> -> vector<16x8xf32>
    %c23_298 = arith.constant 23 : index
    %c0_299 = arith.constant 0 : index
    %c0_300 = arith.constant 0 : index
    %479 = vector.load %arg5[%c23_298, %c0_299, %c0_300] : memref<72x1x8xf32, #tpu.memory_space<vmem>>, vector<1x1x8xf32>
    %480 = vector.shape_cast %479 : vector<1x1x8xf32> to vector<1x8xf32>
    %481 = vector.broadcast %480 : vector<1x8xf32> to vector<16x8xf32>
    %482 = arith.addf %478, %481 : vector<16x8xf32>
    %cst_301 = arith.constant dense<0.000000e+00> : vector<16x16xf32>
    %483 = tpu.matmul %468, %475, %cst_301 {dimension_numbers = #tpu.dot_dimension_numbers<[1], [1], [0], [0], [0, 0, 1, 0], [], []>} : vector<16x8xf32>, vector<16x8xf32>, vector<16x16xf32> -> vector<16x16xf32>
    %cst_302 = arith.constant 0.353553385 : f32
    %484 = vector.broadcast %cst_302 : f32 to vector<16x16xf32>
    %485 = arith.mulf %483, %484 : vector<16x16xf32>
    %486 = arith.mulf %485, %29 : vector<16x16xf32>
    %487 = arith.addf %486, %27 : vector<16x16xf32>
    %cst_303 = arith.constant dense<0xFF800000> : vector<16xf32>
    %488 = vector.multi_reduction <maximumf>, %487, %cst_303 [1] : vector<16x16xf32> to vector<16xf32>
    %489 = vector.shape_cast %488 : vector<16xf32> to vector<16x1xf32>
    %490 = vector.broadcast %489 : vector<16x1xf32> to vector<16x16xf32>
    %491 = arith.subf %487, %490 : vector<16x16xf32>
    %492 = math.exp %491 : vector<16x16xf32>
    %cst_304 = arith.constant dense<0.000000e+00> : vector<16xf32>
    %493 = vector.multi_reduction <add>, %492, %cst_304 [1] : vector<16x16xf32> to vector<16xf32>
    %494 = vector.shape_cast %493 : vector<16xf32> to vector<16x1xf32>
    %495 = vector.broadcast %494 : vector<16x1xf32> to vector<16x16xf32>
    %496 = arith.divf %492, %495 : vector<16x16xf32>
    %cst_305 = arith.constant dense<0.000000e+00> : vector<16x8xf32>
    %497 = tpu.matmul %496, %482, %cst_305 {dimension_numbers = #tpu.dot_dimension_numbers<[1], [0], [0], [1], [0, 0, 1, 1], [], []>} : vector<16x16xf32>, vector<16x8xf32>, vector<16x8xf32> -> vector<16x8xf32>
    %c7_306 = arith.constant 7 : index
    %c0_307 = arith.constant 0 : index
    %c0_308 = arith.constant 0 : index
    %498 = vector.load %arg6[%c7_306, %c0_307, %c0_308] : memref<24x8x32xf32, #tpu.memory_space<vmem>>, vector<1x8x32xf32>
    %499 = vector.shape_cast %498 : vector<1x8x32xf32> to vector<8x32xf32>
    %cst_309 = arith.constant dense<0.000000e+00> : vector<16x32xf32>
    %500 = tpu.matmul %497, %499, %cst_309 {dimension_numbers = #tpu.dot_dimension_numbers<[1], [0], [0], [1], [0, 0, 1, 1], [], []>} : vector<16x8xf32>, vector<8x32xf32>, vector<16x32xf32> -> vector<16x32xf32>
    %501 = arith.addf %461, %500 : vector<16x32xf32>
    %502 = arith.addf %338, %501 : vector<16x32xf32>
    %cst_310 = arith.constant dense<0.000000e+00> : vector<16xf32>
    %503 = vector.multi_reduction <add>, %502, %cst_310 [1] : vector<16x32xf32> to vector<16xf32>
    %504 = vector.shape_cast %503 : vector<16xf32> to vector<16x1xf32>
    %cst_311 = arith.constant 3.200000e+01 : f32
    %505 = vector.broadcast %cst_311 : f32 to vector<16x1xf32>
    %506 = arith.divf %504, %505 : vector<16x1xf32>
    %507 = vector.broadcast %506 : vector<16x1xf32> to vector<16x32xf32>
    %508 = arith.subf %502, %507 : vector<16x32xf32>
    %509 = arith.mulf %508, %508 : vector<16x32xf32>
    %cst_312 = arith.constant dense<0.000000e+00> : vector<16xf32>
    %510 = vector.multi_reduction <add>, %509, %cst_312 [1] : vector<16x32xf32> to vector<16xf32>
    %511 = vector.shape_cast %510 : vector<16xf32> to vector<16x1xf32>
    %cst_313 = arith.constant 3.200000e+01 : f32
    %512 = vector.broadcast %cst_313 : f32 to vector<16x1xf32>
    %513 = arith.divf %511, %512 : vector<16x1xf32>
    %cst_314 = arith.constant 9.99999974E-6 : f32
    %514 = vector.broadcast %cst_314 : f32 to vector<16x1xf32>
    %515 = arith.addf %513, %514 : vector<16x1xf32>
    %516 = math.rsqrt %515 : vector<16x1xf32>
    %517 = vector.broadcast %516 : vector<16x1xf32> to vector<16x32xf32>
    %518 = arith.mulf %508, %517 : vector<16x32xf32>
    %c2_315 = arith.constant 2 : index
    %c0_316 = arith.constant 0 : index
    %c0_317 = arith.constant 0 : index
    %519 = vector.load %arg12[%c2_315, %c0_316, %c0_317] : memref<31x1x32xf32, #tpu.memory_space<vmem>>, vector<1x1x32xf32>
    %520 = vector.shape_cast %519 : vector<1x1x32xf32> to vector<1x32xf32>
    %521 = vector.broadcast %520 : vector<1x32xf32> to vector<16x32xf32>
    %522 = arith.mulf %518, %521 : vector<16x32xf32>
    %c12_318 = arith.constant 12 : index
    %c0_319 = arith.constant 0 : index
    %c0_320 = arith.constant 0 : index
    %523 = vector.load %arg12[%c12_318, %c0_319, %c0_320] : memref<31x1x32xf32, #tpu.memory_space<vmem>>, vector<1x1x32xf32>
    %524 = vector.shape_cast %523 : vector<1x1x32xf32> to vector<1x32xf32>
    %525 = vector.broadcast %524 : vector<1x32xf32> to vector<16x32xf32>
    %526 = arith.addf %522, %525 : vector<16x32xf32>
    %c1_321 = arith.constant 1 : index
    %c0_322 = arith.constant 0 : index
    %c0_323 = arith.constant 0 : index
    %527 = vector.load %arg7[%c1_321, %c0_322, %c0_323] : memref<4x32x64xf32, #tpu.memory_space<vmem>>, vector<1x32x64xf32>
    %528 = vector.shape_cast %527 : vector<1x32x64xf32> to vector<32x64xf32>
    %cst_324 = arith.constant dense<0.000000e+00> : vector<16x64xf32>
    %529 = tpu.matmul %526, %528, %cst_324 {dimension_numbers = #tpu.dot_dimension_numbers<[1], [0], [0], [1], [0, 0, 1, 1], [], []>} : vector<16x32xf32>, vector<32x64xf32>, vector<16x64xf32> -> vector<16x64xf32>
    %c1_325 = arith.constant 1 : index
    %c0_326 = arith.constant 0 : index
    %c0_327 = arith.constant 0 : index
    %530 = vector.load %arg8[%c1_325, %c0_326, %c0_327] : memref<4x1x64xf32, #tpu.memory_space<vmem>>, vector<1x1x64xf32>
    %531 = vector.shape_cast %530 : vector<1x1x64xf32> to vector<1x64xf32>
    %532 = vector.broadcast %531 : vector<1x64xf32> to vector<16x64xf32>
    %533 = arith.addf %529, %532 : vector<16x64xf32>
    %cst_328 = arith.constant 0.000000e+00 : f32
    %534 = vector.broadcast %cst_328 : f32 to vector<16x64xf32>
    %535 = arith.maximumf %533, %534 : vector<16x64xf32>
    %c1_329 = arith.constant 1 : index
    %c0_330 = arith.constant 0 : index
    %c0_331 = arith.constant 0 : index
    %536 = vector.load %arg9[%c1_329, %c0_330, %c0_331] : memref<4x64x32xf32, #tpu.memory_space<vmem>>, vector<1x64x32xf32>
    %537 = vector.shape_cast %536 : vector<1x64x32xf32> to vector<64x32xf32>
    %cst_332 = arith.constant dense<0.000000e+00> : vector<16x32xf32>
    %538 = tpu.matmul %535, %537, %cst_332 {dimension_numbers = #tpu.dot_dimension_numbers<[1], [0], [0], [1], [0, 0, 1, 1], [], []>} : vector<16x64xf32>, vector<64x32xf32>, vector<16x32xf32> -> vector<16x32xf32>
    %c27 = arith.constant 27 : index
    %c0_333 = arith.constant 0 : index
    %c0_334 = arith.constant 0 : index
    %539 = vector.load %arg12[%c27, %c0_333, %c0_334] : memref<31x1x32xf32, #tpu.memory_space<vmem>>, vector<1x1x32xf32>
    %540 = vector.shape_cast %539 : vector<1x1x32xf32> to vector<1x32xf32>
    %541 = vector.broadcast %540 : vector<1x32xf32> to vector<16x32xf32>
    %542 = arith.addf %538, %541 : vector<16x32xf32>
    %543 = arith.addf %526, %542 : vector<16x32xf32>
    %cst_335 = arith.constant dense<0.000000e+00> : vector<16xf32>
    %544 = vector.multi_reduction <add>, %543, %cst_335 [1] : vector<16x32xf32> to vector<16xf32>
    %545 = vector.shape_cast %544 : vector<16xf32> to vector<16x1xf32>
    %cst_336 = arith.constant 3.200000e+01 : f32
    %546 = vector.broadcast %cst_336 : f32 to vector<16x1xf32>
    %547 = arith.divf %545, %546 : vector<16x1xf32>
    %548 = vector.broadcast %547 : vector<16x1xf32> to vector<16x32xf32>
    %549 = arith.subf %543, %548 : vector<16x32xf32>
    %550 = arith.mulf %549, %549 : vector<16x32xf32>
    %cst_337 = arith.constant dense<0.000000e+00> : vector<16xf32>
    %551 = vector.multi_reduction <add>, %550, %cst_337 [1] : vector<16x32xf32> to vector<16xf32>
    %552 = vector.shape_cast %551 : vector<16xf32> to vector<16x1xf32>
    %cst_338 = arith.constant 3.200000e+01 : f32
    %553 = vector.broadcast %cst_338 : f32 to vector<16x1xf32>
    %554 = arith.divf %552, %553 : vector<16x1xf32>
    %cst_339 = arith.constant 9.99999974E-6 : f32
    %555 = vector.broadcast %cst_339 : f32 to vector<16x1xf32>
    %556 = arith.addf %554, %555 : vector<16x1xf32>
    %557 = math.rsqrt %556 : vector<16x1xf32>
    %558 = vector.broadcast %557 : vector<16x1xf32> to vector<16x32xf32>
    %559 = arith.mulf %549, %558 : vector<16x32xf32>
    %c3_340 = arith.constant 3 : index
    %c0_341 = arith.constant 0 : index
    %c0_342 = arith.constant 0 : index
    %560 = vector.load %arg12[%c3_340, %c0_341, %c0_342] : memref<31x1x32xf32, #tpu.memory_space<vmem>>, vector<1x1x32xf32>
    %561 = vector.shape_cast %560 : vector<1x1x32xf32> to vector<1x32xf32>
    %562 = vector.broadcast %561 : vector<1x32xf32> to vector<16x32xf32>
    %563 = arith.mulf %559, %562 : vector<16x32xf32>
    %c13_343 = arith.constant 13 : index
    %c0_344 = arith.constant 0 : index
    %c0_345 = arith.constant 0 : index
    %564 = vector.load %arg12[%c13_343, %c0_344, %c0_345] : memref<31x1x32xf32, #tpu.memory_space<vmem>>, vector<1x1x32xf32>
    %565 = vector.shape_cast %564 : vector<1x1x32xf32> to vector<1x32xf32>
    %566 = vector.broadcast %565 : vector<1x32xf32> to vector<16x32xf32>
    %567 = arith.addf %563, %566 : vector<16x32xf32>
    %c22_346 = arith.constant 22 : index
    %c0_347 = arith.constant 0 : index
    %c0_348 = arith.constant 0 : index
    %568 = vector.load %arg12[%c22_346, %c0_347, %c0_348] : memref<31x1x32xf32, #tpu.memory_space<vmem>>, vector<1x1x32xf32>
    %569 = vector.shape_cast %568 : vector<1x1x32xf32> to vector<1x32xf32>
    %c24 = arith.constant 24 : index
    %c0_349 = arith.constant 0 : index
    %c0_350 = arith.constant 0 : index
    %570 = vector.load %arg4[%c24, %c0_349, %c0_350] : memref<72x32x8xf32, #tpu.memory_space<vmem>>, vector<1x32x8xf32>
    %571 = vector.shape_cast %570 : vector<1x32x8xf32> to vector<32x8xf32>
    %cst_351 = arith.constant dense<0.000000e+00> : vector<16x8xf32>
    %572 = tpu.matmul %109, %571, %cst_351 {dimension_numbers = #tpu.dot_dimension_numbers<[1], [0], [0], [1], [0, 0, 1, 1], [], []>} : vector<16x32xf32>, vector<32x8xf32>, vector<16x8xf32> -> vector<16x8xf32>
    %c24_352 = arith.constant 24 : index
    %c0_353 = arith.constant 0 : index
    %c0_354 = arith.constant 0 : index
    %573 = vector.load %arg5[%c24_352, %c0_353, %c0_354] : memref<72x1x8xf32, #tpu.memory_space<vmem>>, vector<1x1x8xf32>
    %574 = vector.shape_cast %573 : vector<1x1x8xf32> to vector<1x8xf32>
    %575 = vector.broadcast %574 : vector<1x8xf32> to vector<16x8xf32>
    %576 = arith.addf %572, %575 : vector<16x8xf32>
    %c28 = arith.constant 28 : index
    %c0_355 = arith.constant 0 : index
    %c0_356 = arith.constant 0 : index
    %577 = vector.load %arg4[%c28, %c0_355, %c0_356] : memref<72x32x8xf32, #tpu.memory_space<vmem>>, vector<1x32x8xf32>
    %578 = vector.shape_cast %577 : vector<1x32x8xf32> to vector<32x8xf32>
    %cst_357 = arith.constant dense<0.000000e+00> : vector<16x8xf32>
    %579 = tpu.matmul %109, %578, %cst_357 {dimension_numbers = #tpu.dot_dimension_numbers<[1], [0], [0], [1], [0, 0, 1, 1], [], []>} : vector<16x32xf32>, vector<32x8xf32>, vector<16x8xf32> -> vector<16x8xf32>
    %c28_358 = arith.constant 28 : index
    %c0_359 = arith.constant 0 : index
    %c0_360 = arith.constant 0 : index
    %580 = vector.load %arg5[%c28_358, %c0_359, %c0_360] : memref<72x1x8xf32, #tpu.memory_space<vmem>>, vector<1x1x8xf32>
    %581 = vector.shape_cast %580 : vector<1x1x8xf32> to vector<1x8xf32>
    %582 = vector.broadcast %581 : vector<1x8xf32> to vector<16x8xf32>
    %583 = arith.addf %579, %582 : vector<16x8xf32>
    %c32 = arith.constant 32 : index
    %c0_361 = arith.constant 0 : index
    %c0_362 = arith.constant 0 : index
    %584 = vector.load %arg4[%c32, %c0_361, %c0_362] : memref<72x32x8xf32, #tpu.memory_space<vmem>>, vector<1x32x8xf32>
    %585 = vector.shape_cast %584 : vector<1x32x8xf32> to vector<32x8xf32>
    %cst_363 = arith.constant dense<0.000000e+00> : vector<16x8xf32>
    %586 = tpu.matmul %109, %585, %cst_363 {dimension_numbers = #tpu.dot_dimension_numbers<[1], [0], [0], [1], [0, 0, 1, 1], [], []>} : vector<16x32xf32>, vector<32x8xf32>, vector<16x8xf32> -> vector<16x8xf32>
    %c32_364 = arith.constant 32 : index
    %c0_365 = arith.constant 0 : index
    %c0_366 = arith.constant 0 : index
    %587 = vector.load %arg5[%c32_364, %c0_365, %c0_366] : memref<72x1x8xf32, #tpu.memory_space<vmem>>, vector<1x1x8xf32>
    %588 = vector.shape_cast %587 : vector<1x1x8xf32> to vector<1x8xf32>
    %589 = vector.broadcast %588 : vector<1x8xf32> to vector<16x8xf32>
    %590 = arith.addf %586, %589 : vector<16x8xf32>
    %cst_367 = arith.constant dense<0.000000e+00> : vector<16x16xf32>
    %591 = tpu.matmul %576, %583, %cst_367 {dimension_numbers = #tpu.dot_dimension_numbers<[1], [1], [0], [0], [0, 0, 1, 0], [], []>} : vector<16x8xf32>, vector<16x8xf32>, vector<16x16xf32> -> vector<16x16xf32>
    %cst_368 = arith.constant 0.353553385 : f32
    %592 = vector.broadcast %cst_368 : f32 to vector<16x16xf32>
    %593 = arith.mulf %591, %592 : vector<16x16xf32>
    %594 = arith.mulf %593, %53 : vector<16x16xf32>
    %595 = arith.addf %594, %51 : vector<16x16xf32>
    %cst_369 = arith.constant dense<0xFF800000> : vector<16xf32>
    %596 = vector.multi_reduction <maximumf>, %595, %cst_369 [1] : vector<16x16xf32> to vector<16xf32>
    %597 = vector.shape_cast %596 : vector<16xf32> to vector<16x1xf32>
    %598 = vector.broadcast %597 : vector<16x1xf32> to vector<16x16xf32>
    %599 = arith.subf %595, %598 : vector<16x16xf32>
    %600 = math.exp %599 : vector<16x16xf32>
    %cst_370 = arith.constant dense<0.000000e+00> : vector<16xf32>
    %601 = vector.multi_reduction <add>, %600, %cst_370 [1] : vector<16x16xf32> to vector<16xf32>
    %602 = vector.shape_cast %601 : vector<16xf32> to vector<16x1xf32>
    %603 = vector.broadcast %602 : vector<16x1xf32> to vector<16x16xf32>
    %604 = arith.divf %600, %603 : vector<16x16xf32>
    %cst_371 = arith.constant dense<0.000000e+00> : vector<16x8xf32>
    %605 = tpu.matmul %604, %590, %cst_371 {dimension_numbers = #tpu.dot_dimension_numbers<[1], [0], [0], [1], [0, 0, 1, 1], [], []>} : vector<16x16xf32>, vector<16x8xf32>, vector<16x8xf32> -> vector<16x8xf32>
    %c8_372 = arith.constant 8 : index
    %c0_373 = arith.constant 0 : index
    %c0_374 = arith.constant 0 : index
    %606 = vector.load %arg6[%c8_372, %c0_373, %c0_374] : memref<24x8x32xf32, #tpu.memory_space<vmem>>, vector<1x8x32xf32>
    %607 = vector.shape_cast %606 : vector<1x8x32xf32> to vector<8x32xf32>
    %cst_375 = arith.constant dense<0.000000e+00> : vector<16x32xf32>
    %608 = tpu.matmul %605, %607, %cst_375 {dimension_numbers = #tpu.dot_dimension_numbers<[1], [0], [0], [1], [0, 0, 1, 1], [], []>} : vector<16x8xf32>, vector<8x32xf32>, vector<16x32xf32> -> vector<16x32xf32>
    %609 = vector.broadcast %569 : vector<1x32xf32> to vector<16x32xf32>
    %610 = arith.addf %609, %608 : vector<16x32xf32>
    %c25 = arith.constant 25 : index
    %c0_376 = arith.constant 0 : index
    %c0_377 = arith.constant 0 : index
    %611 = vector.load %arg4[%c25, %c0_376, %c0_377] : memref<72x32x8xf32, #tpu.memory_space<vmem>>, vector<1x32x8xf32>
    %612 = vector.shape_cast %611 : vector<1x32x8xf32> to vector<32x8xf32>
    %cst_378 = arith.constant dense<0.000000e+00> : vector<16x8xf32>
    %613 = tpu.matmul %109, %612, %cst_378 {dimension_numbers = #tpu.dot_dimension_numbers<[1], [0], [0], [1], [0, 0, 1, 1], [], []>} : vector<16x32xf32>, vector<32x8xf32>, vector<16x8xf32> -> vector<16x8xf32>
    %c25_379 = arith.constant 25 : index
    %c0_380 = arith.constant 0 : index
    %c0_381 = arith.constant 0 : index
    %614 = vector.load %arg5[%c25_379, %c0_380, %c0_381] : memref<72x1x8xf32, #tpu.memory_space<vmem>>, vector<1x1x8xf32>
    %615 = vector.shape_cast %614 : vector<1x1x8xf32> to vector<1x8xf32>
    %616 = vector.broadcast %615 : vector<1x8xf32> to vector<16x8xf32>
    %617 = arith.addf %613, %616 : vector<16x8xf32>
    %c29 = arith.constant 29 : index
    %c0_382 = arith.constant 0 : index
    %c0_383 = arith.constant 0 : index
    %618 = vector.load %arg4[%c29, %c0_382, %c0_383] : memref<72x32x8xf32, #tpu.memory_space<vmem>>, vector<1x32x8xf32>
    %619 = vector.shape_cast %618 : vector<1x32x8xf32> to vector<32x8xf32>
    %cst_384 = arith.constant dense<0.000000e+00> : vector<16x8xf32>
    %620 = tpu.matmul %109, %619, %cst_384 {dimension_numbers = #tpu.dot_dimension_numbers<[1], [0], [0], [1], [0, 0, 1, 1], [], []>} : vector<16x32xf32>, vector<32x8xf32>, vector<16x8xf32> -> vector<16x8xf32>
    %c29_385 = arith.constant 29 : index
    %c0_386 = arith.constant 0 : index
    %c0_387 = arith.constant 0 : index
    %621 = vector.load %arg5[%c29_385, %c0_386, %c0_387] : memref<72x1x8xf32, #tpu.memory_space<vmem>>, vector<1x1x8xf32>
    %622 = vector.shape_cast %621 : vector<1x1x8xf32> to vector<1x8xf32>
    %623 = vector.broadcast %622 : vector<1x8xf32> to vector<16x8xf32>
    %624 = arith.addf %620, %623 : vector<16x8xf32>
    %c33 = arith.constant 33 : index
    %c0_388 = arith.constant 0 : index
    %c0_389 = arith.constant 0 : index
    %625 = vector.load %arg4[%c33, %c0_388, %c0_389] : memref<72x32x8xf32, #tpu.memory_space<vmem>>, vector<1x32x8xf32>
    %626 = vector.shape_cast %625 : vector<1x32x8xf32> to vector<32x8xf32>
    %cst_390 = arith.constant dense<0.000000e+00> : vector<16x8xf32>
    %627 = tpu.matmul %109, %626, %cst_390 {dimension_numbers = #tpu.dot_dimension_numbers<[1], [0], [0], [1], [0, 0, 1, 1], [], []>} : vector<16x32xf32>, vector<32x8xf32>, vector<16x8xf32> -> vector<16x8xf32>
    %c33_391 = arith.constant 33 : index
    %c0_392 = arith.constant 0 : index
    %c0_393 = arith.constant 0 : index
    %628 = vector.load %arg5[%c33_391, %c0_392, %c0_393] : memref<72x1x8xf32, #tpu.memory_space<vmem>>, vector<1x1x8xf32>
    %629 = vector.shape_cast %628 : vector<1x1x8xf32> to vector<1x8xf32>
    %630 = vector.broadcast %629 : vector<1x8xf32> to vector<16x8xf32>
    %631 = arith.addf %627, %630 : vector<16x8xf32>
    %cst_394 = arith.constant dense<0.000000e+00> : vector<16x16xf32>
    %632 = tpu.matmul %617, %624, %cst_394 {dimension_numbers = #tpu.dot_dimension_numbers<[1], [1], [0], [0], [0, 0, 1, 0], [], []>} : vector<16x8xf32>, vector<16x8xf32>, vector<16x16xf32> -> vector<16x16xf32>
    %cst_395 = arith.constant 0.353553385 : f32
    %633 = vector.broadcast %cst_395 : f32 to vector<16x16xf32>
    %634 = arith.mulf %632, %633 : vector<16x16xf32>
    %635 = arith.mulf %634, %53 : vector<16x16xf32>
    %636 = arith.addf %635, %51 : vector<16x16xf32>
    %cst_396 = arith.constant dense<0xFF800000> : vector<16xf32>
    %637 = vector.multi_reduction <maximumf>, %636, %cst_396 [1] : vector<16x16xf32> to vector<16xf32>
    %638 = vector.shape_cast %637 : vector<16xf32> to vector<16x1xf32>
    %639 = vector.broadcast %638 : vector<16x1xf32> to vector<16x16xf32>
    %640 = arith.subf %636, %639 : vector<16x16xf32>
    %641 = math.exp %640 : vector<16x16xf32>
    %cst_397 = arith.constant dense<0.000000e+00> : vector<16xf32>
    %642 = vector.multi_reduction <add>, %641, %cst_397 [1] : vector<16x16xf32> to vector<16xf32>
    %643 = vector.shape_cast %642 : vector<16xf32> to vector<16x1xf32>
    %644 = vector.broadcast %643 : vector<16x1xf32> to vector<16x16xf32>
    %645 = arith.divf %641, %644 : vector<16x16xf32>
    %cst_398 = arith.constant dense<0.000000e+00> : vector<16x8xf32>
    %646 = tpu.matmul %645, %631, %cst_398 {dimension_numbers = #tpu.dot_dimension_numbers<[1], [0], [0], [1], [0, 0, 1, 1], [], []>} : vector<16x16xf32>, vector<16x8xf32>, vector<16x8xf32> -> vector<16x8xf32>
    %c9_399 = arith.constant 9 : index
    %c0_400 = arith.constant 0 : index
    %c0_401 = arith.constant 0 : index
    %647 = vector.load %arg6[%c9_399, %c0_400, %c0_401] : memref<24x8x32xf32, #tpu.memory_space<vmem>>, vector<1x8x32xf32>
    %648 = vector.shape_cast %647 : vector<1x8x32xf32> to vector<8x32xf32>
    %cst_402 = arith.constant dense<0.000000e+00> : vector<16x32xf32>
    %649 = tpu.matmul %646, %648, %cst_402 {dimension_numbers = #tpu.dot_dimension_numbers<[1], [0], [0], [1], [0, 0, 1, 1], [], []>} : vector<16x8xf32>, vector<8x32xf32>, vector<16x32xf32> -> vector<16x32xf32>
    %650 = arith.addf %610, %649 : vector<16x32xf32>
    %c26_403 = arith.constant 26 : index
    %c0_404 = arith.constant 0 : index
    %c0_405 = arith.constant 0 : index
    %651 = vector.load %arg4[%c26_403, %c0_404, %c0_405] : memref<72x32x8xf32, #tpu.memory_space<vmem>>, vector<1x32x8xf32>
    %652 = vector.shape_cast %651 : vector<1x32x8xf32> to vector<32x8xf32>
    %cst_406 = arith.constant dense<0.000000e+00> : vector<16x8xf32>
    %653 = tpu.matmul %109, %652, %cst_406 {dimension_numbers = #tpu.dot_dimension_numbers<[1], [0], [0], [1], [0, 0, 1, 1], [], []>} : vector<16x32xf32>, vector<32x8xf32>, vector<16x8xf32> -> vector<16x8xf32>
    %c26_407 = arith.constant 26 : index
    %c0_408 = arith.constant 0 : index
    %c0_409 = arith.constant 0 : index
    %654 = vector.load %arg5[%c26_407, %c0_408, %c0_409] : memref<72x1x8xf32, #tpu.memory_space<vmem>>, vector<1x1x8xf32>
    %655 = vector.shape_cast %654 : vector<1x1x8xf32> to vector<1x8xf32>
    %656 = vector.broadcast %655 : vector<1x8xf32> to vector<16x8xf32>
    %657 = arith.addf %653, %656 : vector<16x8xf32>
    %c30 = arith.constant 30 : index
    %c0_410 = arith.constant 0 : index
    %c0_411 = arith.constant 0 : index
    %658 = vector.load %arg4[%c30, %c0_410, %c0_411] : memref<72x32x8xf32, #tpu.memory_space<vmem>>, vector<1x32x8xf32>
    %659 = vector.shape_cast %658 : vector<1x32x8xf32> to vector<32x8xf32>
    %cst_412 = arith.constant dense<0.000000e+00> : vector<16x8xf32>
    %660 = tpu.matmul %109, %659, %cst_412 {dimension_numbers = #tpu.dot_dimension_numbers<[1], [0], [0], [1], [0, 0, 1, 1], [], []>} : vector<16x32xf32>, vector<32x8xf32>, vector<16x8xf32> -> vector<16x8xf32>
    %c30_413 = arith.constant 30 : index
    %c0_414 = arith.constant 0 : index
    %c0_415 = arith.constant 0 : index
    %661 = vector.load %arg5[%c30_413, %c0_414, %c0_415] : memref<72x1x8xf32, #tpu.memory_space<vmem>>, vector<1x1x8xf32>
    %662 = vector.shape_cast %661 : vector<1x1x8xf32> to vector<1x8xf32>
    %663 = vector.broadcast %662 : vector<1x8xf32> to vector<16x8xf32>
    %664 = arith.addf %660, %663 : vector<16x8xf32>
    %c34 = arith.constant 34 : index
    %c0_416 = arith.constant 0 : index
    %c0_417 = arith.constant 0 : index
    %665 = vector.load %arg4[%c34, %c0_416, %c0_417] : memref<72x32x8xf32, #tpu.memory_space<vmem>>, vector<1x32x8xf32>
    %666 = vector.shape_cast %665 : vector<1x32x8xf32> to vector<32x8xf32>
    %cst_418 = arith.constant dense<0.000000e+00> : vector<16x8xf32>
    %667 = tpu.matmul %109, %666, %cst_418 {dimension_numbers = #tpu.dot_dimension_numbers<[1], [0], [0], [1], [0, 0, 1, 1], [], []>} : vector<16x32xf32>, vector<32x8xf32>, vector<16x8xf32> -> vector<16x8xf32>
    %c34_419 = arith.constant 34 : index
    %c0_420 = arith.constant 0 : index
    %c0_421 = arith.constant 0 : index
    %668 = vector.load %arg5[%c34_419, %c0_420, %c0_421] : memref<72x1x8xf32, #tpu.memory_space<vmem>>, vector<1x1x8xf32>
    %669 = vector.shape_cast %668 : vector<1x1x8xf32> to vector<1x8xf32>
    %670 = vector.broadcast %669 : vector<1x8xf32> to vector<16x8xf32>
    %671 = arith.addf %667, %670 : vector<16x8xf32>
    %cst_422 = arith.constant dense<0.000000e+00> : vector<16x16xf32>
    %672 = tpu.matmul %657, %664, %cst_422 {dimension_numbers = #tpu.dot_dimension_numbers<[1], [1], [0], [0], [0, 0, 1, 0], [], []>} : vector<16x8xf32>, vector<16x8xf32>, vector<16x16xf32> -> vector<16x16xf32>
    %cst_423 = arith.constant 0.353553385 : f32
    %673 = vector.broadcast %cst_423 : f32 to vector<16x16xf32>
    %674 = arith.mulf %672, %673 : vector<16x16xf32>
    %675 = arith.mulf %674, %53 : vector<16x16xf32>
    %676 = arith.addf %675, %51 : vector<16x16xf32>
    %cst_424 = arith.constant dense<0xFF800000> : vector<16xf32>
    %677 = vector.multi_reduction <maximumf>, %676, %cst_424 [1] : vector<16x16xf32> to vector<16xf32>
    %678 = vector.shape_cast %677 : vector<16xf32> to vector<16x1xf32>
    %679 = vector.broadcast %678 : vector<16x1xf32> to vector<16x16xf32>
    %680 = arith.subf %676, %679 : vector<16x16xf32>
    %681 = math.exp %680 : vector<16x16xf32>
    %cst_425 = arith.constant dense<0.000000e+00> : vector<16xf32>
    %682 = vector.multi_reduction <add>, %681, %cst_425 [1] : vector<16x16xf32> to vector<16xf32>
    %683 = vector.shape_cast %682 : vector<16xf32> to vector<16x1xf32>
    %684 = vector.broadcast %683 : vector<16x1xf32> to vector<16x16xf32>
    %685 = arith.divf %681, %684 : vector<16x16xf32>
    %cst_426 = arith.constant dense<0.000000e+00> : vector<16x8xf32>
    %686 = tpu.matmul %685, %671, %cst_426 {dimension_numbers = #tpu.dot_dimension_numbers<[1], [0], [0], [1], [0, 0, 1, 1], [], []>} : vector<16x16xf32>, vector<16x8xf32>, vector<16x8xf32> -> vector<16x8xf32>
    %c10_427 = arith.constant 10 : index
    %c0_428 = arith.constant 0 : index
    %c0_429 = arith.constant 0 : index
    %687 = vector.load %arg6[%c10_427, %c0_428, %c0_429] : memref<24x8x32xf32, #tpu.memory_space<vmem>>, vector<1x8x32xf32>
    %688 = vector.shape_cast %687 : vector<1x8x32xf32> to vector<8x32xf32>
    %cst_430 = arith.constant dense<0.000000e+00> : vector<16x32xf32>
    %689 = tpu.matmul %686, %688, %cst_430 {dimension_numbers = #tpu.dot_dimension_numbers<[1], [0], [0], [1], [0, 0, 1, 1], [], []>} : vector<16x8xf32>, vector<8x32xf32>, vector<16x32xf32> -> vector<16x32xf32>
    %690 = arith.addf %650, %689 : vector<16x32xf32>
    %c27_431 = arith.constant 27 : index
    %c0_432 = arith.constant 0 : index
    %c0_433 = arith.constant 0 : index
    %691 = vector.load %arg4[%c27_431, %c0_432, %c0_433] : memref<72x32x8xf32, #tpu.memory_space<vmem>>, vector<1x32x8xf32>
    %692 = vector.shape_cast %691 : vector<1x32x8xf32> to vector<32x8xf32>
    %cst_434 = arith.constant dense<0.000000e+00> : vector<16x8xf32>
    %693 = tpu.matmul %109, %692, %cst_434 {dimension_numbers = #tpu.dot_dimension_numbers<[1], [0], [0], [1], [0, 0, 1, 1], [], []>} : vector<16x32xf32>, vector<32x8xf32>, vector<16x8xf32> -> vector<16x8xf32>
    %c27_435 = arith.constant 27 : index
    %c0_436 = arith.constant 0 : index
    %c0_437 = arith.constant 0 : index
    %694 = vector.load %arg5[%c27_435, %c0_436, %c0_437] : memref<72x1x8xf32, #tpu.memory_space<vmem>>, vector<1x1x8xf32>
    %695 = vector.shape_cast %694 : vector<1x1x8xf32> to vector<1x8xf32>
    %696 = vector.broadcast %695 : vector<1x8xf32> to vector<16x8xf32>
    %697 = arith.addf %693, %696 : vector<16x8xf32>
    %c31 = arith.constant 31 : index
    %c0_438 = arith.constant 0 : index
    %c0_439 = arith.constant 0 : index
    %698 = vector.load %arg4[%c31, %c0_438, %c0_439] : memref<72x32x8xf32, #tpu.memory_space<vmem>>, vector<1x32x8xf32>
    %699 = vector.shape_cast %698 : vector<1x32x8xf32> to vector<32x8xf32>
    %cst_440 = arith.constant dense<0.000000e+00> : vector<16x8xf32>
    %700 = tpu.matmul %109, %699, %cst_440 {dimension_numbers = #tpu.dot_dimension_numbers<[1], [0], [0], [1], [0, 0, 1, 1], [], []>} : vector<16x32xf32>, vector<32x8xf32>, vector<16x8xf32> -> vector<16x8xf32>
    %c31_441 = arith.constant 31 : index
    %c0_442 = arith.constant 0 : index
    %c0_443 = arith.constant 0 : index
    %701 = vector.load %arg5[%c31_441, %c0_442, %c0_443] : memref<72x1x8xf32, #tpu.memory_space<vmem>>, vector<1x1x8xf32>
    %702 = vector.shape_cast %701 : vector<1x1x8xf32> to vector<1x8xf32>
    %703 = vector.broadcast %702 : vector<1x8xf32> to vector<16x8xf32>
    %704 = arith.addf %700, %703 : vector<16x8xf32>
    %c35 = arith.constant 35 : index
    %c0_444 = arith.constant 0 : index
    %c0_445 = arith.constant 0 : index
    %705 = vector.load %arg4[%c35, %c0_444, %c0_445] : memref<72x32x8xf32, #tpu.memory_space<vmem>>, vector<1x32x8xf32>
    %706 = vector.shape_cast %705 : vector<1x32x8xf32> to vector<32x8xf32>
    %cst_446 = arith.constant dense<0.000000e+00> : vector<16x8xf32>
    %707 = tpu.matmul %109, %706, %cst_446 {dimension_numbers = #tpu.dot_dimension_numbers<[1], [0], [0], [1], [0, 0, 1, 1], [], []>} : vector<16x32xf32>, vector<32x8xf32>, vector<16x8xf32> -> vector<16x8xf32>
    %c35_447 = arith.constant 35 : index
    %c0_448 = arith.constant 0 : index
    %c0_449 = arith.constant 0 : index
    %708 = vector.load %arg5[%c35_447, %c0_448, %c0_449] : memref<72x1x8xf32, #tpu.memory_space<vmem>>, vector<1x1x8xf32>
    %709 = vector.shape_cast %708 : vector<1x1x8xf32> to vector<1x8xf32>
    %710 = vector.broadcast %709 : vector<1x8xf32> to vector<16x8xf32>
    %711 = arith.addf %707, %710 : vector<16x8xf32>
    %cst_450 = arith.constant dense<0.000000e+00> : vector<16x16xf32>
    %712 = tpu.matmul %697, %704, %cst_450 {dimension_numbers = #tpu.dot_dimension_numbers<[1], [1], [0], [0], [0, 0, 1, 0], [], []>} : vector<16x8xf32>, vector<16x8xf32>, vector<16x16xf32> -> vector<16x16xf32>
    %cst_451 = arith.constant 0.353553385 : f32
    %713 = vector.broadcast %cst_451 : f32 to vector<16x16xf32>
    %714 = arith.mulf %712, %713 : vector<16x16xf32>
    %715 = arith.mulf %714, %53 : vector<16x16xf32>
    %716 = arith.addf %715, %51 : vector<16x16xf32>
    %cst_452 = arith.constant dense<0xFF800000> : vector<16xf32>
    %717 = vector.multi_reduction <maximumf>, %716, %cst_452 [1] : vector<16x16xf32> to vector<16xf32>
    %718 = vector.shape_cast %717 : vector<16xf32> to vector<16x1xf32>
    %719 = vector.broadcast %718 : vector<16x1xf32> to vector<16x16xf32>
    %720 = arith.subf %716, %719 : vector<16x16xf32>
    %721 = math.exp %720 : vector<16x16xf32>
    %cst_453 = arith.constant dense<0.000000e+00> : vector<16xf32>
    %722 = vector.multi_reduction <add>, %721, %cst_453 [1] : vector<16x16xf32> to vector<16xf32>
    %723 = vector.shape_cast %722 : vector<16xf32> to vector<16x1xf32>
    %724 = vector.broadcast %723 : vector<16x1xf32> to vector<16x16xf32>
    %725 = arith.divf %721, %724 : vector<16x16xf32>
    %cst_454 = arith.constant dense<0.000000e+00> : vector<16x8xf32>
    %726 = tpu.matmul %725, %711, %cst_454 {dimension_numbers = #tpu.dot_dimension_numbers<[1], [0], [0], [1], [0, 0, 1, 1], [], []>} : vector<16x16xf32>, vector<16x8xf32>, vector<16x8xf32> -> vector<16x8xf32>
    %c11_455 = arith.constant 11 : index
    %c0_456 = arith.constant 0 : index
    %c0_457 = arith.constant 0 : index
    %727 = vector.load %arg6[%c11_455, %c0_456, %c0_457] : memref<24x8x32xf32, #tpu.memory_space<vmem>>, vector<1x8x32xf32>
    %728 = vector.shape_cast %727 : vector<1x8x32xf32> to vector<8x32xf32>
    %cst_458 = arith.constant dense<0.000000e+00> : vector<16x32xf32>
    %729 = tpu.matmul %726, %728, %cst_458 {dimension_numbers = #tpu.dot_dimension_numbers<[1], [0], [0], [1], [0, 0, 1, 1], [], []>} : vector<16x8xf32>, vector<8x32xf32>, vector<16x32xf32> -> vector<16x32xf32>
    %730 = arith.addf %690, %729 : vector<16x32xf32>
    %731 = arith.addf %109, %730 : vector<16x32xf32>
    %cst_459 = arith.constant dense<0.000000e+00> : vector<16xf32>
    %732 = vector.multi_reduction <add>, %731, %cst_459 [1] : vector<16x32xf32> to vector<16xf32>
    %733 = vector.shape_cast %732 : vector<16xf32> to vector<16x1xf32>
    %cst_460 = arith.constant 3.200000e+01 : f32
    %734 = vector.broadcast %cst_460 : f32 to vector<16x1xf32>
    %735 = arith.divf %733, %734 : vector<16x1xf32>
    %736 = vector.broadcast %735 : vector<16x1xf32> to vector<16x32xf32>
    %737 = arith.subf %731, %736 : vector<16x32xf32>
    %738 = arith.mulf %737, %737 : vector<16x32xf32>
    %cst_461 = arith.constant dense<0.000000e+00> : vector<16xf32>
    %739 = vector.multi_reduction <add>, %738, %cst_461 [1] : vector<16x32xf32> to vector<16xf32>
    %740 = vector.shape_cast %739 : vector<16xf32> to vector<16x1xf32>
    %cst_462 = arith.constant 3.200000e+01 : f32
    %741 = vector.broadcast %cst_462 : f32 to vector<16x1xf32>
    %742 = arith.divf %740, %741 : vector<16x1xf32>
    %cst_463 = arith.constant 9.99999974E-6 : f32
    %743 = vector.broadcast %cst_463 : f32 to vector<16x1xf32>
    %744 = arith.addf %742, %743 : vector<16x1xf32>
    %745 = math.rsqrt %744 : vector<16x1xf32>
    %746 = vector.broadcast %745 : vector<16x1xf32> to vector<16x32xf32>
    %747 = arith.mulf %737, %746 : vector<16x32xf32>
    %c4_464 = arith.constant 4 : index
    %c0_465 = arith.constant 0 : index
    %c0_466 = arith.constant 0 : index
    %748 = vector.load %arg12[%c4_464, %c0_465, %c0_466] : memref<31x1x32xf32, #tpu.memory_space<vmem>>, vector<1x1x32xf32>
    %749 = vector.shape_cast %748 : vector<1x1x32xf32> to vector<1x32xf32>
    %750 = vector.broadcast %749 : vector<1x32xf32> to vector<16x32xf32>
    %751 = arith.mulf %747, %750 : vector<16x32xf32>
    %c14_467 = arith.constant 14 : index
    %c0_468 = arith.constant 0 : index
    %c0_469 = arith.constant 0 : index
    %752 = vector.load %arg12[%c14_467, %c0_468, %c0_469] : memref<31x1x32xf32, #tpu.memory_space<vmem>>, vector<1x1x32xf32>
    %753 = vector.shape_cast %752 : vector<1x1x32xf32> to vector<1x32xf32>
    %754 = vector.broadcast %753 : vector<1x32xf32> to vector<16x32xf32>
    %755 = arith.addf %751, %754 : vector<16x32xf32>
    %c24_470 = arith.constant 24 : index
    %c0_471 = arith.constant 0 : index
    %c0_472 = arith.constant 0 : index
    %756 = vector.load %arg12[%c24_470, %c0_471, %c0_472] : memref<31x1x32xf32, #tpu.memory_space<vmem>>, vector<1x1x32xf32>
    %757 = vector.shape_cast %756 : vector<1x1x32xf32> to vector<1x32xf32>
    %c48 = arith.constant 48 : index
    %c0_473 = arith.constant 0 : index
    %c0_474 = arith.constant 0 : index
    %758 = vector.load %arg4[%c48, %c0_473, %c0_474] : memref<72x32x8xf32, #tpu.memory_space<vmem>>, vector<1x32x8xf32>
    %759 = vector.shape_cast %758 : vector<1x32x8xf32> to vector<32x8xf32>
    %cst_475 = arith.constant dense<0.000000e+00> : vector<16x8xf32>
    %760 = tpu.matmul %755, %759, %cst_475 {dimension_numbers = #tpu.dot_dimension_numbers<[1], [0], [0], [1], [0, 0, 1, 1], [], []>} : vector<16x32xf32>, vector<32x8xf32>, vector<16x8xf32> -> vector<16x8xf32>
    %c48_476 = arith.constant 48 : index
    %c0_477 = arith.constant 0 : index
    %c0_478 = arith.constant 0 : index
    %761 = vector.load %arg5[%c48_476, %c0_477, %c0_478] : memref<72x1x8xf32, #tpu.memory_space<vmem>>, vector<1x1x8xf32>
    %762 = vector.shape_cast %761 : vector<1x1x8xf32> to vector<1x8xf32>
    %763 = vector.broadcast %762 : vector<1x8xf32> to vector<16x8xf32>
    %764 = arith.addf %760, %763 : vector<16x8xf32>
    %c52 = arith.constant 52 : index
    %c0_479 = arith.constant 0 : index
    %c0_480 = arith.constant 0 : index
    %765 = vector.load %arg4[%c52, %c0_479, %c0_480] : memref<72x32x8xf32, #tpu.memory_space<vmem>>, vector<1x32x8xf32>
    %766 = vector.shape_cast %765 : vector<1x32x8xf32> to vector<32x8xf32>
    %cst_481 = arith.constant dense<0.000000e+00> : vector<16x8xf32>
    %767 = tpu.matmul %567, %766, %cst_481 {dimension_numbers = #tpu.dot_dimension_numbers<[1], [0], [0], [1], [0, 0, 1, 1], [], []>} : vector<16x32xf32>, vector<32x8xf32>, vector<16x8xf32> -> vector<16x8xf32>
    %c52_482 = arith.constant 52 : index
    %c0_483 = arith.constant 0 : index
    %c0_484 = arith.constant 0 : index
    %768 = vector.load %arg5[%c52_482, %c0_483, %c0_484] : memref<72x1x8xf32, #tpu.memory_space<vmem>>, vector<1x1x8xf32>
    %769 = vector.shape_cast %768 : vector<1x1x8xf32> to vector<1x8xf32>
    %770 = vector.broadcast %769 : vector<1x8xf32> to vector<16x8xf32>
    %771 = arith.addf %767, %770 : vector<16x8xf32>
    %c56 = arith.constant 56 : index
    %c0_485 = arith.constant 0 : index
    %c0_486 = arith.constant 0 : index
    %772 = vector.load %arg4[%c56, %c0_485, %c0_486] : memref<72x32x8xf32, #tpu.memory_space<vmem>>, vector<1x32x8xf32>
    %773 = vector.shape_cast %772 : vector<1x32x8xf32> to vector<32x8xf32>
    %cst_487 = arith.constant dense<0.000000e+00> : vector<16x8xf32>
    %774 = tpu.matmul %567, %773, %cst_487 {dimension_numbers = #tpu.dot_dimension_numbers<[1], [0], [0], [1], [0, 0, 1, 1], [], []>} : vector<16x32xf32>, vector<32x8xf32>, vector<16x8xf32> -> vector<16x8xf32>
    %c56_488 = arith.constant 56 : index
    %c0_489 = arith.constant 0 : index
    %c0_490 = arith.constant 0 : index
    %775 = vector.load %arg5[%c56_488, %c0_489, %c0_490] : memref<72x1x8xf32, #tpu.memory_space<vmem>>, vector<1x1x8xf32>
    %776 = vector.shape_cast %775 : vector<1x1x8xf32> to vector<1x8xf32>
    %777 = vector.broadcast %776 : vector<1x8xf32> to vector<16x8xf32>
    %778 = arith.addf %774, %777 : vector<16x8xf32>
    %cst_491 = arith.constant dense<0.000000e+00> : vector<16x16xf32>
    %779 = tpu.matmul %764, %771, %cst_491 {dimension_numbers = #tpu.dot_dimension_numbers<[1], [1], [0], [0], [0, 0, 1, 0], [], []>} : vector<16x8xf32>, vector<16x8xf32>, vector<16x16xf32> -> vector<16x16xf32>
    %cst_492 = arith.constant 0.353553385 : f32
    %780 = vector.broadcast %cst_492 : f32 to vector<16x16xf32>
    %781 = arith.mulf %779, %780 : vector<16x16xf32>
    %782 = arith.mulf %781, %73 : vector<16x16xf32>
    %783 = arith.addf %782, %71 : vector<16x16xf32>
    %cst_493 = arith.constant dense<0xFF800000> : vector<16xf32>
    %784 = vector.multi_reduction <maximumf>, %783, %cst_493 [1] : vector<16x16xf32> to vector<16xf32>
    %785 = vector.shape_cast %784 : vector<16xf32> to vector<16x1xf32>
    %786 = vector.broadcast %785 : vector<16x1xf32> to vector<16x16xf32>
    %787 = arith.subf %783, %786 : vector<16x16xf32>
    %788 = math.exp %787 : vector<16x16xf32>
    %cst_494 = arith.constant dense<0.000000e+00> : vector<16xf32>
    %789 = vector.multi_reduction <add>, %788, %cst_494 [1] : vector<16x16xf32> to vector<16xf32>
    %790 = vector.shape_cast %789 : vector<16xf32> to vector<16x1xf32>
    %791 = vector.broadcast %790 : vector<16x1xf32> to vector<16x16xf32>
    %792 = arith.divf %788, %791 : vector<16x16xf32>
    %cst_495 = arith.constant dense<0.000000e+00> : vector<16x8xf32>
    %793 = tpu.matmul %792, %778, %cst_495 {dimension_numbers = #tpu.dot_dimension_numbers<[1], [0], [0], [1], [0, 0, 1, 1], [], []>} : vector<16x16xf32>, vector<16x8xf32>, vector<16x8xf32> -> vector<16x8xf32>
    %c16_496 = arith.constant 16 : index
    %c0_497 = arith.constant 0 : index
    %c0_498 = arith.constant 0 : index
    %794 = vector.load %arg6[%c16_496, %c0_497, %c0_498] : memref<24x8x32xf32, #tpu.memory_space<vmem>>, vector<1x8x32xf32>
    %795 = vector.shape_cast %794 : vector<1x8x32xf32> to vector<8x32xf32>
    %cst_499 = arith.constant dense<0.000000e+00> : vector<16x32xf32>
    %796 = tpu.matmul %793, %795, %cst_499 {dimension_numbers = #tpu.dot_dimension_numbers<[1], [0], [0], [1], [0, 0, 1, 1], [], []>} : vector<16x8xf32>, vector<8x32xf32>, vector<16x32xf32> -> vector<16x32xf32>
    %797 = vector.broadcast %757 : vector<1x32xf32> to vector<16x32xf32>
    %798 = arith.addf %797, %796 : vector<16x32xf32>
    %c49 = arith.constant 49 : index
    %c0_500 = arith.constant 0 : index
    %c0_501 = arith.constant 0 : index
    %799 = vector.load %arg4[%c49, %c0_500, %c0_501] : memref<72x32x8xf32, #tpu.memory_space<vmem>>, vector<1x32x8xf32>
    %800 = vector.shape_cast %799 : vector<1x32x8xf32> to vector<32x8xf32>
    %cst_502 = arith.constant dense<0.000000e+00> : vector<16x8xf32>
    %801 = tpu.matmul %755, %800, %cst_502 {dimension_numbers = #tpu.dot_dimension_numbers<[1], [0], [0], [1], [0, 0, 1, 1], [], []>} : vector<16x32xf32>, vector<32x8xf32>, vector<16x8xf32> -> vector<16x8xf32>
    %c49_503 = arith.constant 49 : index
    %c0_504 = arith.constant 0 : index
    %c0_505 = arith.constant 0 : index
    %802 = vector.load %arg5[%c49_503, %c0_504, %c0_505] : memref<72x1x8xf32, #tpu.memory_space<vmem>>, vector<1x1x8xf32>
    %803 = vector.shape_cast %802 : vector<1x1x8xf32> to vector<1x8xf32>
    %804 = vector.broadcast %803 : vector<1x8xf32> to vector<16x8xf32>
    %805 = arith.addf %801, %804 : vector<16x8xf32>
    %c53 = arith.constant 53 : index
    %c0_506 = arith.constant 0 : index
    %c0_507 = arith.constant 0 : index
    %806 = vector.load %arg4[%c53, %c0_506, %c0_507] : memref<72x32x8xf32, #tpu.memory_space<vmem>>, vector<1x32x8xf32>
    %807 = vector.shape_cast %806 : vector<1x32x8xf32> to vector<32x8xf32>
    %cst_508 = arith.constant dense<0.000000e+00> : vector<16x8xf32>
    %808 = tpu.matmul %567, %807, %cst_508 {dimension_numbers = #tpu.dot_dimension_numbers<[1], [0], [0], [1], [0, 0, 1, 1], [], []>} : vector<16x32xf32>, vector<32x8xf32>, vector<16x8xf32> -> vector<16x8xf32>
    %c53_509 = arith.constant 53 : index
    %c0_510 = arith.constant 0 : index
    %c0_511 = arith.constant 0 : index
    %809 = vector.load %arg5[%c53_509, %c0_510, %c0_511] : memref<72x1x8xf32, #tpu.memory_space<vmem>>, vector<1x1x8xf32>
    %810 = vector.shape_cast %809 : vector<1x1x8xf32> to vector<1x8xf32>
    %811 = vector.broadcast %810 : vector<1x8xf32> to vector<16x8xf32>
    %812 = arith.addf %808, %811 : vector<16x8xf32>
    %c57 = arith.constant 57 : index
    %c0_512 = arith.constant 0 : index
    %c0_513 = arith.constant 0 : index
    %813 = vector.load %arg4[%c57, %c0_512, %c0_513] : memref<72x32x8xf32, #tpu.memory_space<vmem>>, vector<1x32x8xf32>
    %814 = vector.shape_cast %813 : vector<1x32x8xf32> to vector<32x8xf32>
    %cst_514 = arith.constant dense<0.000000e+00> : vector<16x8xf32>
    %815 = tpu.matmul %567, %814, %cst_514 {dimension_numbers = #tpu.dot_dimension_numbers<[1], [0], [0], [1], [0, 0, 1, 1], [], []>} : vector<16x32xf32>, vector<32x8xf32>, vector<16x8xf32> -> vector<16x8xf32>
    %c57_515 = arith.constant 57 : index
    %c0_516 = arith.constant 0 : index
    %c0_517 = arith.constant 0 : index
    %816 = vector.load %arg5[%c57_515, %c0_516, %c0_517] : memref<72x1x8xf32, #tpu.memory_space<vmem>>, vector<1x1x8xf32>
    %817 = vector.shape_cast %816 : vector<1x1x8xf32> to vector<1x8xf32>
    %818 = vector.broadcast %817 : vector<1x8xf32> to vector<16x8xf32>
    %819 = arith.addf %815, %818 : vector<16x8xf32>
    %cst_518 = arith.constant dense<0.000000e+00> : vector<16x16xf32>
    %820 = tpu.matmul %805, %812, %cst_518 {dimension_numbers = #tpu.dot_dimension_numbers<[1], [1], [0], [0], [0, 0, 1, 0], [], []>} : vector<16x8xf32>, vector<16x8xf32>, vector<16x16xf32> -> vector<16x16xf32>
    %cst_519 = arith.constant 0.353553385 : f32
    %821 = vector.broadcast %cst_519 : f32 to vector<16x16xf32>
    %822 = arith.mulf %820, %821 : vector<16x16xf32>
    %823 = arith.mulf %822, %73 : vector<16x16xf32>
    %824 = arith.addf %823, %71 : vector<16x16xf32>
    %cst_520 = arith.constant dense<0xFF800000> : vector<16xf32>
    %825 = vector.multi_reduction <maximumf>, %824, %cst_520 [1] : vector<16x16xf32> to vector<16xf32>
    %826 = vector.shape_cast %825 : vector<16xf32> to vector<16x1xf32>
    %827 = vector.broadcast %826 : vector<16x1xf32> to vector<16x16xf32>
    %828 = arith.subf %824, %827 : vector<16x16xf32>
    %829 = math.exp %828 : vector<16x16xf32>
    %cst_521 = arith.constant dense<0.000000e+00> : vector<16xf32>
    %830 = vector.multi_reduction <add>, %829, %cst_521 [1] : vector<16x16xf32> to vector<16xf32>
    %831 = vector.shape_cast %830 : vector<16xf32> to vector<16x1xf32>
    %832 = vector.broadcast %831 : vector<16x1xf32> to vector<16x16xf32>
    %833 = arith.divf %829, %832 : vector<16x16xf32>
    %cst_522 = arith.constant dense<0.000000e+00> : vector<16x8xf32>
    %834 = tpu.matmul %833, %819, %cst_522 {dimension_numbers = #tpu.dot_dimension_numbers<[1], [0], [0], [1], [0, 0, 1, 1], [], []>} : vector<16x16xf32>, vector<16x8xf32>, vector<16x8xf32> -> vector<16x8xf32>
    %c17_523 = arith.constant 17 : index
    %c0_524 = arith.constant 0 : index
    %c0_525 = arith.constant 0 : index
    %835 = vector.load %arg6[%c17_523, %c0_524, %c0_525] : memref<24x8x32xf32, #tpu.memory_space<vmem>>, vector<1x8x32xf32>
    %836 = vector.shape_cast %835 : vector<1x8x32xf32> to vector<8x32xf32>
    %cst_526 = arith.constant dense<0.000000e+00> : vector<16x32xf32>
    %837 = tpu.matmul %834, %836, %cst_526 {dimension_numbers = #tpu.dot_dimension_numbers<[1], [0], [0], [1], [0, 0, 1, 1], [], []>} : vector<16x8xf32>, vector<8x32xf32>, vector<16x32xf32> -> vector<16x32xf32>
    %838 = arith.addf %798, %837 : vector<16x32xf32>
    %c50 = arith.constant 50 : index
    %c0_527 = arith.constant 0 : index
    %c0_528 = arith.constant 0 : index
    %839 = vector.load %arg4[%c50, %c0_527, %c0_528] : memref<72x32x8xf32, #tpu.memory_space<vmem>>, vector<1x32x8xf32>
    %840 = vector.shape_cast %839 : vector<1x32x8xf32> to vector<32x8xf32>
    %cst_529 = arith.constant dense<0.000000e+00> : vector<16x8xf32>
    %841 = tpu.matmul %755, %840, %cst_529 {dimension_numbers = #tpu.dot_dimension_numbers<[1], [0], [0], [1], [0, 0, 1, 1], [], []>} : vector<16x32xf32>, vector<32x8xf32>, vector<16x8xf32> -> vector<16x8xf32>
    %c50_530 = arith.constant 50 : index
    %c0_531 = arith.constant 0 : index
    %c0_532 = arith.constant 0 : index
    %842 = vector.load %arg5[%c50_530, %c0_531, %c0_532] : memref<72x1x8xf32, #tpu.memory_space<vmem>>, vector<1x1x8xf32>
    %843 = vector.shape_cast %842 : vector<1x1x8xf32> to vector<1x8xf32>
    %844 = vector.broadcast %843 : vector<1x8xf32> to vector<16x8xf32>
    %845 = arith.addf %841, %844 : vector<16x8xf32>
    %c54 = arith.constant 54 : index
    %c0_533 = arith.constant 0 : index
    %c0_534 = arith.constant 0 : index
    %846 = vector.load %arg4[%c54, %c0_533, %c0_534] : memref<72x32x8xf32, #tpu.memory_space<vmem>>, vector<1x32x8xf32>
    %847 = vector.shape_cast %846 : vector<1x32x8xf32> to vector<32x8xf32>
    %cst_535 = arith.constant dense<0.000000e+00> : vector<16x8xf32>
    %848 = tpu.matmul %567, %847, %cst_535 {dimension_numbers = #tpu.dot_dimension_numbers<[1], [0], [0], [1], [0, 0, 1, 1], [], []>} : vector<16x32xf32>, vector<32x8xf32>, vector<16x8xf32> -> vector<16x8xf32>
    %c54_536 = arith.constant 54 : index
    %c0_537 = arith.constant 0 : index
    %c0_538 = arith.constant 0 : index
    %849 = vector.load %arg5[%c54_536, %c0_537, %c0_538] : memref<72x1x8xf32, #tpu.memory_space<vmem>>, vector<1x1x8xf32>
    %850 = vector.shape_cast %849 : vector<1x1x8xf32> to vector<1x8xf32>
    %851 = vector.broadcast %850 : vector<1x8xf32> to vector<16x8xf32>
    %852 = arith.addf %848, %851 : vector<16x8xf32>
    %c58 = arith.constant 58 : index
    %c0_539 = arith.constant 0 : index
    %c0_540 = arith.constant 0 : index
    %853 = vector.load %arg4[%c58, %c0_539, %c0_540] : memref<72x32x8xf32, #tpu.memory_space<vmem>>, vector<1x32x8xf32>
    %854 = vector.shape_cast %853 : vector<1x32x8xf32> to vector<32x8xf32>
    %cst_541 = arith.constant dense<0.000000e+00> : vector<16x8xf32>
    %855 = tpu.matmul %567, %854, %cst_541 {dimension_numbers = #tpu.dot_dimension_numbers<[1], [0], [0], [1], [0, 0, 1, 1], [], []>} : vector<16x32xf32>, vector<32x8xf32>, vector<16x8xf32> -> vector<16x8xf32>
    %c58_542 = arith.constant 58 : index
    %c0_543 = arith.constant 0 : index
    %c0_544 = arith.constant 0 : index
    %856 = vector.load %arg5[%c58_542, %c0_543, %c0_544] : memref<72x1x8xf32, #tpu.memory_space<vmem>>, vector<1x1x8xf32>
    %857 = vector.shape_cast %856 : vector<1x1x8xf32> to vector<1x8xf32>
    %858 = vector.broadcast %857 : vector<1x8xf32> to vector<16x8xf32>
    %859 = arith.addf %855, %858 : vector<16x8xf32>
    %cst_545 = arith.constant dense<0.000000e+00> : vector<16x16xf32>
    %860 = tpu.matmul %845, %852, %cst_545 {dimension_numbers = #tpu.dot_dimension_numbers<[1], [1], [0], [0], [0, 0, 1, 0], [], []>} : vector<16x8xf32>, vector<16x8xf32>, vector<16x16xf32> -> vector<16x16xf32>
    %cst_546 = arith.constant 0.353553385 : f32
    %861 = vector.broadcast %cst_546 : f32 to vector<16x16xf32>
    %862 = arith.mulf %860, %861 : vector<16x16xf32>
    %863 = arith.mulf %862, %73 : vector<16x16xf32>
    %864 = arith.addf %863, %71 : vector<16x16xf32>
    %cst_547 = arith.constant dense<0xFF800000> : vector<16xf32>
    %865 = vector.multi_reduction <maximumf>, %864, %cst_547 [1] : vector<16x16xf32> to vector<16xf32>
    %866 = vector.shape_cast %865 : vector<16xf32> to vector<16x1xf32>
    %867 = vector.broadcast %866 : vector<16x1xf32> to vector<16x16xf32>
    %868 = arith.subf %864, %867 : vector<16x16xf32>
    %869 = math.exp %868 : vector<16x16xf32>
    %cst_548 = arith.constant dense<0.000000e+00> : vector<16xf32>
    %870 = vector.multi_reduction <add>, %869, %cst_548 [1] : vector<16x16xf32> to vector<16xf32>
    %871 = vector.shape_cast %870 : vector<16xf32> to vector<16x1xf32>
    %872 = vector.broadcast %871 : vector<16x1xf32> to vector<16x16xf32>
    %873 = arith.divf %869, %872 : vector<16x16xf32>
    %cst_549 = arith.constant dense<0.000000e+00> : vector<16x8xf32>
    %874 = tpu.matmul %873, %859, %cst_549 {dimension_numbers = #tpu.dot_dimension_numbers<[1], [0], [0], [1], [0, 0, 1, 1], [], []>} : vector<16x16xf32>, vector<16x8xf32>, vector<16x8xf32> -> vector<16x8xf32>
    %c18_550 = arith.constant 18 : index
    %c0_551 = arith.constant 0 : index
    %c0_552 = arith.constant 0 : index
    %875 = vector.load %arg6[%c18_550, %c0_551, %c0_552] : memref<24x8x32xf32, #tpu.memory_space<vmem>>, vector<1x8x32xf32>
    %876 = vector.shape_cast %875 : vector<1x8x32xf32> to vector<8x32xf32>
    %cst_553 = arith.constant dense<0.000000e+00> : vector<16x32xf32>
    %877 = tpu.matmul %874, %876, %cst_553 {dimension_numbers = #tpu.dot_dimension_numbers<[1], [0], [0], [1], [0, 0, 1, 1], [], []>} : vector<16x8xf32>, vector<8x32xf32>, vector<16x32xf32> -> vector<16x32xf32>
    %878 = arith.addf %838, %877 : vector<16x32xf32>
    %c51 = arith.constant 51 : index
    %c0_554 = arith.constant 0 : index
    %c0_555 = arith.constant 0 : index
    %879 = vector.load %arg4[%c51, %c0_554, %c0_555] : memref<72x32x8xf32, #tpu.memory_space<vmem>>, vector<1x32x8xf32>
    %880 = vector.shape_cast %879 : vector<1x32x8xf32> to vector<32x8xf32>
    %cst_556 = arith.constant dense<0.000000e+00> : vector<16x8xf32>
    %881 = tpu.matmul %755, %880, %cst_556 {dimension_numbers = #tpu.dot_dimension_numbers<[1], [0], [0], [1], [0, 0, 1, 1], [], []>} : vector<16x32xf32>, vector<32x8xf32>, vector<16x8xf32> -> vector<16x8xf32>
    %c51_557 = arith.constant 51 : index
    %c0_558 = arith.constant 0 : index
    %c0_559 = arith.constant 0 : index
    %882 = vector.load %arg5[%c51_557, %c0_558, %c0_559] : memref<72x1x8xf32, #tpu.memory_space<vmem>>, vector<1x1x8xf32>
    %883 = vector.shape_cast %882 : vector<1x1x8xf32> to vector<1x8xf32>
    %884 = vector.broadcast %883 : vector<1x8xf32> to vector<16x8xf32>
    %885 = arith.addf %881, %884 : vector<16x8xf32>
    %c55 = arith.constant 55 : index
    %c0_560 = arith.constant 0 : index
    %c0_561 = arith.constant 0 : index
    %886 = vector.load %arg4[%c55, %c0_560, %c0_561] : memref<72x32x8xf32, #tpu.memory_space<vmem>>, vector<1x32x8xf32>
    %887 = vector.shape_cast %886 : vector<1x32x8xf32> to vector<32x8xf32>
    %cst_562 = arith.constant dense<0.000000e+00> : vector<16x8xf32>
    %888 = tpu.matmul %567, %887, %cst_562 {dimension_numbers = #tpu.dot_dimension_numbers<[1], [0], [0], [1], [0, 0, 1, 1], [], []>} : vector<16x32xf32>, vector<32x8xf32>, vector<16x8xf32> -> vector<16x8xf32>
    %c55_563 = arith.constant 55 : index
    %c0_564 = arith.constant 0 : index
    %c0_565 = arith.constant 0 : index
    %889 = vector.load %arg5[%c55_563, %c0_564, %c0_565] : memref<72x1x8xf32, #tpu.memory_space<vmem>>, vector<1x1x8xf32>
    %890 = vector.shape_cast %889 : vector<1x1x8xf32> to vector<1x8xf32>
    %891 = vector.broadcast %890 : vector<1x8xf32> to vector<16x8xf32>
    %892 = arith.addf %888, %891 : vector<16x8xf32>
    %c59 = arith.constant 59 : index
    %c0_566 = arith.constant 0 : index
    %c0_567 = arith.constant 0 : index
    %893 = vector.load %arg4[%c59, %c0_566, %c0_567] : memref<72x32x8xf32, #tpu.memory_space<vmem>>, vector<1x32x8xf32>
    %894 = vector.shape_cast %893 : vector<1x32x8xf32> to vector<32x8xf32>
    %cst_568 = arith.constant dense<0.000000e+00> : vector<16x8xf32>
    %895 = tpu.matmul %567, %894, %cst_568 {dimension_numbers = #tpu.dot_dimension_numbers<[1], [0], [0], [1], [0, 0, 1, 1], [], []>} : vector<16x32xf32>, vector<32x8xf32>, vector<16x8xf32> -> vector<16x8xf32>
    %c59_569 = arith.constant 59 : index
    %c0_570 = arith.constant 0 : index
    %c0_571 = arith.constant 0 : index
    %896 = vector.load %arg5[%c59_569, %c0_570, %c0_571] : memref<72x1x8xf32, #tpu.memory_space<vmem>>, vector<1x1x8xf32>
    %897 = vector.shape_cast %896 : vector<1x1x8xf32> to vector<1x8xf32>
    %898 = vector.broadcast %897 : vector<1x8xf32> to vector<16x8xf32>
    %899 = arith.addf %895, %898 : vector<16x8xf32>
    %cst_572 = arith.constant dense<0.000000e+00> : vector<16x16xf32>
    %900 = tpu.matmul %885, %892, %cst_572 {dimension_numbers = #tpu.dot_dimension_numbers<[1], [1], [0], [0], [0, 0, 1, 0], [], []>} : vector<16x8xf32>, vector<16x8xf32>, vector<16x16xf32> -> vector<16x16xf32>
    %cst_573 = arith.constant 0.353553385 : f32
    %901 = vector.broadcast %cst_573 : f32 to vector<16x16xf32>
    %902 = arith.mulf %900, %901 : vector<16x16xf32>
    %903 = arith.mulf %902, %73 : vector<16x16xf32>
    %904 = arith.addf %903, %71 : vector<16x16xf32>
    %cst_574 = arith.constant dense<0xFF800000> : vector<16xf32>
    %905 = vector.multi_reduction <maximumf>, %904, %cst_574 [1] : vector<16x16xf32> to vector<16xf32>
    %906 = vector.shape_cast %905 : vector<16xf32> to vector<16x1xf32>
    %907 = vector.broadcast %906 : vector<16x1xf32> to vector<16x16xf32>
    %908 = arith.subf %904, %907 : vector<16x16xf32>
    %909 = math.exp %908 : vector<16x16xf32>
    %cst_575 = arith.constant dense<0.000000e+00> : vector<16xf32>
    %910 = vector.multi_reduction <add>, %909, %cst_575 [1] : vector<16x16xf32> to vector<16xf32>
    %911 = vector.shape_cast %910 : vector<16xf32> to vector<16x1xf32>
    %912 = vector.broadcast %911 : vector<16x1xf32> to vector<16x16xf32>
    %913 = arith.divf %909, %912 : vector<16x16xf32>
    %cst_576 = arith.constant dense<0.000000e+00> : vector<16x8xf32>
    %914 = tpu.matmul %913, %899, %cst_576 {dimension_numbers = #tpu.dot_dimension_numbers<[1], [0], [0], [1], [0, 0, 1, 1], [], []>} : vector<16x16xf32>, vector<16x8xf32>, vector<16x8xf32> -> vector<16x8xf32>
    %c19_577 = arith.constant 19 : index
    %c0_578 = arith.constant 0 : index
    %c0_579 = arith.constant 0 : index
    %915 = vector.load %arg6[%c19_577, %c0_578, %c0_579] : memref<24x8x32xf32, #tpu.memory_space<vmem>>, vector<1x8x32xf32>
    %916 = vector.shape_cast %915 : vector<1x8x32xf32> to vector<8x32xf32>
    %cst_580 = arith.constant dense<0.000000e+00> : vector<16x32xf32>
    %917 = tpu.matmul %914, %916, %cst_580 {dimension_numbers = #tpu.dot_dimension_numbers<[1], [0], [0], [1], [0, 0, 1, 1], [], []>} : vector<16x8xf32>, vector<8x32xf32>, vector<16x32xf32> -> vector<16x32xf32>
    %918 = arith.addf %878, %917 : vector<16x32xf32>
    %919 = arith.addf %755, %918 : vector<16x32xf32>
    %cst_581 = arith.constant dense<0.000000e+00> : vector<16xf32>
    %920 = vector.multi_reduction <add>, %919, %cst_581 [1] : vector<16x32xf32> to vector<16xf32>
    %921 = vector.shape_cast %920 : vector<16xf32> to vector<16x1xf32>
    %cst_582 = arith.constant 3.200000e+01 : f32
    %922 = vector.broadcast %cst_582 : f32 to vector<16x1xf32>
    %923 = arith.divf %921, %922 : vector<16x1xf32>
    %924 = vector.broadcast %923 : vector<16x1xf32> to vector<16x32xf32>
    %925 = arith.subf %919, %924 : vector<16x32xf32>
    %926 = arith.mulf %925, %925 : vector<16x32xf32>
    %cst_583 = arith.constant dense<0.000000e+00> : vector<16xf32>
    %927 = vector.multi_reduction <add>, %926, %cst_583 [1] : vector<16x32xf32> to vector<16xf32>
    %928 = vector.shape_cast %927 : vector<16xf32> to vector<16x1xf32>
    %cst_584 = arith.constant 3.200000e+01 : f32
    %929 = vector.broadcast %cst_584 : f32 to vector<16x1xf32>
    %930 = arith.divf %928, %929 : vector<16x1xf32>
    %cst_585 = arith.constant 9.99999974E-6 : f32
    %931 = vector.broadcast %cst_585 : f32 to vector<16x1xf32>
    %932 = arith.addf %930, %931 : vector<16x1xf32>
    %933 = math.rsqrt %932 : vector<16x1xf32>
    %934 = vector.broadcast %933 : vector<16x1xf32> to vector<16x32xf32>
    %935 = arith.mulf %925, %934 : vector<16x32xf32>
    %c5_586 = arith.constant 5 : index
    %c0_587 = arith.constant 0 : index
    %c0_588 = arith.constant 0 : index
    %936 = vector.load %arg12[%c5_586, %c0_587, %c0_588] : memref<31x1x32xf32, #tpu.memory_space<vmem>>, vector<1x1x32xf32>
    %937 = vector.shape_cast %936 : vector<1x1x32xf32> to vector<1x32xf32>
    %938 = vector.broadcast %937 : vector<1x32xf32> to vector<16x32xf32>
    %939 = arith.mulf %935, %938 : vector<16x32xf32>
    %c15_589 = arith.constant 15 : index
    %c0_590 = arith.constant 0 : index
    %c0_591 = arith.constant 0 : index
    %940 = vector.load %arg12[%c15_589, %c0_590, %c0_591] : memref<31x1x32xf32, #tpu.memory_space<vmem>>, vector<1x1x32xf32>
    %941 = vector.shape_cast %940 : vector<1x1x32xf32> to vector<1x32xf32>
    %942 = vector.broadcast %941 : vector<1x32xf32> to vector<16x32xf32>
    %943 = arith.addf %939, %942 : vector<16x32xf32>
    %c2_592 = arith.constant 2 : index
    %c0_593 = arith.constant 0 : index
    %c0_594 = arith.constant 0 : index
    %944 = vector.load %arg7[%c2_592, %c0_593, %c0_594] : memref<4x32x64xf32, #tpu.memory_space<vmem>>, vector<1x32x64xf32>
    %945 = vector.shape_cast %944 : vector<1x32x64xf32> to vector<32x64xf32>
    %cst_595 = arith.constant dense<0.000000e+00> : vector<16x64xf32>
    %946 = tpu.matmul %943, %945, %cst_595 {dimension_numbers = #tpu.dot_dimension_numbers<[1], [0], [0], [1], [0, 0, 1, 1], [], []>} : vector<16x32xf32>, vector<32x64xf32>, vector<16x64xf32> -> vector<16x64xf32>
    %c2_596 = arith.constant 2 : index
    %c0_597 = arith.constant 0 : index
    %c0_598 = arith.constant 0 : index
    %947 = vector.load %arg8[%c2_596, %c0_597, %c0_598] : memref<4x1x64xf32, #tpu.memory_space<vmem>>, vector<1x1x64xf32>
    %948 = vector.shape_cast %947 : vector<1x1x64xf32> to vector<1x64xf32>
    %949 = vector.broadcast %948 : vector<1x64xf32> to vector<16x64xf32>
    %950 = arith.addf %946, %949 : vector<16x64xf32>
    %cst_599 = arith.constant 0.000000e+00 : f32
    %951 = vector.broadcast %cst_599 : f32 to vector<16x64xf32>
    %952 = arith.maximumf %950, %951 : vector<16x64xf32>
    %c2_600 = arith.constant 2 : index
    %c0_601 = arith.constant 0 : index
    %c0_602 = arith.constant 0 : index
    %953 = vector.load %arg9[%c2_600, %c0_601, %c0_602] : memref<4x64x32xf32, #tpu.memory_space<vmem>>, vector<1x64x32xf32>
    %954 = vector.shape_cast %953 : vector<1x64x32xf32> to vector<64x32xf32>
    %cst_603 = arith.constant dense<0.000000e+00> : vector<16x32xf32>
    %955 = tpu.matmul %952, %954, %cst_603 {dimension_numbers = #tpu.dot_dimension_numbers<[1], [0], [0], [1], [0, 0, 1, 1], [], []>} : vector<16x64xf32>, vector<64x32xf32>, vector<16x32xf32> -> vector<16x32xf32>
    %c28_604 = arith.constant 28 : index
    %c0_605 = arith.constant 0 : index
    %c0_606 = arith.constant 0 : index
    %956 = vector.load %arg12[%c28_604, %c0_605, %c0_606] : memref<31x1x32xf32, #tpu.memory_space<vmem>>, vector<1x1x32xf32>
    %957 = vector.shape_cast %956 : vector<1x1x32xf32> to vector<1x32xf32>
    %958 = vector.broadcast %957 : vector<1x32xf32> to vector<16x32xf32>
    %959 = arith.addf %955, %958 : vector<16x32xf32>
    %960 = arith.addf %943, %959 : vector<16x32xf32>
    %cst_607 = arith.constant dense<0.000000e+00> : vector<16xf32>
    %961 = vector.multi_reduction <add>, %960, %cst_607 [1] : vector<16x32xf32> to vector<16xf32>
    %962 = vector.shape_cast %961 : vector<16xf32> to vector<16x1xf32>
    %cst_608 = arith.constant 3.200000e+01 : f32
    %963 = vector.broadcast %cst_608 : f32 to vector<16x1xf32>
    %964 = arith.divf %962, %963 : vector<16x1xf32>
    %965 = vector.broadcast %964 : vector<16x1xf32> to vector<16x32xf32>
    %966 = arith.subf %960, %965 : vector<16x32xf32>
    %967 = arith.mulf %966, %966 : vector<16x32xf32>
    %cst_609 = arith.constant dense<0.000000e+00> : vector<16xf32>
    %968 = vector.multi_reduction <add>, %967, %cst_609 [1] : vector<16x32xf32> to vector<16xf32>
    %969 = vector.shape_cast %968 : vector<16xf32> to vector<16x1xf32>
    %cst_610 = arith.constant 3.200000e+01 : f32
    %970 = vector.broadcast %cst_610 : f32 to vector<16x1xf32>
    %971 = arith.divf %969, %970 : vector<16x1xf32>
    %cst_611 = arith.constant 9.99999974E-6 : f32
    %972 = vector.broadcast %cst_611 : f32 to vector<16x1xf32>
    %973 = arith.addf %971, %972 : vector<16x1xf32>
    %974 = math.rsqrt %973 : vector<16x1xf32>
    %975 = vector.broadcast %974 : vector<16x1xf32> to vector<16x32xf32>
    %976 = arith.mulf %966, %975 : vector<16x32xf32>
    %c6_612 = arith.constant 6 : index
    %c0_613 = arith.constant 0 : index
    %c0_614 = arith.constant 0 : index
    %977 = vector.load %arg12[%c6_612, %c0_613, %c0_614] : memref<31x1x32xf32, #tpu.memory_space<vmem>>, vector<1x1x32xf32>
    %978 = vector.shape_cast %977 : vector<1x1x32xf32> to vector<1x32xf32>
    %979 = vector.broadcast %978 : vector<1x32xf32> to vector<16x32xf32>
    %980 = arith.mulf %976, %979 : vector<16x32xf32>
    %c16_615 = arith.constant 16 : index
    %c0_616 = arith.constant 0 : index
    %c0_617 = arith.constant 0 : index
    %981 = vector.load %arg12[%c16_615, %c0_616, %c0_617] : memref<31x1x32xf32, #tpu.memory_space<vmem>>, vector<1x1x32xf32>
    %982 = vector.shape_cast %981 : vector<1x1x32xf32> to vector<1x32xf32>
    %983 = vector.broadcast %982 : vector<1x32xf32> to vector<16x32xf32>
    %984 = arith.addf %980, %983 : vector<16x32xf32>
    %c23_618 = arith.constant 23 : index
    %c0_619 = arith.constant 0 : index
    %c0_620 = arith.constant 0 : index
    %985 = vector.load %arg12[%c23_618, %c0_619, %c0_620] : memref<31x1x32xf32, #tpu.memory_space<vmem>>, vector<1x1x32xf32>
    %986 = vector.shape_cast %985 : vector<1x1x32xf32> to vector<1x32xf32>
    %c36 = arith.constant 36 : index
    %c0_621 = arith.constant 0 : index
    %c0_622 = arith.constant 0 : index
    %987 = vector.load %arg4[%c36, %c0_621, %c0_622] : memref<72x32x8xf32, #tpu.memory_space<vmem>>, vector<1x32x8xf32>
    %988 = vector.shape_cast %987 : vector<1x32x8xf32> to vector<32x8xf32>
    %cst_623 = arith.constant dense<0.000000e+00> : vector<16x8xf32>
    %989 = tpu.matmul %984, %988, %cst_623 {dimension_numbers = #tpu.dot_dimension_numbers<[1], [0], [0], [1], [0, 0, 1, 1], [], []>} : vector<16x32xf32>, vector<32x8xf32>, vector<16x8xf32> -> vector<16x8xf32>
    %c36_624 = arith.constant 36 : index
    %c0_625 = arith.constant 0 : index
    %c0_626 = arith.constant 0 : index
    %990 = vector.load %arg5[%c36_624, %c0_625, %c0_626] : memref<72x1x8xf32, #tpu.memory_space<vmem>>, vector<1x1x8xf32>
    %991 = vector.shape_cast %990 : vector<1x1x8xf32> to vector<1x8xf32>
    %992 = vector.broadcast %991 : vector<1x8xf32> to vector<16x8xf32>
    %993 = arith.addf %989, %992 : vector<16x8xf32>
    %c40 = arith.constant 40 : index
    %c0_627 = arith.constant 0 : index
    %c0_628 = arith.constant 0 : index
    %994 = vector.load %arg4[%c40, %c0_627, %c0_628] : memref<72x32x8xf32, #tpu.memory_space<vmem>>, vector<1x32x8xf32>
    %995 = vector.shape_cast %994 : vector<1x32x8xf32> to vector<32x8xf32>
    %cst_629 = arith.constant dense<0.000000e+00> : vector<16x8xf32>
    %996 = tpu.matmul %984, %995, %cst_629 {dimension_numbers = #tpu.dot_dimension_numbers<[1], [0], [0], [1], [0, 0, 1, 1], [], []>} : vector<16x32xf32>, vector<32x8xf32>, vector<16x8xf32> -> vector<16x8xf32>
    %c40_630 = arith.constant 40 : index
    %c0_631 = arith.constant 0 : index
    %c0_632 = arith.constant 0 : index
    %997 = vector.load %arg5[%c40_630, %c0_631, %c0_632] : memref<72x1x8xf32, #tpu.memory_space<vmem>>, vector<1x1x8xf32>
    %998 = vector.shape_cast %997 : vector<1x1x8xf32> to vector<1x8xf32>
    %999 = vector.broadcast %998 : vector<1x8xf32> to vector<16x8xf32>
    %1000 = arith.addf %996, %999 : vector<16x8xf32>
    %c44 = arith.constant 44 : index
    %c0_633 = arith.constant 0 : index
    %c0_634 = arith.constant 0 : index
    %1001 = vector.load %arg4[%c44, %c0_633, %c0_634] : memref<72x32x8xf32, #tpu.memory_space<vmem>>, vector<1x32x8xf32>
    %1002 = vector.shape_cast %1001 : vector<1x32x8xf32> to vector<32x8xf32>
    %cst_635 = arith.constant dense<0.000000e+00> : vector<16x8xf32>
    %1003 = tpu.matmul %984, %1002, %cst_635 {dimension_numbers = #tpu.dot_dimension_numbers<[1], [0], [0], [1], [0, 0, 1, 1], [], []>} : vector<16x32xf32>, vector<32x8xf32>, vector<16x8xf32> -> vector<16x8xf32>
    %c44_636 = arith.constant 44 : index
    %c0_637 = arith.constant 0 : index
    %c0_638 = arith.constant 0 : index
    %1004 = vector.load %arg5[%c44_636, %c0_637, %c0_638] : memref<72x1x8xf32, #tpu.memory_space<vmem>>, vector<1x1x8xf32>
    %1005 = vector.shape_cast %1004 : vector<1x1x8xf32> to vector<1x8xf32>
    %1006 = vector.broadcast %1005 : vector<1x8xf32> to vector<16x8xf32>
    %1007 = arith.addf %1003, %1006 : vector<16x8xf32>
    %cst_639 = arith.constant dense<0.000000e+00> : vector<16x16xf32>
    %1008 = tpu.matmul %993, %1000, %cst_639 {dimension_numbers = #tpu.dot_dimension_numbers<[1], [1], [0], [0], [0, 0, 1, 0], [], []>} : vector<16x8xf32>, vector<16x8xf32>, vector<16x16xf32> -> vector<16x16xf32>
    %cst_640 = arith.constant 0.353553385 : f32
    %1009 = vector.broadcast %cst_640 : f32 to vector<16x16xf32>
    %1010 = arith.mulf %1008, %1009 : vector<16x16xf32>
    %1011 = arith.mulf %1010, %53 : vector<16x16xf32>
    %1012 = arith.addf %1011, %51 : vector<16x16xf32>
    %cst_641 = arith.constant dense<0xFF800000> : vector<16xf32>
    %1013 = vector.multi_reduction <maximumf>, %1012, %cst_641 [1] : vector<16x16xf32> to vector<16xf32>
    %1014 = vector.shape_cast %1013 : vector<16xf32> to vector<16x1xf32>
    %1015 = vector.broadcast %1014 : vector<16x1xf32> to vector<16x16xf32>
    %1016 = arith.subf %1012, %1015 : vector<16x16xf32>
    %1017 = math.exp %1016 : vector<16x16xf32>
    %cst_642 = arith.constant dense<0.000000e+00> : vector<16xf32>
    %1018 = vector.multi_reduction <add>, %1017, %cst_642 [1] : vector<16x16xf32> to vector<16xf32>
    %1019 = vector.shape_cast %1018 : vector<16xf32> to vector<16x1xf32>
    %1020 = vector.broadcast %1019 : vector<16x1xf32> to vector<16x16xf32>
    %1021 = arith.divf %1017, %1020 : vector<16x16xf32>
    %cst_643 = arith.constant dense<0.000000e+00> : vector<16x8xf32>
    %1022 = tpu.matmul %1021, %1007, %cst_643 {dimension_numbers = #tpu.dot_dimension_numbers<[1], [0], [0], [1], [0, 0, 1, 1], [], []>} : vector<16x16xf32>, vector<16x8xf32>, vector<16x8xf32> -> vector<16x8xf32>
    %c12_644 = arith.constant 12 : index
    %c0_645 = arith.constant 0 : index
    %c0_646 = arith.constant 0 : index
    %1023 = vector.load %arg6[%c12_644, %c0_645, %c0_646] : memref<24x8x32xf32, #tpu.memory_space<vmem>>, vector<1x8x32xf32>
    %1024 = vector.shape_cast %1023 : vector<1x8x32xf32> to vector<8x32xf32>
    %cst_647 = arith.constant dense<0.000000e+00> : vector<16x32xf32>
    %1025 = tpu.matmul %1022, %1024, %cst_647 {dimension_numbers = #tpu.dot_dimension_numbers<[1], [0], [0], [1], [0, 0, 1, 1], [], []>} : vector<16x8xf32>, vector<8x32xf32>, vector<16x32xf32> -> vector<16x32xf32>
    %1026 = vector.broadcast %986 : vector<1x32xf32> to vector<16x32xf32>
    %1027 = arith.addf %1026, %1025 : vector<16x32xf32>
    %c37 = arith.constant 37 : index
    %c0_648 = arith.constant 0 : index
    %c0_649 = arith.constant 0 : index
    %1028 = vector.load %arg4[%c37, %c0_648, %c0_649] : memref<72x32x8xf32, #tpu.memory_space<vmem>>, vector<1x32x8xf32>
    %1029 = vector.shape_cast %1028 : vector<1x32x8xf32> to vector<32x8xf32>
    %cst_650 = arith.constant dense<0.000000e+00> : vector<16x8xf32>
    %1030 = tpu.matmul %984, %1029, %cst_650 {dimension_numbers = #tpu.dot_dimension_numbers<[1], [0], [0], [1], [0, 0, 1, 1], [], []>} : vector<16x32xf32>, vector<32x8xf32>, vector<16x8xf32> -> vector<16x8xf32>
    %c37_651 = arith.constant 37 : index
    %c0_652 = arith.constant 0 : index
    %c0_653 = arith.constant 0 : index
    %1031 = vector.load %arg5[%c37_651, %c0_652, %c0_653] : memref<72x1x8xf32, #tpu.memory_space<vmem>>, vector<1x1x8xf32>
    %1032 = vector.shape_cast %1031 : vector<1x1x8xf32> to vector<1x8xf32>
    %1033 = vector.broadcast %1032 : vector<1x8xf32> to vector<16x8xf32>
    %1034 = arith.addf %1030, %1033 : vector<16x8xf32>
    %c41 = arith.constant 41 : index
    %c0_654 = arith.constant 0 : index
    %c0_655 = arith.constant 0 : index
    %1035 = vector.load %arg4[%c41, %c0_654, %c0_655] : memref<72x32x8xf32, #tpu.memory_space<vmem>>, vector<1x32x8xf32>
    %1036 = vector.shape_cast %1035 : vector<1x32x8xf32> to vector<32x8xf32>
    %cst_656 = arith.constant dense<0.000000e+00> : vector<16x8xf32>
    %1037 = tpu.matmul %984, %1036, %cst_656 {dimension_numbers = #tpu.dot_dimension_numbers<[1], [0], [0], [1], [0, 0, 1, 1], [], []>} : vector<16x32xf32>, vector<32x8xf32>, vector<16x8xf32> -> vector<16x8xf32>
    %c41_657 = arith.constant 41 : index
    %c0_658 = arith.constant 0 : index
    %c0_659 = arith.constant 0 : index
    %1038 = vector.load %arg5[%c41_657, %c0_658, %c0_659] : memref<72x1x8xf32, #tpu.memory_space<vmem>>, vector<1x1x8xf32>
    %1039 = vector.shape_cast %1038 : vector<1x1x8xf32> to vector<1x8xf32>
    %1040 = vector.broadcast %1039 : vector<1x8xf32> to vector<16x8xf32>
    %1041 = arith.addf %1037, %1040 : vector<16x8xf32>
    %c45 = arith.constant 45 : index
    %c0_660 = arith.constant 0 : index
    %c0_661 = arith.constant 0 : index
    %1042 = vector.load %arg4[%c45, %c0_660, %c0_661] : memref<72x32x8xf32, #tpu.memory_space<vmem>>, vector<1x32x8xf32>
    %1043 = vector.shape_cast %1042 : vector<1x32x8xf32> to vector<32x8xf32>
    %cst_662 = arith.constant dense<0.000000e+00> : vector<16x8xf32>
    %1044 = tpu.matmul %984, %1043, %cst_662 {dimension_numbers = #tpu.dot_dimension_numbers<[1], [0], [0], [1], [0, 0, 1, 1], [], []>} : vector<16x32xf32>, vector<32x8xf32>, vector<16x8xf32> -> vector<16x8xf32>
    %c45_663 = arith.constant 45 : index
    %c0_664 = arith.constant 0 : index
    %c0_665 = arith.constant 0 : index
    %1045 = vector.load %arg5[%c45_663, %c0_664, %c0_665] : memref<72x1x8xf32, #tpu.memory_space<vmem>>, vector<1x1x8xf32>
    %1046 = vector.shape_cast %1045 : vector<1x1x8xf32> to vector<1x8xf32>
    %1047 = vector.broadcast %1046 : vector<1x8xf32> to vector<16x8xf32>
    %1048 = arith.addf %1044, %1047 : vector<16x8xf32>
    %cst_666 = arith.constant dense<0.000000e+00> : vector<16x16xf32>
    %1049 = tpu.matmul %1034, %1041, %cst_666 {dimension_numbers = #tpu.dot_dimension_numbers<[1], [1], [0], [0], [0, 0, 1, 0], [], []>} : vector<16x8xf32>, vector<16x8xf32>, vector<16x16xf32> -> vector<16x16xf32>
    %cst_667 = arith.constant 0.353553385 : f32
    %1050 = vector.broadcast %cst_667 : f32 to vector<16x16xf32>
    %1051 = arith.mulf %1049, %1050 : vector<16x16xf32>
    %1052 = arith.mulf %1051, %53 : vector<16x16xf32>
    %1053 = arith.addf %1052, %51 : vector<16x16xf32>
    %cst_668 = arith.constant dense<0xFF800000> : vector<16xf32>
    %1054 = vector.multi_reduction <maximumf>, %1053, %cst_668 [1] : vector<16x16xf32> to vector<16xf32>
    %1055 = vector.shape_cast %1054 : vector<16xf32> to vector<16x1xf32>
    %1056 = vector.broadcast %1055 : vector<16x1xf32> to vector<16x16xf32>
    %1057 = arith.subf %1053, %1056 : vector<16x16xf32>
    %1058 = math.exp %1057 : vector<16x16xf32>
    %cst_669 = arith.constant dense<0.000000e+00> : vector<16xf32>
    %1059 = vector.multi_reduction <add>, %1058, %cst_669 [1] : vector<16x16xf32> to vector<16xf32>
    %1060 = vector.shape_cast %1059 : vector<16xf32> to vector<16x1xf32>
    %1061 = vector.broadcast %1060 : vector<16x1xf32> to vector<16x16xf32>
    %1062 = arith.divf %1058, %1061 : vector<16x16xf32>
    %cst_670 = arith.constant dense<0.000000e+00> : vector<16x8xf32>
    %1063 = tpu.matmul %1062, %1048, %cst_670 {dimension_numbers = #tpu.dot_dimension_numbers<[1], [0], [0], [1], [0, 0, 1, 1], [], []>} : vector<16x16xf32>, vector<16x8xf32>, vector<16x8xf32> -> vector<16x8xf32>
    %c13_671 = arith.constant 13 : index
    %c0_672 = arith.constant 0 : index
    %c0_673 = arith.constant 0 : index
    %1064 = vector.load %arg6[%c13_671, %c0_672, %c0_673] : memref<24x8x32xf32, #tpu.memory_space<vmem>>, vector<1x8x32xf32>
    %1065 = vector.shape_cast %1064 : vector<1x8x32xf32> to vector<8x32xf32>
    %cst_674 = arith.constant dense<0.000000e+00> : vector<16x32xf32>
    %1066 = tpu.matmul %1063, %1065, %cst_674 {dimension_numbers = #tpu.dot_dimension_numbers<[1], [0], [0], [1], [0, 0, 1, 1], [], []>} : vector<16x8xf32>, vector<8x32xf32>, vector<16x32xf32> -> vector<16x32xf32>
    %1067 = arith.addf %1027, %1066 : vector<16x32xf32>
    %c38 = arith.constant 38 : index
    %c0_675 = arith.constant 0 : index
    %c0_676 = arith.constant 0 : index
    %1068 = vector.load %arg4[%c38, %c0_675, %c0_676] : memref<72x32x8xf32, #tpu.memory_space<vmem>>, vector<1x32x8xf32>
    %1069 = vector.shape_cast %1068 : vector<1x32x8xf32> to vector<32x8xf32>
    %cst_677 = arith.constant dense<0.000000e+00> : vector<16x8xf32>
    %1070 = tpu.matmul %984, %1069, %cst_677 {dimension_numbers = #tpu.dot_dimension_numbers<[1], [0], [0], [1], [0, 0, 1, 1], [], []>} : vector<16x32xf32>, vector<32x8xf32>, vector<16x8xf32> -> vector<16x8xf32>
    %c38_678 = arith.constant 38 : index
    %c0_679 = arith.constant 0 : index
    %c0_680 = arith.constant 0 : index
    %1071 = vector.load %arg5[%c38_678, %c0_679, %c0_680] : memref<72x1x8xf32, #tpu.memory_space<vmem>>, vector<1x1x8xf32>
    %1072 = vector.shape_cast %1071 : vector<1x1x8xf32> to vector<1x8xf32>
    %1073 = vector.broadcast %1072 : vector<1x8xf32> to vector<16x8xf32>
    %1074 = arith.addf %1070, %1073 : vector<16x8xf32>
    %c42 = arith.constant 42 : index
    %c0_681 = arith.constant 0 : index
    %c0_682 = arith.constant 0 : index
    %1075 = vector.load %arg4[%c42, %c0_681, %c0_682] : memref<72x32x8xf32, #tpu.memory_space<vmem>>, vector<1x32x8xf32>
    %1076 = vector.shape_cast %1075 : vector<1x32x8xf32> to vector<32x8xf32>
    %cst_683 = arith.constant dense<0.000000e+00> : vector<16x8xf32>
    %1077 = tpu.matmul %984, %1076, %cst_683 {dimension_numbers = #tpu.dot_dimension_numbers<[1], [0], [0], [1], [0, 0, 1, 1], [], []>} : vector<16x32xf32>, vector<32x8xf32>, vector<16x8xf32> -> vector<16x8xf32>
    %c42_684 = arith.constant 42 : index
    %c0_685 = arith.constant 0 : index
    %c0_686 = arith.constant 0 : index
    %1078 = vector.load %arg5[%c42_684, %c0_685, %c0_686] : memref<72x1x8xf32, #tpu.memory_space<vmem>>, vector<1x1x8xf32>
    %1079 = vector.shape_cast %1078 : vector<1x1x8xf32> to vector<1x8xf32>
    %1080 = vector.broadcast %1079 : vector<1x8xf32> to vector<16x8xf32>
    %1081 = arith.addf %1077, %1080 : vector<16x8xf32>
    %c46 = arith.constant 46 : index
    %c0_687 = arith.constant 0 : index
    %c0_688 = arith.constant 0 : index
    %1082 = vector.load %arg4[%c46, %c0_687, %c0_688] : memref<72x32x8xf32, #tpu.memory_space<vmem>>, vector<1x32x8xf32>
    %1083 = vector.shape_cast %1082 : vector<1x32x8xf32> to vector<32x8xf32>
    %cst_689 = arith.constant dense<0.000000e+00> : vector<16x8xf32>
    %1084 = tpu.matmul %984, %1083, %cst_689 {dimension_numbers = #tpu.dot_dimension_numbers<[1], [0], [0], [1], [0, 0, 1, 1], [], []>} : vector<16x32xf32>, vector<32x8xf32>, vector<16x8xf32> -> vector<16x8xf32>
    %c46_690 = arith.constant 46 : index
    %c0_691 = arith.constant 0 : index
    %c0_692 = arith.constant 0 : index
    %1085 = vector.load %arg5[%c46_690, %c0_691, %c0_692] : memref<72x1x8xf32, #tpu.memory_space<vmem>>, vector<1x1x8xf32>
    %1086 = vector.shape_cast %1085 : vector<1x1x8xf32> to vector<1x8xf32>
    %1087 = vector.broadcast %1086 : vector<1x8xf32> to vector<16x8xf32>
    %1088 = arith.addf %1084, %1087 : vector<16x8xf32>
    %cst_693 = arith.constant dense<0.000000e+00> : vector<16x16xf32>
    %1089 = tpu.matmul %1074, %1081, %cst_693 {dimension_numbers = #tpu.dot_dimension_numbers<[1], [1], [0], [0], [0, 0, 1, 0], [], []>} : vector<16x8xf32>, vector<16x8xf32>, vector<16x16xf32> -> vector<16x16xf32>
    %cst_694 = arith.constant 0.353553385 : f32
    %1090 = vector.broadcast %cst_694 : f32 to vector<16x16xf32>
    %1091 = arith.mulf %1089, %1090 : vector<16x16xf32>
    %1092 = arith.mulf %1091, %53 : vector<16x16xf32>
    %1093 = arith.addf %1092, %51 : vector<16x16xf32>
    %cst_695 = arith.constant dense<0xFF800000> : vector<16xf32>
    %1094 = vector.multi_reduction <maximumf>, %1093, %cst_695 [1] : vector<16x16xf32> to vector<16xf32>
    %1095 = vector.shape_cast %1094 : vector<16xf32> to vector<16x1xf32>
    %1096 = vector.broadcast %1095 : vector<16x1xf32> to vector<16x16xf32>
    %1097 = arith.subf %1093, %1096 : vector<16x16xf32>
    %1098 = math.exp %1097 : vector<16x16xf32>
    %cst_696 = arith.constant dense<0.000000e+00> : vector<16xf32>
    %1099 = vector.multi_reduction <add>, %1098, %cst_696 [1] : vector<16x16xf32> to vector<16xf32>
    %1100 = vector.shape_cast %1099 : vector<16xf32> to vector<16x1xf32>
    %1101 = vector.broadcast %1100 : vector<16x1xf32> to vector<16x16xf32>
    %1102 = arith.divf %1098, %1101 : vector<16x16xf32>
    %cst_697 = arith.constant dense<0.000000e+00> : vector<16x8xf32>
    %1103 = tpu.matmul %1102, %1088, %cst_697 {dimension_numbers = #tpu.dot_dimension_numbers<[1], [0], [0], [1], [0, 0, 1, 1], [], []>} : vector<16x16xf32>, vector<16x8xf32>, vector<16x8xf32> -> vector<16x8xf32>
    %c14_698 = arith.constant 14 : index
    %c0_699 = arith.constant 0 : index
    %c0_700 = arith.constant 0 : index
    %1104 = vector.load %arg6[%c14_698, %c0_699, %c0_700] : memref<24x8x32xf32, #tpu.memory_space<vmem>>, vector<1x8x32xf32>
    %1105 = vector.shape_cast %1104 : vector<1x8x32xf32> to vector<8x32xf32>
    %cst_701 = arith.constant dense<0.000000e+00> : vector<16x32xf32>
    %1106 = tpu.matmul %1103, %1105, %cst_701 {dimension_numbers = #tpu.dot_dimension_numbers<[1], [0], [0], [1], [0, 0, 1, 1], [], []>} : vector<16x8xf32>, vector<8x32xf32>, vector<16x32xf32> -> vector<16x32xf32>
    %1107 = arith.addf %1067, %1106 : vector<16x32xf32>
    %c39 = arith.constant 39 : index
    %c0_702 = arith.constant 0 : index
    %c0_703 = arith.constant 0 : index
    %1108 = vector.load %arg4[%c39, %c0_702, %c0_703] : memref<72x32x8xf32, #tpu.memory_space<vmem>>, vector<1x32x8xf32>
    %1109 = vector.shape_cast %1108 : vector<1x32x8xf32> to vector<32x8xf32>
    %cst_704 = arith.constant dense<0.000000e+00> : vector<16x8xf32>
    %1110 = tpu.matmul %984, %1109, %cst_704 {dimension_numbers = #tpu.dot_dimension_numbers<[1], [0], [0], [1], [0, 0, 1, 1], [], []>} : vector<16x32xf32>, vector<32x8xf32>, vector<16x8xf32> -> vector<16x8xf32>
    %c39_705 = arith.constant 39 : index
    %c0_706 = arith.constant 0 : index
    %c0_707 = arith.constant 0 : index
    %1111 = vector.load %arg5[%c39_705, %c0_706, %c0_707] : memref<72x1x8xf32, #tpu.memory_space<vmem>>, vector<1x1x8xf32>
    %1112 = vector.shape_cast %1111 : vector<1x1x8xf32> to vector<1x8xf32>
    %1113 = vector.broadcast %1112 : vector<1x8xf32> to vector<16x8xf32>
    %1114 = arith.addf %1110, %1113 : vector<16x8xf32>
    %c43 = arith.constant 43 : index
    %c0_708 = arith.constant 0 : index
    %c0_709 = arith.constant 0 : index
    %1115 = vector.load %arg4[%c43, %c0_708, %c0_709] : memref<72x32x8xf32, #tpu.memory_space<vmem>>, vector<1x32x8xf32>
    %1116 = vector.shape_cast %1115 : vector<1x32x8xf32> to vector<32x8xf32>
    %cst_710 = arith.constant dense<0.000000e+00> : vector<16x8xf32>
    %1117 = tpu.matmul %984, %1116, %cst_710 {dimension_numbers = #tpu.dot_dimension_numbers<[1], [0], [0], [1], [0, 0, 1, 1], [], []>} : vector<16x32xf32>, vector<32x8xf32>, vector<16x8xf32> -> vector<16x8xf32>
    %c43_711 = arith.constant 43 : index
    %c0_712 = arith.constant 0 : index
    %c0_713 = arith.constant 0 : index
    %1118 = vector.load %arg5[%c43_711, %c0_712, %c0_713] : memref<72x1x8xf32, #tpu.memory_space<vmem>>, vector<1x1x8xf32>
    %1119 = vector.shape_cast %1118 : vector<1x1x8xf32> to vector<1x8xf32>
    %1120 = vector.broadcast %1119 : vector<1x8xf32> to vector<16x8xf32>
    %1121 = arith.addf %1117, %1120 : vector<16x8xf32>
    %c47 = arith.constant 47 : index
    %c0_714 = arith.constant 0 : index
    %c0_715 = arith.constant 0 : index
    %1122 = vector.load %arg4[%c47, %c0_714, %c0_715] : memref<72x32x8xf32, #tpu.memory_space<vmem>>, vector<1x32x8xf32>
    %1123 = vector.shape_cast %1122 : vector<1x32x8xf32> to vector<32x8xf32>
    %cst_716 = arith.constant dense<0.000000e+00> : vector<16x8xf32>
    %1124 = tpu.matmul %984, %1123, %cst_716 {dimension_numbers = #tpu.dot_dimension_numbers<[1], [0], [0], [1], [0, 0, 1, 1], [], []>} : vector<16x32xf32>, vector<32x8xf32>, vector<16x8xf32> -> vector<16x8xf32>
    %c47_717 = arith.constant 47 : index
    %c0_718 = arith.constant 0 : index
    %c0_719 = arith.constant 0 : index
    %1125 = vector.load %arg5[%c47_717, %c0_718, %c0_719] : memref<72x1x8xf32, #tpu.memory_space<vmem>>, vector<1x1x8xf32>
    %1126 = vector.shape_cast %1125 : vector<1x1x8xf32> to vector<1x8xf32>
    %1127 = vector.broadcast %1126 : vector<1x8xf32> to vector<16x8xf32>
    %1128 = arith.addf %1124, %1127 : vector<16x8xf32>
    %cst_720 = arith.constant dense<0.000000e+00> : vector<16x16xf32>
    %1129 = tpu.matmul %1114, %1121, %cst_720 {dimension_numbers = #tpu.dot_dimension_numbers<[1], [1], [0], [0], [0, 0, 1, 0], [], []>} : vector<16x8xf32>, vector<16x8xf32>, vector<16x16xf32> -> vector<16x16xf32>
    %cst_721 = arith.constant 0.353553385 : f32
    %1130 = vector.broadcast %cst_721 : f32 to vector<16x16xf32>
    %1131 = arith.mulf %1129, %1130 : vector<16x16xf32>
    %1132 = arith.mulf %1131, %53 : vector<16x16xf32>
    %1133 = arith.addf %1132, %51 : vector<16x16xf32>
    %cst_722 = arith.constant dense<0xFF800000> : vector<16xf32>
    %1134 = vector.multi_reduction <maximumf>, %1133, %cst_722 [1] : vector<16x16xf32> to vector<16xf32>
    %1135 = vector.shape_cast %1134 : vector<16xf32> to vector<16x1xf32>
    %1136 = vector.broadcast %1135 : vector<16x1xf32> to vector<16x16xf32>
    %1137 = arith.subf %1133, %1136 : vector<16x16xf32>
    %1138 = math.exp %1137 : vector<16x16xf32>
    %cst_723 = arith.constant dense<0.000000e+00> : vector<16xf32>
    %1139 = vector.multi_reduction <add>, %1138, %cst_723 [1] : vector<16x16xf32> to vector<16xf32>
    %1140 = vector.shape_cast %1139 : vector<16xf32> to vector<16x1xf32>
    %1141 = vector.broadcast %1140 : vector<16x1xf32> to vector<16x16xf32>
    %1142 = arith.divf %1138, %1141 : vector<16x16xf32>
    %cst_724 = arith.constant dense<0.000000e+00> : vector<16x8xf32>
    %1143 = tpu.matmul %1142, %1128, %cst_724 {dimension_numbers = #tpu.dot_dimension_numbers<[1], [0], [0], [1], [0, 0, 1, 1], [], []>} : vector<16x16xf32>, vector<16x8xf32>, vector<16x8xf32> -> vector<16x8xf32>
    %c15_725 = arith.constant 15 : index
    %c0_726 = arith.constant 0 : index
    %c0_727 = arith.constant 0 : index
    %1144 = vector.load %arg6[%c15_725, %c0_726, %c0_727] : memref<24x8x32xf32, #tpu.memory_space<vmem>>, vector<1x8x32xf32>
    %1145 = vector.shape_cast %1144 : vector<1x8x32xf32> to vector<8x32xf32>
    %cst_728 = arith.constant dense<0.000000e+00> : vector<16x32xf32>
    %1146 = tpu.matmul %1143, %1145, %cst_728 {dimension_numbers = #tpu.dot_dimension_numbers<[1], [0], [0], [1], [0, 0, 1, 1], [], []>} : vector<16x8xf32>, vector<8x32xf32>, vector<16x32xf32> -> vector<16x32xf32>
    %1147 = arith.addf %1107, %1146 : vector<16x32xf32>
    %1148 = arith.addf %984, %1147 : vector<16x32xf32>
    %cst_729 = arith.constant dense<0.000000e+00> : vector<16xf32>
    %1149 = vector.multi_reduction <add>, %1148, %cst_729 [1] : vector<16x32xf32> to vector<16xf32>
    %1150 = vector.shape_cast %1149 : vector<16xf32> to vector<16x1xf32>
    %cst_730 = arith.constant 3.200000e+01 : f32
    %1151 = vector.broadcast %cst_730 : f32 to vector<16x1xf32>
    %1152 = arith.divf %1150, %1151 : vector<16x1xf32>
    %1153 = vector.broadcast %1152 : vector<16x1xf32> to vector<16x32xf32>
    %1154 = arith.subf %1148, %1153 : vector<16x32xf32>
    %1155 = arith.mulf %1154, %1154 : vector<16x32xf32>
    %cst_731 = arith.constant dense<0.000000e+00> : vector<16xf32>
    %1156 = vector.multi_reduction <add>, %1155, %cst_731 [1] : vector<16x32xf32> to vector<16xf32>
    %1157 = vector.shape_cast %1156 : vector<16xf32> to vector<16x1xf32>
    %cst_732 = arith.constant 3.200000e+01 : f32
    %1158 = vector.broadcast %cst_732 : f32 to vector<16x1xf32>
    %1159 = arith.divf %1157, %1158 : vector<16x1xf32>
    %cst_733 = arith.constant 9.99999974E-6 : f32
    %1160 = vector.broadcast %cst_733 : f32 to vector<16x1xf32>
    %1161 = arith.addf %1159, %1160 : vector<16x1xf32>
    %1162 = math.rsqrt %1161 : vector<16x1xf32>
    %1163 = vector.broadcast %1162 : vector<16x1xf32> to vector<16x32xf32>
    %1164 = arith.mulf %1154, %1163 : vector<16x32xf32>
    %c7_734 = arith.constant 7 : index
    %c0_735 = arith.constant 0 : index
    %c0_736 = arith.constant 0 : index
    %1165 = vector.load %arg12[%c7_734, %c0_735, %c0_736] : memref<31x1x32xf32, #tpu.memory_space<vmem>>, vector<1x1x32xf32>
    %1166 = vector.shape_cast %1165 : vector<1x1x32xf32> to vector<1x32xf32>
    %1167 = vector.broadcast %1166 : vector<1x32xf32> to vector<16x32xf32>
    %1168 = arith.mulf %1164, %1167 : vector<16x32xf32>
    %c17_737 = arith.constant 17 : index
    %c0_738 = arith.constant 0 : index
    %c0_739 = arith.constant 0 : index
    %1169 = vector.load %arg12[%c17_737, %c0_738, %c0_739] : memref<31x1x32xf32, #tpu.memory_space<vmem>>, vector<1x1x32xf32>
    %1170 = vector.shape_cast %1169 : vector<1x1x32xf32> to vector<1x32xf32>
    %1171 = vector.broadcast %1170 : vector<1x32xf32> to vector<16x32xf32>
    %1172 = arith.addf %1168, %1171 : vector<16x32xf32>
    %c25_740 = arith.constant 25 : index
    %c0_741 = arith.constant 0 : index
    %c0_742 = arith.constant 0 : index
    %1173 = vector.load %arg12[%c25_740, %c0_741, %c0_742] : memref<31x1x32xf32, #tpu.memory_space<vmem>>, vector<1x1x32xf32>
    %1174 = vector.shape_cast %1173 : vector<1x1x32xf32> to vector<1x32xf32>
    %c60 = arith.constant 60 : index
    %c0_743 = arith.constant 0 : index
    %c0_744 = arith.constant 0 : index
    %1175 = vector.load %arg4[%c60, %c0_743, %c0_744] : memref<72x32x8xf32, #tpu.memory_space<vmem>>, vector<1x32x8xf32>
    %1176 = vector.shape_cast %1175 : vector<1x32x8xf32> to vector<32x8xf32>
    %cst_745 = arith.constant dense<0.000000e+00> : vector<16x8xf32>
    %1177 = tpu.matmul %1172, %1176, %cst_745 {dimension_numbers = #tpu.dot_dimension_numbers<[1], [0], [0], [1], [0, 0, 1, 1], [], []>} : vector<16x32xf32>, vector<32x8xf32>, vector<16x8xf32> -> vector<16x8xf32>
    %c60_746 = arith.constant 60 : index
    %c0_747 = arith.constant 0 : index
    %c0_748 = arith.constant 0 : index
    %1178 = vector.load %arg5[%c60_746, %c0_747, %c0_748] : memref<72x1x8xf32, #tpu.memory_space<vmem>>, vector<1x1x8xf32>
    %1179 = vector.shape_cast %1178 : vector<1x1x8xf32> to vector<1x8xf32>
    %1180 = vector.broadcast %1179 : vector<1x8xf32> to vector<16x8xf32>
    %1181 = arith.addf %1177, %1180 : vector<16x8xf32>
    %c64 = arith.constant 64 : index
    %c0_749 = arith.constant 0 : index
    %c0_750 = arith.constant 0 : index
    %1182 = vector.load %arg4[%c64, %c0_749, %c0_750] : memref<72x32x8xf32, #tpu.memory_space<vmem>>, vector<1x32x8xf32>
    %1183 = vector.shape_cast %1182 : vector<1x32x8xf32> to vector<32x8xf32>
    %cst_751 = arith.constant dense<0.000000e+00> : vector<16x8xf32>
    %1184 = tpu.matmul %567, %1183, %cst_751 {dimension_numbers = #tpu.dot_dimension_numbers<[1], [0], [0], [1], [0, 0, 1, 1], [], []>} : vector<16x32xf32>, vector<32x8xf32>, vector<16x8xf32> -> vector<16x8xf32>
    %c64_752 = arith.constant 64 : index
    %c0_753 = arith.constant 0 : index
    %c0_754 = arith.constant 0 : index
    %1185 = vector.load %arg5[%c64_752, %c0_753, %c0_754] : memref<72x1x8xf32, #tpu.memory_space<vmem>>, vector<1x1x8xf32>
    %1186 = vector.shape_cast %1185 : vector<1x1x8xf32> to vector<1x8xf32>
    %1187 = vector.broadcast %1186 : vector<1x8xf32> to vector<16x8xf32>
    %1188 = arith.addf %1184, %1187 : vector<16x8xf32>
    %c68 = arith.constant 68 : index
    %c0_755 = arith.constant 0 : index
    %c0_756 = arith.constant 0 : index
    %1189 = vector.load %arg4[%c68, %c0_755, %c0_756] : memref<72x32x8xf32, #tpu.memory_space<vmem>>, vector<1x32x8xf32>
    %1190 = vector.shape_cast %1189 : vector<1x32x8xf32> to vector<32x8xf32>
    %cst_757 = arith.constant dense<0.000000e+00> : vector<16x8xf32>
    %1191 = tpu.matmul %567, %1190, %cst_757 {dimension_numbers = #tpu.dot_dimension_numbers<[1], [0], [0], [1], [0, 0, 1, 1], [], []>} : vector<16x32xf32>, vector<32x8xf32>, vector<16x8xf32> -> vector<16x8xf32>
    %c68_758 = arith.constant 68 : index
    %c0_759 = arith.constant 0 : index
    %c0_760 = arith.constant 0 : index
    %1192 = vector.load %arg5[%c68_758, %c0_759, %c0_760] : memref<72x1x8xf32, #tpu.memory_space<vmem>>, vector<1x1x8xf32>
    %1193 = vector.shape_cast %1192 : vector<1x1x8xf32> to vector<1x8xf32>
    %1194 = vector.broadcast %1193 : vector<1x8xf32> to vector<16x8xf32>
    %1195 = arith.addf %1191, %1194 : vector<16x8xf32>
    %cst_761 = arith.constant dense<0.000000e+00> : vector<16x16xf32>
    %1196 = tpu.matmul %1181, %1188, %cst_761 {dimension_numbers = #tpu.dot_dimension_numbers<[1], [1], [0], [0], [0, 0, 1, 0], [], []>} : vector<16x8xf32>, vector<16x8xf32>, vector<16x16xf32> -> vector<16x16xf32>
    %cst_762 = arith.constant 0.353553385 : f32
    %1197 = vector.broadcast %cst_762 : f32 to vector<16x16xf32>
    %1198 = arith.mulf %1196, %1197 : vector<16x16xf32>
    %1199 = arith.mulf %1198, %73 : vector<16x16xf32>
    %1200 = arith.addf %1199, %71 : vector<16x16xf32>
    %cst_763 = arith.constant dense<0xFF800000> : vector<16xf32>
    %1201 = vector.multi_reduction <maximumf>, %1200, %cst_763 [1] : vector<16x16xf32> to vector<16xf32>
    %1202 = vector.shape_cast %1201 : vector<16xf32> to vector<16x1xf32>
    %1203 = vector.broadcast %1202 : vector<16x1xf32> to vector<16x16xf32>
    %1204 = arith.subf %1200, %1203 : vector<16x16xf32>
    %1205 = math.exp %1204 : vector<16x16xf32>
    %cst_764 = arith.constant dense<0.000000e+00> : vector<16xf32>
    %1206 = vector.multi_reduction <add>, %1205, %cst_764 [1] : vector<16x16xf32> to vector<16xf32>
    %1207 = vector.shape_cast %1206 : vector<16xf32> to vector<16x1xf32>
    %1208 = vector.broadcast %1207 : vector<16x1xf32> to vector<16x16xf32>
    %1209 = arith.divf %1205, %1208 : vector<16x16xf32>
    %cst_765 = arith.constant dense<0.000000e+00> : vector<16x8xf32>
    %1210 = tpu.matmul %1209, %1195, %cst_765 {dimension_numbers = #tpu.dot_dimension_numbers<[1], [0], [0], [1], [0, 0, 1, 1], [], []>} : vector<16x16xf32>, vector<16x8xf32>, vector<16x8xf32> -> vector<16x8xf32>
    %c20_766 = arith.constant 20 : index
    %c0_767 = arith.constant 0 : index
    %c0_768 = arith.constant 0 : index
    %1211 = vector.load %arg6[%c20_766, %c0_767, %c0_768] : memref<24x8x32xf32, #tpu.memory_space<vmem>>, vector<1x8x32xf32>
    %1212 = vector.shape_cast %1211 : vector<1x8x32xf32> to vector<8x32xf32>
    %cst_769 = arith.constant dense<0.000000e+00> : vector<16x32xf32>
    %1213 = tpu.matmul %1210, %1212, %cst_769 {dimension_numbers = #tpu.dot_dimension_numbers<[1], [0], [0], [1], [0, 0, 1, 1], [], []>} : vector<16x8xf32>, vector<8x32xf32>, vector<16x32xf32> -> vector<16x32xf32>
    %1214 = vector.broadcast %1174 : vector<1x32xf32> to vector<16x32xf32>
    %1215 = arith.addf %1214, %1213 : vector<16x32xf32>
    %c61 = arith.constant 61 : index
    %c0_770 = arith.constant 0 : index
    %c0_771 = arith.constant 0 : index
    %1216 = vector.load %arg4[%c61, %c0_770, %c0_771] : memref<72x32x8xf32, #tpu.memory_space<vmem>>, vector<1x32x8xf32>
    %1217 = vector.shape_cast %1216 : vector<1x32x8xf32> to vector<32x8xf32>
    %cst_772 = arith.constant dense<0.000000e+00> : vector<16x8xf32>
    %1218 = tpu.matmul %1172, %1217, %cst_772 {dimension_numbers = #tpu.dot_dimension_numbers<[1], [0], [0], [1], [0, 0, 1, 1], [], []>} : vector<16x32xf32>, vector<32x8xf32>, vector<16x8xf32> -> vector<16x8xf32>
    %c61_773 = arith.constant 61 : index
    %c0_774 = arith.constant 0 : index
    %c0_775 = arith.constant 0 : index
    %1219 = vector.load %arg5[%c61_773, %c0_774, %c0_775] : memref<72x1x8xf32, #tpu.memory_space<vmem>>, vector<1x1x8xf32>
    %1220 = vector.shape_cast %1219 : vector<1x1x8xf32> to vector<1x8xf32>
    %1221 = vector.broadcast %1220 : vector<1x8xf32> to vector<16x8xf32>
    %1222 = arith.addf %1218, %1221 : vector<16x8xf32>
    %c65 = arith.constant 65 : index
    %c0_776 = arith.constant 0 : index
    %c0_777 = arith.constant 0 : index
    %1223 = vector.load %arg4[%c65, %c0_776, %c0_777] : memref<72x32x8xf32, #tpu.memory_space<vmem>>, vector<1x32x8xf32>
    %1224 = vector.shape_cast %1223 : vector<1x32x8xf32> to vector<32x8xf32>
    %cst_778 = arith.constant dense<0.000000e+00> : vector<16x8xf32>
    %1225 = tpu.matmul %567, %1224, %cst_778 {dimension_numbers = #tpu.dot_dimension_numbers<[1], [0], [0], [1], [0, 0, 1, 1], [], []>} : vector<16x32xf32>, vector<32x8xf32>, vector<16x8xf32> -> vector<16x8xf32>
    %c65_779 = arith.constant 65 : index
    %c0_780 = arith.constant 0 : index
    %c0_781 = arith.constant 0 : index
    %1226 = vector.load %arg5[%c65_779, %c0_780, %c0_781] : memref<72x1x8xf32, #tpu.memory_space<vmem>>, vector<1x1x8xf32>
    %1227 = vector.shape_cast %1226 : vector<1x1x8xf32> to vector<1x8xf32>
    %1228 = vector.broadcast %1227 : vector<1x8xf32> to vector<16x8xf32>
    %1229 = arith.addf %1225, %1228 : vector<16x8xf32>
    %c69 = arith.constant 69 : index
    %c0_782 = arith.constant 0 : index
    %c0_783 = arith.constant 0 : index
    %1230 = vector.load %arg4[%c69, %c0_782, %c0_783] : memref<72x32x8xf32, #tpu.memory_space<vmem>>, vector<1x32x8xf32>
    %1231 = vector.shape_cast %1230 : vector<1x32x8xf32> to vector<32x8xf32>
    %cst_784 = arith.constant dense<0.000000e+00> : vector<16x8xf32>
    %1232 = tpu.matmul %567, %1231, %cst_784 {dimension_numbers = #tpu.dot_dimension_numbers<[1], [0], [0], [1], [0, 0, 1, 1], [], []>} : vector<16x32xf32>, vector<32x8xf32>, vector<16x8xf32> -> vector<16x8xf32>
    %c69_785 = arith.constant 69 : index
    %c0_786 = arith.constant 0 : index
    %c0_787 = arith.constant 0 : index
    %1233 = vector.load %arg5[%c69_785, %c0_786, %c0_787] : memref<72x1x8xf32, #tpu.memory_space<vmem>>, vector<1x1x8xf32>
    %1234 = vector.shape_cast %1233 : vector<1x1x8xf32> to vector<1x8xf32>
    %1235 = vector.broadcast %1234 : vector<1x8xf32> to vector<16x8xf32>
    %1236 = arith.addf %1232, %1235 : vector<16x8xf32>
    %cst_788 = arith.constant dense<0.000000e+00> : vector<16x16xf32>
    %1237 = tpu.matmul %1222, %1229, %cst_788 {dimension_numbers = #tpu.dot_dimension_numbers<[1], [1], [0], [0], [0, 0, 1, 0], [], []>} : vector<16x8xf32>, vector<16x8xf32>, vector<16x16xf32> -> vector<16x16xf32>
    %cst_789 = arith.constant 0.353553385 : f32
    %1238 = vector.broadcast %cst_789 : f32 to vector<16x16xf32>
    %1239 = arith.mulf %1237, %1238 : vector<16x16xf32>
    %1240 = arith.mulf %1239, %73 : vector<16x16xf32>
    %1241 = arith.addf %1240, %71 : vector<16x16xf32>
    %cst_790 = arith.constant dense<0xFF800000> : vector<16xf32>
    %1242 = vector.multi_reduction <maximumf>, %1241, %cst_790 [1] : vector<16x16xf32> to vector<16xf32>
    %1243 = vector.shape_cast %1242 : vector<16xf32> to vector<16x1xf32>
    %1244 = vector.broadcast %1243 : vector<16x1xf32> to vector<16x16xf32>
    %1245 = arith.subf %1241, %1244 : vector<16x16xf32>
    %1246 = math.exp %1245 : vector<16x16xf32>
    %cst_791 = arith.constant dense<0.000000e+00> : vector<16xf32>
    %1247 = vector.multi_reduction <add>, %1246, %cst_791 [1] : vector<16x16xf32> to vector<16xf32>
    %1248 = vector.shape_cast %1247 : vector<16xf32> to vector<16x1xf32>
    %1249 = vector.broadcast %1248 : vector<16x1xf32> to vector<16x16xf32>
    %1250 = arith.divf %1246, %1249 : vector<16x16xf32>
    %cst_792 = arith.constant dense<0.000000e+00> : vector<16x8xf32>
    %1251 = tpu.matmul %1250, %1236, %cst_792 {dimension_numbers = #tpu.dot_dimension_numbers<[1], [0], [0], [1], [0, 0, 1, 1], [], []>} : vector<16x16xf32>, vector<16x8xf32>, vector<16x8xf32> -> vector<16x8xf32>
    %c21_793 = arith.constant 21 : index
    %c0_794 = arith.constant 0 : index
    %c0_795 = arith.constant 0 : index
    %1252 = vector.load %arg6[%c21_793, %c0_794, %c0_795] : memref<24x8x32xf32, #tpu.memory_space<vmem>>, vector<1x8x32xf32>
    %1253 = vector.shape_cast %1252 : vector<1x8x32xf32> to vector<8x32xf32>
    %cst_796 = arith.constant dense<0.000000e+00> : vector<16x32xf32>
    %1254 = tpu.matmul %1251, %1253, %cst_796 {dimension_numbers = #tpu.dot_dimension_numbers<[1], [0], [0], [1], [0, 0, 1, 1], [], []>} : vector<16x8xf32>, vector<8x32xf32>, vector<16x32xf32> -> vector<16x32xf32>
    %1255 = arith.addf %1215, %1254 : vector<16x32xf32>
    %c62 = arith.constant 62 : index
    %c0_797 = arith.constant 0 : index
    %c0_798 = arith.constant 0 : index
    %1256 = vector.load %arg4[%c62, %c0_797, %c0_798] : memref<72x32x8xf32, #tpu.memory_space<vmem>>, vector<1x32x8xf32>
    %1257 = vector.shape_cast %1256 : vector<1x32x8xf32> to vector<32x8xf32>
    %cst_799 = arith.constant dense<0.000000e+00> : vector<16x8xf32>
    %1258 = tpu.matmul %1172, %1257, %cst_799 {dimension_numbers = #tpu.dot_dimension_numbers<[1], [0], [0], [1], [0, 0, 1, 1], [], []>} : vector<16x32xf32>, vector<32x8xf32>, vector<16x8xf32> -> vector<16x8xf32>
    %c62_800 = arith.constant 62 : index
    %c0_801 = arith.constant 0 : index
    %c0_802 = arith.constant 0 : index
    %1259 = vector.load %arg5[%c62_800, %c0_801, %c0_802] : memref<72x1x8xf32, #tpu.memory_space<vmem>>, vector<1x1x8xf32>
    %1260 = vector.shape_cast %1259 : vector<1x1x8xf32> to vector<1x8xf32>
    %1261 = vector.broadcast %1260 : vector<1x8xf32> to vector<16x8xf32>
    %1262 = arith.addf %1258, %1261 : vector<16x8xf32>
    %c66 = arith.constant 66 : index
    %c0_803 = arith.constant 0 : index
    %c0_804 = arith.constant 0 : index
    %1263 = vector.load %arg4[%c66, %c0_803, %c0_804] : memref<72x32x8xf32, #tpu.memory_space<vmem>>, vector<1x32x8xf32>
    %1264 = vector.shape_cast %1263 : vector<1x32x8xf32> to vector<32x8xf32>
    %cst_805 = arith.constant dense<0.000000e+00> : vector<16x8xf32>
    %1265 = tpu.matmul %567, %1264, %cst_805 {dimension_numbers = #tpu.dot_dimension_numbers<[1], [0], [0], [1], [0, 0, 1, 1], [], []>} : vector<16x32xf32>, vector<32x8xf32>, vector<16x8xf32> -> vector<16x8xf32>
    %c66_806 = arith.constant 66 : index
    %c0_807 = arith.constant 0 : index
    %c0_808 = arith.constant 0 : index
    %1266 = vector.load %arg5[%c66_806, %c0_807, %c0_808] : memref<72x1x8xf32, #tpu.memory_space<vmem>>, vector<1x1x8xf32>
    %1267 = vector.shape_cast %1266 : vector<1x1x8xf32> to vector<1x8xf32>
    %1268 = vector.broadcast %1267 : vector<1x8xf32> to vector<16x8xf32>
    %1269 = arith.addf %1265, %1268 : vector<16x8xf32>
    %c70 = arith.constant 70 : index
    %c0_809 = arith.constant 0 : index
    %c0_810 = arith.constant 0 : index
    %1270 = vector.load %arg4[%c70, %c0_809, %c0_810] : memref<72x32x8xf32, #tpu.memory_space<vmem>>, vector<1x32x8xf32>
    %1271 = vector.shape_cast %1270 : vector<1x32x8xf32> to vector<32x8xf32>
    %cst_811 = arith.constant dense<0.000000e+00> : vector<16x8xf32>
    %1272 = tpu.matmul %567, %1271, %cst_811 {dimension_numbers = #tpu.dot_dimension_numbers<[1], [0], [0], [1], [0, 0, 1, 1], [], []>} : vector<16x32xf32>, vector<32x8xf32>, vector<16x8xf32> -> vector<16x8xf32>
    %c70_812 = arith.constant 70 : index
    %c0_813 = arith.constant 0 : index
    %c0_814 = arith.constant 0 : index
    %1273 = vector.load %arg5[%c70_812, %c0_813, %c0_814] : memref<72x1x8xf32, #tpu.memory_space<vmem>>, vector<1x1x8xf32>
    %1274 = vector.shape_cast %1273 : vector<1x1x8xf32> to vector<1x8xf32>
    %1275 = vector.broadcast %1274 : vector<1x8xf32> to vector<16x8xf32>
    %1276 = arith.addf %1272, %1275 : vector<16x8xf32>
    %cst_815 = arith.constant dense<0.000000e+00> : vector<16x16xf32>
    %1277 = tpu.matmul %1262, %1269, %cst_815 {dimension_numbers = #tpu.dot_dimension_numbers<[1], [1], [0], [0], [0, 0, 1, 0], [], []>} : vector<16x8xf32>, vector<16x8xf32>, vector<16x16xf32> -> vector<16x16xf32>
    %cst_816 = arith.constant 0.353553385 : f32
    %1278 = vector.broadcast %cst_816 : f32 to vector<16x16xf32>
    %1279 = arith.mulf %1277, %1278 : vector<16x16xf32>
    %1280 = arith.mulf %1279, %73 : vector<16x16xf32>
    %1281 = arith.addf %1280, %71 : vector<16x16xf32>
    %cst_817 = arith.constant dense<0xFF800000> : vector<16xf32>
    %1282 = vector.multi_reduction <maximumf>, %1281, %cst_817 [1] : vector<16x16xf32> to vector<16xf32>
    %1283 = vector.shape_cast %1282 : vector<16xf32> to vector<16x1xf32>
    %1284 = vector.broadcast %1283 : vector<16x1xf32> to vector<16x16xf32>
    %1285 = arith.subf %1281, %1284 : vector<16x16xf32>
    %1286 = math.exp %1285 : vector<16x16xf32>
    %cst_818 = arith.constant dense<0.000000e+00> : vector<16xf32>
    %1287 = vector.multi_reduction <add>, %1286, %cst_818 [1] : vector<16x16xf32> to vector<16xf32>
    %1288 = vector.shape_cast %1287 : vector<16xf32> to vector<16x1xf32>
    %1289 = vector.broadcast %1288 : vector<16x1xf32> to vector<16x16xf32>
    %1290 = arith.divf %1286, %1289 : vector<16x16xf32>
    %cst_819 = arith.constant dense<0.000000e+00> : vector<16x8xf32>
    %1291 = tpu.matmul %1290, %1276, %cst_819 {dimension_numbers = #tpu.dot_dimension_numbers<[1], [0], [0], [1], [0, 0, 1, 1], [], []>} : vector<16x16xf32>, vector<16x8xf32>, vector<16x8xf32> -> vector<16x8xf32>
    %c22_820 = arith.constant 22 : index
    %c0_821 = arith.constant 0 : index
    %c0_822 = arith.constant 0 : index
    %1292 = vector.load %arg6[%c22_820, %c0_821, %c0_822] : memref<24x8x32xf32, #tpu.memory_space<vmem>>, vector<1x8x32xf32>
    %1293 = vector.shape_cast %1292 : vector<1x8x32xf32> to vector<8x32xf32>
    %cst_823 = arith.constant dense<0.000000e+00> : vector<16x32xf32>
    %1294 = tpu.matmul %1291, %1293, %cst_823 {dimension_numbers = #tpu.dot_dimension_numbers<[1], [0], [0], [1], [0, 0, 1, 1], [], []>} : vector<16x8xf32>, vector<8x32xf32>, vector<16x32xf32> -> vector<16x32xf32>
    %1295 = arith.addf %1255, %1294 : vector<16x32xf32>
    %c63 = arith.constant 63 : index
    %c0_824 = arith.constant 0 : index
    %c0_825 = arith.constant 0 : index
    %1296 = vector.load %arg4[%c63, %c0_824, %c0_825] : memref<72x32x8xf32, #tpu.memory_space<vmem>>, vector<1x32x8xf32>
    %1297 = vector.shape_cast %1296 : vector<1x32x8xf32> to vector<32x8xf32>
    %cst_826 = arith.constant dense<0.000000e+00> : vector<16x8xf32>
    %1298 = tpu.matmul %1172, %1297, %cst_826 {dimension_numbers = #tpu.dot_dimension_numbers<[1], [0], [0], [1], [0, 0, 1, 1], [], []>} : vector<16x32xf32>, vector<32x8xf32>, vector<16x8xf32> -> vector<16x8xf32>
    %c63_827 = arith.constant 63 : index
    %c0_828 = arith.constant 0 : index
    %c0_829 = arith.constant 0 : index
    %1299 = vector.load %arg5[%c63_827, %c0_828, %c0_829] : memref<72x1x8xf32, #tpu.memory_space<vmem>>, vector<1x1x8xf32>
    %1300 = vector.shape_cast %1299 : vector<1x1x8xf32> to vector<1x8xf32>
    %1301 = vector.broadcast %1300 : vector<1x8xf32> to vector<16x8xf32>
    %1302 = arith.addf %1298, %1301 : vector<16x8xf32>
    %c67 = arith.constant 67 : index
    %c0_830 = arith.constant 0 : index
    %c0_831 = arith.constant 0 : index
    %1303 = vector.load %arg4[%c67, %c0_830, %c0_831] : memref<72x32x8xf32, #tpu.memory_space<vmem>>, vector<1x32x8xf32>
    %1304 = vector.shape_cast %1303 : vector<1x32x8xf32> to vector<32x8xf32>
    %cst_832 = arith.constant dense<0.000000e+00> : vector<16x8xf32>
    %1305 = tpu.matmul %567, %1304, %cst_832 {dimension_numbers = #tpu.dot_dimension_numbers<[1], [0], [0], [1], [0, 0, 1, 1], [], []>} : vector<16x32xf32>, vector<32x8xf32>, vector<16x8xf32> -> vector<16x8xf32>
    %c67_833 = arith.constant 67 : index
    %c0_834 = arith.constant 0 : index
    %c0_835 = arith.constant 0 : index
    %1306 = vector.load %arg5[%c67_833, %c0_834, %c0_835] : memref<72x1x8xf32, #tpu.memory_space<vmem>>, vector<1x1x8xf32>
    %1307 = vector.shape_cast %1306 : vector<1x1x8xf32> to vector<1x8xf32>
    %1308 = vector.broadcast %1307 : vector<1x8xf32> to vector<16x8xf32>
    %1309 = arith.addf %1305, %1308 : vector<16x8xf32>
    %c71 = arith.constant 71 : index
    %c0_836 = arith.constant 0 : index
    %c0_837 = arith.constant 0 : index
    %1310 = vector.load %arg4[%c71, %c0_836, %c0_837] : memref<72x32x8xf32, #tpu.memory_space<vmem>>, vector<1x32x8xf32>
    %1311 = vector.shape_cast %1310 : vector<1x32x8xf32> to vector<32x8xf32>
    %cst_838 = arith.constant dense<0.000000e+00> : vector<16x8xf32>
    %1312 = tpu.matmul %567, %1311, %cst_838 {dimension_numbers = #tpu.dot_dimension_numbers<[1], [0], [0], [1], [0, 0, 1, 1], [], []>} : vector<16x32xf32>, vector<32x8xf32>, vector<16x8xf32> -> vector<16x8xf32>
    %c71_839 = arith.constant 71 : index
    %c0_840 = arith.constant 0 : index
    %c0_841 = arith.constant 0 : index
    %1313 = vector.load %arg5[%c71_839, %c0_840, %c0_841] : memref<72x1x8xf32, #tpu.memory_space<vmem>>, vector<1x1x8xf32>
    %1314 = vector.shape_cast %1313 : vector<1x1x8xf32> to vector<1x8xf32>
    %1315 = vector.broadcast %1314 : vector<1x8xf32> to vector<16x8xf32>
    %1316 = arith.addf %1312, %1315 : vector<16x8xf32>
    %cst_842 = arith.constant dense<0.000000e+00> : vector<16x16xf32>
    %1317 = tpu.matmul %1302, %1309, %cst_842 {dimension_numbers = #tpu.dot_dimension_numbers<[1], [1], [0], [0], [0, 0, 1, 0], [], []>} : vector<16x8xf32>, vector<16x8xf32>, vector<16x16xf32> -> vector<16x16xf32>
    %cst_843 = arith.constant 0.353553385 : f32
    %1318 = vector.broadcast %cst_843 : f32 to vector<16x16xf32>
    %1319 = arith.mulf %1317, %1318 : vector<16x16xf32>
    %1320 = arith.mulf %1319, %73 : vector<16x16xf32>
    %1321 = arith.addf %1320, %71 : vector<16x16xf32>
    %cst_844 = arith.constant dense<0xFF800000> : vector<16xf32>
    %1322 = vector.multi_reduction <maximumf>, %1321, %cst_844 [1] : vector<16x16xf32> to vector<16xf32>
    %1323 = vector.shape_cast %1322 : vector<16xf32> to vector<16x1xf32>
    %1324 = vector.broadcast %1323 : vector<16x1xf32> to vector<16x16xf32>
    %1325 = arith.subf %1321, %1324 : vector<16x16xf32>
    %1326 = math.exp %1325 : vector<16x16xf32>
    %cst_845 = arith.constant dense<0.000000e+00> : vector<16xf32>
    %1327 = vector.multi_reduction <add>, %1326, %cst_845 [1] : vector<16x16xf32> to vector<16xf32>
    %1328 = vector.shape_cast %1327 : vector<16xf32> to vector<16x1xf32>
    %1329 = vector.broadcast %1328 : vector<16x1xf32> to vector<16x16xf32>
    %1330 = arith.divf %1326, %1329 : vector<16x16xf32>
    %cst_846 = arith.constant dense<0.000000e+00> : vector<16x8xf32>
    %1331 = tpu.matmul %1330, %1316, %cst_846 {dimension_numbers = #tpu.dot_dimension_numbers<[1], [0], [0], [1], [0, 0, 1, 1], [], []>} : vector<16x16xf32>, vector<16x8xf32>, vector<16x8xf32> -> vector<16x8xf32>
    %c23_847 = arith.constant 23 : index
    %c0_848 = arith.constant 0 : index
    %c0_849 = arith.constant 0 : index
    %1332 = vector.load %arg6[%c23_847, %c0_848, %c0_849] : memref<24x8x32xf32, #tpu.memory_space<vmem>>, vector<1x8x32xf32>
    %1333 = vector.shape_cast %1332 : vector<1x8x32xf32> to vector<8x32xf32>
    %cst_850 = arith.constant dense<0.000000e+00> : vector<16x32xf32>
    %1334 = tpu.matmul %1331, %1333, %cst_850 {dimension_numbers = #tpu.dot_dimension_numbers<[1], [0], [0], [1], [0, 0, 1, 1], [], []>} : vector<16x8xf32>, vector<8x32xf32>, vector<16x32xf32> -> vector<16x32xf32>
    %1335 = arith.addf %1295, %1334 : vector<16x32xf32>
    %1336 = arith.addf %1172, %1335 : vector<16x32xf32>
    %cst_851 = arith.constant dense<0.000000e+00> : vector<16xf32>
    %1337 = vector.multi_reduction <add>, %1336, %cst_851 [1] : vector<16x32xf32> to vector<16xf32>
    %1338 = vector.shape_cast %1337 : vector<16xf32> to vector<16x1xf32>
    %cst_852 = arith.constant 3.200000e+01 : f32
    %1339 = vector.broadcast %cst_852 : f32 to vector<16x1xf32>
    %1340 = arith.divf %1338, %1339 : vector<16x1xf32>
    %1341 = vector.broadcast %1340 : vector<16x1xf32> to vector<16x32xf32>
    %1342 = arith.subf %1336, %1341 : vector<16x32xf32>
    %1343 = arith.mulf %1342, %1342 : vector<16x32xf32>
    %cst_853 = arith.constant dense<0.000000e+00> : vector<16xf32>
    %1344 = vector.multi_reduction <add>, %1343, %cst_853 [1] : vector<16x32xf32> to vector<16xf32>
    %1345 = vector.shape_cast %1344 : vector<16xf32> to vector<16x1xf32>
    %cst_854 = arith.constant 3.200000e+01 : f32
    %1346 = vector.broadcast %cst_854 : f32 to vector<16x1xf32>
    %1347 = arith.divf %1345, %1346 : vector<16x1xf32>
    %cst_855 = arith.constant 9.99999974E-6 : f32
    %1348 = vector.broadcast %cst_855 : f32 to vector<16x1xf32>
    %1349 = arith.addf %1347, %1348 : vector<16x1xf32>
    %1350 = math.rsqrt %1349 : vector<16x1xf32>
    %1351 = vector.broadcast %1350 : vector<16x1xf32> to vector<16x32xf32>
    %1352 = arith.mulf %1342, %1351 : vector<16x32xf32>
    %c8_856 = arith.constant 8 : index
    %c0_857 = arith.constant 0 : index
    %c0_858 = arith.constant 0 : index
    %1353 = vector.load %arg12[%c8_856, %c0_857, %c0_858] : memref<31x1x32xf32, #tpu.memory_space<vmem>>, vector<1x1x32xf32>
    %1354 = vector.shape_cast %1353 : vector<1x1x32xf32> to vector<1x32xf32>
    %1355 = vector.broadcast %1354 : vector<1x32xf32> to vector<16x32xf32>
    %1356 = arith.mulf %1352, %1355 : vector<16x32xf32>
    %c18_859 = arith.constant 18 : index
    %c0_860 = arith.constant 0 : index
    %c0_861 = arith.constant 0 : index
    %1357 = vector.load %arg12[%c18_859, %c0_860, %c0_861] : memref<31x1x32xf32, #tpu.memory_space<vmem>>, vector<1x1x32xf32>
    %1358 = vector.shape_cast %1357 : vector<1x1x32xf32> to vector<1x32xf32>
    %1359 = vector.broadcast %1358 : vector<1x32xf32> to vector<16x32xf32>
    %1360 = arith.addf %1356, %1359 : vector<16x32xf32>
    %c3_862 = arith.constant 3 : index
    %c0_863 = arith.constant 0 : index
    %c0_864 = arith.constant 0 : index
    %1361 = vector.load %arg7[%c3_862, %c0_863, %c0_864] : memref<4x32x64xf32, #tpu.memory_space<vmem>>, vector<1x32x64xf32>
    %1362 = vector.shape_cast %1361 : vector<1x32x64xf32> to vector<32x64xf32>
    %cst_865 = arith.constant dense<0.000000e+00> : vector<16x64xf32>
    %1363 = tpu.matmul %1360, %1362, %cst_865 {dimension_numbers = #tpu.dot_dimension_numbers<[1], [0], [0], [1], [0, 0, 1, 1], [], []>} : vector<16x32xf32>, vector<32x64xf32>, vector<16x64xf32> -> vector<16x64xf32>
    %c3_866 = arith.constant 3 : index
    %c0_867 = arith.constant 0 : index
    %c0_868 = arith.constant 0 : index
    %1364 = vector.load %arg8[%c3_866, %c0_867, %c0_868] : memref<4x1x64xf32, #tpu.memory_space<vmem>>, vector<1x1x64xf32>
    %1365 = vector.shape_cast %1364 : vector<1x1x64xf32> to vector<1x64xf32>
    %1366 = vector.broadcast %1365 : vector<1x64xf32> to vector<16x64xf32>
    %1367 = arith.addf %1363, %1366 : vector<16x64xf32>
    %cst_869 = arith.constant 0.000000e+00 : f32
    %1368 = vector.broadcast %cst_869 : f32 to vector<16x64xf32>
    %1369 = arith.maximumf %1367, %1368 : vector<16x64xf32>
    %c3_870 = arith.constant 3 : index
    %c0_871 = arith.constant 0 : index
    %c0_872 = arith.constant 0 : index
    %1370 = vector.load %arg9[%c3_870, %c0_871, %c0_872] : memref<4x64x32xf32, #tpu.memory_space<vmem>>, vector<1x64x32xf32>
    %1371 = vector.shape_cast %1370 : vector<1x64x32xf32> to vector<64x32xf32>
    %cst_873 = arith.constant dense<0.000000e+00> : vector<16x32xf32>
    %1372 = tpu.matmul %1369, %1371, %cst_873 {dimension_numbers = #tpu.dot_dimension_numbers<[1], [0], [0], [1], [0, 0, 1, 1], [], []>} : vector<16x64xf32>, vector<64x32xf32>, vector<16x32xf32> -> vector<16x32xf32>
    %c29_874 = arith.constant 29 : index
    %c0_875 = arith.constant 0 : index
    %c0_876 = arith.constant 0 : index
    %1373 = vector.load %arg12[%c29_874, %c0_875, %c0_876] : memref<31x1x32xf32, #tpu.memory_space<vmem>>, vector<1x1x32xf32>
    %1374 = vector.shape_cast %1373 : vector<1x1x32xf32> to vector<1x32xf32>
    %1375 = vector.broadcast %1374 : vector<1x32xf32> to vector<16x32xf32>
    %1376 = arith.addf %1372, %1375 : vector<16x32xf32>
    %1377 = arith.addf %1360, %1376 : vector<16x32xf32>
    %cst_877 = arith.constant dense<0.000000e+00> : vector<16xf32>
    %1378 = vector.multi_reduction <add>, %1377, %cst_877 [1] : vector<16x32xf32> to vector<16xf32>
    %1379 = vector.shape_cast %1378 : vector<16xf32> to vector<16x1xf32>
    %cst_878 = arith.constant 3.200000e+01 : f32
    %1380 = vector.broadcast %cst_878 : f32 to vector<16x1xf32>
    %1381 = arith.divf %1379, %1380 : vector<16x1xf32>
    %1382 = vector.broadcast %1381 : vector<16x1xf32> to vector<16x32xf32>
    %1383 = arith.subf %1377, %1382 : vector<16x32xf32>
    %1384 = arith.mulf %1383, %1383 : vector<16x32xf32>
    %cst_879 = arith.constant dense<0.000000e+00> : vector<16xf32>
    %1385 = vector.multi_reduction <add>, %1384, %cst_879 [1] : vector<16x32xf32> to vector<16xf32>
    %1386 = vector.shape_cast %1385 : vector<16xf32> to vector<16x1xf32>
    %cst_880 = arith.constant 3.200000e+01 : f32
    %1387 = vector.broadcast %cst_880 : f32 to vector<16x1xf32>
    %1388 = arith.divf %1386, %1387 : vector<16x1xf32>
    %cst_881 = arith.constant 9.99999974E-6 : f32
    %1389 = vector.broadcast %cst_881 : f32 to vector<16x1xf32>
    %1390 = arith.addf %1388, %1389 : vector<16x1xf32>
    %1391 = math.rsqrt %1390 : vector<16x1xf32>
    %1392 = vector.broadcast %1391 : vector<16x1xf32> to vector<16x32xf32>
    %1393 = arith.mulf %1383, %1392 : vector<16x32xf32>
    %c9_882 = arith.constant 9 : index
    %c0_883 = arith.constant 0 : index
    %c0_884 = arith.constant 0 : index
    %1394 = vector.load %arg12[%c9_882, %c0_883, %c0_884] : memref<31x1x32xf32, #tpu.memory_space<vmem>>, vector<1x1x32xf32>
    %1395 = vector.shape_cast %1394 : vector<1x1x32xf32> to vector<1x32xf32>
    %1396 = vector.broadcast %1395 : vector<1x32xf32> to vector<16x32xf32>
    %1397 = arith.mulf %1393, %1396 : vector<16x32xf32>
    %c19_885 = arith.constant 19 : index
    %c0_886 = arith.constant 0 : index
    %c0_887 = arith.constant 0 : index
    %1398 = vector.load %arg12[%c19_885, %c0_886, %c0_887] : memref<31x1x32xf32, #tpu.memory_space<vmem>>, vector<1x1x32xf32>
    %1399 = vector.shape_cast %1398 : vector<1x1x32xf32> to vector<1x32xf32>
    %1400 = vector.broadcast %1399 : vector<1x32xf32> to vector<16x32xf32>
    %1401 = arith.addf %1397, %1400 : vector<16x32xf32>
    %c0_888 = arith.constant 0 : index
    %c0_889 = arith.constant 0 : index
    %1402 = vector.load %arg14[%c0_888, %c0_889] : memref<16x32xf32, #tpu.memory_space<vmem>>, vector<16x32xf32>
    tpu.vector_store %arg14[%c0_888, %c0_889], %1401 {strides = array<i32>} : memref<16x32xf32, #tpu.memory_space<vmem>>, vector<16x32xf32>,
    %c2_890 = arith.constant 2 : index
    %c0_891 = arith.constant 0 : index
    %c0_892 = arith.constant 0 : index
    %1403 = vector.load %arg10[%c2_890, %c0_891, %c0_892] : memref<3x32x32xf32, #tpu.memory_space<vmem>>, vector<1x32x32xf32>
    %1404 = vector.shape_cast %1403 : vector<1x32x32xf32> to vector<32x32xf32>
    %cst_893 = arith.constant dense<0.000000e+00> : vector<16x32xf32>
    %1405 = tpu.matmul %1401, %1404, %cst_893 {dimension_numbers = #tpu.dot_dimension_numbers<[1], [0], [0], [1], [0, 0, 1, 1], [], []>} : vector<16x32xf32>, vector<32x32xf32>, vector<16x32xf32> -> vector<16x32xf32>
    %c30_894 = arith.constant 30 : index
    %c0_895 = arith.constant 0 : index
    %c0_896 = arith.constant 0 : index
    %1406 = vector.load %arg12[%c30_894, %c0_895, %c0_896] : memref<31x1x32xf32, #tpu.memory_space<vmem>>, vector<1x1x32xf32>
    %1407 = vector.shape_cast %1406 : vector<1x1x32xf32> to vector<1x32xf32>
    %1408 = vector.broadcast %1407 : vector<1x32xf32> to vector<16x32xf32>
    %1409 = arith.addf %1405, %1408 : vector<16x32xf32>
    %cst_897 = arith.constant dense<0xFF800000> : vector<16xf32>
    %1410 = vector.multi_reduction <maximumf>, %1409, %cst_897 [1] : vector<16x32xf32> to vector<16xf32>
    %1411 = vector.shape_cast %1410 : vector<16xf32> to vector<16x1xf32>
    %1412 = vector.broadcast %1411 : vector<16x1xf32> to vector<16x32xf32>
    %1413 = arith.subf %1409, %1412 : vector<16x32xf32>
    %1414 = math.exp %1413 : vector<16x32xf32>
    %cst_898 = arith.constant dense<0.000000e+00> : vector<16xf32>
    %1415 = vector.multi_reduction <add>, %1414, %cst_898 [1] : vector<16x32xf32> to vector<16xf32>
    %1416 = vector.shape_cast %1415 : vector<16xf32> to vector<16x1xf32>
    %1417 = math.log %1416 : vector<16x1xf32>
    %1418 = vector.broadcast %1417 : vector<16x1xf32> to vector<16x32xf32>
    %1419 = arith.subf %1413, %1418 : vector<16x32xf32>
    %c0_899 = arith.constant 0 : index
    %c0_900 = arith.constant 0 : index
    %1420 = vector.load %arg13[%c0_899, %c0_900] : memref<16x32xf32, #tpu.memory_space<vmem>>, vector<16x32xf32>
    tpu.vector_store %arg13[%c0_899, %c0_900], %1419 {strides = array<i32>} : memref<16x32xf32, #tpu.memory_space<vmem>>, vector<16x32xf32>,
    return
  }
}

</mosaic_0001>

<bundles_post_ra>
// kernel: transformer_forward.1
= control target key start
LH: loop header
LB: loop body
LE: loop exit
PB: predicated region body
PF: predicated region fallthrough
CT: control target
= control target key end

     0   :  { %20 = vsyncpa [#allocation3], 0  ;;  %v18580_v1 = vmov 2   ;;  %v18581_v2 = vmov 0   ;;  %s21230_s0 = inlined_call_operand.vmem [shape: s32[16,3], index: 0, kind: input, shape index: {}]   ;;  %s21231_s1 = inlined_call_operand.vmem [shape: s32[16,3], index: 1, kind: input, shape index: {}]   ;;  %s21232_s2 = inlined_call_operand.vmem [shape: s32[3,16], index: 2, kind: input, shape index: {}]   ;;  %s21233_s3 = inlined_call_operand.vmem [shape: s32[3,16], index: 3, kind: input, shape index: {}]   ;;  %s21234_s4 = inlined_call_operand.vmem [shape: f32[72,32,8], index: 4, kind: input, shape index: {}]   ;;  %s21235_s5 = inlined_call_operand.vmem [shape: f32[72,1,8], index: 5, kind: input, shape index: {}]   ;;  %s21236_s6 = inlined_call_operand.vmem [shape: f32[24,8,32], index: 6, kind: input, shape index: {}]   ;;  %s21237_s7 = inlined_call_operand.vmem [shape: f32[4,32,64], index: 7, kind: input, shape index: {}]   ;;  %s21238_s8 = inlined_call_operand.vmem [shape: f32[4,1,64], index: 8, kind: input, shape index: {}]   ;;  %s21239_s9 = inlined_call_operand.vmem [shape: f32[4,64,32], index: 9, kind: input, shape index: {}]   ;;  %s21240_s10 = inlined_call_operand.vmem [shape: f32[3,32,32], index: 10, kind: input, shape index: {}]   ;;  %s21241_s11 = inlined_call_operand.vmem [shape: f32[64,32], index: 11, kind: input, shape index: {}]   ;;  %s21242_s12 = inlined_call_operand.vmem [shape: f32[31,1,32], index: 12, kind: input, shape index: {}]   ;;  %s21243_s13 = inlined_call_operand.hbm [shape: f32[16,32], index: 13, kind: output, shape index: {0}]   ;;  %s21244_s14 = inlined_call_operand.hbm [shape: f32[16,32], index: 14, kind: output, shape index: {1}]  }
   0x1   :  { %v48_v0 = vld [vmem:[%s21230_s0] sm:$0xff]  ;;  %18284 = vset.pattern.permute.xlu1 %v18580_v1  ;;  %18283 = vset.pattern.permute.xlu0 %v18581_v2  ;;  %v198_v3 = vld [vmem:[%s21240_s10 + $0x18] sm:$0xff]  ;;  %v197_v4 = vld [vmem:[%s21240_s10 + $0x10] sm:$0xff] }
   0x2   :  { %184 = vperm.xlu1 %18284, %v48_v0   ;;  %172 = vperm.xlu0 %18283, %v48_v0   ;;  %v18678_v5 = vld [vmem:[%s21241_s11] sm:$0xff]  ;;  %v49_v6 = vld [vmem:[%s21230_s0 + $0x8] sm:$0xff] }
   0x3   :  { %16863 = vmatprep.subr.mxu0 %v198_v3  ;;  %16874 = vmatprep.subr.mxu1 %v18678_v5 }
   0x4   :  { %21 = vsyncpa [#allocation5], 0  ;;  %16864 = vmatpush3.msra.mxu0 %v198_v3  ;;  %16875 = vmatpush3.msra.mxu1 %v18678_v5  ;;  %v196_v7 = vld [vmem:[%s21240_s10 + $0x8] sm:$0xff]  ;;  %v15162_v8 = vld [vmem:[%s21240_s10 + $0x38] sm:$0xff]  ;;  %vm68_vm0 = vcmp.ne.s32.totalorder %v48_v0, 1  ;;  %vm69_vm1 = vcmp.ne.s32.totalorder %v49_v6, 1  ;;  %v82_v15 = vlaneseq }
   0x5   :  { %16865 = vmatprep.subr.mxu0 %v197_v4  ;;  %v51_v9 = vld [vmem:[%s21231_s1 + $0x8] sm:$0xff]  ;;  %16879 = vmatprep.subr.mxu1 %v15162_v8  ;;  %v50_v10 = vld [vmem:[%s21231_s1] sm:$0xff]  ;;  %v71_v12 = vsel %vm68_vm0, 1, %v18581_v2  ;;  %v72_v13 = vsel %vm69_vm1, 1, %v18581_v2  ;;  %v18582_v14 = vmov 1   ;;  %vm199_vm2 = vcmask 261120  }
   0x6   :  { %187 = vperm.xlu1 %18284, %v49_v6   ;;  %175 = vperm.xlu0 %18283, %v49_v6   ;;  %v195_v11 = vld [vmem:[%s21240_s10] sm:$0xff]  ;;  %v18710_v16 = vand.u32 127, %v82_v15  ;;  %vm284_vm3 = vcmask 64512   ;;  %v18583_v19 = vmov 0.0   ;;  %v15161_v26 = vld [vmem:[%s21240_s10 + $0x30] sm:$0xff]  ;;  %v15160_v28 = vld [vmem:[%s21240_s10 + $0x28] sm:$0xff] }
   0x7   :  { %16866 = vmatpush3.msra.mxu0 %v197_v4  ;;  %v15159_v30 = vld [vmem:[%s21240_s10 + $0x20] sm:$0xff]  ;;  %v568_v33 = vld [vmem:[%s21234_s4 + $0x18] sm:$0xff]  ;;  %v567_v39 = vld [vmem:[%s21234_s4 + $0x10] sm:$0xff] }
   0x8   :  { %16867 = vmatprep.subr.mxu0 %v196_v7  ;;  %v15174_v38 = vld [vmem:[%s21234_s4 + $0x98] sm:$0xff]  ;;  %v15173_v40 = vld [vmem:[%s21234_s4 + $0x90] sm:$0xff]  ;;  %v566_v41 = vld [vmem:[%s21234_s4 + $0x8] sm:$0xff] }
   0x9   :  { %16868 = vmatpush3.msra.mxu0 %v196_v7  ;;  %v15172_v42 = vld [vmem:[%s21234_s4 + $0x88] sm:$0xff]  ;;  %v565_v43 = vld [vmem:[%s21234_s4] sm:$0xff]  ;;  %v15182_v45 = vld [vmem:[%s21234_s4 + $0x118] sm:$0xff] }
   0xa   :  { %384 = vperm.xlu1 %18284, %v51_v9   ;;  %18285 = vset.pattern.permute.xlu0 %v18580_v1  ;;  %v15171_v44 = vld [vmem:[%s21234_s4 + $0x80] sm:$0xff]  ;;  %v15181_v54 = vld [vmem:[%s21234_s4 + $0x110] sm:$0xff]  ;;  %v15180_v55 = vld [vmem:[%s21234_s4 + $0x108] sm:$0xff] }
   0xb   :  { %381 = vperm.xlu0 %18285, %v50_v10   ;;  %16869 = vmatprep.subr.mxu0 %v195_v11  ;;  %v15179_v58 = vld [vmem:[%s21234_s4 + $0x100] sm:$0xff] }
   0xc   :  { %16870 = vmatpush3.msra.mxu0 %v195_v11  ;;  %v15176_v63 = vld [vmem:[%s21235_s5 + $0x4] ss:$0 sm:$0xff] }
   0xd   :  { %16890 = vmatprep.subr.mxu0 %v18678_v5 }
   0xe   :  { %18286 = vset.pattern.permute.xlu1 %v18581_v2 }
   0xf   :  { %369 = vperm.xlu1 %18286, %v50_v10   ;;  %18287 = vset.pattern.permute.xlu0 %v18581_v2  ;;  %v15184_v10 = vld [vmem:[%s21235_s5 + $0x8] ss:$0 sm:$0xff] }
  0x10   :  { %372 = vperm.xlu0 %18287, %v51_v9  }
  0x13   :  { %74 = vperm.xlu1 %18286, %v71_v12  }
  0x14   :  { %77 = vperm.xlu0 %18287, %v72_v13  }
  0x17   :  { %18288 = vset.pattern.permute.xlu1 %v18582_v14 }
  0x18   :  { %57 = vperm.xlu1 %18288, %v48_v0   ;;  %18290 = vset.pattern.permute.xlu0 %v18582_v14 }
  0x1c   :  { %60 = vperm.xlu1 %18288, %v49_v6  }
  0x20   :  { %18289 = vset.pattern.permute.xlu1 %v18581_v2 }
  0x7d   :  { %v185_v17 = vpop.permute.xlu1 %184  ;;  %v173_v18 = vpop.permute.xlu0 %172 }
  0x7e   :  { %vm177_vm4 = vcmp.eq.s32.totalorder %v18710_v16, %v173_v18  ;;  %vm189_vm5 = vcmp.eq.s32.totalorder %v18710_v16, %v185_v17 }
  0x7f   :  { %v15147_v20 = vsel %vm177_vm4, 1.0, %v18583_v19  ;;  %v15149_v21 = vsel %vm189_vm5, 1.0, %v18583_v19 }
  0x80   :  { %16871 = vmatprep.mubr.msk.f32.mxu0 %vm199_vm2, %v15147_v20  ;;  %16876 = vmatprep.mubr.msk.f32.mxu1 %vm284_vm3, %v15149_v21  ;;  %v52_v20 = vld [vmem:[%s21232_s2] sm:$0x1]  ;;  %v18823_v21 = vshrl.u32 %v82_v15, 7 }
  0x81   :  { %v188_v22 = vpop.permute.xlu1 %187  ;;  %v176_v23 = vpop.permute.xlu0 %175  ;;  %vm70_vm12 = vcmp.ne.s32.totalorder %v52_v20, 1  ;;  %v15207_v20 = vld [vmem:[%s21234_s4 + $0xb8] sm:$0xff] }
  0x82   :  { %vm190_vm6 = vcmp.eq.s32.totalorder %v18710_v16, %v188_v22  ;;  %vm178_vm7 = vcmp.eq.s32.totalorder %v18710_v16, %v176_v23  ;;  %v84_v23 = vsub.s32 0, %v18823_v21 }
  0x83   :  { %v15150_v24 = vsel %vm190_vm6, 1.0, %v18583_v19  ;;  %v15148_v25 = vsel %vm178_vm7, 1.0, %v18583_v19 }
  0x84   :  { %16872 = vmatmul.mubr.msk.f32.vlgmr.msra.gmra.mxu0 %vm199_vm2, %v15148_v25  ;;  %16877 = vmatmul.mubr.msk.f32.vlgmr.msra.gmra.mxu1 %vm284_vm3, %v15150_v24  ;;  %v81_v24 = vsel %vm70_vm12, 1, %v18581_v2 }
  0x85   :  { %v385_v27 = vpop.permute.xlu1 %384  ;;  %16880 = vmatpush3.msra.mxu1 %v15162_v8  ;;  %16891 = vmatpush3.msra.mxu0 %v18678_v5  ;;  %v15168_v5 = vld [vmem:[%s21235_s5] ss:$0 sm:$0xff] }
  0x86   :  { %vm387_vm8 = vcmp.eq.s32.totalorder %v18710_v16, %v385_v27  ;;  %v382_v29 = vpop.permute.xlu0 %381  ;;  %16881 = vmatprep.subr.mxu1 %v15161_v26  ;;  %16906 = vmatprep.subr.mxu0 %v15174_v38 }
  0x87   :  { %vm386_vm9 = vcmp.eq.s32.totalorder %v18710_v16, %v382_v29  ;;  %16882 = vmatpush3.msra.mxu1 %v15161_v26  ;;  %v15158_v32 = vsel %vm387_vm8, 1.0, %v18583_v19  ;;  %v18829_v26 = vrot.slane %v81_v24, %v84_v23  ;;  %v18584_v29 = vmov -1e+09  }
  0x88   :  { %v15157_v31 = vsel %vm386_vm9, 1.0, %v18583_v19  ;;  %16883 = vmatprep.subr.mxu1 %v15160_v28  ;;  %vm926_vm8 = vcmask 130048   ;;  %vm21245_vm9 = vcmask 523264  }
  0x89   :  { %16892 = vmatprep.mubr.msk.f32.mxu0 %vm284_vm3, %v15157_v31  ;;  %16884 = vmatpush3.msra.mxu1 %v15160_v28  ;;  %vm86_vm13 = vcmp.eq.s32.totalorder %v18829_v26, 1  ;;  %v15139_v28 = vld [vmem:[%s21232_s2 + $0x1] ss:$0 sm:$0xff] }
  0x8a   :  { %v370_v34 = vpop.permute.xlu1 %369  ;;  %16893 = vmatmul.mubr.msk.f32.vlgmr.msra.gmra.mxu0 %vm284_vm3, %v15158_v32  ;;  %16885 = vmatprep.subr.mxu1 %v15159_v30 }
  0x8b   :  { %vm374_vm10 = vcmp.eq.s32.totalorder %v18710_v16, %v370_v34  ;;  %v373_v35 = vpop.permute.xlu0 %372  ;;  %16886 = vmatpush3.msra.mxu1 %v15159_v30  ;;  %16907 = vmatpush3.msra.mxu0 %v15174_v38 }
  0x8c   :  { %v15155_v36 = vsel %vm374_vm10, 1.0, %v18583_v19  ;;  %vm375_vm11 = vcmp.eq.s32.totalorder %v18710_v16, %v373_v35  ;;  %16895 = vmatprep.subr.mxu1 %v568_v33  ;;  %16908 = vmatprep.subr.mxu0 %v15173_v40 }
  0x8d   :  { %v15156_v37 = vsel %vm375_vm11, 1.0, %v18583_v19  ;;  %16887 = vmatprep.mubr.msk.f32.mxu1 %vm199_vm2, %v15155_v36  ;;  %16909 = vmatpush3.msra.mxu0 %v15173_v40 }
  0x8e   :  { %16888 = vmatmul.mubr.msk.f32.vlgmr.msra.gmra.mxu1 %vm199_vm2, %v15156_v37  ;;  %16910 = vmatprep.subr.mxu0 %v15172_v42  ;;  %v75_v22 = vpop.permute.xlu1 %74 }
  0x8f   :  { %16896 = vmatpush3.msra.mxu1 %v568_v33  ;;  %16911 = vmatpush3.msra.mxu0 %v15172_v42  ;;  %v78_v27 = vpop.permute.xlu0 %77  ;;  %vm79_vm15 = vcmp.eq.s32.totalorder %v75_v22, 1 }
  0x90   :  { %16897 = vmatprep.subr.mxu1 %v567_v39  ;;  %16912 = vmatprep.subr.mxu0 %v15171_v44  ;;  %vm80_vm14 = vcmp.eq.s32.totalorder %v78_v27, 1  ;;  %vm87_vm4 = vmand %vm79_vm15, %vm86_vm13  ;;  %v15205_v27 = vld [vmem:[%s21234_s4 + $0xa8] sm:$0xff] }
  0x91   :  { %16898 = vmatpush3.msra.mxu1 %v567_v39  ;;  %16913 = vmatpush3.msra.mxu0 %v15171_v44  ;;  %vm88_vm0 = vmand %vm80_vm14, %vm86_vm13 }
  0x92   :  { %16899 = vmatprep.subr.mxu1 %v566_v41 }
  0x93   :  { %16900 = vmatpush3.msra.mxu1 %v566_v41  ;;  %v58_v25 = vpop.permute.xlu1 %57 }
  0x94   :  { %16901 = vmatprep.subr.mxu1 %v565_v43  ;;  %vm66_vm5 = vcmp.eq.s32.totalorder %v58_v25, %v15139_v28  ;;  %v15206_v25 = vld [vmem:[%s21234_s4 + $0xb0] sm:$0xff] }
  0x95   :  { %16902 = vmatpush3.msra.mxu1 %v565_v43  ;;  %vm89_vm7 = vmand %vm87_vm4, %vm66_vm5  ;;  %v93_v35 = vsel %vm66_vm5, 0.0, %v18584_v29 }
  0x96   :  { %16917 = vmatprep.subr.mxu1 %v15182_v45  ;;  %v91_v34 = vsel %vm89_vm7, 0.0, %v18584_v29  ;;  %v18850_v41 = vsel %vm89_vm7, 1.0, %v18583_v19 }
  0x97   :  { %v61_v15 = vpop.permute.xlu1 %60  ;;  %v18852_v42 = vadd.f32 %v93_v35, %v91_v34  ;;  %v15217_v34 = vld [vmem:[%s21235_s5 + $0x9] ss:$0 sm:$0xff] }
  0x98   :  { %vm67_vm1 = vcmp.eq.s32.totalorder %v61_v15, %v15139_v28  ;;  %v15201_v28 = vld [vmem:[%s21235_s5 + $0x1] ss:$0 sm:$0xff] }
  0x99   :  { %vm90_vm6 = vmand %vm88_vm0, %vm67_vm1  ;;  %v94_v31 = vsel %vm67_vm1, 0.0, %v18584_v29  ;;  %v15204_v15 = vld [vmem:[%s21234_s4 + $0xa0] sm:$0xff] }
  0x9a   :  { %v92_v30 = vsel %vm90_vm6, 0.0, %v18584_v29  ;;  %v18844_v36 = vsel %vm90_vm6, 1.0, %v18583_v19 }
  0x9b   :  { %v18846_v38 = vadd.f32 %v94_v31, %v92_v30 }
 0x144   :  { %v16873_v46 = vpop.f32.mrf.mxu0  ;;  %v16878_v47 = vpop.f32.mrf.mxu1 }
 0x145   :  { %v282_v48 = vmul.f32 5.656854, %v16873_v46 }
 0x146   :  { %v272_v49 = vpop.f32.mrf.mxu0  ;;  %v357_v51 = vpop.f32.mrf.mxu1 }
 0x147   :  { %v281_v50 = vmul.f32 5.656854, %v272_v49  ;;  %v18775_v53 = vadd.f32 %v16878_v47, %v282_v48 }
 0x149   :  { %v18773_v52 = vadd.f32 %v357_v51, %v281_v50 }
 0x14a   :  { %v16894_v59 = vpop.f32.mrf.mxu0 }
 0x14b   :  { %16903 = vmatprep.mubr.msk.f32.mxu1 %vm199_vm2, %v18773_v52  ;;  %16914 = vmatprep.mubr.msk.f32.mxu0 %vm199_vm2, %v18773_v52 }
 0x14c   :  { %16904 = vmatmul.mubr.msk.f32.vlgmr.msra.gmra.mxu1 %vm199_vm2, %v18775_v53  ;;  %16915 = vmatmul.mubr.msk.f32.vlgmr.msra.gmra.mxu0 %vm199_vm2, %v18775_v53  ;;  %v18800_v61 = vpop.f32.mrf.mxu0 }
 0x14d   :  { %16918 = vmatpush3.msra.mxu1 %v15182_v45  ;;  %16925 = vmatprep.mubr.msk.f32.mxu1 %vm199_vm2, %v18773_v52 }
 0x14e   :  { %16919 = vmatprep.subr.mxu1 %v15181_v54  ;;  %v16889_v56 = vpop.f32.mrf.mxu1 }
 0x14f   :  { %v479_v57 = vmul.f32 5.656854, %v16889_v56  ;;  %16920 = vmatpush3.msra.mxu1 %v15181_v54 }
 0x150   :  { %16921 = vmatprep.subr.mxu1 %v15180_v55  ;;  %v18802_v62 = vpop.f32.mrf.mxu1 }
 0x151   :  { %v18796_v60 = vadd.f32 %v16894_v59, %v479_v57  ;;  %16922 = vmatpush3.msra.mxu1 %v15180_v55 }
 0x152   :  { %16923 = vmatprep.subr.mxu1 %v15179_v58 }
 0x153   :  { %16924 = vmatpush3.msra.mxu1 %v15179_v58 }
 0x154   :  { %16926 = vmatmul.mubr.msk.f32.vlgmr.msra.gmra.mxu1 %vm199_vm2, %v18775_v53 }
 0x20c   :  { %v16905_v0 = vpop.f32.mrf.mxu1  ;;  %v16916_v3 = vpop.f32.mrf.mxu0 }
 0x20d   :  { %v742_v4 = vadd.f32 %v16916_v3, %v15176_v63  ;;  %v654_v12 = vadd.f32 %v16905_v0, %v15168_v5  ;;  %v1030_v0 = vld [vmem:[%s21236_s6] sm:$0xff] }
 0x20e   :  { %v648_v6 = vpop.f32.mrf.mxu1  ;;  %v736_v7 = vpop.f32.mrf.mxu0 }
 0x20f   :  { %v649_v8 = vadd.f32 %v15168_v5, %v648_v6  ;;  %v737_v9 = vadd.f32 %v15176_v63, %v736_v7  ;;  %16928 = vmatprep.subr.msk.mxu0 %vm284_vm3, %v742_v4  ;;  %v15199_v63 = vld [vmem:[%s21234_s4 + $0x38] sm:$0xff] }
 0x210   :  { %16929 = vmatpush3.xpose.msk.msra.mxu0 %vm284_vm3, %v742_v4 }
 0x211   :  { %16930 = vmatprep.subr.msk.mxu0 %vm284_vm3, %v737_v9  ;;  %16932 = vmatprep.mubr.msk.f32.mxu0 %vm284_vm3, %v649_v8 }
 0x214   :  { %v16927_v11 = vpop.f32.mrf.mxu1  ;;  %16931 = vmatpush3.xpose.msk.msra.mxu0 %vm284_vm3, %v737_v9  ;;  %v15198_v9 = vld [vmem:[%s21234_s4 + $0x30] sm:$0xff] }
 0x215   :  { %v830_v13 = vadd.f32 %v16927_v11, %v15184_v10  ;;  %16942 = vmatprep.subr.mxu0 %v1030_v0  ;;  %v15196_v11 = vld [vmem:[%s21234_s4 + $0x20] sm:$0xff] }
 0x216   :  { %v824_v17 = vpop.f32.mrf.mxu1 }
 0x217   :  { %v825_v18 = vadd.f32 %v15184_v10, %v824_v17  ;;  %16935 = vmatprep.subr.mxu1 %v830_v13  ;;  %16933 = vmatmul.mubr.msk.f32.vlgmr.msra.gmra.mxu0 %vm284_vm3, %v654_v12  ;;  %v15197_v10 = vld [vmem:[%s21234_s4 + $0x28] sm:$0xff]  ;;  %v15215_v12 = vld [vmem:[%s21234_s4 + $0x138] sm:$0xff] }
 0x218   :  { %16936 = vmatpush3.msra.mxu1 %v830_v13  ;;  %16943 = vmatpush3.msra.mxu0 %v1030_v0  ;;  %v15214_v13 = vld [vmem:[%s21234_s4 + $0x130] sm:$0xff]  ;;  %v15213_v17 = vld [vmem:[%s21234_s4 + $0x128] sm:$0xff] }
 0x219   :  { %16937 = vmatprep.subr.mxu1 %v825_v18  ;;  %16958 = vmatprep.subr.mxu0 %v15207_v20 }
 0x21a   :  { %16938 = vmatpush3.msra.mxu1 %v825_v18  ;;  %v15212_v18 = vld [vmem:[%s21234_s4 + $0x120] sm:$0xff] }
 0x21b   :  { %16947 = vmatprep.subr.mxu1 %v15199_v63 }
 0x2d7   :  { %v16934_v32 = vpop.f32.mrf.mxu0 }
 0x2d8   :  { %v921_v33 = vmul.f32 0.35355338, %v16934_v32 }
 0x2d9   :  { %v911_v37 = vpop.f32.mrf.mxu0 }
 0x2da   :  { %v923_v39 = vmul.f32 %v18844_v36, %v921_v33  ;;  %v920_v40 = vmul.f32 0.35355338, %v911_v37 }
 0x2dc   :  { %v922_v43 = vmul.f32 %v18850_v41, %v920_v40  ;;  %v925_v44 = vadd.f32 %v923_v39, %v18846_v38 }
 0x2de   :  { %v930_v45 = vsel %vm926_vm8, %v925_v44, -inf  ;;  %v924_v46 = vadd.f32 %v922_v43, %v18852_v42 }
 0x2df   :  { %931 = vmax.xlane.f32.xlu1 %v930_v45  ;;  %v15209_v45 = vld [vmem:[%s21235_s5 + $0x5] ss:$0 sm:$0xff] }
 0x2e0   :  { %v927_v47 = vsel %vm926_vm8, %v924_v46, -inf }
 0x2e1   :  { %928 = vmax.xlane.f32.xlu0 %v927_v47 }
 0x368   :  { %v932_v48 = vpop.xlane.xlu1 %931 }
 0x369   :  { %v934_v49 = vsub.f32 %v925_v44, %v932_v48 }
 0x36a   :  { %v929_v50 = vpop.xlane.xlu0 %928 }
 0x36b   :  { %v933_v51 = vsub.f32 %v924_v46, %v929_v50  ;;  %v937_v54 = vmul.f32 1.442695, %v934_v49 }
 0x36d   :  { %v935_v55 = vmul.f32 1.442695, %v933_v51 }
 0x36f   :  { %18293 = vpow2.f32 %v935_v55 }
 0x370   :  { %18295 = vpow2.f32 %v937_v54 }
 0x37c   :  { %v18294_v56 = vpop.eup %18293 }
 0x37d   :  { %v939_v57 = vsel %vm926_vm8, %v18294_v56, 0.0  ;;  %v18296_v58 = vpop.eup %18295 }
 0x37e   :  { %940 = vadd.xlane.f32.xlu0 %v939_v57  ;;  %v942_v59 = vsel %vm926_vm8, %v18296_v58, 0.0 }
 0x382   :  { %943 = vadd.xlane.f32.xlu0 %v942_v59 }
 0x407   :  { %v941_v3 = vpop.xlane.xlu0 %940 }
 0x408   :  { %18297 = vrcp.f32 %v941_v3 }
 0x40b   :  { %v944_v4 = vpop.xlane.xlu0 %943 }
 0x40c   :  { %18299 = vrcp.f32 %v944_v4 }
 0x415   :  { %v18298_v5 = vpop.eup %18297 }
 0x416   :  { %v946_v6 = vmul.f32 %v18298_v5, %v18294_v56 }
 0x418   :  { %16939 = vmatprep.mubr.msk.f32.mxu1 %vm926_vm8, %v946_v6 }
 0x419   :  { %v18300_v7 = vpop.eup %18299 }
 0x41a   :  { %v948_v8 = vmul.f32 %v18300_v7, %v18296_v58 }
 0x41c   :  { %16940 = vmatmul.mubr.msk.f32.vlgmr.msra.gmra.mxu1 %vm926_vm8, %v948_v8 }
 0x41d   :  { %16948 = vmatpush3.msra.mxu1 %v15199_v63  ;;  %16955 = vmatprep.mubr.msk.f32.mxu1 %vm199_vm2, %v18773_v52 }
 0x41e   :  { %16949 = vmatprep.subr.mxu1 %v15198_v9 }
 0x41f   :  { %16950 = vmatpush3.msra.mxu1 %v15198_v9 }
 0x420   :  { %16951 = vmatprep.subr.mxu1 %v15197_v10 }
 0x421   :  { %16952 = vmatpush3.msra.mxu1 %v15197_v10 }
 0x422   :  { %16953 = vmatprep.subr.mxu1 %v15196_v11 }
 0x423   :  { %16954 = vmatpush3.msra.mxu1 %v15196_v11 }
 0x424   :  { %16956 = vmatmul.mubr.msk.f32.vlgmr.msra.gmra.mxu1 %vm199_vm2, %v18775_v53  ;;  %16969 = vmatprep.subr.mxu1 %v15215_v12 }
 0x425   :  { %16970 = vmatpush3.msra.mxu1 %v15215_v12  ;;  %16977 = vmatprep.mubr.msk.f32.mxu1 %vm199_vm2, %v18773_v52 }
 0x426   :  { %16971 = vmatprep.subr.mxu1 %v15214_v13 }
 0x427   :  { %16972 = vmatpush3.msra.mxu1 %v15214_v13  ;;  %v15232_v13 = vld [vmem:[%s21234_s4 + $0x58] sm:$0xff] }
 0x428   :  { %16973 = vmatprep.subr.mxu1 %v15213_v17 }
 0x429   :  { %16974 = vmatpush3.msra.mxu1 %v15213_v17  ;;  %v15226_v17 = vld [vmem:[%s21236_s6 + $0x8] sm:$0xff] }
 0x42a   :  { %16975 = vmatprep.subr.mxu1 %v15212_v18 }
 0x42b   :  { %16976 = vmatpush3.msra.mxu1 %v15212_v18 }
 0x42c   :  { %16978 = vmatmul.mubr.msk.f32.vlgmr.msra.gmra.mxu1 %vm199_vm2, %v18775_v53 }
 0x4dc   :  { %v16941_v22 = vpop.f32.mrf.mxu1 }
 0x4de   :  { %v1021_v24 = vpop.f32.mrf.mxu1 }
 0x4df   :  { %16944 = vmatprep.mubr.msk.f32.mxu0 %vm284_vm3, %v1021_v24 }
 0x4e0   :  { %16945 = vmatmul.mubr.msk.f32.vlgmr.msra.gmra.mxu0 %vm284_vm3, %v16941_v22 }
 0x4e1   :  { %16959 = vmatpush3.msra.mxu0 %v15207_v20  ;;  %16966 = vmatprep.mubr.msk.f32.mxu0 %vm199_vm2, %v18773_v52 }
 0x4e2   :  { %16960 = vmatprep.subr.mxu0 %v15206_v25 }
 0x4e3   :  { %16961 = vmatpush3.msra.mxu0 %v15206_v25 }
 0x4e4   :  { %v16957_v30 = vpop.f32.mrf.mxu1  ;;  %16962 = vmatprep.subr.mxu0 %v15205_v27 }
 0x4e5   :  { %v1205_v31 = vadd.f32 %v16957_v30, %v15201_v28  ;;  %16963 = vmatpush3.msra.mxu0 %v15205_v27  ;;  %v15229_v30 = vld [vmem:[%s21234_s4 + $0x40] sm:$0xff] }
 0x4e6   :  { %v1199_v32 = vpop.f32.mrf.mxu1  ;;  %16964 = vmatprep.subr.mxu0 %v15204_v15 }
 0x4e7   :  { %v1200_v33 = vadd.f32 %v15201_v28, %v1199_v32  ;;  %16965 = vmatpush3.msra.mxu0 %v15204_v15  ;;  %v15231_v28 = vld [vmem:[%s21234_s4 + $0x50] sm:$0xff]  ;;  %v15230_v15 = vld [vmem:[%s21234_s4 + $0x48] sm:$0xff] }
 0x4e8   :  { %16967 = vmatmul.mubr.msk.f32.vlgmr.msra.gmra.mxu0 %vm199_vm2, %v18775_v53  ;;  %v15247_v32 = vld [vmem:[%s21234_s4 + $0x150] sm:$0xff] }
 0x4e9   :  { %16984 = vmatprep.mubr.msk.f32.mxu0 %vm284_vm3, %v1200_v33  ;;  %v15246_v33 = vld [vmem:[%s21234_s4 + $0x148] sm:$0xff] }
 0x4ec   :  { %v16979_v35 = vpop.f32.mrf.mxu1 }
 0x4ed   :  { %v1381_v37 = vadd.f32 %v16979_v35, %v15217_v34  ;;  %v15240_v35 = vld [vmem:[%s21234_s4 + $0xd8] sm:$0xff] }
 0x4ee   :  { %v1375_v39 = vpop.f32.mrf.mxu1 }
 0x4ef   :  { %v1376_v40 = vadd.f32 %v15217_v34, %v1375_v39  ;;  %16987 = vmatprep.subr.mxu1 %v1381_v37  ;;  %v15245_v34 = vld [vmem:[%s21234_s4 + $0x140] sm:$0xff] }
 0x4f0   :  { %16988 = vmatpush3.msra.mxu1 %v1381_v37 }
 0x4f1   :  { %16989 = vmatprep.subr.mxu1 %v1376_v40 }
 0x4f2   :  { %16990 = vmatpush3.msra.mxu1 %v1376_v40  ;;  %v15239_v40 = vld [vmem:[%s21234_s4 + $0xd0] sm:$0xff] }
 0x4f3   :  { %16999 = vmatprep.subr.mxu1 %v15232_v13 }
 0x5a0   :  { %v18923_v43 = vpop.f32.mrf.mxu0 }
 0x5a2   :  { %v18925_v44 = vpop.f32.mrf.mxu0 }
 0x5a8   :  { %v16968_v46 = vpop.f32.mrf.mxu0 }
 0x5a9   :  { %v1293_v47 = vadd.f32 %v16968_v46, %v15209_v45  ;;  %v15234_v46 = vld [vmem:[%s21235_s5 + $0x2] ss:$0 sm:$0xff] }
 0x5aa   :  { %v1287_v48 = vpop.f32.mrf.mxu0 }
 0x5ab   :  { %v1288_v49 = vadd.f32 %v15209_v45, %v1287_v48  ;;  %16980 = vmatprep.subr.msk.mxu0 %vm284_vm3, %v1293_v47  ;;  %v15238_v45 = vld [vmem:[%s21234_s4 + $0xc8] sm:$0xff] }
 0x5ac   :  { %16981 = vmatpush3.xpose.msk.msra.mxu0 %vm284_vm3, %v1293_v47  ;;  %v15237_v47 = vld [vmem:[%s21234_s4 + $0xc0] sm:$0xff] }
 0x5ad   :  { %16982 = vmatprep.subr.msk.mxu0 %vm284_vm3, %v1288_v49 }
 0x5b0   :  { %16983 = vmatpush3.xpose.msk.msra.mxu0 %vm284_vm3, %v1288_v49 }
 0x5b1   :  { %16994 = vmatprep.subr.mxu0 %v15226_v17 }
 0x5b3   :  { %16985 = vmatmul.mubr.msk.f32.vlgmr.msra.gmra.mxu0 %vm284_vm3, %v1205_v31  ;;  %v15248_v31 = vld [vmem:[%s21234_s4 + $0x158] sm:$0xff] }
 0x5b4   :  { %16995 = vmatpush3.msra.mxu0 %v15226_v17 }
 0x5b5   :  { %17010 = vmatprep.subr.mxu0 %v15240_v35 }
 0x673   :  { %v16986_v50 = vpop.f32.mrf.mxu0 }
 0x674   :  { %v1472_v51 = vmul.f32 0.35355338, %v16986_v50 }
 0x675   :  { %v1462_v54 = vpop.f32.mrf.mxu0 }
 0x676   :  { %v1474_v55 = vmul.f32 %v18844_v36, %v1472_v51  ;;  %v1471_v56 = vmul.f32 0.35355338, %v1462_v54  ;;  %v15250_v54 = vld [vmem:[%s21235_s5 + $0xa] ss:$0 sm:$0xff] }
 0x678   :  { %v1473_v57 = vmul.f32 %v18850_v41, %v1471_v56  ;;  %v1476_v58 = vadd.f32 %v1474_v55, %v18846_v38 }
 0x67a   :  { %v1480_v59 = vsel %vm926_vm8, %v1476_v58, -inf  ;;  %v1475_v63 = vadd.f32 %v1473_v57, %v18852_v42 }
 0x67b   :  { %1481 = vmax.xlane.f32.xlu0 %v1480_v59  ;;  %v19008_v59 = vld [vmem:[%s21242_s12 + $0x14] ss:$0 sm:$0xff] }
 0x67c   :  { %v1477_v0 = vsel %vm926_vm8, %v1475_v63, -inf }
 0x67d   :  { %1478 = vmax.xlane.f32.xlu1 %v1477_v0 }
 0x704   :  { %v1482_v3 = vpop.xlane.xlu0 %1481 }
 0x705   :  { %v1484_v4 = vsub.f32 %v1476_v58, %v1482_v3 }
 0x706   :  { %v1479_v5 = vpop.xlane.xlu1 %1478 }
 0x707   :  { %v1487_v6 = vmul.f32 1.442695, %v1484_v4  ;;  %v1483_v7 = vsub.f32 %v1475_v63, %v1479_v5  ;;  %v1119_v63 = vadd.f32 %v18923_v43, %v19008_v59  ;;  %v15242_v5 = vld [vmem:[%s21235_s5 + $0x6] ss:$0 sm:$0xff] }
 0x709   :  { %18301 = vpow2.f32 %v1487_v6  ;;  %v1485_v8 = vmul.f32 1.442695, %v1483_v7 }
 0x70b   :  { %18303 = vpow2.f32 %v1485_v8 }
 0x716   :  { %v18302_v9 = vpop.eup %18301 }
 0x717   :  { %v1492_v10 = vsel %vm926_vm8, %v18302_v9, 0.0 }
 0x718   :  { %v18304_v11 = vpop.eup %18303  ;;  %1493 = vadd.xlane.f32.xlu0 %v1492_v10 }
 0x719   :  { %v1489_v12 = vsel %vm926_vm8, %v18304_v11, 0.0 }
 0x71a   :  { %1490 = vadd.xlane.f32.xlu1 %v1489_v12 }
 0x7a1   :  { %v1494_v18 = vpop.xlane.xlu0 %1493 }
 0x7a2   :  { %18305 = vrcp.f32 %v1494_v18 }
 0x7a3   :  { %v1491_v20 = vpop.xlane.xlu1 %1490 }
 0x7a4   :  { %18307 = vrcp.f32 %v1491_v20 }
 0x7af   :  { %v18306_v22 = vpop.eup %18305 }
 0x7b0   :  { %v1498_v27 = vmul.f32 %v18306_v22, %v18302_v9 }
 0x7b1   :  { %v18308_v24 = vpop.eup %18307 }
 0x7b2   :  { %v1496_v25 = vmul.f32 %v18308_v24, %v18304_v11 }
 0x7b4   :  { %16991 = vmatprep.mubr.msk.f32.mxu1 %vm926_vm8, %v1496_v25 }
 0x7b5   :  { %16992 = vmatmul.mubr.msk.f32.vlgmr.msra.gmra.mxu1 %vm926_vm8, %v1498_v27 }
 0x7b6   :  { %17000 = vmatpush3.msra.mxu1 %v15232_v13  ;;  %17007 = vmatprep.mubr.msk.f32.mxu1 %vm199_vm2, %v18773_v52 }
 0x7b7   :  { %17001 = vmatprep.subr.mxu1 %v15231_v28 }
 0x7b8   :  { %17002 = vmatpush3.msra.mxu1 %v15231_v28 }
 0x7b9   :  { %17003 = vmatprep.subr.mxu1 %v15230_v15 }
 0x7ba   :  { %17004 = vmatpush3.msra.mxu1 %v15230_v15 }
 0x7bb   :  { %17005 = vmatprep.subr.mxu1 %v15229_v30 }
 0x7bc   :  { %17006 = vmatpush3.msra.mxu1 %v15229_v30 }
 0x7bd   :  { %17008 = vmatmul.mubr.msk.f32.vlgmr.msra.gmra.mxu1 %vm199_vm2, %v18775_v53  ;;  %17021 = vmatprep.subr.mxu1 %v15248_v31 }
 0x7be   :  { %17022 = vmatpush3.msra.mxu1 %v15248_v31  ;;  %17029 = vmatprep.mubr.msk.f32.mxu1 %vm199_vm2, %v18773_v52 }
 0x7bf   :  { %17023 = vmatprep.subr.mxu1 %v15247_v32 }
 0x7c0   :  { %17024 = vmatpush3.msra.mxu1 %v15247_v32 }
 0x7c1   :  { %17025 = vmatprep.subr.mxu1 %v15246_v33 }
 0x7c2   :  { %17026 = vmatpush3.msra.mxu1 %v15246_v33 }
 0x7c3   :  { %17027 = vmatprep.subr.mxu1 %v15245_v34 }
 0x7c4   :  { %17028 = vmatpush3.msra.mxu1 %v15245_v34 }
 0x7c5   :  { %17030 = vmatmul.mubr.msk.f32.vlgmr.msra.gmra.mxu1 %vm199_vm2, %v18775_v53 }
 0x875   :  { %v16993_v37 = vpop.f32.mrf.mxu1 }
 0x877   :  { %v1571_v39 = vpop.f32.mrf.mxu1 }
 0x878   :  { %16996 = vmatprep.mubr.msk.f32.mxu0 %vm284_vm3, %v1571_v39  ;;  %v15259_v39 = vld [vmem:[%s21236_s6 + $0x10] sm:$0xff] }
 0x879   :  { %16997 = vmatmul.mubr.msk.f32.vlgmr.msra.gmra.mxu0 %vm284_vm3, %v16993_v37  ;;  %v15265_v37 = vld [vmem:[%s21234_s4 + $0x78] sm:$0xff] }
 0x87a   :  { %17011 = vmatpush3.msra.mxu0 %v15240_v35  ;;  %17018 = vmatprep.mubr.msk.f32.mxu0 %vm199_vm2, %v18773_v52 }
 0x87b   :  { %17012 = vmatprep.subr.mxu0 %v15239_v40 }
 0x87c   :  { %17013 = vmatpush3.msra.mxu0 %v15239_v40 }
 0x87d   :  { %v17009_v48 = vpop.f32.mrf.mxu1  ;;  %17014 = vmatprep.subr.mxu0 %v15238_v45 }
 0x87e   :  { %v1750_v49 = vadd.f32 %v17009_v48, %v15234_v46  ;;  %17015 = vmatpush3.msra.mxu0 %v15238_v45 }
 0x87f   :  { %v1744_v50 = vpop.f32.mrf.mxu1  ;;  %17016 = vmatprep.subr.mxu0 %v15237_v47 }
 0x880   :  { %v1745_v51 = vadd.f32 %v15234_v46, %v1744_v50  ;;  %17017 = vmatpush3.msra.mxu0 %v15237_v47  ;;  %v15264_v50 = vld [vmem:[%s21234_s4 + $0x70] sm:$0xff] }
 0x881   :  { %17019 = vmatmul.mubr.msk.f32.vlgmr.msra.gmra.mxu0 %vm199_vm2, %v18775_v53 }
 0x882   :  { %17036 = vmatprep.mubr.msk.f32.mxu0 %vm284_vm3, %v1745_v51  ;;  %v15263_v51 = vld [vmem:[%s21234_s4 + $0x68] sm:$0xff] }
 0x885   :  { %v17031_v55 = vpop.f32.mrf.mxu1 }
 0x886   :  { %v1926_v56 = vadd.f32 %v17031_v55, %v15250_v54  ;;  %v15281_v55 = vld [vmem:[%s21234_s4 + $0x178] sm:$0xff] }
 0x887   :  { %v1920_v57 = vpop.f32.mrf.mxu1 }
 0x888   :  { %v1921_v58 = vadd.f32 %v15250_v54, %v1920_v57  ;;  %17039 = vmatprep.subr.mxu1 %v1926_v56  ;;  %v15262_v54 = vld [vmem:[%s21234_s4 + $0x60] sm:$0xff]  ;;  %v15279_v57 = vld [vmem:[%s21234_s4 + $0x168] sm:$0xff] }
 0x889   :  { %17040 = vmatpush3.msra.mxu1 %v1926_v56  ;;  %v15280_v56 = vld [vmem:[%s21234_s4 + $0x170] sm:$0xff] }
 0x88a   :  { %17041 = vmatprep.subr.mxu1 %v1921_v58 }
 0x88b   :  { %17042 = vmatpush3.msra.mxu1 %v1921_v58  ;;  %v15278_v58 = vld [vmem:[%s21234_s4 + $0x160] sm:$0xff] }
 0x88c   :  { %17051 = vmatprep.subr.mxu1 %v15265_v37 }
 0x939   :  { %v16998_v0 = vpop.f32.mrf.mxu0 }
 0x93a   :  { %v19012_v3 = vadd.f32 %v16998_v0, %v1119_v63  ;;  %v15273_v63 = vld [vmem:[%s21234_s4 + $0xf8] sm:$0xff] }
 0x93b   :  { %v19014_v4 = vpop.f32.mrf.mxu0 }
 0x941   :  { %v17020_v6 = vpop.f32.mrf.mxu0 }
 0x942   :  { %v1838_v7 = vadd.f32 %v17020_v6, %v15242_v5  ;;  %v15272_v6 = vld [vmem:[%s21234_s4 + $0xf0] sm:$0xff] }
 0x943   :  { %v1832_v8 = vpop.f32.mrf.mxu0 }
 0x944   :  { %v1833_v9 = vadd.f32 %v15242_v5, %v1832_v8  ;;  %17032 = vmatprep.subr.msk.mxu0 %vm284_vm3, %v1838_v7  ;;  %v15267_v8 = vld [vmem:[%s21235_s5 + $0x3] ss:$0 sm:$0xff] }
 0x945   :  { %17033 = vmatpush3.xpose.msk.msra.mxu0 %vm284_vm3, %v1838_v7  ;;  %v15271_v7 = vld [vmem:[%s21234_s4 + $0xe8] sm:$0xff] }
 0x946   :  { %17034 = vmatprep.subr.msk.mxu0 %vm284_vm3, %v1833_v9 }
 0x949   :  { %17035 = vmatpush3.xpose.msk.msra.mxu0 %vm284_vm3, %v1833_v9  ;;  %v15270_v9 = vld [vmem:[%s21234_s4 + $0xe0] sm:$0xff] }
 0x94a   :  { %17046 = vmatprep.subr.mxu0 %v15259_v39 }
 0x94c   :  { %17037 = vmatmul.mubr.msk.f32.vlgmr.msra.gmra.mxu0 %vm284_vm3, %v1750_v49 }
 0x94d   :  { %17047 = vmatpush3.msra.mxu0 %v15259_v39 }
 0x94e   :  { %17062 = vmatprep.subr.mxu0 %v15273_v63 }
 0xa0c   :  { %v17038_v43 = vpop.f32.mrf.mxu0 }
 0xa0d   :  { %v2017_v10 = vmul.f32 0.35355338, %v17038_v43 }
 0xa0e   :  { %v2007_v11 = vpop.f32.mrf.mxu0 }
 0xa0f   :  { %v2019_v12 = vmul.f32 %v18844_v36, %v2017_v10  ;;  %v2016_v13 = vmul.f32 0.35355338, %v2007_v11 }
 0xa11   :  { %v2018_v17 = vmul.f32 %v18850_v41, %v2016_v13  ;;  %v2021_v18 = vadd.f32 %v2019_v12, %v18846_v38  ;;  %v15283_v13 = vld [vmem:[%s21235_s5 + $0xb] ss:$0 sm:$0xff] }
 0xa13   :  { %v2025_v20 = vsel %vm926_vm8, %v2021_v18, -inf  ;;  %v2020_v22 = vadd.f32 %v2018_v17, %v18852_v42 }
 0xa14   :  { %2026 = vmax.xlane.f32.xlu0 %v2025_v20 }
 0xa15   :  { %v2022_v24 = vsel %vm926_vm8, %v2020_v22, -inf }
 0xa16   :  { %2023 = vmax.xlane.f32.xlu1 %v2022_v24 }
 0xa9d   :  { %v2027_v25 = vpop.xlane.xlu0 %2026 }
 0xa9e   :  { %v2029_v27 = vsub.f32 %v2021_v18, %v2027_v25 }
 0xa9f   :  { %v2024_v28 = vpop.xlane.xlu1 %2023 }
 0xaa0   :  { %v2032_v15 = vmul.f32 1.442695, %v2029_v27  ;;  %v2028_v30 = vsub.f32 %v2020_v22, %v2024_v28  ;;  %v15275_v28 = vld [vmem:[%s21235_s5 + $0x7] ss:$0 sm:$0xff] }
 0xaa2   :  { %18309 = vpow2.f32 %v2032_v15  ;;  %v2030_v31 = vmul.f32 1.442695, %v2028_v30 }
 0xaa4   :  { %18311 = vpow2.f32 %v2030_v31 }
 0xaaf   :  { %v18310_v32 = vpop.eup %18309 }
 0xab0   :  { %v2037_v33 = vsel %vm926_vm8, %v18310_v32, 0.0 }
 0xab1   :  { %v18312_v34 = vpop.eup %18311  ;;  %2038 = vadd.xlane.f32.xlu0 %v2037_v33 }
 0xab2   :  { %v2034_v35 = vsel %vm926_vm8, %v18312_v34, 0.0 }
 0xab3   :  { %2035 = vadd.xlane.f32.xlu1 %v2034_v35 }
 0xb3a   :  { %v2039_v40 = vpop.xlane.xlu0 %2038 }
 0xb3b   :  { %18313 = vrcp.f32 %v2039_v40 }
 0xb3c   :  { %v2036_v45 = vpop.xlane.xlu1 %2035 }
 0xb3d   :  { %18315 = vrcp.f32 %v2036_v45 }
 0xb48   :  { %v18314_v46 = vpop.eup %18313 }
 0xb49   :  { %v2043_v49 = vmul.f32 %v18314_v46, %v18310_v32 }
 0xb4a   :  { %v18316_v47 = vpop.eup %18315 }
 0xb4b   :  { %v2041_v48 = vmul.f32 %v18316_v47, %v18312_v34 }
 0xb4d   :  { %17043 = vmatprep.mubr.msk.f32.mxu1 %vm926_vm8, %v2041_v48 }
 0xb4e   :  { %17044 = vmatmul.mubr.msk.f32.vlgmr.msra.gmra.mxu1 %vm926_vm8, %v2043_v49 }
 0xb4f   :  { %17052 = vmatpush3.msra.mxu1 %v15265_v37  ;;  %17059 = vmatprep.mubr.msk.f32.mxu1 %vm199_vm2, %v18773_v52 }
 0xb50   :  { %17053 = vmatprep.subr.mxu1 %v15264_v50 }
 0xb51   :  { %17054 = vmatpush3.msra.mxu1 %v15264_v50 }
 0xb52   :  { %17055 = vmatprep.subr.mxu1 %v15263_v51 }
 0xb53   :  { %17056 = vmatpush3.msra.mxu1 %v15263_v51 }
 0xb54   :  { %17057 = vmatprep.subr.mxu1 %v15262_v54 }
 0xb55   :  { %17058 = vmatpush3.msra.mxu1 %v15262_v54 }
 0xb56   :  { %17060 = vmatmul.mubr.msk.f32.vlgmr.msra.gmra.mxu1 %vm199_vm2, %v18775_v53  ;;  %17073 = vmatprep.subr.mxu1 %v15281_v55 }
 0xb57   :  { %17074 = vmatpush3.msra.mxu1 %v15281_v55  ;;  %17081 = vmatprep.mubr.msk.f32.mxu1 %vm199_vm2, %v18773_v52 }
 0xb58   :  { %17075 = vmatprep.subr.mxu1 %v15280_v56 }
 0xb59   :  { %17076 = vmatpush3.msra.mxu1 %v15280_v56 }
 0xb5a   :  { %17077 = vmatprep.subr.mxu1 %v15279_v57 }
 0xb5b   :  { %17078 = vmatpush3.msra.mxu1 %v15279_v57 }
 0xb5c   :  { %17079 = vmatprep.subr.mxu1 %v15278_v58 }
 0xb5d   :  { %17080 = vmatpush3.msra.mxu1 %v15278_v58 }
 0xb5e   :  { %17082 = vmatmul.mubr.msk.f32.vlgmr.msra.gmra.mxu1 %vm199_vm2, %v18775_v53 }
 0xc0e   :  { %v17045_v0 = vpop.f32.mrf.mxu1 }
 0xc10   :  { %v2116_v5 = vpop.f32.mrf.mxu1 }
 0xc11   :  { %17048 = vmatprep.mubr.msk.f32.mxu0 %vm284_vm3, %v2116_v5 }
 0xc12   :  { %17049 = vmatmul.mubr.msk.f32.vlgmr.msra.gmra.mxu0 %vm284_vm3, %v17045_v0  ;;  %v15292_v0 = vld [vmem:[%s21236_s6 + $0x18] sm:$0xff] }
 0xc13   :  { %17063 = vmatpush3.msra.mxu0 %v15273_v63  ;;  %17070 = vmatprep.mubr.msk.f32.mxu0 %vm199_vm2, %v18773_v52 }
 0xc14   :  { %17064 = vmatprep.subr.mxu0 %v15272_v6 }
 0xc15   :  { %17065 = vmatpush3.msra.mxu0 %v15272_v6 }
 0xc16   :  { %v17061_v43 = vpop.f32.mrf.mxu1  ;;  %17066 = vmatprep.subr.mxu0 %v15271_v7 }
 0xc17   :  { %v2295_v10 = vadd.f32 %v17061_v43, %v15267_v8  ;;  %17067 = vmatpush3.msra.mxu0 %v15271_v7 }
 0xc18   :  { %v2289_v11 = vpop.f32.mrf.mxu1  ;;  %17068 = vmatprep.subr.mxu0 %v15270_v9 }
 0xc19   :  { %v2290_v12 = vadd.f32 %v15267_v8, %v2289_v11  ;;  %17069 = vmatpush3.msra.mxu0 %v15270_v9 }
 0xc1a   :  { %17071 = vmatmul.mubr.msk.f32.vlgmr.msra.gmra.mxu0 %vm199_vm2, %v18775_v53 }
 0xc1b   :  { %17088 = vmatprep.mubr.msk.f32.mxu0 %vm284_vm3, %v2290_v12  ;;  %v1118_v12 = vadd.f32 %v19008_v59, %v18925_v44 }
 0xc1e   :  { %v17083_v17 = vpop.f32.mrf.mxu1 }
 0xc1f   :  { %v2471_v18 = vadd.f32 %v17083_v17, %v15283_v13 }
 0xc20   :  { %v2465_v20 = vpop.f32.mrf.mxu1 }
 0xc21   :  { %v2466_v22 = vadd.f32 %v15283_v13, %v2465_v20  ;;  %17091 = vmatprep.subr.mxu1 %v2471_v18  ;;  %v1663_v13 = vadd.f32 %v19014_v4, %v1118_v12  ;;  %v2897_v12 = vld [vmem:[%s21239_s9] sm:$0xff] }
 0xc22   :  { %17092 = vmatpush3.msra.mxu1 %v2471_v18 }
 0xc23   :  { %17093 = vmatprep.subr.mxu1 %v2466_v22 }
 0xc24   :  { %17094 = vmatpush3.msra.mxu1 %v2466_v22 }
 0xcd2   :  { %v17050_v24 = vpop.f32.mrf.mxu0 }
 0xcd3   :  { %v2209_v25 = vadd.f32 %v17050_v24, %v19012_v3 }
 0xcd4   :  { %v2199_v27 = vpop.f32.mrf.mxu0 }
 0xcd5   :  { %v2208_v18 = vadd.f32 %v2199_v27, %v1663_v13  ;;  %v15298_v13 = vld [vmem:[%s21238_s8] ss:$0 sm:$0xff] }
 0xcda   :  { %v17072_v15 = vpop.f32.mrf.mxu0 }
 0xcdb   :  { %v2383_v30 = vadd.f32 %v17072_v15, %v15275_v28 }
 0xcdc   :  { %v2377_v31 = vpop.f32.mrf.mxu0 }
 0xcdd   :  { %v2378_v32 = vadd.f32 %v15275_v28, %v2377_v31  ;;  %17084 = vmatprep.subr.msk.mxu0 %vm284_vm3, %v2383_v30 }
 0xcde   :  { %17085 = vmatpush3.xpose.msk.msra.mxu0 %vm284_vm3, %v2383_v30 }
 0xcdf   :  { %17086 = vmatprep.subr.msk.mxu0 %vm284_vm3, %v2378_v32 }
 0xce2   :  { %17087 = vmatpush3.xpose.msk.msra.mxu0 %vm284_vm3, %v2378_v32 }
 0xce3   :  { %17098 = vmatprep.subr.mxu0 %v15292_v0 }
 0xce5   :  { %17089 = vmatmul.mubr.msk.f32.vlgmr.msra.gmra.mxu0 %vm284_vm3, %v2295_v10 }
 0xce6   :  { %17099 = vmatpush3.msra.mxu0 %v15292_v0 }
 0xda5   :  { %v17090_v3 = vpop.f32.mrf.mxu0 }
 0xda6   :  { %v2562_v33 = vmul.f32 0.35355338, %v17090_v3 }
 0xda7   :  { %v2552_v34 = vpop.f32.mrf.mxu0 }
 0xda8   :  { %v2564_v35 = vmul.f32 %v18844_v36, %v2562_v33  ;;  %v2561_v37 = vmul.f32 0.35355338, %v2552_v34 }
 0xdaa   :  { %v2563_v39 = vmul.f32 %v18850_v41, %v2561_v37  ;;  %v2566_v40 = vadd.f32 %v2564_v35, %v18846_v38  ;;  %v2805_v35 = vld [vmem:[%s21237_s7 + $0x10] sm:$0xff]  ;;  %v2804_v37 = vld [vmem:[%s21237_s7 + $0x8] sm:$0xff] }
 0xdac   :  { %v2570_v45 = vsel %vm926_vm8, %v2566_v40, -inf  ;;  %v2565_v46 = vadd.f32 %v2563_v39, %v18852_v42  ;;  %v2803_v39 = vld [vmem:[%s21237_s7] sm:$0xff] }
 0xdad   :  { %2571 = vmax.xlane.f32.xlu0 %v2570_v45  ;;  %v2903_v45 = vld [vmem:[%s21239_s9 + $0x30] sm:$0xff] }
 0xdae   :  { %v2567_v47 = vsel %vm926_vm8, %v2565_v46, -inf }
 0xdaf   :  { %2568 = vmax.xlane.f32.xlu1 %v2567_v47  ;;  %v2901_v47 = vld [vmem:[%s21239_s9 + $0x20] sm:$0xff] }
 0xe36   :  { %v2572_v48 = vpop.xlane.xlu0 %2571 }
 0xe37   :  { %v2574_v49 = vsub.f32 %v2566_v40, %v2572_v48  ;;  %v2904_v40 = vld [vmem:[%s21239_s9 + $0x38] sm:$0xff] }
 0xe38   :  { %v2569_v50 = vpop.xlane.xlu1 %2568  ;;  %17114 = vmatprep.subr.mxu0 %v2904_v40 }
 0xe39   :  { %v2577_v51 = vmul.f32 1.442695, %v2574_v49  ;;  %v2573_v54 = vsub.f32 %v2565_v46, %v2569_v50  ;;  %v2902_v46 = vld [vmem:[%s21239_s9 + $0x28] sm:$0xff] }
 0xe3b   :  { %18317 = vpow2.f32 %v2577_v51  ;;  %v2575_v55 = vmul.f32 1.442695, %v2573_v54 }
 0xe3d   :  { %18319 = vpow2.f32 %v2575_v55 }
 0xe48   :  { %v18318_v56 = vpop.eup %18317 }
 0xe49   :  { %v2582_v57 = vsel %vm926_vm8, %v18318_v56, 0.0 }
 0xe4a   :  { %v18320_v58 = vpop.eup %18319  ;;  %2583 = vadd.xlane.f32.xlu0 %v2582_v57 }
 0xe4b   :  { %v2579_v63 = vsel %vm926_vm8, %v18320_v58, 0.0 }
 0xe4c   :  { %2580 = vadd.xlane.f32.xlu1 %v2579_v63 }
 0xed3   :  { %v2584_v5 = vpop.xlane.xlu0 %2583 }
 0xed4   :  { %18321 = vrcp.f32 %v2584_v5 }
 0xed5   :  { %v2581_v6 = vpop.xlane.xlu1 %2580 }
 0xed6   :  { %18323 = vrcp.f32 %v2581_v6 }
 0xee1   :  { %v18322_v7 = vpop.eup %18321 }
 0xee2   :  { %v2588_v43 = vmul.f32 %v18322_v7, %v18318_v56  ;;  %v15297_v7 = vld [vmem:[%s21242_s12 + $0xa] ss:$0 sm:$0xff] }
 0xee3   :  { %v18324_v8 = vpop.eup %18323 }
 0xee4   :  { %v2586_v9 = vmul.f32 %v18324_v8, %v18320_v58  ;;  %v15295_v58 = vld [vmem:[%s21242_s12] ss:$0 sm:$0xff] }
 0xee6   :  { %17095 = vmatprep.mubr.msk.f32.mxu1 %vm926_vm8, %v2586_v9 }
 0xee7   :  { %17096 = vmatmul.mubr.msk.f32.vlgmr.msra.gmra.mxu1 %vm926_vm8, %v2588_v43  ;;  %v2900_v43 = vld [vmem:[%s21239_s9 + $0x18] sm:$0xff] }
 0xfa7   :  { %v17097_v10 = vpop.f32.mrf.mxu1 }
 0xfa9   :  { %v2661_v11 = vpop.f32.mrf.mxu1 }
 0xfaa   :  { %17100 = vmatprep.mubr.msk.f32.mxu0 %vm284_vm3, %v2661_v11  ;;  %v2898_v11 = vld [vmem:[%s21239_s9 + $0x8] sm:$0xff] }
 0xfab   :  { %17101 = vmatmul.mubr.msk.f32.vlgmr.msra.gmra.mxu0 %vm284_vm3, %v17097_v10  ;;  %v2899_v10 = vld [vmem:[%s21239_s9 + $0x10] sm:$0xff] }
 0xfac   :  { %17115 = vmatpush3.msra.mxu0 %v2904_v40 }
 0xfad   :  { %17116 = vmatprep.subr.mxu0 %v2903_v45 }
 0xfae   :  { %17117 = vmatpush3.msra.mxu0 %v2903_v45 }
 0xfaf   :  { %17118 = vmatprep.subr.mxu0 %v2902_v46 }
 0xfb0   :  { %17119 = vmatpush3.msra.mxu0 %v2902_v46  ;;  %v15313_v46 = vld [vmem:[%s21234_s4 + $0x198] sm:$0xff] }
 0xfb1   :  { %17120 = vmatprep.subr.mxu0 %v2901_v47 }
 0xfb2   :  { %17121 = vmatpush3.msra.mxu0 %v2901_v47  ;;  %v15329_v47 = vld [vmem:[%s21234_s4 + $0x298] sm:$0xff] }
 0xfb3   :  { %17122 = vmatprep.subr.mxu0 %v2900_v43 }
 0xfb4   :  { %17123 = vmatpush3.msra.mxu0 %v2900_v43 }
 0xfb5   :  { %17124 = vmatprep.subr.mxu0 %v2899_v10 }
 0xfb6   :  { %17125 = vmatpush3.msra.mxu0 %v2899_v10 }
 0xfb7   :  { %17126 = vmatprep.subr.mxu0 %v2898_v11 }
 0xfb8   :  { %17127 = vmatpush3.msra.mxu0 %v2898_v11 }
 0xfb9   :  { %17128 = vmatprep.subr.mxu0 %v2897_v12 }
 0xfba   :  { %17129 = vmatpush3.msra.mxu0 %v2897_v12  ;;  %v15308_v12 = vld [vmem:[%s21242_s12 + $0xb] ss:$0 sm:$0xff] }
 0xfbb   :  { %17155 = vmatprep.subr.mxu0 %v15329_v47 }
0x106b   :  { %v17102_v17 = vpop.f32.mrf.mxu0 }
0x106c   :  { %v2754_v20 = vadd.f32 %v17102_v17, %v2209_v25 }
0x106d   :  { %v2744_v22 = vpop.f32.mrf.mxu0 }
0x106e   :  { %v2753_v24 = vadd.f32 %v2744_v22, %v2208_v18  ;;  %v2756_v28 = vadd.f32 %v2754_v20, %v18775_v53 }
0x1070   :  { %v2760_v15 = vsel %vm199_vm2, %v2756_v28, 0.0  ;;  %v2755_v30 = vadd.f32 %v2753_v24, %v18773_v52  ;;  %v2806_v52 = vld [vmem:[%s21237_s7 + $0x18] sm:$0xff] }
0x1071   :  { %2761 = vadd.xlane.f32.xlu0 %v2760_v15  ;;  %17103 = vmatprep.subr.mxu1 %v2806_v52  ;;  %v15302_v15 = vld [vmem:[%s21242_s12 + $0x1a] ss:$0 sm:$0xff] }
0x1072   :  { %v2757_v31 = vsel %vm199_vm2, %v2755_v30, 0.0  ;;  %17104 = vmatpush3.msra.mxu1 %v2806_v52 }
0x1073   :  { %2758 = vadd.xlane.f32.xlu1 %v2757_v31  ;;  %17105 = vmatprep.subr.mxu1 %v2805_v35 }
0x1074   :  { %17106 = vmatpush3.msra.mxu1 %v2805_v35 }
0x1075   :  { %17107 = vmatprep.subr.mxu1 %v2804_v37 }
0x1076   :  { %17108 = vmatpush3.msra.mxu1 %v2804_v37 }
0x1077   :  { %17109 = vmatprep.subr.mxu1 %v2803_v39 }
0x1078   :  { %17110 = vmatpush3.msra.mxu1 %v2803_v39 }
0x1079   :  { %17133 = vmatprep.subr.mxu1 %v15313_v46 }
0x10fa   :  { %v2762_v32 = vpop.xlane.xlu0 %2761 }
0x10fb   :  { %v2765_v3 = vmul.f32 0.03125, %v2762_v32 }
0x10fc   :  { %v2759_v44 = vpop.xlane.xlu1 %2758 }
0x10fd   :  { %v2767_v59 = vsub.f32 %v2756_v28, %v2765_v3  ;;  %v2764_v4 = vmul.f32 0.03125, %v2759_v44 }
0x10ff   :  { %v2766_v33 = vsub.f32 %v2755_v30, %v2764_v4  ;;  %v2769_v27 = vmul.f32 %v2767_v59, %v2767_v59 }
0x1101   :  { %v2773_v25 = vsel %vm199_vm2, %v2769_v27, 0.0  ;;  %v2768_v34 = vmul.f32 %v2766_v33, %v2766_v33 }
0x1102   :  { %2774 = vadd.xlane.f32.xlu0 %v2773_v25 }
0x1103   :  { %v2770_v53 = vsel %vm199_vm2, %v2768_v34, 0.0 }
0x1104   :  { %2771 = vadd.xlane.f32.xlu1 %v2770_v53 }
0x118b   :  { %v2775_v48 = vpop.xlane.xlu0 %2774 }
0x118c   :  { %v2777_v49 = vmul.f32 0.03125, %v2775_v48  ;;  %v15312_v48 = vld [vmem:[%s21234_s4 + $0x190] sm:$0xff] }
0x118d   :  { %v2772_v50 = vpop.xlane.xlu1 %2771 }
0x118e   :  { %v2779_v51 = vadd.f32 1e-05, %v2777_v49  ;;  %v2776_v54 = vmul.f32 0.03125, %v2772_v50  ;;  %v15328_v49 = vld [vmem:[%s21234_s4 + $0x290] sm:$0xff]  ;;  %v15311_v50 = vld [vmem:[%s21234_s4 + $0x188] sm:$0xff] }
0x1190   :  { %18325 = vrsqrt.f32 %v2779_v51  ;;  %v2778_v55 = vadd.f32 1e-05, %v2776_v54  ;;  %v15327_v51 = vld [vmem:[%s21234_s4 + $0x288] sm:$0xff]  ;;  %v15310_v54 = vld [vmem:[%s21234_s4 + $0x180] sm:$0xff] }
0x1192   :  { %18327 = vrsqrt.f32 %v2778_v55  ;;  %v15326_v55 = vld [vmem:[%s21234_s4 + $0x280] sm:$0xff] }
0x119d   :  { %v18326_v56 = vpop.eup %18325 }
0x119e   :  { %v2783_v57 = vmul.f32 %v18326_v56, %v2767_v59  ;;  %v15321_v56 = vld [vmem:[%s21234_s4 + $0x218] sm:$0xff] }
0x119f   :  { %v18328_v63 = vpop.eup %18327 }
0x11a0   :  { %v2782_v0 = vmul.f32 %v18328_v63, %v2766_v33  ;;  %v2792_v5 = vmul.f32 %v15295_v58, %v2783_v57 }
0x11a2   :  { %v2791_v6 = vmul.f32 %v15295_v58, %v2782_v0  ;;  %v2802_v9 = vadd.f32 %v15297_v7, %v2792_v5 }
0x11a4   :  { %v2801_v8 = vadd.f32 %v15297_v7, %v2791_v6 }
0x11a6   :  { %17111 = vmatprep.mubr.msk.f32.mxu1 %vm199_vm2, %v2801_v8 }
0x11a7   :  { %17112 = vmatmul.mubr.msk.f32.vlgmr.msra.gmra.mxu1 %vm199_vm2, %v2802_v9 }
0x11a8   :  { %17134 = vmatpush3.msra.mxu1 %v15313_v46  ;;  %v15362_v46 = vld [vmem:[%s21234_s4 + $0x2b0] sm:$0xff] }
0x11a9   :  { %17135 = vmatprep.subr.mxu1 %v15312_v48 }
0x11aa   :  { %17136 = vmatpush3.msra.mxu1 %v15312_v48  ;;  %v15360_v48 = vld [vmem:[%s21234_s4 + $0x2a0] sm:$0xff] }
0x11ab   :  { %17137 = vmatprep.subr.mxu1 %v15311_v50 }
0x11ac   :  { %17138 = vmatpush3.msra.mxu1 %v15311_v50 }
0x11ad   :  { %17139 = vmatprep.subr.mxu1 %v15310_v54 }
0x11ae   :  { %17140 = vmatpush3.msra.mxu1 %v15310_v54 }
0x11af   :  { %17144 = vmatprep.subr.mxu1 %v15321_v56 }
0x1267   :  { %v17113_v17 = vpop.f32.mrf.mxu1 }
0x1268   :  { %v2892_v18 = vadd.f32 %v17113_v17, %v15298_v13 }
0x1269   :  { %v2886_v20 = vpop.f32.mrf.mxu1 }
0x126a   :  { %v2887_v22 = vadd.f32 %v15298_v13, %v2886_v20  ;;  %v2896_v28 = vmax.f32 %v2892_v18, 0.0  ;;  %v15320_v20 = vld [vmem:[%s21234_s4 + $0x210] sm:$0xff] }
0x126c   :  { %v2895_v24 = vmax.f32 %v2887_v22, 0.0  ;;  %v15319_v22 = vld [vmem:[%s21234_s4 + $0x208] sm:$0xff] }
0x126e   :  { %17130 = vmatprep.mubr.msk.f32.mxu0 %vm21245_vm9, %v2895_v24  ;;  %v15318_v24 = vld [vmem:[%s21234_s4 + $0x200] sm:$0xff] }
0x126f   :  { %17131 = vmatmul.mubr.msk.f32.vlgmr.msra.gmra.mxu0 %vm21245_vm9, %v2896_v28  ;;  %v15331_v28 = vld [vmem:[%s21235_s5 + $0x14] ss:$0 sm:$0xff] }
0x1270   :  { %17156 = vmatpush3.msra.mxu0 %v15329_v47  ;;  %v15361_v47 = vld [vmem:[%s21234_s4 + $0x2a8] sm:$0xff] }
0x1271   :  { %17157 = vmatprep.subr.mxu0 %v15328_v49 }
0x1272   :  { %17158 = vmatpush3.msra.mxu0 %v15328_v49 }
0x1273   :  { %17159 = vmatprep.subr.mxu0 %v15327_v51 }
0x1274   :  { %17160 = vmatpush3.msra.mxu0 %v15327_v51 }
0x1275   :  { %17161 = vmatprep.subr.mxu0 %v15326_v55 }
0x1276   :  { %17162 = vmatpush3.msra.mxu0 %v15326_v55 }
0x132f   :  { %v17132_v30 = vpop.f32.mrf.mxu0 }
0x1330   :  { %v2992_v31 = vadd.f32 %v17132_v30, %v15302_v15 }
0x1331   :  { %v2986_v32 = vpop.f32.mrf.mxu0 }
0x1332   :  { %v2987_v3 = vadd.f32 %v15302_v15, %v2986_v32  ;;  %v2996_v44 = vadd.f32 %v2992_v31, %v2802_v9  ;;  %v15315_v32 = vld [vmem:[%s21235_s5 + $0xc] ss:$0 sm:$0xff] }
0x1334   :  { %v3000_v59 = vsel %vm199_vm2, %v2996_v44, 0.0  ;;  %v2995_v4 = vadd.f32 %v2987_v3, %v2801_v8  ;;  %v15306_v8 = vld [vmem:[%s21242_s12 + $0x1] ss:$0 sm:$0xff] }
0x1335   :  { %3001 = vadd.xlane.f32.xlu0 %v3000_v59 }
0x1336   :  { %v2997_v33 = vsel %vm199_vm2, %v2995_v4, 0.0 }
0x1337   :  { %2998 = vadd.xlane.f32.xlu1 %v2997_v33  ;;  %v15323_v33 = vld [vmem:[%s21235_s5 + $0x10] ss:$0 sm:$0xff] }
0x13be   :  { %v3002_v27 = vpop.xlane.xlu0 %3001 }
0x13bf   :  { %v3004_v25 = vmul.f32 0.03125, %v3002_v27 }
0x13c0   :  { %v2999_v34 = vpop.xlane.xlu1 %2998 }
0x13c1   :  { %v3006_v53 = vsub.f32 %v2996_v44, %v3004_v25  ;;  %v3003_v52 = vmul.f32 0.03125, %v2999_v34 }
0x13c3   :  { %v3005_v35 = vsub.f32 %v2995_v4, %v3003_v52  ;;  %v3008_v37 = vmul.f32 %v3006_v53, %v3006_v53  ;;  %v15347_v52 = vld [vmem:[%s21234_s4 + $0x1b8] sm:$0xff] }
0x13c5   :  { %v3012_v39 = vsel %vm199_vm2, %v3008_v37, 0.0  ;;  %v3007_v40 = vmul.f32 %v3005_v35, %v3005_v35  ;;  %v15346_v37 = vld [vmem:[%s21234_s4 + $0x1b0] sm:$0xff] }
0x13c6   :  { %3013 = vadd.xlane.f32.xlu0 %v3012_v39  ;;  %v15345_v39 = vld [vmem:[%s21234_s4 + $0x1a8] sm:$0xff] }
0x13c7   :  { %v3009_v45 = vsel %vm199_vm2, %v3007_v40, 0.0  ;;  %v15344_v40 = vld [vmem:[%s21234_s4 + $0x1a0] sm:$0xff] }
0x13c8   :  { %3010 = vadd.xlane.f32.xlu1 %v3009_v45  ;;  %v15363_v45 = vld [vmem:[%s21234_s4 + $0x2b8] sm:$0xff] }
0x144f   :  { %v3014_v57 = vpop.xlane.xlu0 %3013 }
0x1450   :  { %v3016_v58 = vmul.f32 0.03125, %v3014_v57 }
0x1451   :  { %v3011_v63 = vpop.xlane.xlu1 %3010 }
0x1452   :  { %v3018_v0 = vadd.f32 1e-05, %v3016_v58  ;;  %v3015_v5 = vmul.f32 0.03125, %v3011_v63  ;;  %v15349_v58 = vld [vmem:[%s21235_s5 + $0xd] ss:$0 sm:$0xff] }
0x1454   :  { %18329 = vrsqrt.f32 %v3018_v0  ;;  %v3017_v6 = vadd.f32 1e-05, %v3015_v5 }
0x1456   :  { %18331 = vrsqrt.f32 %v3017_v6 }
0x1461   :  { %v18330_v7 = vpop.eup %18329 }
0x1462   :  { %v3022_v9 = vmul.f32 %v18330_v7, %v3006_v53 }
0x1463   :  { %v18332_v43 = vpop.eup %18331 }
0x1464   :  { %v3021_v10 = vmul.f32 %v18332_v43, %v3005_v35  ;;  %v3032_v11 = vmul.f32 %v15306_v8, %v3022_v9  ;;  %v15365_v9 = vld [vmem:[%s21235_s5 + $0x15] ss:$0 sm:$0xff] }
0x1466   :  { %v3031_v13 = vmul.f32 %v15306_v8, %v3021_v10  ;;  %v19218_v18 = vadd.f32 %v15308_v12, %v3032_v11 }
0x1468   :  { %v19216_v17 = vadd.f32 %v15308_v12, %v3031_v13 }
0x146a   :  { %17141 = vmatprep.mubr.msk.f32.mxu1 %vm199_vm2, %v19216_v17  ;;  %17163 = vmatprep.mubr.msk.f32.mxu0 %vm199_vm2, %v19216_v17 }
0x146b   :  { %17142 = vmatmul.mubr.msk.f32.vlgmr.msra.gmra.mxu1 %vm199_vm2, %v19218_v18  ;;  %17164 = vmatmul.mubr.msk.f32.vlgmr.msra.gmra.mxu0 %vm199_vm2, %v19218_v18 }
0x146c   :  { %17145 = vmatpush3.msra.mxu1 %v15321_v56  ;;  %17152 = vmatprep.mubr.msk.f32.mxu1 %vm199_vm2, %v19216_v17 }
0x146d   :  { %17146 = vmatprep.subr.mxu1 %v15320_v20 }
0x146e   :  { %17147 = vmatpush3.msra.mxu1 %v15320_v20 }
0x146f   :  { %17148 = vmatprep.subr.mxu1 %v15319_v22 }
0x1470   :  { %17149 = vmatpush3.msra.mxu1 %v15319_v22 }
0x1471   :  { %17150 = vmatprep.subr.mxu1 %v15318_v24 }
0x1472   :  { %17151 = vmatpush3.msra.mxu1 %v15318_v24 }
0x1473   :  { %17153 = vmatmul.mubr.msk.f32.vlgmr.msra.gmra.mxu1 %vm199_vm2, %v19218_v18 }
0x152b   :  { %v17143_v15 = vpop.f32.mrf.mxu1  ;;  %v17165_v30 = vpop.f32.mrf.mxu0 }
0x152c   :  { %v3312_v31 = vadd.f32 %v17165_v30, %v15331_v28  ;;  %v3136_v35 = vadd.f32 %v17143_v15, %v15315_v32 }
0x152d   :  { %v3130_v3 = vpop.f32.mrf.mxu1  ;;  %v3306_v44 = vpop.f32.mrf.mxu0 }
0x152e   :  { %v3131_v59 = vadd.f32 %v15315_v32, %v3130_v3  ;;  %v3307_v4 = vadd.f32 %v15331_v28, %v3306_v44  ;;  %17173 = vmatprep.subr.mxu0 %v3312_v31  ;;  %v15340_v44 = vld [vmem:[%s21236_s6 + $0x20] sm:$0xff] }
0x152f   :  { %17174 = vmatpush3.msra.mxu0 %v3312_v31 }
0x1530   :  { %17170 = vmatprep.mubr.msk.f32.mxu1 %vm284_vm3, %v3131_v59  ;;  %17175 = vmatprep.subr.mxu0 %v3307_v4 }
0x1531   :  { %17176 = vmatpush3.msra.mxu0 %v3307_v4 }
0x1532   :  { %17180 = vmatprep.subr.mxu0 %v15340_v44 }
0x1533   :  { %v17154_v27 = vpop.f32.mrf.mxu1 }
0x1534   :  { %v3224_v25 = vadd.f32 %v17154_v27, %v15323_v33 }
0x1535   :  { %v3218_v34 = vpop.f32.mrf.mxu1 }
0x1536   :  { %v3219_v53 = vadd.f32 %v15323_v33, %v3218_v34  ;;  %17166 = vmatprep.subr.msk.mxu1 %vm284_vm3, %v3224_v25 }
0x1537   :  { %17167 = vmatpush3.xpose.msk.msra.mxu1 %vm284_vm3, %v3224_v25 }
0x1538   :  { %17168 = vmatprep.subr.msk.mxu1 %vm284_vm3, %v3219_v53 }
0x153b   :  { %17169 = vmatpush3.xpose.msk.msra.mxu1 %vm284_vm3, %v3219_v53  ;;  %v15355_v53 = vld [vmem:[%s21234_s4 + $0x238] sm:$0xff] }
0x153c   :  { %17185 = vmatprep.subr.mxu1 %v15347_v52 }
0x153e   :  { %17171 = vmatmul.mubr.msk.f32.vlgmr.msra.gmra.mxu1 %vm284_vm3, %v3136_v35 }
0x153f   :  { %17186 = vmatpush3.msra.mxu1 %v15347_v52  ;;  %17193 = vmatprep.mubr.msk.f32.mxu1 %vm199_vm2, %v19216_v17 }
0x1540   :  { %17187 = vmatprep.subr.mxu1 %v15346_v37 }
0x1541   :  { %17188 = vmatpush3.msra.mxu1 %v15346_v37  ;;  %v15354_v37 = vld [vmem:[%s21234_s4 + $0x230] sm:$0xff] }
0x1542   :  { %17189 = vmatprep.subr.mxu1 %v15345_v39 }
0x1543   :  { %17190 = vmatpush3.msra.mxu1 %v15345_v39  ;;  %v15353_v39 = vld [vmem:[%s21234_s4 + $0x228] sm:$0xff] }
0x1544   :  { %17191 = vmatprep.subr.mxu1 %v15344_v40 }
0x1545   :  { %17192 = vmatpush3.msra.mxu1 %v15344_v40  ;;  %v15352_v40 = vld [vmem:[%s21234_s4 + $0x220] sm:$0xff] }
0x1546   :  { %17194 = vmatmul.mubr.msk.f32.vlgmr.msra.gmra.mxu1 %vm199_vm2, %v19218_v18  ;;  %17207 = vmatprep.subr.mxu1 %v15363_v45 }
0x1547   :  { %17208 = vmatpush3.msra.mxu1 %v15363_v45  ;;  %17215 = vmatprep.mubr.msk.f32.mxu1 %vm199_vm2, %v19216_v17 }
0x1548   :  { %17209 = vmatprep.subr.mxu1 %v15362_v46 }
0x1549   :  { %17210 = vmatpush3.msra.mxu1 %v15362_v46 }
0x154a   :  { %17211 = vmatprep.subr.mxu1 %v15361_v47 }
0x154b   :  { %17212 = vmatpush3.msra.mxu1 %v15361_v47 }
0x154c   :  { %17213 = vmatprep.subr.mxu1 %v15360_v48 }
0x154d   :  { %17214 = vmatpush3.msra.mxu1 %v15360_v48  ;;  %v15357_v48 = vld [vmem:[%s21235_s5 + $0x11] ss:$0 sm:$0xff] }
0x154e   :  { %17216 = vmatmul.mubr.msk.f32.vlgmr.msra.gmra.mxu1 %vm199_vm2, %v19218_v18 }
0x15fe   :  { %v17172_v49 = vpop.f32.mrf.mxu1 }
0x15ff   :  { %v3403_v50 = vmul.f32 0.35355338, %v17172_v49 }
0x1600   :  { %v3393_v51 = vpop.f32.mrf.mxu1 }
0x1601   :  { %v3405_v54 = vmul.f32 %v18844_v36, %v3403_v50  ;;  %v3402_v55 = vmul.f32 0.35355338, %v3393_v51 }
0x1603   :  { %v3404_v56 = vmul.f32 %v18850_v41, %v3402_v55  ;;  %v3407_v57 = vadd.f32 %v3405_v54, %v18846_v38 }
0x1605   :  { %v3411_v63 = vsel %vm926_vm8, %v3407_v57, -inf  ;;  %v3406_v0 = vadd.f32 %v3404_v56, %v18852_v42 }
0x1606   :  { %3412 = vmax.xlane.f32.xlu0 %v3411_v63  ;;  %v17195_v5 = vpop.f32.mrf.mxu1 }
0x1607   :  { %v19296_v6 = vadd.f32 %v17195_v5, %v15349_v58  ;;  %v3408_v7 = vsel %vm926_vm8, %v3406_v0, -inf }
0x1608   :  { %3409 = vmax.xlane.f32.xlu1 %v3408_v7  ;;  %v3681_v8 = vpop.f32.mrf.mxu1 }
0x1609   :  { %v3682_v45 = vadd.f32 %v15349_v58, %v3681_v8 }
0x160e   :  { %v17217_v43 = vpop.f32.mrf.mxu1 }
0x160f   :  { %v3863_v10 = vadd.f32 %v17217_v43, %v15365_v9 }
0x1610   :  { %v3857_v11 = vpop.f32.mrf.mxu1 }
0x1611   :  { %v3858_v12 = vadd.f32 %v15365_v9, %v3857_v11  ;;  %17225 = vmatprep.subr.mxu1 %v3863_v10 }
0x1612   :  { %17226 = vmatpush3.msra.mxu1 %v3863_v10 }
0x1613   :  { %17227 = vmatprep.subr.mxu1 %v3858_v12 }
0x1614   :  { %17228 = vmatpush3.msra.mxu1 %v3858_v12 }
0x168f   :  { %v3413_v13 = vpop.xlane.xlu0 %3412 }
0x1690   :  { %v3415_v20 = vsub.f32 %v3407_v57, %v3413_v13 }
0x1691   :  { %v3410_v22 = vpop.xlane.xlu1 %3409 }
0x1692   :  { %v3418_v24 = vmul.f32 1.442695, %v3415_v20  ;;  %v3414_v28 = vsub.f32 %v3406_v0, %v3410_v22 }
0x1694   :  { %18333 = vpow2.f32 %v3418_v24  ;;  %v3416_v15 = vmul.f32 1.442695, %v3414_v28 }
0x1696   :  { %18335 = vpow2.f32 %v3416_v15  ;;  %v15380_v15 = vld [vmem:[%s21234_s4 + $0x1d8] sm:$0xff] }
0x1697   :  { %17237 = vmatprep.subr.mxu1 %v15380_v15 }
0x16a1   :  { %v18334_v30 = vpop.eup %18333 }
0x16a2   :  { %v3423_v31 = vsel %vm926_vm8, %v18334_v30, 0.0 }
0x16a3   :  { %v18336_v32 = vpop.eup %18335  ;;  %3424 = vadd.xlane.f32.xlu0 %v3423_v31 }
0x16a4   :  { %v3420_v3 = vsel %vm926_vm8, %v18336_v32, 0.0 }
0x16a5   :  { %3421 = vadd.xlane.f32.xlu1 %v3420_v3 }
0x172c   :  { %v3425_v59 = vpop.xlane.xlu0 %3424 }
0x172d   :  { %18337 = vrcp.f32 %v3425_v59 }
0x172e   :  { %v3422_v4 = vpop.xlane.xlu1 %3421 }
0x172f   :  { %18339 = vrcp.f32 %v3422_v4 }
0x173a   :  { %v18338_v33 = vpop.eup %18337 }
0x173b   :  { %v3429_v34 = vmul.f32 %v18338_v33, %v18334_v30  ;;  %v15374_v30 = vld [vmem:[%s21236_s6 + $0x28] sm:$0xff]  ;;  %v15379_v33 = vld [vmem:[%s21234_s4 + $0x1d0] sm:$0xff] }
0x173c   :  { %v18340_v27 = vpop.eup %18339 }
0x173d   :  { %v3427_v25 = vmul.f32 %v18340_v27, %v18336_v32  ;;  %v15378_v27 = vld [vmem:[%s21234_s4 + $0x1c8] sm:$0xff] }
0x173f   :  { %17177 = vmatprep.mubr.msk.f32.mxu0 %vm926_vm8, %v3427_v25  ;;  %v15377_v25 = vld [vmem:[%s21234_s4 + $0x1c0] sm:$0xff] }
0x1740   :  { %17178 = vmatmul.mubr.msk.f32.vlgmr.msra.gmra.mxu0 %vm926_vm8, %v3429_v34  ;;  %v15396_v34 = vld [vmem:[%s21234_s4 + $0x2d8] sm:$0xff] }
0x1741   :  { %17181 = vmatpush3.msra.mxu0 %v15340_v44 }
0x1742   :  { %17196 = vmatprep.subr.mxu0 %v15355_v53 }
0x1800   :  { %v17179_v52 = vpop.f32.mrf.mxu0 }
0x1802   :  { %v3502_v35 = vpop.f32.mrf.mxu0 }
0x1803   :  { %17182 = vmatprep.mubr.msk.f32.mxu0 %vm284_vm3, %v3502_v35  ;;  %v15393_v35 = vld [vmem:[%s21234_s4 + $0x2c0] sm:$0xff] }
0x1804   :  { %17183 = vmatmul.mubr.msk.f32.vlgmr.msra.gmra.mxu0 %vm284_vm3, %v17179_v52  ;;  %v15394_v52 = vld [vmem:[%s21234_s4 + $0x2c8] sm:$0xff] }
0x1805   :  { %17197 = vmatpush3.msra.mxu0 %v15355_v53  ;;  %17204 = vmatprep.mubr.msk.f32.mxu0 %vm199_vm2, %v19216_v17  ;;  %v15395_v53 = vld [vmem:[%s21234_s4 + $0x2d0] sm:$0xff] }
0x1806   :  { %17198 = vmatprep.subr.mxu0 %v15354_v37 }
0x1807   :  { %17199 = vmatpush3.msra.mxu0 %v15354_v37  ;;  %v15388_v37 = vld [vmem:[%s21234_s4 + $0x258] sm:$0xff] }
0x1808   :  { %17200 = vmatprep.subr.mxu0 %v15353_v39 }
0x1809   :  { %17201 = vmatpush3.msra.mxu0 %v15353_v39 }
0x180a   :  { %17202 = vmatprep.subr.mxu0 %v15352_v40 }
0x180b   :  { %17203 = vmatpush3.msra.mxu0 %v15352_v40 }
0x180c   :  { %17205 = vmatmul.mubr.msk.f32.vlgmr.msra.gmra.mxu0 %vm199_vm2, %v19218_v18 }
0x180d   :  { %17222 = vmatprep.mubr.msk.f32.mxu0 %vm284_vm3, %v3682_v45  ;;  %v15387_v45 = vld [vmem:[%s21234_s4 + $0x250] sm:$0xff] }
0x18c4   :  { %v19328_v46 = vpop.f32.mrf.mxu0 }
0x18c6   :  { %v19330_v47 = vpop.f32.mrf.mxu0 }
0x18cc   :  { %v17206_v49 = vpop.f32.mrf.mxu0 }
0x18cd   :  { %v3775_v50 = vadd.f32 %v17206_v49, %v15357_v48  ;;  %v15382_v49 = vld [vmem:[%s21235_s5 + $0xe] ss:$0 sm:$0xff] }
0x18ce   :  { %v3769_v51 = vpop.f32.mrf.mxu0 }
0x18cf   :  { %v3770_v54 = vadd.f32 %v15357_v48, %v3769_v51  ;;  %17218 = vmatprep.subr.msk.mxu0 %vm284_vm3, %v3775_v50  ;;  %v15386_v48 = vld [vmem:[%s21234_s4 + $0x248] sm:$0xff] }
0x18d0   :  { %17219 = vmatpush3.xpose.msk.msra.mxu0 %vm284_vm3, %v3775_v50  ;;  %v15385_v50 = vld [vmem:[%s21234_s4 + $0x240] sm:$0xff] }
0x18d1   :  { %17220 = vmatprep.subr.msk.mxu0 %vm284_vm3, %v3770_v54 }
0x18d4   :  { %17221 = vmatpush3.xpose.msk.msra.mxu0 %vm284_vm3, %v3770_v54 }
0x18d5   :  { %17232 = vmatprep.subr.mxu0 %v15374_v30 }
0x18d7   :  { %17223 = vmatmul.mubr.msk.f32.vlgmr.msra.gmra.mxu0 %vm284_vm3, %v19296_v6 }
0x18d8   :  { %17233 = vmatpush3.msra.mxu0 %v15374_v30 }
0x18d9   :  { %17248 = vmatprep.subr.mxu0 %v15388_v37 }
0x1997   :  { %v17224_v55 = vpop.f32.mrf.mxu0 }
0x1998   :  { %v3954_v56 = vmul.f32 0.35355338, %v17224_v55 }
0x1999   :  { %v3944_v57 = vpop.f32.mrf.mxu0 }
0x199a   :  { %v3956_v58 = vmul.f32 %v18844_v36, %v3954_v56  ;;  %v3953_v63 = vmul.f32 0.35355338, %v3944_v57  ;;  %v15398_v57 = vld [vmem:[%s21235_s5 + $0x16] ss:$0 sm:$0xff] }
0x199c   :  { %v3955_v0 = vmul.f32 %v18850_v41, %v3953_v63  ;;  %v3958_v5 = vadd.f32 %v3956_v58, %v18846_v38 }
0x199e   :  { %v3962_v7 = vsel %vm926_vm8, %v3958_v5, -inf  ;;  %v3957_v8 = vadd.f32 %v3955_v0, %v18852_v42 }
0x199f   :  { %3963 = vmax.xlane.f32.xlu0 %v3962_v7  ;;  %v19414_v7 = vld [vmem:[%s21242_s12 + $0x15] ss:$0 sm:$0xff] }
0x19a0   :  { %v3959_v9 = vsel %vm926_vm8, %v3957_v8, -inf }
0x19a1   :  { %3960 = vmax.xlane.f32.xlu1 %v3959_v9 }
0x1a28   :  { %v3964_v43 = vpop.xlane.xlu0 %3963 }
0x1a29   :  { %v3966_v6 = vsub.f32 %v3958_v5, %v3964_v43 }
0x1a2a   :  { %v3961_v10 = vpop.xlane.xlu1 %3960 }
0x1a2b   :  { %v3969_v11 = vmul.f32 1.442695, %v3966_v6  ;;  %v3965_v12 = vsub.f32 %v3957_v8, %v3961_v10  ;;  %v3601_v8 = vadd.f32 %v19328_v46, %v19414_v7  ;;  %v15390_v10 = vld [vmem:[%s21235_s5 + $0x12] ss:$0 sm:$0xff] }
0x1a2d   :  { %18341 = vpow2.f32 %v3969_v11  ;;  %v3967_v13 = vmul.f32 1.442695, %v3965_v12 }
0x1a2f   :  { %18343 = vpow2.f32 %v3967_v13 }
0x1a3a   :  { %v18342_v20 = vpop.eup %18341 }
0x1a3b   :  { %v3974_v22 = vsel %vm926_vm8, %v18342_v20, 0.0 }
0x1a3c   :  { %v18344_v24 = vpop.eup %18343  ;;  %3975 = vadd.xlane.f32.xlu0 %v3974_v22 }
0x1a3d   :  { %v3971_v28 = vsel %vm926_vm8, %v18344_v24, 0.0 }
0x1a3e   :  { %3972 = vadd.xlane.f32.xlu1 %v3971_v28 }
0x1ac5   :  { %v3976_v31 = vpop.xlane.xlu0 %3975 }
0x1ac6   :  { %18345 = vrcp.f32 %v3976_v31 }
0x1ac7   :  { %v3973_v32 = vpop.xlane.xlu1 %3972 }
0x1ac8   :  { %18347 = vrcp.f32 %v3973_v32 }
0x1ad3   :  { %v18346_v3 = vpop.eup %18345 }
0x1ad4   :  { %v3980_v4 = vmul.f32 %v18346_v3, %v18342_v20 }
0x1ad5   :  { %v18348_v44 = vpop.eup %18347 }
0x1ad6   :  { %v3978_v59 = vmul.f32 %v18348_v44, %v18344_v24 }
0x1ad8   :  { %17229 = vmatprep.mubr.msk.f32.mxu1 %vm926_vm8, %v3978_v59 }
0x1ad9   :  { %17230 = vmatmul.mubr.msk.f32.vlgmr.msra.gmra.mxu1 %vm926_vm8, %v3980_v4 }
0x1ada   :  { %17238 = vmatpush3.msra.mxu1 %v15380_v15  ;;  %17245 = vmatprep.mubr.msk.f32.mxu1 %vm199_vm2, %v19216_v17 }
0x1adb   :  { %17239 = vmatprep.subr.mxu1 %v15379_v33 }
0x1adc   :  { %17240 = vmatpush3.msra.mxu1 %v15379_v33 }
0x1add   :  { %17241 = vmatprep.subr.mxu1 %v15378_v27 }
0x1ade   :  { %17242 = vmatpush3.msra.mxu1 %v15378_v27 }
0x1adf   :  { %17243 = vmatprep.subr.mxu1 %v15377_v25 }
0x1ae0   :  { %17244 = vmatpush3.msra.mxu1 %v15377_v25 }
0x1ae1   :  { %17246 = vmatmul.mubr.msk.f32.vlgmr.msra.gmra.mxu1 %vm199_vm2, %v19218_v18  ;;  %17259 = vmatprep.subr.mxu1 %v15396_v34 }
0x1ae2   :  { %17260 = vmatpush3.msra.mxu1 %v15396_v34  ;;  %17267 = vmatprep.mubr.msk.f32.mxu1 %vm199_vm2, %v19216_v17 }
0x1ae3   :  { %17261 = vmatprep.subr.mxu1 %v15395_v53 }
0x1ae4   :  { %17262 = vmatpush3.msra.mxu1 %v15395_v53 }
0x1ae5   :  { %17263 = vmatprep.subr.mxu1 %v15394_v52 }
0x1ae6   :  { %17264 = vmatpush3.msra.mxu1 %v15394_v52 }
0x1ae7   :  { %17265 = vmatprep.subr.mxu1 %v15393_v35 }
0x1ae8   :  { %17266 = vmatpush3.msra.mxu1 %v15393_v35 }
0x1ae9   :  { %17268 = vmatmul.mubr.msk.f32.vlgmr.msra.gmra.mxu1 %vm199_vm2, %v19218_v18 }
0x1b99   :  { %v17231_v39 = vpop.f32.mrf.mxu1 }
0x1b9b   :  { %v4053_v40 = vpop.f32.mrf.mxu1 }
0x1b9c   :  { %17234 = vmatprep.mubr.msk.f32.mxu0 %vm284_vm3, %v4053_v40  ;;  %v15407_v40 = vld [vmem:[%s21236_s6 + $0x30] sm:$0xff] }
0x1b9d   :  { %17235 = vmatmul.mubr.msk.f32.vlgmr.msra.gmra.mxu0 %vm284_vm3, %v17231_v39  ;;  %v15413_v39 = vld [vmem:[%s21234_s4 + $0x1f8] sm:$0xff] }
0x1b9e   :  { %17249 = vmatpush3.msra.mxu0 %v15388_v37  ;;  %17256 = vmatprep.mubr.msk.f32.mxu0 %vm199_vm2, %v19216_v17 }
0x1b9f   :  { %17250 = vmatprep.subr.mxu0 %v15387_v45 }
0x1ba0   :  { %17251 = vmatpush3.msra.mxu0 %v15387_v45 }
0x1ba1   :  { %v17247_v51 = vpop.f32.mrf.mxu1  ;;  %17252 = vmatprep.subr.mxu0 %v15386_v48 }
0x1ba2   :  { %v4232_v54 = vadd.f32 %v17247_v51, %v15382_v49  ;;  %17253 = vmatpush3.msra.mxu0 %v15386_v48 }
0x1ba3   :  { %v4226_v55 = vpop.f32.mrf.mxu1  ;;  %17254 = vmatprep.subr.mxu0 %v15385_v50 }
0x1ba4   :  { %v4227_v56 = vadd.f32 %v15382_v49, %v4226_v55  ;;  %17255 = vmatpush3.msra.mxu0 %v15385_v50  ;;  %v15412_v55 = vld [vmem:[%s21234_s4 + $0x1f0] sm:$0xff] }
0x1ba5   :  { %17257 = vmatmul.mubr.msk.f32.vlgmr.msra.gmra.mxu0 %vm199_vm2, %v19218_v18 }
0x1ba6   :  { %17274 = vmatprep.mubr.msk.f32.mxu0 %vm284_vm3, %v4227_v56  ;;  %v15411_v56 = vld [vmem:[%s21234_s4 + $0x1e8] sm:$0xff] }
0x1ba9   :  { %v17269_v58 = vpop.f32.mrf.mxu1 }
0x1baa   :  { %v4408_v63 = vadd.f32 %v17269_v58, %v15398_v57  ;;  %v15429_v58 = vld [vmem:[%s21234_s4 + $0x2f8] sm:$0xff] }
0x1bab   :  { %v4402_v0 = vpop.f32.mrf.mxu1 }
0x1bac   :  { %v4403_v5 = vadd.f32 %v15398_v57, %v4402_v0  ;;  %17277 = vmatprep.subr.mxu1 %v4408_v63  ;;  %v15410_v57 = vld [vmem:[%s21234_s4 + $0x1e0] sm:$0xff]  ;;  %v15427_v0 = vld [vmem:[%s21234_s4 + $0x2e8] sm:$0xff] }
0x1bad   :  { %17278 = vmatpush3.msra.mxu1 %v4408_v63  ;;  %v15428_v63 = vld [vmem:[%s21234_s4 + $0x2f0] sm:$0xff] }
0x1bae   :  { %17279 = vmatprep.subr.mxu1 %v4403_v5 }
0x1baf   :  { %17280 = vmatpush3.msra.mxu1 %v4403_v5  ;;  %v15426_v5 = vld [vmem:[%s21234_s4 + $0x2e0] sm:$0xff] }
0x1bb0   :  { %17289 = vmatprep.subr.mxu1 %v15413_v39 }
0x1c5d   :  { %v17236_v9 = vpop.f32.mrf.mxu0 }
0x1c5e   :  { %v19418_v43 = vadd.f32 %v17236_v9, %v3601_v8  ;;  %v15421_v8 = vld [vmem:[%s21234_s4 + $0x278] sm:$0xff] }
0x1c5f   :  { %v19420_v6 = vpop.f32.mrf.mxu0 }
0x1c65   :  { %v17258_v11 = vpop.f32.mrf.mxu0 }
0x1c66   :  { %v4320_v12 = vadd.f32 %v17258_v11, %v15390_v10  ;;  %v15420_v11 = vld [vmem:[%s21234_s4 + $0x270] sm:$0xff] }
0x1c67   :  { %v4314_v13 = vpop.f32.mrf.mxu0 }
0x1c68   :  { %v4315_v20 = vadd.f32 %v15390_v10, %v4314_v13  ;;  %17270 = vmatprep.subr.msk.mxu0 %vm284_vm3, %v4320_v12  ;;  %v15415_v13 = vld [vmem:[%s21235_s5 + $0xf] ss:$0 sm:$0xff] }
0x1c69   :  { %17271 = vmatpush3.xpose.msk.msra.mxu0 %vm284_vm3, %v4320_v12  ;;  %v15419_v12 = vld [vmem:[%s21234_s4 + $0x268] sm:$0xff] }
0x1c6a   :  { %17272 = vmatprep.subr.msk.mxu0 %vm284_vm3, %v4315_v20 }
0x1c6d   :  { %17273 = vmatpush3.xpose.msk.msra.mxu0 %vm284_vm3, %v4315_v20  ;;  %v15418_v20 = vld [vmem:[%s21234_s4 + $0x260] sm:$0xff] }
0x1c6e   :  { %17284 = vmatprep.subr.mxu0 %v15407_v40 }
0x1c70   :  { %17275 = vmatmul.mubr.msk.f32.vlgmr.msra.gmra.mxu0 %vm284_vm3, %v4232_v54 }
0x1c71   :  { %17285 = vmatpush3.msra.mxu0 %v15407_v40 }
0x1c72   :  { %17300 = vmatprep.subr.mxu0 %v15421_v8 }
0x1d30   :  { %v17276_v46 = vpop.f32.mrf.mxu0 }
0x1d31   :  { %v4499_v22 = vmul.f32 0.35355338, %v17276_v46 }
0x1d32   :  { %v4489_v24 = vpop.f32.mrf.mxu0 }
0x1d33   :  { %v4501_v28 = vmul.f32 %v18844_v36, %v4499_v22  ;;  %v4498_v15 = vmul.f32 0.35355338, %v4489_v24 }
0x1d35   :  { %v4500_v30 = vmul.f32 %v18850_v41, %v4498_v15  ;;  %v4503_v31 = vadd.f32 %v4501_v28, %v18846_v38  ;;  %v15431_v15 = vld [vmem:[%s21235_s5 + $0x17] ss:$0 sm:$0xff] }
0x1d37   :  { %v4507_v32 = vsel %vm926_vm8, %v4503_v31, -inf  ;;  %v4502_v3 = vadd.f32 %v4500_v30, %v18852_v42 }
0x1d38   :  { %4508 = vmax.xlane.f32.xlu0 %v4507_v32 }
0x1d39   :  { %v4504_v44 = vsel %vm926_vm8, %v4502_v3, -inf }
0x1d3a   :  { %4505 = vmax.xlane.f32.xlu1 %v4504_v44 }
0x1dc1   :  { %v4509_v59 = vpop.xlane.xlu0 %4508 }
0x1dc2   :  { %v4511_v4 = vsub.f32 %v4503_v31, %v4509_v59 }
0x1dc3   :  { %v4506_v33 = vpop.xlane.xlu1 %4505 }
0x1dc4   :  { %v4514_v27 = vmul.f32 1.442695, %v4511_v4  ;;  %v4510_v25 = vsub.f32 %v4502_v3, %v4506_v33  ;;  %v15423_v33 = vld [vmem:[%s21235_s5 + $0x13] ss:$0 sm:$0xff] }
0x1dc6   :  { %18349 = vpow2.f32 %v4514_v27  ;;  %v4512_v34 = vmul.f32 1.442695, %v4510_v25 }
0x1dc8   :  { %18351 = vpow2.f32 %v4512_v34 }
0x1dd3   :  { %v18350_v53 = vpop.eup %18349 }
0x1dd4   :  { %v4519_v52 = vsel %vm926_vm8, %v18350_v53, 0.0 }
0x1dd5   :  { %v18352_v35 = vpop.eup %18351  ;;  %4520 = vadd.xlane.f32.xlu0 %v4519_v52 }
0x1dd6   :  { %v4516_v37 = vsel %vm926_vm8, %v18352_v35, 0.0 }
0x1dd7   :  { %4517 = vadd.xlane.f32.xlu1 %v4516_v37 }
0x1e5e   :  { %v4521_v45 = vpop.xlane.xlu0 %4520 }
0x1e5f   :  { %18353 = vrcp.f32 %v4521_v45 }
0x1e60   :  { %v4518_v48 = vpop.xlane.xlu1 %4517 }
0x1e61   :  { %18355 = vrcp.f32 %v4518_v48 }
0x1e6c   :  { %v18354_v49 = vpop.eup %18353 }
0x1e6d   :  { %v4525_v54 = vmul.f32 %v18354_v49, %v18350_v53 }
0x1e6e   :  { %v18356_v50 = vpop.eup %18355 }
0x1e6f   :  { %v4523_v51 = vmul.f32 %v18356_v50, %v18352_v35 }
0x1e71   :  { %17281 = vmatprep.mubr.msk.f32.mxu1 %vm926_vm8, %v4523_v51 }
0x1e72   :  { %17282 = vmatmul.mubr.msk.f32.vlgmr.msra.gmra.mxu1 %vm926_vm8, %v4525_v54 }
0x1e73   :  { %17290 = vmatpush3.msra.mxu1 %v15413_v39  ;;  %17297 = vmatprep.mubr.msk.f32.mxu1 %vm199_vm2, %v19216_v17 }
0x1e74   :  { %17291 = vmatprep.subr.mxu1 %v15412_v55 }
0x1e75   :  { %17292 = vmatpush3.msra.mxu1 %v15412_v55 }
0x1e76   :  { %17293 = vmatprep.subr.mxu1 %v15411_v56 }
0x1e77   :  { %17294 = vmatpush3.msra.mxu1 %v15411_v56 }
0x1e78   :  { %17295 = vmatprep.subr.mxu1 %v15410_v57 }
0x1e79   :  { %17296 = vmatpush3.msra.mxu1 %v15410_v57 }
0x1e7a   :  { %17298 = vmatmul.mubr.msk.f32.vlgmr.msra.gmra.mxu1 %vm199_vm2, %v19218_v18  ;;  %17311 = vmatprep.subr.mxu1 %v15429_v58 }
0x1e7b   :  { %17312 = vmatpush3.msra.mxu1 %v15429_v58  ;;  %17319 = vmatprep.mubr.msk.f32.mxu1 %vm199_vm2, %v19216_v17 }
0x1e7c   :  { %17313 = vmatprep.subr.mxu1 %v15428_v63 }
0x1e7d   :  { %17314 = vmatpush3.msra.mxu1 %v15428_v63 }
0x1e7e   :  { %17315 = vmatprep.subr.mxu1 %v15427_v0 }
0x1e7f   :  { %17316 = vmatpush3.msra.mxu1 %v15427_v0 }
0x1e80   :  { %17317 = vmatprep.subr.mxu1 %v15426_v5 }
0x1e81   :  { %17318 = vmatpush3.msra.mxu1 %v15426_v5 }
0x1e82   :  { %17320 = vmatmul.mubr.msk.f32.vlgmr.msra.gmra.mxu1 %vm199_vm2, %v19218_v18 }
0x1f32   :  { %v17283_v9 = vpop.f32.mrf.mxu1 }
0x1f34   :  { %v4598_v10 = vpop.f32.mrf.mxu1 }
0x1f35   :  { %17286 = vmatprep.mubr.msk.f32.mxu0 %vm284_vm3, %v4598_v10 }
0x1f36   :  { %17287 = vmatmul.mubr.msk.f32.vlgmr.msra.gmra.mxu0 %vm284_vm3, %v17283_v9 }
0x1f37   :  { %17301 = vmatpush3.msra.mxu0 %v15421_v8  ;;  %17308 = vmatprep.mubr.msk.f32.mxu0 %vm199_vm2, %v19216_v17 }
0x1f38   :  { %17302 = vmatprep.subr.mxu0 %v15420_v11 }
0x1f39   :  { %17303 = vmatpush3.msra.mxu0 %v15420_v11 }
0x1f3a   :  { %v17299_v46 = vpop.f32.mrf.mxu1  ;;  %17304 = vmatprep.subr.mxu0 %v15419_v12 }
0x1f3b   :  { %v4777_v22 = vadd.f32 %v17299_v46, %v15415_v13  ;;  %17305 = vmatpush3.msra.mxu0 %v15419_v12 }
0x1f3c   :  { %v4771_v24 = vpop.f32.mrf.mxu1  ;;  %17306 = vmatprep.subr.mxu0 %v15418_v20 }
0x1f3d   :  { %v4772_v28 = vadd.f32 %v15415_v13, %v4771_v24  ;;  %17307 = vmatpush3.msra.mxu0 %v15418_v20  ;;  %v3600_v20 = vadd.f32 %v19414_v7, %v19330_v47 }
0x1f3e   :  { %17309 = vmatmul.mubr.msk.f32.vlgmr.msra.gmra.mxu0 %vm199_vm2, %v19218_v18 }
0x1f3f   :  { %17326 = vmatprep.mubr.msk.f32.mxu0 %vm284_vm3, %v4772_v28  ;;  %v4145_v46 = vadd.f32 %v19420_v6, %v3600_v20  ;;  %v15481_v20 = vld [vmem:[%s21234_s4 + $0x388] sm:$0xff] }
0x1f42   :  { %v17321_v30 = vpop.f32.mrf.mxu1 }
0x1f43   :  { %v4953_v31 = vadd.f32 %v17321_v30, %v15431_v15 }
0x1f44   :  { %v4947_v32 = vpop.f32.mrf.mxu1 }
0x1f45   :  { %v4948_v3 = vadd.f32 %v15431_v15, %v4947_v32  ;;  %17329 = vmatprep.subr.mxu1 %v4953_v31 }
0x1f46   :  { %17330 = vmatpush3.msra.mxu1 %v4953_v31 }
0x1f47   :  { %17331 = vmatprep.subr.mxu1 %v4948_v3 }
0x1f48   :  { %17332 = vmatpush3.msra.mxu1 %v4948_v3 }
0x1ff6   :  { %v17288_v44 = vpop.f32.mrf.mxu0 }
0x1ff7   :  { %v4691_v59 = vadd.f32 %v17288_v44, %v19418_v43 }
0x1ff8   :  { %v4681_v4 = vpop.f32.mrf.mxu0 }
0x1ff9   :  { %v4690_v24 = vadd.f32 %v4681_v4, %v4145_v46  ;;  %v15480_v46 = vld [vmem:[%s21234_s4 + $0x380] sm:$0xff] }
0x1ffe   :  { %v17310_v27 = vpop.f32.mrf.mxu0 }
0x1fff   :  { %v4865_v25 = vadd.f32 %v17310_v27, %v15423_v33 }
0x2000   :  { %v4859_v34 = vpop.f32.mrf.mxu0 }
0x2001   :  { %v4860_v53 = vadd.f32 %v15423_v33, %v4859_v34  ;;  %17322 = vmatprep.subr.msk.mxu0 %vm284_vm3, %v4865_v25 }
0x2002   :  { %17323 = vmatpush3.xpose.msk.msra.mxu0 %vm284_vm3, %v4865_v25 }
0x2003   :  { %17324 = vmatprep.subr.msk.mxu0 %vm284_vm3, %v4860_v53 }
0x2006   :  { %17325 = vmatpush3.xpose.msk.msra.mxu0 %vm284_vm3, %v4860_v53  ;;  %v15449_v53 = vld [vmem:[%s21237_s7 + $0x30] sm:$0xff] }
0x2009   :  { %17327 = vmatmul.mubr.msk.f32.vlgmr.msra.gmra.mxu0 %vm284_vm3, %v4777_v22 }
0x20c9   :  { %v17328_v43 = vpop.f32.mrf.mxu0 }
0x20ca   :  { %v5044_v52 = vmul.f32 0.35355338, %v17328_v43  ;;  %v15448_v43 = vld [vmem:[%s21237_s7 + $0x28] sm:$0xff] }
0x20cb   :  { %v5034_v35 = vpop.f32.mrf.mxu0 }
0x20cc   :  { %v5046_v37 = vmul.f32 %v18844_v36, %v5044_v52  ;;  %v5043_v39 = vmul.f32 0.35355338, %v5034_v35  ;;  %v15447_v52 = vld [vmem:[%s21237_s7 + $0x20] sm:$0xff] }
0x20cd   :  { %v19548_v35 = vld [vmem:[%s21231_s1] sm:$0xff] }
0x20ce   :  { %v5045_v40 = vmul.f32 %v18850_v41, %v5043_v39  ;;  %v5048_v45 = vadd.f32 %v5046_v37, %v18846_v38  ;;  %v15475_v37 = vld [vmem:[%s21234_s4 + $0x318] sm:$0xff]  ;;  %vm113_vm10 = vcmp.ne.s32.totalorder %v19548_v35, 1 }
0x20cf   :  { %v15462_v39 = vld [vmem:[%s21239_s9 + $0x78] sm:$0xff] }
0x20d0   :  { %v5052_v48 = vsel %vm926_vm8, %v5048_v45, -inf  ;;  %v5047_v49 = vadd.f32 %v5045_v40, %v18852_v42  ;;  %v15440_v42 = vld [vmem:[%s21236_s6 + $0x38] sm:$0xff]  ;;  %v15461_v40 = vld [vmem:[%s21239_s9 + $0x70] sm:$0xff] }
0x20d1   :  { %5053 = vmax.xlane.f32.xlu0 %v5052_v48  ;;  %17336 = vmatprep.subr.mxu0 %v15440_v42  ;;  %v15458_v48 = vld [vmem:[%s21239_s9 + $0x58] sm:$0xff] }
0x20d2   :  { %v5049_v50 = vsel %vm926_vm8, %v5047_v49, -inf  ;;  %17337 = vmatpush3.msra.mxu0 %v15440_v42  ;;  %v478_v42 = vmul.f32 5.656854, %v18802_v62  ;;  %v15473_v62 = vld [vmem:[%s21234_s4 + $0x308] sm:$0xff] }
0x20d3   :  { %5050 = vmax.xlane.f32.xlu1 %v5049_v50  ;;  %17352 = vmatprep.subr.mxu0 %v15462_v39 }
0x215a   :  { %v5054_v51 = vpop.xlane.xlu0 %5053 }
0x215b   :  { %v5056_v54 = vsub.f32 %v5048_v45, %v5054_v51  ;;  %v15460_v45 = vld [vmem:[%s21239_s9 + $0x68] sm:$0xff] }
0x215c   :  { %v5051_v55 = vpop.xlane.xlu1 %5050 }
0x215d   :  { %v5059_v56 = vmul.f32 1.442695, %v5056_v54  ;;  %v5055_v57 = vsub.f32 %v5047_v49, %v5051_v55 }
0x215f   :  { %18357 = vpow2.f32 %v5059_v56  ;;  %v5057_v36 = vmul.f32 1.442695, %v5055_v57 }
0x2161   :  { %18359 = vpow2.f32 %v5057_v36 }
0x216c   :  { %v18358_v58 = vpop.eup %18357 }
0x216d   :  { %v5064_v41 = vsel %vm926_vm8, %v18358_v58, 0.0 }
0x216e   :  { %v18360_v38 = vpop.eup %18359  ;;  %5065 = vadd.xlane.f32.xlu0 %v5064_v41 }
0x216f   :  { %v5061_v63 = vsel %vm926_vm8, %v18360_v38, 0.0 }
0x2170   :  { %5062 = vadd.xlane.f32.xlu1 %v5061_v63 }
0x21f7   :  { %v5066_v0 = vpop.xlane.xlu0 %5065 }
0x21f8   :  { %18361 = vrcp.f32 %v5066_v0 }
0x21f9   :  { %v5063_v5 = vpop.xlane.xlu1 %5062 }
0x21fa   :  { %18363 = vrcp.f32 %v5063_v5  ;;  %v15446_v5 = vld [vmem:[%s21242_s12 + $0xc] ss:$0 sm:$0xff] }
0x2205   :  { %v18362_v8 = vpop.eup %18361 }
0x2206   :  { %v5070_v11 = vmul.f32 %v18362_v8, %v18358_v58  ;;  %v15444_v58 = vld [vmem:[%s21242_s12 + $0x2] ss:$0 sm:$0xff] }
0x2207   :  { %v18364_v9 = vpop.eup %18363 }
0x2208   :  { %v5068_v10 = vmul.f32 %v18364_v9, %v18360_v38 }
0x220a   :  { %17333 = vmatprep.mubr.msk.f32.mxu1 %vm926_vm8, %v5068_v10  ;;  %v19582_v10 = vadd.f32 %v18800_v61, %v478_v42  ;;  %v15472_v61 = vld [vmem:[%s21234_s4 + $0x300] sm:$0xff] }
0x220b   :  { %17334 = vmatmul.mubr.msk.f32.vlgmr.msra.gmra.mxu1 %vm926_vm8, %v5070_v11  ;;  %v15474_v11 = vld [vmem:[%s21234_s4 + $0x310] sm:$0xff] }
0x22cb   :  { %v17335_v12 = vpop.f32.mrf.mxu1 }
0x22cd   :  { %v5143_v13 = vpop.f32.mrf.mxu1 }
0x22ce   :  { %17338 = vmatprep.mubr.msk.f32.mxu0 %vm284_vm3, %v5143_v13  ;;  %v15482_v13 = vld [vmem:[%s21234_s4 + $0x390] sm:$0xff] }
0x22cf   :  { %17339 = vmatmul.mubr.msk.f32.vlgmr.msra.gmra.mxu0 %vm284_vm3, %v17335_v12  ;;  %v15483_v12 = vld [vmem:[%s21234_s4 + $0x398] sm:$0xff] }
0x22d0   :  { %17353 = vmatpush3.msra.mxu0 %v15462_v39  ;;  %v15509_v39 = vld [vmem:[%s21234_s4 + $0x338] sm:$0xff] }
0x22d1   :  { %17354 = vmatprep.subr.mxu0 %v15461_v40 }
0x22d2   :  { %17355 = vmatpush3.msra.mxu0 %v15461_v40 }
0x22d3   :  { %17356 = vmatprep.subr.mxu0 %v15460_v45 }
0x22d4   :  { %17357 = vmatpush3.msra.mxu0 %v15460_v45  ;;  %v15508_v45 = vld [vmem:[%s21234_s4 + $0x330] sm:$0xff] }
0x238f   :  { %v17340_v22 = vpop.f32.mrf.mxu0 }
0x2390   :  { %v5236_v28 = vadd.f32 %v17340_v22, %v4691_v59  ;;  %v15457_v22 = vld [vmem:[%s21239_s9 + $0x50] sm:$0xff] }
0x2391   :  { %v5226_v15 = vpop.f32.mrf.mxu0 }
0x2392   :  { %v5235_v30 = vadd.f32 %v5226_v15, %v4690_v24  ;;  %v5238_v31 = vadd.f32 %v5236_v28, %v19218_v18  ;;  %v15456_v24 = vld [vmem:[%s21239_s9 + $0x48] sm:$0xff]  ;;  %v15455_v28 = vld [vmem:[%s21239_s9 + $0x40] sm:$0xff]  ;;  %v15491_v15 = vld [vmem:[%s21234_s4 + $0x418] sm:$0xff] }
0x2394   :  { %v5242_v32 = vsel %vm199_vm2, %v5238_v31, 0.0  ;;  %v5237_v3 = vadd.f32 %v5235_v30, %v19216_v17  ;;  %v15450_v17 = vld [vmem:[%s21237_s7 + $0x38] sm:$0xff]  ;;  %v18534_v30 = vld [vmem:[%s21231_s1 + $0x8] sm:$0xff] }
0x2395   :  { %5243 = vadd.xlane.f32.xlu0 %v5242_v32  ;;  %17341 = vmatprep.subr.mxu1 %v15450_v17  ;;  %vm114_vm11 = vcmp.ne.s32.totalorder %v18534_v30, 1 }
0x2396   :  { %v5239_v44 = vsel %vm199_vm2, %v5237_v3, 0.0  ;;  %17342 = vmatpush3.msra.mxu1 %v15450_v17  ;;  %v117_v32 = vsel %vm114_vm11, 1, %v18581_v2  ;;  %v15488_v17 = vld [vmem:[%s21234_s4 + $0x400] sm:$0xff]  ;;  %vm141_vm11 = vcmp.ge.s32.totalorder %v18823_v21, %v18710_v16 }
0x2397   :  { %5240 = vadd.xlane.f32.xlu1 %v5239_v44  ;;  %17343 = vmatprep.subr.mxu1 %v15449_v53 }
0x2398   :  { %17344 = vmatpush3.msra.mxu1 %v15449_v53  ;;  %v15485_v53 = vld [vmem:[%s21235_s5 + $0x1c] ss:$0 sm:$0xff] }
0x2399   :  { %17345 = vmatprep.subr.mxu1 %v15448_v43 }
0x239a   :  { %17346 = vmatpush3.msra.mxu1 %v15448_v43 }
0x239b   :  { %17347 = vmatprep.subr.mxu1 %v15447_v52 }
0x239c   :  { %17348 = vmatpush3.msra.mxu1 %v15447_v52 }
0x239d   :  { %17371 = vmatprep.subr.mxu1 %v15475_v37 }
0x241e   :  { %v5244_v33 = vpop.xlane.xlu0 %5243 }
0x241f   :  { %v5246_v27 = vmul.f32 0.03125, %v5244_v33 }
0x2420   :  { %v5241_v47 = vpop.xlane.xlu1 %5240 }
0x2421   :  { %v5248_v7 = vsub.f32 %v5238_v31, %v5246_v27  ;;  %v5245_v6 = vmul.f32 0.03125, %v5241_v47  ;;  %v116_v31 = vsel %vm113_vm10, 1, %v18581_v2 }
0x2423   :  { %v5247_v25 = vsub.f32 %v5237_v3, %v5245_v6  ;;  %v5250_v4 = vmul.f32 %v5248_v7, %v5248_v7  ;;  %v15452_v3 = vld [vmem:[%s21238_s8 + $0x1] ss:$0 sm:$0xff] }
0x2425   :  { %v5254_v59 = vsel %vm199_vm2, %v5250_v4, 0.0  ;;  %v5249_v34 = vmul.f32 %v5247_v25, %v5247_v25 }
0x2426   :  { %5255 = vadd.xlane.f32.xlu0 %v5254_v59  ;;  %v15477_v59 = vld [vmem:[%s21235_s5 + $0x18] ss:$0 sm:$0xff] }
0x2427   :  { %v5251_v18 = vsel %vm199_vm2, %v5249_v34, 0.0 }
0x2428   :  { %5252 = vadd.xlane.f32.xlu1 %v5251_v18 }
0x2439   :  { %119 = vperm.xlu1 %18289, %v116_v31  }
0x243c   :  { %102 = vperm.xlu0 %18290, %v19548_v35  }
0x243d   :  { %122 = vperm.xlu1 %18289, %v117_v32  }
0x2440   :  { %18292 = vset.pattern.permute.xlu0 %v18580_v1  ;;  %v15459_v1 = vld [vmem:[%s21239_s9 + $0x60] sm:$0xff] }
0x2441   :  { %17358 = vmatprep.subr.mxu0 %v15459_v1  ;;  %18291 = vset.pattern.permute.xlu1 %v18582_v14  ;;  %v15489_v14 = vld [vmem:[%s21234_s4 + $0x408] sm:$0xff] }
0x2442   :  { %17359 = vmatpush3.msra.mxu0 %v15459_v1  ;;  %105 = vperm.xlu1 %18291, %v18534_v30   ;;  %v15507_v1 = vld [vmem:[%s21234_s4 + $0x328] sm:$0xff] }
0x2443   :  { %17360 = vmatprep.subr.mxu0 %v15458_v48 }
0x2444   :  { %17361 = vmatpush3.msra.mxu0 %v15458_v48  ;;  %v15506_v48 = vld [vmem:[%s21234_s4 + $0x320] sm:$0xff] }
0x2445   :  { %17362 = vmatprep.subr.mxu0 %v15457_v22 }
0x2446   :  { %17363 = vmatpush3.msra.mxu0 %v15457_v22 }
0x2447   :  { %17364 = vmatprep.subr.mxu0 %v15456_v24 }
0x2448   :  { %17365 = vmatpush3.msra.mxu0 %v15456_v24 }
0x2449   :  { %17366 = vmatprep.subr.mxu0 %v15455_v28 }
0x244a   :  { %17367 = vmatpush3.msra.mxu0 %v15455_v28 }
0x244b   :  { %17393 = vmatprep.subr.mxu0 %v15491_v15 }
0x24af   :  { %v5256_v49 = vpop.xlane.xlu0 %5255 }
0x24b0   :  { %v5258_v50 = vmul.f32 0.03125, %v5256_v49  ;;  %v15525_v49 = vld [vmem:[%s21234_s4 + $0x438] sm:$0xff] }
0x24b1   :  { %v5253_v51 = vpop.xlane.xlu1 %5252 }
0x24b2   :  { %v5260_v54 = vadd.f32 1e-05, %v5258_v50  ;;  %v5257_v55 = vmul.f32 0.03125, %v5253_v51  ;;  %v15524_v50 = vld [vmem:[%s21234_s4 + $0x430] sm:$0xff]  ;;  %v15523_v51 = vld [vmem:[%s21234_s4 + $0x428] sm:$0xff] }
0x24b4   :  { %18365 = vrsqrt.f32 %v5260_v54  ;;  %v5259_v56 = vadd.f32 1e-05, %v5257_v55  ;;  %v15522_v54 = vld [vmem:[%s21234_s4 + $0x420] sm:$0xff] }
0x24b5   :  { %v54_v55 = vld [vmem:[%s21233_s3] sm:$0x1] }
0x24b6   :  { %18367 = vrsqrt.f32 %v5259_v56  ;;  %v19701_v56 = vpop.permute.xlu1 %119  ;;  %vm115_vm12 = vcmp.ne.s32.totalorder %v54_v55, 1 }
0x24b7   :  { %vm124_vm0 = vcmp.eq.s32.totalorder %v19701_v56, 1 }
0x24c1   :  { %v18366_v57 = vpop.eup %18365 }
0x24c2   :  { %v5264_v36 = vmul.f32 %v18366_v57, %v5248_v7  ;;  %v126_v57 = vsel %vm115_vm12, 1, %v18581_v2  ;;  %v15142_v2 = vld [vmem:[%s21233_s3 + $0x1] ss:$0 sm:$0xff] }
0x24c3   :  { %v18368_v41 = vpop.eup %18367 }
0x24c4   :  { %v5263_v38 = vmul.f32 %v18368_v41, %v5247_v25  ;;  %v5274_v63 = vmul.f32 %v15444_v58, %v5264_v36  ;;  %v15490_v25 = vld [vmem:[%s21234_s4 + $0x410] sm:$0xff]  ;;  %v19704_v36 = vpop.permute.xlu1 %122  ;;  %v130_v41 = vrot.slane %v126_v57, %v84_v23  ;;  %v19722_v23 = vpop.permute.xlu0 %102 }
0x24c5   :  { %vm21246_vm15 = vcmp.eq.s32.totalorder %v19704_v36, 1  ;;  %vm111_vm6 = vcmp.eq.s32.totalorder %v19722_v23, %v15142_v2 }
0x24c6   :  { %v5273_v0 = vmul.f32 %v15444_v58, %v5263_v38  ;;  %v19579_v9 = vadd.f32 %v15446_v5, %v5274_v63  ;;  %v15493_v63 = vld [vmem:[%s21235_s5 + $0x20] ss:$0 sm:$0xff]  ;;  %vm131_vm14 = vcmp.eq.s32.totalorder %v130_v41, 1  ;;  %v147_v24 = vsel %vm111_vm6, 0.0, %v18584_v29 }
0x24c7   :  { %vm133_vm1 = vmand %vm21246_vm15, %vm131_vm14 }
0x24c8   :  { %v19577_v8 = vadd.f32 %v15446_v5, %v5273_v0  ;;  %v19719_v42 = vpop.permute.xlu1 %105  ;;  %vm132_vm5 = vmand %vm124_vm0, %vm131_vm14 }
0x24c9   :  { %vm112_vm4 = vcmp.eq.s32.totalorder %v19719_v42, %v15142_v2  ;;  %vm134_vm12 = vmand %vm132_vm5, %vm111_vm6 }
0x24ca   :  { %17349 = vmatprep.mubr.msk.f32.mxu1 %vm199_vm2, %v19577_v8  ;;  %vm135_vm10 = vmand %vm133_vm1, %vm112_vm4 }
0x24cb   :  { %17350 = vmatmul.mubr.msk.f32.vlgmr.msra.gmra.mxu1 %vm199_vm2, %v19579_v9  ;;  %vm143_vm15 = vmand %vm134_vm12, %vm141_vm11 }
0x24cc   :  { %17372 = vmatpush3.msra.mxu1 %v15475_v37  ;;  %17379 = vmatprep.mubr.msk.f32.mxu1 %vm199_vm2, %v19582_v10  ;;  %v145_v22 = vsel %vm143_vm15, 0.0, %v18584_v29  ;;  %v19745_v31 = vsel %vm143_vm15, 1.0, %v18583_v19  ;;  %vm157_vm1 = vmand %vm124_vm0, %vm86_vm13 }
0x24cd   :  { %17373 = vmatprep.subr.mxu1 %v15474_v11  ;;  %v19747_v32 = vadd.f32 %v147_v24, %v145_v22 }
0x24ce   :  { %17374 = vmatpush3.msra.mxu1 %v15474_v11  ;;  %v138_v11 = vadd.s32 8, %v18823_v21 }
0x24cf   :  { %17375 = vmatprep.subr.mxu1 %v15473_v62 }
0x24d0   :  { %17376 = vmatpush3.msra.mxu1 %v15473_v62  ;;  %vm142_vm7 = vcmp.ge.s32.totalorder %v138_v11, %v18710_v16  ;;  %v15515_v11 = vld [vmem:[%s21234_s4 + $0x3a8] sm:$0xff] }
0x24d1   :  { %17377 = vmatprep.subr.mxu1 %v15472_v61 }
0x24d2   :  { %17378 = vmatpush3.msra.mxu1 %v15472_v61 }
0x24d3   :  { %17380 = vmatmul.mubr.msk.f32.vlgmr.msra.gmra.mxu1 %vm199_vm2, %v18796_v60  ;;  %17382 = vmatprep.subr.mxu1 %v15483_v12 }
0x24d4   :  { %17383 = vmatpush3.msra.mxu1 %v15483_v12  ;;  %17390 = vmatprep.mubr.msk.f32.mxu1 %vm199_vm2, %v19582_v10 }
0x24d5   :  { %17384 = vmatprep.subr.mxu1 %v15482_v13 }
0x24d6   :  { %17385 = vmatpush3.msra.mxu1 %v15482_v13  ;;  %v148_v13 = vsel %vm112_vm4, 0.0, %v18584_v29 }
0x24d7   :  { %17386 = vmatprep.subr.mxu1 %v15481_v20 }
0x24d8   :  { %17387 = vmatpush3.msra.mxu1 %v15481_v20 }
0x24d9   :  { %17388 = vmatprep.subr.mxu1 %v15480_v46 }
0x24da   :  { %17389 = vmatpush3.msra.mxu1 %v15480_v46 }
0x24db   :  { %17391 = vmatmul.mubr.msk.f32.vlgmr.msra.gmra.mxu1 %vm199_vm2, %v18796_v60 }
0x258b   :  { %v17351_v44 = vpop.f32.mrf.mxu1 }
0x258c   :  { %v5376_v33 = vadd.f32 %v17351_v44, %v15452_v3 }
0x258d   :  { %v5370_v27 = vpop.f32.mrf.mxu1 }
0x258e   :  { %v5371_v47 = vadd.f32 %v15452_v3, %v5370_v27  ;;  %v5380_v6 = vmax.f32 %v5376_v33, 0.0  ;;  %v15511_v33 = vld [vmem:[%s21235_s5 + $0x19] ss:$0 sm:$0xff] }
0x2590   :  { %v5379_v7 = vmax.f32 %v5371_v47, 0.0 }
0x2592   :  { %17368 = vmatprep.mubr.msk.f32.mxu0 %vm21245_vm9, %v5379_v7 }
0x2593   :  { %v17381_v4 = vpop.f32.mrf.mxu1  ;;  %17369 = vmatmul.mubr.msk.f32.vlgmr.msra.gmra.mxu0 %vm21245_vm9, %v5380_v6  ;;  %vm144_vm9 = vmand %vm135_vm10, %vm142_vm7 }
0x2594   :  { %17394 = vmatpush3.msra.mxu0 %v15491_v15  ;;  %17401 = vmatprep.mubr.msk.f32.mxu0 %vm199_vm2, %v19582_v10  ;;  %v5620_v40 = vadd.f32 %v17381_v4, %v15477_v59  ;;  %v146_v12 = vsel %vm144_vm9, 0.0, %v18584_v29  ;;  %v19739_v28 = vsel %vm144_vm9, 1.0, %v18583_v19  ;;  %vm21247_vm9 = vcmp.eq.s32.totalorder %v19704_v36, 1 }
0x2595   :  { %v5614_v34 = vpop.f32.mrf.mxu1  ;;  %17395 = vmatprep.subr.mxu0 %v15490_v25  ;;  %v19741_v30 = vadd.f32 %v148_v13, %v146_v12  ;;  %vm158_vm14 = vmand %vm21247_vm9, %vm86_vm13  ;;  %vm21248_vm13 = vcmask 523264  }
0x2596   :  { %v5615_v18 = vadd.f32 %v15477_v59, %v5614_v34  ;;  %17396 = vmatpush3.msra.mxu0 %v15490_v25  ;;  %vm21249_vm0 = vmmov %vm21248_vm13 }
0x2597   :  { %17397 = vmatprep.subr.mxu0 %v15489_v14 }
0x2598   :  { %17398 = vmatpush3.msra.mxu0 %v15489_v14  ;;  %17408 = vmatprep.mubr.msk.f32.mxu1 %vm284_vm3, %v5615_v18  ;;  %v15527_v14 = vld [vmem:[%s21235_s5 + $0x21] ss:$0 sm:$0xff] }
0x2599   :  { %17399 = vmatprep.subr.mxu0 %v15488_v17 }
0x259a   :  { %17400 = vmatpush3.msra.mxu0 %v15488_v17 }
0x259b   :  { %v17392_v43 = vpop.f32.mrf.mxu1  ;;  %17402 = vmatmul.mubr.msk.f32.vlgmr.msra.gmra.mxu0 %vm199_vm2, %v18796_v60 }
0x259c   :  { %v5708_v52 = vadd.f32 %v17392_v43, %v15485_v53 }
0x259d   :  { %v5702_v35 = vpop.f32.mrf.mxu1 }
0x259e   :  { %v5703_v37 = vadd.f32 %v15485_v53, %v5702_v35  ;;  %17404 = vmatprep.subr.msk.mxu1 %vm284_vm3, %v5708_v52 }
0x259f   :  { %17405 = vmatpush3.xpose.msk.msra.mxu1 %vm284_vm3, %v5708_v52 }
0x25a0   :  { %17406 = vmatprep.subr.msk.mxu1 %vm284_vm3, %v5703_v37 }
0x25a3   :  { %17407 = vmatpush3.xpose.msk.msra.mxu1 %vm284_vm3, %v5703_v37 }
0x25a4   :  { %17423 = vmatprep.subr.mxu1 %v15509_v39 }
0x25a6   :  { %17409 = vmatmul.mubr.msk.f32.vlgmr.msra.gmra.mxu1 %vm284_vm3, %v5620_v40 }
0x25a7   :  { %17424 = vmatpush3.msra.mxu1 %v15509_v39  ;;  %17431 = vmatprep.mubr.msk.f32.mxu1 %vm199_vm2, %v19582_v10 }
0x25a8   :  { %17425 = vmatprep.subr.mxu1 %v15508_v45 }
0x25a9   :  { %17426 = vmatpush3.msra.mxu1 %v15508_v45 }
0x25aa   :  { %17427 = vmatprep.subr.mxu1 %v15507_v1 }
0x25ab   :  { %17428 = vmatpush3.msra.mxu1 %v15507_v1 }
0x25ac   :  { %17429 = vmatprep.subr.mxu1 %v15506_v48 }
0x25ad   :  { %17430 = vmatpush3.msra.mxu1 %v15506_v48 }
0x25ae   :  { %17432 = vmatmul.mubr.msk.f32.vlgmr.msra.gmra.mxu1 %vm199_vm2, %v18796_v60  ;;  %17445 = vmatprep.subr.mxu1 %v15525_v49 }
0x25af   :  { %17446 = vmatpush3.msra.mxu1 %v15525_v49  ;;  %17453 = vmatprep.mubr.msk.f32.mxu1 %vm199_vm2, %v19582_v10  ;;  %v15502_v49 = vld [vmem:[%s21236_s6 + $0x40] sm:$0xff] }
0x25b0   :  { %17447 = vmatprep.subr.mxu1 %v15524_v50 }
0x25b1   :  { %17448 = vmatpush3.msra.mxu1 %v15524_v50 }
0x25b2   :  { %17449 = vmatprep.subr.mxu1 %v15523_v51 }
0x25b3   :  { %17450 = vmatpush3.msra.mxu1 %v15523_v51 }
0x25b4   :  { %17451 = vmatprep.subr.mxu1 %v15522_v54 }
0x25b5   :  { %17452 = vmatpush3.msra.mxu1 %v15522_v54 }
0x25b6   :  { %17454 = vmatmul.mubr.msk.f32.vlgmr.msra.gmra.mxu1 %vm199_vm2, %v18796_v60 }
0x2653   :  { %v19706_v58 = vpop.f32.mrf.mxu0 }
0x2655   :  { %v19710_v38 = vpop.f32.mrf.mxu0 }
0x265b   :  { %v17403_v0 = vpop.f32.mrf.mxu0 }
0x265c   :  { %v5796_v5 = vadd.f32 %v17403_v0, %v15493_v63 }
0x265d   :  { %v5790_v62 = vpop.f32.mrf.mxu0 }
0x265e   :  { %v5791_v61 = vadd.f32 %v15493_v63, %v5790_v62  ;;  %17411 = vmatprep.subr.mxu0 %v5796_v5  ;;  %v15517_v63 = vld [vmem:[%s21234_s4 + $0x3b8] sm:$0xff]  ;;  %v15514_v62 = vld [vmem:[%s21234_s4 + $0x3a0] sm:$0xff] }
0x265f   :  { %17412 = vmatpush3.msra.mxu0 %v5796_v5  ;;  %v15516_v5 = vld [vmem:[%s21234_s4 + $0x3b0] sm:$0xff] }
0x2660   :  { %17413 = vmatprep.subr.mxu0 %v5791_v61 }
0x2661   :  { %17414 = vmatpush3.msra.mxu0 %v5791_v61 }
0x2662   :  { %17418 = vmatprep.subr.mxu0 %v15502_v49 }
0x2666   :  { %v17410_v20 = vpop.f32.mrf.mxu1 }
0x2667   :  { %v5887_v46 = vmul.f32 0.35355338, %v17410_v20  ;;  %v15519_v20 = vld [vmem:[%s21235_s5 + $0x1d] ss:$0 sm:$0xff] }
0x2668   :  { %v5877_v15 = vpop.f32.mrf.mxu1 }
0x2669   :  { %v5889_v16 = vmul.f32 %v19739_v28, %v5887_v46  ;;  %v5886_v21 = vmul.f32 0.35355338, %v5877_v15 }
0x266b   :  { %v5888_v3 = vmul.f32 %v19745_v31, %v5886_v21  ;;  %v5891_v44 = vadd.f32 %v5889_v16, %v19741_v30 }
0x266d   :  { %v5895_v27 = vsel %vm926_vm8, %v5891_v44, -inf  ;;  %v5890_v47 = vadd.f32 %v5888_v3, %v19747_v32 }
0x266e   :  { %v17433_v7 = vpop.f32.mrf.mxu1  ;;  %5896 = vmax.xlane.f32.xlu0 %v5895_v27 }
0x266f   :  { %v19756_v6 = vadd.f32 %v17433_v7, %v15511_v33  ;;  %v5892_v25 = vsel %vm926_vm8, %v5890_v47, -inf }
0x2670   :  { %5893 = vmax.xlane.f32.xlu1 %v5892_v25  ;;  %v6165_v4 = vpop.f32.mrf.mxu1 }
0x2671   :  { %v6166_v61 = vadd.f32 %v15511_v33, %v6165_v4 }
0x2676   :  { %v17455_v59 = vpop.f32.mrf.mxu1 }
0x2677   :  { %v6347_v34 = vadd.f32 %v17455_v59, %v15527_v14 }
0x2678   :  { %v6341_v18 = vpop.f32.mrf.mxu1 }
0x2679   :  { %v6342_v17 = vadd.f32 %v15527_v14, %v6341_v18  ;;  %17463 = vmatprep.subr.mxu1 %v6347_v34 }
0x267a   :  { %17464 = vmatpush3.msra.mxu1 %v6347_v34 }
0x267b   :  { %17465 = vmatprep.subr.mxu1 %v6342_v17 }
0x267c   :  { %17466 = vmatpush3.msra.mxu1 %v6342_v17 }
0x26f7   :  { %v5897_v53 = vpop.xlane.xlu0 %5896 }
0x26f8   :  { %v5899_v43 = vsub.f32 %v5891_v44, %v5897_v53 }
0x26f9   :  { %v5894_v52 = vpop.xlane.xlu1 %5893 }
0x26fa   :  { %v5898_v35 = vsub.f32 %v5890_v47, %v5894_v52  ;;  %v5902_v37 = vmul.f32 1.442695, %v5899_v43 }
0x26fc   :  { %v5900_v39 = vmul.f32 1.442695, %v5898_v35 }
0x26fe   :  { %18369 = vpow2.f32 %v5900_v39  ;;  %v15536_v39 = vld [vmem:[%s21236_s6 + $0x48] sm:$0xff] }
0x26ff   :  { %18371 = vpow2.f32 %v5902_v37  ;;  %v15542_v37 = vld [vmem:[%s21234_s4 + $0x358] sm:$0xff] }
0x2700   :  { %17475 = vmatprep.subr.mxu1 %v15542_v37 }
0x270b   :  { %v18370_v40 = vpop.eup %18369 }
0x270c   :  { %v5904_v45 = vsel %vm926_vm8, %v18370_v40, 0.0  ;;  %v18372_v1 = vpop.eup %18371 }
0x270d   :  { %5905 = vadd.xlane.f32.xlu1 %v5904_v45  ;;  %v5907_v48 = vsel %vm926_vm8, %v18372_v1, 0.0 }
0x2711   :  { %5908 = vadd.xlane.f32.xlu1 %v5907_v48 }
0x2796   :  { %v5906_v50 = vpop.xlane.xlu1 %5905 }
0x2797   :  { %18373 = vrcp.f32 %v5906_v50 }
0x279a   :  { %v5909_v51 = vpop.xlane.xlu1 %5908 }
0x279b   :  { %18375 = vrcp.f32 %v5909_v51  ;;  %v15541_v51 = vld [vmem:[%s21234_s4 + $0x350] sm:$0xff] }
0x27a4   :  { %v18374_v54 = vpop.eup %18373 }
0x27a5   :  { %v5911_v55 = vmul.f32 %v18374_v54, %v18370_v40  ;;  %v15540_v54 = vld [vmem:[%s21234_s4 + $0x348] sm:$0xff] }
0x27a7   :  { %17415 = vmatprep.mubr.msk.f32.mxu0 %vm926_vm8, %v5911_v55  ;;  %v15539_v55 = vld [vmem:[%s21234_s4 + $0x340] sm:$0xff] }
0x27a8   :  { %v18376_v57 = vpop.eup %18375 }
0x27a9   :  { %v5913_v41 = vmul.f32 %v18376_v57, %v18372_v1  ;;  %v15558_v57 = vld [vmem:[%s21234_s4 + $0x458] sm:$0xff] }
0x27ab   :  { %17416 = vmatmul.mubr.msk.f32.vlgmr.msra.gmra.mxu0 %vm926_vm8, %v5913_v41  ;;  %v15557_v41 = vld [vmem:[%s21234_s4 + $0x450] sm:$0xff] }
0x27ac   :  { %17419 = vmatpush3.msra.mxu0 %v15502_v49 }
0x27ad   :  { %17434 = vmatprep.subr.mxu0 %v15517_v63 }
0x286b   :  { %v17417_v2 = vpop.f32.mrf.mxu0 }
0x286d   :  { %v5986_v0 = vpop.f32.mrf.mxu0 }
0x286e   :  { %17420 = vmatprep.mubr.msk.f32.mxu0 %vm284_vm3, %v5986_v0  ;;  %v15550_v0 = vld [vmem:[%s21234_s4 + $0x3d8] sm:$0xff] }
0x286f   :  { %17421 = vmatmul.mubr.msk.f32.vlgmr.msra.gmra.mxu0 %vm284_vm3, %v17417_v2  ;;  %v15555_v2 = vld [vmem:[%s21234_s4 + $0x440] sm:$0xff] }
0x2870   :  { %17435 = vmatpush3.msra.mxu0 %v15517_v63  ;;  %17442 = vmatprep.mubr.msk.f32.mxu0 %vm199_vm2, %v19582_v10  ;;  %v15556_v63 = vld [vmem:[%s21234_s4 + $0x448] sm:$0xff] }
0x2871   :  { %17436 = vmatprep.subr.mxu0 %v15516_v5 }
0x2872   :  { %17437 = vmatpush3.msra.mxu0 %v15516_v5 }
0x2873   :  { %17438 = vmatprep.subr.mxu0 %v15515_v11 }
0x2874   :  { %17439 = vmatpush3.msra.mxu0 %v15515_v11 }
0x2875   :  { %17440 = vmatprep.subr.mxu0 %v15514_v62 }
0x2876   :  { %17441 = vmatpush3.msra.mxu0 %v15514_v62  ;;  %v15549_v62 = vld [vmem:[%s21234_s4 + $0x3d0] sm:$0xff] }
0x2877   :  { %17443 = vmatmul.mubr.msk.f32.vlgmr.msra.gmra.mxu0 %vm199_vm2, %v18796_v60 }
0x2878   :  { %17460 = vmatprep.mubr.msk.f32.mxu0 %vm284_vm3, %v6166_v61  ;;  %v15548_v61 = vld [vmem:[%s21234_s4 + $0x3c8] sm:$0xff] }
0x292f   :  { %v19788_v12 = vpop.f32.mrf.mxu0 }
0x2931   :  { %v19790_v13 = vpop.f32.mrf.mxu0 }
0x2937   :  { %v17444_v46 = vpop.f32.mrf.mxu0 }
0x2938   :  { %v6259_v22 = vadd.f32 %v17444_v46, %v15519_v20  ;;  %v15547_v46 = vld [vmem:[%s21234_s4 + $0x3c0] sm:$0xff] }
0x2939   :  { %v6253_v24 = vpop.f32.mrf.mxu0 }
0x293a   :  { %v6254_v15 = vadd.f32 %v15519_v20, %v6253_v24  ;;  %17456 = vmatprep.subr.msk.mxu0 %vm284_vm3, %v6259_v22  ;;  %v15544_v20 = vld [vmem:[%s21235_s5 + $0x1a] ss:$0 sm:$0xff] }
0x293b   :  { %17457 = vmatpush3.xpose.msk.msra.mxu0 %vm284_vm3, %v6259_v22 }
0x293c   :  { %17458 = vmatprep.subr.msk.mxu0 %vm284_vm3, %v6254_v15 }
0x293f   :  { %17459 = vmatpush3.xpose.msk.msra.mxu0 %vm284_vm3, %v6254_v15 }
0x2940   :  { %17470 = vmatprep.subr.mxu0 %v15536_v39 }
0x2942   :  { %17461 = vmatmul.mubr.msk.f32.vlgmr.msra.gmra.mxu0 %vm284_vm3, %v19756_v6 }
0x2943   :  { %17471 = vmatpush3.msra.mxu0 %v15536_v39 }
0x2944   :  { %17486 = vmatprep.subr.mxu0 %v15550_v0 }
0x2a02   :  { %v17462_v16 = vpop.f32.mrf.mxu0 }
0x2a03   :  { %v6438_v21 = vmul.f32 0.35355338, %v17462_v16 }
0x2a04   :  { %v6428_v3 = vpop.f32.mrf.mxu0 }
0x2a05   :  { %v6437_v44 = vmul.f32 0.35355338, %v6428_v3  ;;  %v6440_v33 = vmul.f32 %v19739_v28, %v6438_v21  ;;  %v15560_v21 = vld [vmem:[%s21235_s5 + $0x22] ss:$0 sm:$0xff] }
0x2a07   :  { %v6439_v27 = vmul.f32 %v19745_v31, %v6437_v44  ;;  %v6442_v25 = vadd.f32 %v6440_v33, %v19741_v30 }
0x2a09   :  { %v6441_v47 = vadd.f32 %v6439_v27, %v19747_v32  ;;  %v6446_v4 = vsel %vm926_vm8, %v6442_v25, -inf }
0x2a0b   :  { %v6443_v7 = vsel %vm926_vm8, %v6441_v47, -inf }
0x2a0c   :  { %6444 = vmax.xlane.f32.xlu1 %v6443_v7 }
0x2a10   :  { %6447 = vmax.xlane.f32.xlu1 %v6446_v4 }
0x2a95   :  { %v6445_v14 = vpop.xlane.xlu1 %6444 }
0x2a96   :  { %v6449_v6 = vsub.f32 %v6441_v47, %v6445_v14  ;;  %v15505_v47 = vld [vmem:[%s21242_s12 + $0x16] ss:$0 sm:$0xff] }
0x2a97   :  { %v6085_v7 = vadd.f32 %v19788_v12, %v15505_v47  ;;  %v6084_v4 = vadd.f32 %v15505_v47, %v19790_v13  ;;  %v15583_v47 = vld [vmem:[%s21234_s4 + $0x3f8] sm:$0xff] }
0x2a98   :  { %v6451_v59 = vmul.f32 1.442695, %v6449_v6 }
0x2a99   :  { %v6448_v34 = vpop.xlane.xlu1 %6447 }
0x2a9a   :  { %18377 = vpow2.f32 %v6451_v59  ;;  %v6450_v18 = vsub.f32 %v6442_v25, %v6448_v34  ;;  %v15552_v34 = vld [vmem:[%s21235_s5 + $0x1e] ss:$0 sm:$0xff] }
0x2a9c   :  { %v6453_v17 = vmul.f32 1.442695, %v6450_v18 }
0x2a9e   :  { %18379 = vpow2.f32 %v6453_v17 }
0x2aa7   :  { %v18378_v53 = vpop.eup %18377 }
0x2aa8   :  { %v6455_v43 = vsel %vm926_vm8, %v18378_v53, 0.0 }
0x2aa9   :  { %6456 = vadd.xlane.f32.xlu1 %v6455_v43 }
0x2aab   :  { %v18380_v52 = vpop.eup %18379 }
0x2aac   :  { %v6458_v35 = vsel %vm926_vm8, %v18380_v52, 0.0 }
0x2aad   :  { %6459 = vadd.xlane.f32.xlu0 %v6458_v35 }
0x2b32   :  { %v6457_v40 = vpop.xlane.xlu1 %6456 }
0x2b33   :  { %18381 = vrcp.f32 %v6457_v40 }
0x2b36   :  { %v6460_v45 = vpop.xlane.xlu0 %6459 }
0x2b37   :  { %18383 = vrcp.f32 %v6460_v45 }
0x2b40   :  { %v18382_v1 = vpop.eup %18381 }
0x2b41   :  { %v6462_v48 = vmul.f32 %v18382_v1, %v18378_v53 }
0x2b43   :  { %17467 = vmatprep.mubr.msk.f32.mxu1 %vm926_vm8, %v6462_v48 }
0x2b44   :  { %v18384_v49 = vpop.eup %18383 }
0x2b45   :  { %v6464_v50 = vmul.f32 %v18384_v49, %v18380_v52 }
0x2b47   :  { %17468 = vmatmul.mubr.msk.f32.vlgmr.msra.gmra.mxu1 %vm926_vm8, %v6464_v50 }
0x2b48   :  { %17476 = vmatpush3.msra.mxu1 %v15542_v37  ;;  %17483 = vmatprep.mubr.msk.f32.mxu1 %vm199_vm2, %v19582_v10 }
0x2b49   :  { %17477 = vmatprep.subr.mxu1 %v15541_v51 }
0x2b4a   :  { %17478 = vmatpush3.msra.mxu1 %v15541_v51 }
0x2b4b   :  { %17479 = vmatprep.subr.mxu1 %v15540_v54 }
0x2b4c   :  { %17480 = vmatpush3.msra.mxu1 %v15540_v54 }
0x2b4d   :  { %17481 = vmatprep.subr.mxu1 %v15539_v55 }
0x2b4e   :  { %17482 = vmatpush3.msra.mxu1 %v15539_v55 }
0x2b4f   :  { %17484 = vmatmul.mubr.msk.f32.vlgmr.msra.gmra.mxu1 %vm199_vm2, %v18796_v60  ;;  %17497 = vmatprep.subr.mxu1 %v15558_v57 }
0x2b50   :  { %17498 = vmatpush3.msra.mxu1 %v15558_v57  ;;  %17505 = vmatprep.mubr.msk.f32.mxu1 %vm199_vm2, %v19582_v10 }
0x2b51   :  { %17499 = vmatprep.subr.mxu1 %v15557_v41 }
0x2b52   :  { %17500 = vmatpush3.msra.mxu1 %v15557_v41 }
0x2b53   :  { %17501 = vmatprep.subr.mxu1 %v15556_v63 }
0x2b54   :  { %17502 = vmatpush3.msra.mxu1 %v15556_v63 }
0x2b55   :  { %17503 = vmatprep.subr.mxu1 %v15555_v2 }
0x2b56   :  { %17504 = vmatpush3.msra.mxu1 %v15555_v2 }
0x2b57   :  { %17506 = vmatmul.mubr.msk.f32.vlgmr.msra.gmra.mxu1 %vm199_vm2, %v18796_v60 }
0x2c07   :  { %v17469_v5 = vpop.f32.mrf.mxu1 }
0x2c09   :  { %v6537_v11 = vpop.f32.mrf.mxu1 }
0x2c0a   :  { %17472 = vmatprep.mubr.msk.f32.mxu0 %vm284_vm3, %v6537_v11  ;;  %v15569_v11 = vld [vmem:[%s21236_s6 + $0x50] sm:$0xff] }
0x2c0b   :  { %17473 = vmatmul.mubr.msk.f32.vlgmr.msra.gmra.mxu0 %vm284_vm3, %v17469_v5  ;;  %v15575_v5 = vld [vmem:[%s21234_s4 + $0x378] sm:$0xff] }
0x2c0c   :  { %17487 = vmatpush3.msra.mxu0 %v15550_v0  ;;  %17494 = vmatprep.mubr.msk.f32.mxu0 %vm199_vm2, %v19582_v10 }
0x2c0d   :  { %17488 = vmatprep.subr.mxu0 %v15549_v62 }
0x2c0e   :  { %17489 = vmatpush3.msra.mxu0 %v15549_v62 }
0x2c0f   :  { %v17485_v22 = vpop.f32.mrf.mxu1  ;;  %17490 = vmatprep.subr.mxu0 %v15548_v61 }
0x2c10   :  { %v6716_v24 = vadd.f32 %v17485_v22, %v15544_v20  ;;  %17491 = vmatpush3.msra.mxu0 %v15548_v61 }
0x2c11   :  { %v6710_v15 = vpop.f32.mrf.mxu1  ;;  %17492 = vmatprep.subr.mxu0 %v15547_v46 }
0x2c12   :  { %v6711_v16 = vadd.f32 %v15544_v20, %v6710_v15  ;;  %17493 = vmatpush3.msra.mxu0 %v15547_v46  ;;  %v15574_v15 = vld [vmem:[%s21234_s4 + $0x370] sm:$0xff] }
0x2c13   :  { %17495 = vmatmul.mubr.msk.f32.vlgmr.msra.gmra.mxu0 %vm199_vm2, %v18796_v60 }
0x2c14   :  { %17512 = vmatprep.mubr.msk.f32.mxu0 %vm284_vm3, %v6711_v16  ;;  %v15573_v16 = vld [vmem:[%s21234_s4 + $0x368] sm:$0xff] }
0x2c17   :  { %v17507_v3 = vpop.f32.mrf.mxu1 }
0x2c18   :  { %v6892_v44 = vadd.f32 %v17507_v3, %v15560_v21  ;;  %v15591_v3 = vld [vmem:[%s21234_s4 + $0x478] sm:$0xff] }
0x2c19   :  { %v6886_v33 = vpop.f32.mrf.mxu1 }
0x2c1a   :  { %v6887_v27 = vadd.f32 %v15560_v21, %v6886_v33  ;;  %17515 = vmatprep.subr.mxu1 %v6892_v44  ;;  %v15572_v21 = vld [vmem:[%s21234_s4 + $0x360] sm:$0xff]  ;;  %v15589_v33 = vld [vmem:[%s21234_s4 + $0x468] sm:$0xff] }
0x2c1b   :  { %17516 = vmatpush3.msra.mxu1 %v6892_v44  ;;  %v15590_v44 = vld [vmem:[%s21234_s4 + $0x470] sm:$0xff] }
0x2c1c   :  { %17517 = vmatprep.subr.mxu1 %v6887_v27 }
0x2c1d   :  { %17518 = vmatpush3.msra.mxu1 %v6887_v27  ;;  %v15588_v27 = vld [vmem:[%s21234_s4 + $0x460] sm:$0xff] }
0x2c1e   :  { %17527 = vmatprep.subr.mxu1 %v15575_v5 }
0x2ccb   :  { %v17474_v25 = vpop.f32.mrf.mxu0 }
0x2ccc   :  { %v19876_v14 = vadd.f32 %v17474_v25, %v6085_v7 }
0x2ccd   :  { %v6620_v6 = vpop.f32.mrf.mxu0 }
0x2cce   :  { %v19878_v59 = vadd.f32 %v6620_v6, %v6084_v4  ;;  %v15582_v4 = vld [vmem:[%s21234_s4 + $0x3f0] sm:$0xff]  ;;  %v15581_v6 = vld [vmem:[%s21234_s4 + $0x3e8] sm:$0xff] }
0x2cd3   :  { %v17496_v18 = vpop.f32.mrf.mxu0 }
0x2cd4   :  { %v6804_v17 = vadd.f32 %v17496_v18, %v15552_v34  ;;  %v15580_v18 = vld [vmem:[%s21234_s4 + $0x3e0] sm:$0xff] }
0x2cd5   :  { %v6798_v53 = vpop.f32.mrf.mxu0 }
0x2cd6   :  { %v6799_v43 = vadd.f32 %v15552_v34, %v6798_v53  ;;  %17508 = vmatprep.subr.msk.mxu0 %vm284_vm3, %v6804_v17  ;;  %v15577_v34 = vld [vmem:[%s21235_s5 + $0x1b] ss:$0 sm:$0xff] }
0x2cd7   :  { %17509 = vmatpush3.xpose.msk.msra.mxu0 %vm284_vm3, %v6804_v17 }
0x2cd8   :  { %17510 = vmatprep.subr.msk.mxu0 %vm284_vm3, %v6799_v43 }
0x2cdb   :  { %17511 = vmatpush3.xpose.msk.msra.mxu0 %vm284_vm3, %v6799_v43 }
0x2cdc   :  { %17522 = vmatprep.subr.mxu0 %v15569_v11 }
0x2cde   :  { %17513 = vmatmul.mubr.msk.f32.vlgmr.msra.gmra.mxu0 %vm284_vm3, %v6716_v24 }
0x2cdf   :  { %17523 = vmatpush3.msra.mxu0 %v15569_v11 }
0x2ce0   :  { %17538 = vmatprep.subr.mxu0 %v15583_v47 }
0x2d9e   :  { %v17514_v12 = vpop.f32.mrf.mxu0 }
0x2d9f   :  { %v6983_v13 = vmul.f32 0.35355338, %v17514_v12 }
0x2da0   :  { %v6973_v52 = vpop.f32.mrf.mxu0 }
0x2da1   :  { %v6985_v35 = vmul.f32 %v19739_v28, %v6983_v13  ;;  %v6982_v37 = vmul.f32 0.35355338, %v6973_v52  ;;  %v15593_v13 = vld [vmem:[%s21235_s5 + $0x23] ss:$0 sm:$0xff] }
0x2da3   :  { %v6984_v39 = vmul.f32 %v19745_v31, %v6982_v37  ;;  %v6987_v40 = vadd.f32 %v6985_v35, %v19741_v30 }
0x2da5   :  { %v6991_v45 = vsel %vm926_vm8, %v6987_v40, -inf  ;;  %v6986_v1 = vadd.f32 %v6984_v39, %v19747_v32 }
0x2da6   :  { %6992 = vmax.xlane.f32.xlu0 %v6991_v45 }
0x2da7   :  { %v6988_v48 = vsel %vm926_vm8, %v6986_v1, -inf }
0x2da8   :  { %6989 = vmax.xlane.f32.xlu1 %v6988_v48 }
0x2e2f   :  { %v6993_v49 = vpop.xlane.xlu0 %6992 }
0x2e30   :  { %v6995_v50 = vsub.f32 %v6987_v40, %v6993_v49  ;;  %v15585_v49 = vld [vmem:[%s21235_s5 + $0x1f] ss:$0 sm:$0xff] }
0x2e31   :  { %v6990_v51 = vpop.xlane.xlu1 %6989 }
0x2e32   :  { %v6998_v54 = vmul.f32 1.442695, %v6995_v50  ;;  %v6994_v55 = vsub.f32 %v6986_v1, %v6990_v51 }
0x2e34   :  { %18385 = vpow2.f32 %v6998_v54  ;;  %v6996_v57 = vmul.f32 1.442695, %v6994_v55 }
0x2e36   :  { %18387 = vpow2.f32 %v6996_v57 }
0x2e41   :  { %v18386_v41 = vpop.eup %18385 }
0x2e42   :  { %v7003_v63 = vsel %vm926_vm8, %v18386_v41, 0.0 }
0x2e43   :  { %v18388_v2 = vpop.eup %18387  ;;  %7004 = vadd.xlane.f32.xlu0 %v7003_v63 }
0x2e44   :  { %v7000_v0 = vsel %vm926_vm8, %v18388_v2, 0.0 }
0x2e45   :  { %7001 = vadd.xlane.f32.xlu1 %v7000_v0 }
0x2ecc   :  { %v7005_v62 = vpop.xlane.xlu0 %7004 }
0x2ecd   :  { %18389 = vrcp.f32 %v7005_v62 }
0x2ece   :  { %v7002_v61 = vpop.xlane.xlu1 %7001 }
0x2ecf   :  { %18391 = vrcp.f32 %v7002_v61 }
0x2eda   :  { %v18390_v20 = vpop.eup %18389 }
0x2edb   :  { %v7009_v24 = vmul.f32 %v18390_v20, %v18386_v41 }
0x2edc   :  { %v18392_v46 = vpop.eup %18391 }
0x2edd   :  { %v7007_v22 = vmul.f32 %v18392_v46, %v18388_v2 }
0x2edf   :  { %17519 = vmatprep.mubr.msk.f32.mxu1 %vm926_vm8, %v7007_v22 }
0x2ee0   :  { %17520 = vmatmul.mubr.msk.f32.vlgmr.msra.gmra.mxu1 %vm926_vm8, %v7009_v24 }
0x2ee1   :  { %17528 = vmatpush3.msra.mxu1 %v15575_v5  ;;  %17535 = vmatprep.mubr.msk.f32.mxu1 %vm199_vm2, %v19582_v10 }
0x2ee2   :  { %17529 = vmatprep.subr.mxu1 %v15574_v15 }
0x2ee3   :  { %17530 = vmatpush3.msra.mxu1 %v15574_v15 }
0x2ee4   :  { %17531 = vmatprep.subr.mxu1 %v15573_v16 }
0x2ee5   :  { %17532 = vmatpush3.msra.mxu1 %v15573_v16  ;;  %v15464_v16 = vld [vmem:[%s21242_s12 + $0x1b] ss:$0 sm:$0xff] }
0x2ee6   :  { %17533 = vmatprep.subr.mxu1 %v15572_v21 }
0x2ee7   :  { %17534 = vmatpush3.msra.mxu1 %v15572_v21  ;;  %v5476_v21 = vadd.f32 %v19706_v58, %v15464_v16  ;;  %v15602_v58 = vld [vmem:[%s21236_s6 + $0x58] sm:$0xff] }
0x2ee8   :  { %17536 = vmatmul.mubr.msk.f32.vlgmr.msra.gmra.mxu1 %vm199_vm2, %v18796_v60  ;;  %17549 = vmatprep.subr.mxu1 %v15591_v3 }
0x2ee9   :  { %17550 = vmatpush3.msra.mxu1 %v15591_v3  ;;  %17557 = vmatprep.mubr.msk.f32.mxu1 %vm199_vm2, %v19582_v10  ;;  %v5471_v3 = vadd.f32 %v15464_v16, %v19710_v38 }
0x2eea   :  { %17551 = vmatprep.subr.mxu1 %v15590_v44 }
0x2eeb   :  { %17552 = vmatpush3.msra.mxu1 %v15590_v44 }
0x2eec   :  { %17553 = vmatprep.subr.mxu1 %v15589_v33 }
0x2eed   :  { %17554 = vmatpush3.msra.mxu1 %v15589_v33 }
0x2eee   :  { %17555 = vmatprep.subr.mxu1 %v15588_v27 }
0x2eef   :  { %17556 = vmatpush3.msra.mxu1 %v15588_v27  ;;  %v5480_v27 = vadd.f32 %v5476_v21, %v19579_v9 }
0x2ef0   :  { %17558 = vmatmul.mubr.msk.f32.vlgmr.msra.gmra.mxu1 %vm199_vm2, %v18796_v60 }
0x2fa0   :  { %v17521_v7 = vpop.f32.mrf.mxu1 }
0x2fa2   :  { %v7082_v25 = vpop.f32.mrf.mxu1 }
0x2fa3   :  { %17524 = vmatprep.mubr.msk.f32.mxu0 %vm284_vm3, %v7082_v25  ;;  %v5479_v25 = vadd.f32 %v5471_v3, %v19577_v8 }
0x2fa4   :  { %17525 = vmatmul.mubr.msk.f32.vlgmr.msra.gmra.mxu0 %vm284_vm3, %v17521_v7 }
0x2fa5   :  { %17539 = vmatpush3.msra.mxu0 %v15583_v47  ;;  %17546 = vmatprep.mubr.msk.f32.mxu0 %vm199_vm2, %v19582_v10 }
0x2fa6   :  { %17540 = vmatprep.subr.mxu0 %v15582_v4 }
0x2fa7   :  { %17541 = vmatpush3.msra.mxu0 %v15582_v4  ;;  %v5484_v4 = vsel %vm199_vm2, %v5480_v27, 0.0 }
0x2fa8   :  { %v17537_v17 = vpop.f32.mrf.mxu1  ;;  %17542 = vmatprep.subr.mxu0 %v15581_v6 }
0x2fa9   :  { %v7261_v53 = vadd.f32 %v17537_v17, %v15577_v34  ;;  %17543 = vmatpush3.msra.mxu0 %v15581_v6  ;;  %v5481_v6 = vsel %vm199_vm2, %v5479_v25, 0.0 }
0x2faa   :  { %v7255_v43 = vpop.f32.mrf.mxu1  ;;  %17544 = vmatprep.subr.mxu0 %v15580_v18 }
0x2fab   :  { %v7256_v12 = vadd.f32 %v15577_v34, %v7255_v43  ;;  %17545 = vmatpush3.msra.mxu0 %v15580_v18 }
0x2fac   :  { %17547 = vmatmul.mubr.msk.f32.vlgmr.msra.gmra.mxu0 %vm199_vm2, %v18796_v60 }
0x2fad   :  { %17564 = vmatprep.mubr.msk.f32.mxu0 %vm284_vm3, %v7256_v12 }
0x2fb0   :  { %v17559_v52 = vpop.f32.mrf.mxu1 }
0x2fb1   :  { %v7437_v35 = vadd.f32 %v17559_v52, %v15593_v13 }
0x2fb2   :  { %v7431_v37 = vpop.f32.mrf.mxu1 }
0x2fb3   :  { %v7432_v39 = vadd.f32 %v15593_v13, %v7431_v37  ;;  %17567 = vmatprep.subr.mxu1 %v7437_v35 }
0x2fb4   :  { %17568 = vmatpush3.msra.mxu1 %v7437_v35 }
0x2fb5   :  { %17569 = vmatprep.subr.mxu1 %v7432_v39 }
0x2fb6   :  { %17570 = vmatpush3.msra.mxu1 %v7432_v39 }
0x3064   :  { %v17526_v40 = vpop.f32.mrf.mxu0 }
0x3065   :  { %v19959_v45 = vadd.f32 %v17526_v40, %v19876_v14 }
0x3066   :  { %v7165_v1 = vpop.f32.mrf.mxu0 }
0x3067   :  { %v19962_v48 = vadd.f32 %v7165_v1, %v19878_v59 }
0x306c   :  { %v17548_v50 = vpop.f32.mrf.mxu0 }
0x306d   :  { %v7349_v51 = vadd.f32 %v17548_v50, %v15585_v49 }
0x306e   :  { %v7343_v54 = vpop.f32.mrf.mxu0 }
0x306f   :  { %v7344_v55 = vadd.f32 %v15585_v49, %v7343_v54  ;;  %17560 = vmatprep.subr.msk.mxu0 %vm284_vm3, %v7349_v51 }
0x3070   :  { %17561 = vmatpush3.xpose.msk.msra.mxu0 %vm284_vm3, %v7349_v51 }
0x3071   :  { %17562 = vmatprep.subr.msk.mxu0 %vm284_vm3, %v7344_v55 }
0x3074   :  { %17563 = vmatpush3.xpose.msk.msra.mxu0 %vm284_vm3, %v7344_v55 }
0x3075   :  { %17574 = vmatprep.subr.mxu0 %v15602_v58 }
0x3077   :  { %17565 = vmatmul.mubr.msk.f32.vlgmr.msra.gmra.mxu0 %vm284_vm3, %v7261_v53 }
0x3078   :  { %17575 = vmatpush3.msra.mxu0 %v15602_v58  ;;  %v15470_v58 = vld [vmem:[%s21242_s12 + $0xd] ss:$0 sm:$0xff] }
0x3137   :  { %v17566_v14 = vpop.f32.mrf.mxu0 }
0x3138   :  { %v7528_v59 = vmul.f32 0.35355338, %v17566_v14 }
0x3139   :  { %v7518_v57 = vpop.f32.mrf.mxu0 }
0x313a   :  { %v7530_v41 = vmul.f32 %v19739_v28, %v7528_v59  ;;  %v7527_v63 = vmul.f32 0.35355338, %v7518_v57 }
0x313c   :  { %v7529_v2 = vmul.f32 %v19745_v31, %v7527_v63  ;;  %v7532_v0 = vadd.f32 %v7530_v41, %v19741_v30  ;;  %v15618_v63 = vld [vmem:[%s21234_s4 + $0x680] sm:$0xff] }
0x313e   :  { %v7536_v5 = vsel %vm926_vm8, %v7532_v0, -inf  ;;  %v7531_v11 = vadd.f32 %v7529_v2, %v19747_v32 }
0x313f   :  { %7537 = vmax.xlane.f32.xlu0 %v7536_v5 }
0x3140   :  { %v7533_v62 = vsel %vm926_vm8, %v7531_v11, -inf }
0x3141   :  { %7534 = vmax.xlane.f32.xlu1 %v7533_v62 }
0x31c8   :  { %v7538_v61 = vpop.xlane.xlu0 %7537 }
0x31c9   :  { %v7540_v20 = vsub.f32 %v7532_v0, %v7538_v61 }
0x31ca   :  { %v7535_v46 = vpop.xlane.xlu1 %7534 }
0x31cb   :  { %v7543_v22 = vmul.f32 1.442695, %v7540_v20  ;;  %v7539_v24 = vsub.f32 %v7531_v11, %v7535_v46 }
0x31cd   :  { %18393 = vpow2.f32 %v7543_v22  ;;  %v7541_v15 = vmul.f32 1.442695, %v7539_v24 }
0x31cf   :  { %18395 = vpow2.f32 %v7541_v15 }
0x31da   :  { %v18394_v44 = vpop.eup %18393 }
0x31db   :  { %v7548_v33 = vsel %vm926_vm8, %v18394_v44, 0.0 }
0x31dc   :  { %v18396_v47 = vpop.eup %18395  ;;  %7549 = vadd.xlane.f32.xlu0 %v7548_v33 }
0x31dd   :  { %v7545_v7 = vsel %vm926_vm8, %v18396_v47, 0.0 }
0x31de   :  { %7546 = vadd.xlane.f32.xlu1 %v7545_v7 }
0x31e0   :  { %5485 = vadd.xlane.f32.xlu0 %v5484_v4 }
0x31e2   :  { %5482 = vadd.xlane.f32.xlu1 %v5481_v6 }
0x3265   :  { %v7550_v9 = vpop.xlane.xlu0 %7549 }
0x3266   :  { %18397 = vrcp.f32 %v7550_v9 }
0x3267   :  { %v7547_v38 = vpop.xlane.xlu1 %7546 }
0x3268   :  { %18399 = vrcp.f32 %v7547_v38 }
0x3269   :  { %v5486_v12 = vpop.xlane.xlu0 %5485 }
0x326a   :  { %v5488_v52 = vmul.f32 0.03125, %v5486_v12 }
0x326b   :  { %v5483_v13 = vpop.xlane.xlu1 %5482 }
0x326c   :  { %v5487_v35 = vmul.f32 0.03125, %v5483_v13  ;;  %v5490_v39 = vsub.f32 %v5480_v27, %v5488_v52 }
0x326e   :  { %v5489_v49 = vsub.f32 %v5479_v25, %v5487_v35  ;;  %v5492_v14 = vmul.f32 %v5490_v39, %v5490_v39 }
0x3270   :  { %v5491_v57 = vmul.f32 %v5489_v49, %v5489_v49  ;;  %v5496_v41 = vsel %vm199_vm2, %v5492_v14, 0.0  ;;  %v15608_v14 = vld [vmem:[%s21242_s12 + $0xe] ss:$0 sm:$0xff] }
0x3273   :  { %v18398_v34 = vpop.eup %18397 }
0x3274   :  { %v7554_v17 = vmul.f32 %v18398_v34, %v18394_v44 }
0x3275   :  { %v18400_v18 = vpop.eup %18399 }
0x3276   :  { %v7552_v8 = vmul.f32 %v18400_v18, %v18396_v47  ;;  %v15468_v47 = vld [vmem:[%s21242_s12 + $0x3] ss:$0 sm:$0xff]  ;;  %v15613_v18 = vld [vmem:[%s21234_s4 + $0x618] sm:$0xff] }
0x3277   :  { %17579 = vmatprep.subr.mxu1 %v15613_v18 }
0x3278   :  { %17571 = vmatprep.mubr.msk.f32.mxu1 %vm926_vm8, %v7552_v8  ;;  %v15612_v8 = vld [vmem:[%s21234_s4 + $0x610] sm:$0xff] }
0x3279   :  { %17572 = vmatmul.mubr.msk.f32.vlgmr.msra.gmra.mxu1 %vm926_vm8, %v7554_v17  ;;  %v15611_v17 = vld [vmem:[%s21234_s4 + $0x608] sm:$0xff] }
0x327a   :  { %17580 = vmatpush3.msra.mxu1 %v15613_v18 }
0x327b   :  { %17581 = vmatprep.subr.mxu1 %v15612_v8 }
0x327c   :  { %17582 = vmatpush3.msra.mxu1 %v15612_v8 }
0x327d   :  { %17583 = vmatprep.subr.mxu1 %v15611_v17 }
0x327e   :  { %17584 = vmatpush3.msra.mxu1 %v15611_v17 }
0x3339   :  { %v17573_v53 = vpop.f32.mrf.mxu1 }
0x333b   :  { %v7627_v43 = vpop.f32.mrf.mxu1 }
0x333c   :  { %17576 = vmatprep.mubr.msk.f32.mxu0 %vm284_vm3, %v7627_v43  ;;  %v15629_v43 = vld [vmem:[%s21234_s4 + $0x718] sm:$0xff] }
0x333d   :  { %17577 = vmatmul.mubr.msk.f32.vlgmr.msra.gmra.mxu0 %vm284_vm3, %v17573_v53  ;;  %v15610_v53 = vld [vmem:[%s21234_s4 + $0x600] sm:$0xff] }
0x333e   :  { %17585 = vmatprep.subr.mxu1 %v15610_v53 }
0x333f   :  { %17586 = vmatpush3.msra.mxu1 %v15610_v53 }
0x3340   :  { %17601 = vmatprep.subr.mxu1 %v15629_v43 }
0x33fd   :  { %v17578_v37 = vpop.f32.mrf.mxu0 }
0x33fe   :  { %v7720_v40 = vadd.f32 %v17578_v37, %v19959_v45  ;;  %v5493_v45 = vsel %vm199_vm2, %v5491_v57, 0.0 }
0x33ff   :  { %v7710_v1 = vpop.f32.mrf.mxu0 }
0x3400   :  { %v7719_v50 = vadd.f32 %v7710_v1, %v19962_v48  ;;  %v7722_v51 = vadd.f32 %v7720_v40, %v18796_v60  ;;  %v15621_v60 = vld [vmem:[%s21234_s4 + $0x698] sm:$0xff]  ;;  %v15619_v48 = vld [vmem:[%s21234_s4 + $0x688] sm:$0xff] }
0x3401   :  { %17590 = vmatprep.subr.mxu0 %v15621_v60 }
0x3402   :  { %v7726_v54 = vsel %vm199_vm2, %v7722_v51, 0.0  ;;  %v7721_v55 = vadd.f32 %v7719_v50, %v19582_v10  ;;  %17591 = vmatpush3.msra.mxu0 %v15621_v60  ;;  %v15620_v10 = vld [vmem:[%s21234_s4 + $0x690] sm:$0xff]  ;;  %v15626_v60 = vld [vmem:[%s21234_s4 + $0x700] sm:$0xff] }
0x3403   :  { %7727 = vadd.xlane.f32.xlu0 %v7726_v54  ;;  %17592 = vmatprep.subr.mxu0 %v15620_v10 }
0x3404   :  { %v7723_v59 = vsel %vm199_vm2, %v7721_v55, 0.0  ;;  %17593 = vmatpush3.msra.mxu0 %v15620_v10  ;;  %v15623_v10 = vld [vmem:[%s21235_s5 + $0x34] ss:$0 sm:$0xff] }
0x3405   :  { %7724 = vadd.xlane.f32.xlu1 %v7723_v59  ;;  %17594 = vmatprep.subr.mxu0 %v15619_v48 }
0x3406   :  { %17595 = vmatpush3.msra.mxu0 %v15619_v48 }
0x3407   :  { %5497 = vadd.xlane.f32.xlu0 %v5496_v41  ;;  %17596 = vmatprep.subr.mxu0 %v15618_v63  ;;  %v15628_v41 = vld [vmem:[%s21234_s4 + $0x710] sm:$0xff] }
0x3408   :  { %17597 = vmatpush3.msra.mxu0 %v15618_v63 }
0x3409   :  { %5494 = vadd.xlane.f32.xlu1 %v5493_v45  ;;  %v15627_v45 = vld [vmem:[%s21234_s4 + $0x708] sm:$0xff] }
0x348c   :  { %v7728_v2 = vpop.xlane.xlu0 %7727 }
0x348d   :  { %v7730_v0 = vmul.f32 0.03125, %v7728_v2 }
0x348e   :  { %v7725_v5 = vpop.xlane.xlu1 %7724 }
0x348f   :  { %v7732_v11 = vsub.f32 %v7722_v51, %v7730_v0  ;;  %v7729_v62 = vmul.f32 0.03125, %v7725_v5 }
0x3490   :  { %v5498_v61 = vpop.xlane.xlu0 %5497 }
0x3491   :  { %v7731_v20 = vsub.f32 %v7721_v55, %v7729_v62  ;;  %v5500_v46 = vmul.f32 0.03125, %v5498_v61  ;;  %v7734_v22 = vmul.f32 %v7732_v11, %v7732_v11 }
0x3492   :  { %v5495_v24 = vpop.xlane.xlu1 %5494 }
0x3493   :  { %v5502_v15 = vadd.f32 1e-05, %v5500_v46  ;;  %v5499_v16 = vmul.f32 0.03125, %v5495_v24  ;;  %v7738_v21 = vsel %vm199_vm2, %v7734_v22, 0.0  ;;  %v7733_v3 = vmul.f32 %v7731_v20, %v7731_v20  ;;  %v15631_v46 = vld [vmem:[%s21235_s5 + $0x38] ss:$0 sm:$0xff] }
0x3494   :  { %7739 = vadd.xlane.f32.xlu0 %v7738_v21  ;;  %v18535_v21 = vld [vmem:[%s21232_s2 + $0x1] ss:$0 sm:$0xff] }
0x3495   :  { %18401 = vrsqrt.f32 %v5502_v15  ;;  %v5501_v44 = vadd.f32 1e-05, %v5499_v16  ;;  %v7735_v33 = vsel %vm199_vm2, %v7733_v3, 0.0  ;;  %vm156_vm15 = vcmp.eq.s32.totalorder %v19719_v42, %v18535_v21 }
0x3496   :  { %7736 = vadd.xlane.f32.xlu1 %v7735_v33  ;;  %vm155_vm4 = vcmp.eq.s32.totalorder %v19722_v23, %v18535_v21  ;;  %vm160_vm5 = vmand %vm158_vm14, %vm156_vm15  ;;  %v164_v36 = vsel %vm156_vm15, 0.0, %v18584_v29 }
0x3497   :  { %18403 = vrsqrt.f32 %v5501_v44  ;;  %vm159_vm6 = vmand %vm157_vm1, %vm155_vm4  ;;  %v162_v3 = vsel %vm160_vm5, 0.0, %v18584_v29  ;;  %v20107_v42 = vsel %vm160_vm5, 1.0, %v18583_v19 }
0x3498   :  { %v20109_v56 = vadd.f32 %v164_v36, %v162_v3 }
0x34a2   :  { %v18402_v27 = vpop.eup %18401 }
0x34a3   :  { %v5506_v7 = vmul.f32 %v18402_v27, %v5490_v39  ;;  %v161_v27 = vsel %vm159_vm6, 0.0, %v18584_v29 }
0x34a4   :  { %v18404_v25 = vpop.eup %18403 }
0x34a5   :  { %v5505_v4 = vmul.f32 %v18404_v25, %v5489_v49  ;;  %v5516_v6 = vmul.f32 %v15468_v47, %v5506_v7  ;;  %v15606_v49 = vld [vmem:[%s21242_s12 + $0x4] ss:$0 sm:$0xff]  ;;  %v20113_v25 = vsel %vm159_vm6, 1.0, %v18583_v19 }
0x34a7   :  { %v5515_v9 = vmul.f32 %v15468_v47, %v5505_v4  ;;  %v20026_v34 = vadd.f32 %v15470_v58, %v5516_v6  ;;  %v163_v47 = vsel %vm155_vm4, 0.0, %v18584_v29 }
0x34a8   :  { %v20115_v4 = vadd.f32 %v163_v47, %v161_v27  ;;  %v15657_v47 = vld [vmem:[%s21235_s5 + $0x35] ss:$0 sm:$0xff] }
0x34a9   :  { %v20024_v38 = vadd.f32 %v15470_v58, %v5515_v9 }
0x34ab   :  { %17598 = vmatprep.mubr.msk.f32.mxu0 %vm199_vm2, %v20024_v38 }
0x34ac   :  { %17599 = vmatmul.mubr.msk.f32.vlgmr.msra.gmra.mxu0 %vm199_vm2, %v20026_v34 }
0x351d   :  { %v7740_v12 = vpop.xlane.xlu0 %7739 }
0x351e   :  { %v7742_v13 = vmul.f32 0.03125, %v7740_v12 }
0x351f   :  { %v7737_v52 = vpop.xlane.xlu1 %7736 }
0x3520   :  { %v7744_v35 = vadd.f32 1e-05, %v7742_v13  ;;  %v7741_v37 = vmul.f32 0.03125, %v7737_v52 }
0x3522   :  { %18405 = vrsqrt.f32 %v7744_v35  ;;  %v7743_v39 = vadd.f32 1e-05, %v7741_v37 }
0x3524   :  { %18407 = vrsqrt.f32 %v7743_v39  ;;  %v15647_v39 = vld [vmem:[%s21234_s4 + $0x638] sm:$0xff] }
0x352f   :  { %v18406_v40 = vpop.eup %18405 }
0x3530   :  { %v7748_v1 = vmul.f32 %v18406_v40, %v7732_v11  ;;  %v15615_v11 = vld [vmem:[%s21235_s5 + $0x30] ss:$0 sm:$0xff]  ;;  %v15640_v40 = vld [vmem:[%s21236_s6 + $0x80] sm:$0xff] }
0x3531   :  { %v18408_v50 = vpop.eup %18407 }
0x3532   :  { %v7747_v51 = vmul.f32 %v18408_v50, %v7731_v20  ;;  %v7758_v54 = vmul.f32 %v15606_v49, %v7748_v1 }
0x3534   :  { %v7757_v55 = vmul.f32 %v15606_v49, %v7747_v51  ;;  %v20055_v57 = vadd.f32 %v15608_v14, %v7758_v54 }
0x3536   :  { %v20053_v59 = vadd.f32 %v15608_v14, %v7757_v55  ;;  %v15646_v14 = vld [vmem:[%s21234_s4 + $0x630] sm:$0xff] }
0x3538   :  { %17587 = vmatprep.mubr.msk.f32.mxu1 %vm199_vm2, %v20053_v59 }
0x3539   :  { %17588 = vmatmul.mubr.msk.f32.vlgmr.msra.gmra.mxu1 %vm199_vm2, %v20055_v57 }
0x353a   :  { %17602 = vmatpush3.msra.mxu1 %v15629_v43  ;;  %17609 = vmatprep.mubr.msk.f32.mxu1 %vm199_vm2, %v20024_v38 }
0x353b   :  { %17603 = vmatprep.subr.mxu1 %v15628_v41 }
0x353c   :  { %17604 = vmatpush3.msra.mxu1 %v15628_v41  ;;  %v15645_v41 = vld [vmem:[%s21234_s4 + $0x628] sm:$0xff] }
0x353d   :  { %17605 = vmatprep.subr.mxu1 %v15627_v45 }
0x353e   :  { %17606 = vmatpush3.msra.mxu1 %v15627_v45  ;;  %v15644_v45 = vld [vmem:[%s21234_s4 + $0x620] sm:$0xff] }
0x353f   :  { %17607 = vmatprep.subr.mxu1 %v15626_v60 }
0x3540   :  { %17608 = vmatpush3.msra.mxu1 %v15626_v60  ;;  %v15663_v60 = vld [vmem:[%s21234_s4 + $0x738] sm:$0xff] }
0x3541   :  { %17610 = vmatmul.mubr.msk.f32.vlgmr.msra.gmra.mxu1 %vm199_vm2, %v20026_v34 }
0x356c   :  { %v17600_v48 = vpop.f32.mrf.mxu0 }
0x356d   :  { %v7956_v63 = vadd.f32 %v17600_v48, %v15623_v10  ;;  %v15661_v48 = vld [vmem:[%s21234_s4 + $0x728] sm:$0xff] }
0x356e   :  { %v7950_v2 = vpop.f32.mrf.mxu0 }
0x356f   :  { %v7951_v0 = vadd.f32 %v15623_v10, %v7950_v2  ;;  %17612 = vmatprep.subr.msk.mxu0 %vm284_vm3, %v7956_v63  ;;  %v15662_v10 = vld [vmem:[%s21234_s4 + $0x730] sm:$0xff]  ;;  %v15655_v2 = vld [vmem:[%s21234_s4 + $0x6b8] sm:$0xff] }
0x3570   :  { %17613 = vmatpush3.xpose.msk.msra.mxu0 %vm284_vm3, %v7956_v63  ;;  %v15660_v63 = vld [vmem:[%s21234_s4 + $0x720] sm:$0xff] }
0x3571   :  { %17614 = vmatprep.subr.msk.mxu0 %vm284_vm3, %v7951_v0 }
0x3574   :  { %17615 = vmatpush3.xpose.msk.msra.mxu0 %vm284_vm3, %v7951_v0 }
0x3575   :  { %17626 = vmatprep.subr.mxu0 %v15640_v40 }
0x35f9   :  { %v17589_v5 = vpop.f32.mrf.mxu1 }
0x35fa   :  { %v7862_v20 = vadd.f32 %v17589_v5, %v15615_v11 }
0x35fb   :  { %v7856_v62 = vpop.f32.mrf.mxu1 }
0x35fc   :  { %v7857_v61 = vadd.f32 %v15615_v11, %v7856_v62  ;;  %v15654_v11 = vld [vmem:[%s21234_s4 + $0x6b0] sm:$0xff]  ;;  %v15653_v62 = vld [vmem:[%s21234_s4 + $0x6a8] sm:$0xff] }
0x35fe   :  { %17616 = vmatprep.mubr.msk.f32.mxu0 %vm284_vm3, %v7857_v61  ;;  %v15649_v61 = vld [vmem:[%s21235_s5 + $0x31] ss:$0 sm:$0xff] }
0x35ff   :  { %17617 = vmatmul.mubr.msk.f32.vlgmr.msra.gmra.mxu0 %vm284_vm3, %v7862_v20  ;;  %v15652_v20 = vld [vmem:[%s21234_s4 + $0x6a0] sm:$0xff] }
0x3600   :  { %17627 = vmatpush3.msra.mxu0 %v15640_v40 }
0x3601   :  { %v17611_v22 = vpop.f32.mrf.mxu1  ;;  %17642 = vmatprep.subr.mxu0 %v15655_v2 }
0x3602   :  { %v8044_v24 = vadd.f32 %v17611_v22, %v15631_v46 }
0x3603   :  { %v8038_v15 = vpop.f32.mrf.mxu1 }
0x3604   :  { %v8039_v16 = vadd.f32 %v15631_v46, %v8038_v15  ;;  %17619 = vmatprep.subr.mxu1 %v8044_v24 }
0x3605   :  { %17620 = vmatpush3.msra.mxu1 %v8044_v24 }
0x3606   :  { %17621 = vmatprep.subr.mxu1 %v8039_v16 }
0x3607   :  { %17622 = vmatpush3.msra.mxu1 %v8039_v16  ;;  %v15665_v16 = vld [vmem:[%s21235_s5 + $0x39] ss:$0 sm:$0xff] }
0x3608   :  { %17631 = vmatprep.subr.mxu1 %v15647_v39 }
0x36bf   :  { %v17618_v44 = vpop.f32.mrf.mxu0 }
0x36c0   :  { %v8135_v33 = vmul.f32 0.35355338, %v17618_v44 }
0x36c1   :  { %v8125_v26 = vpop.f32.mrf.mxu0 }
0x36c2   :  { %v8137_v23 = vmul.f32 %v20107_v42, %v8135_v33  ;;  %v8134_v7 = vmul.f32 0.35355338, %v8125_v26 }
0x36c4   :  { %v8136_v6 = vmul.f32 %v20113_v25, %v8134_v7  ;;  %v8139_v58 = vadd.f32 %v8137_v23, %v20109_v56 }
0x36c6   :  { %v8143_v29 = vsel %vm926_vm8, %v8139_v58, -inf  ;;  %v8138_v9 = vadd.f32 %v8136_v6, %v20115_v4 }
0x36c7   :  { %8144 = vmax.xlane.f32.xlu0 %v8143_v29 }
0x36c8   :  { %v8140_v18 = vsel %vm926_vm8, %v8138_v9, -inf }
0x36c9   :  { %8141 = vmax.xlane.f32.xlu1 %v8140_v18 }
0x3750   :  { %v8145_v8 = vpop.xlane.xlu0 %8144 }
0x3751   :  { %v8147_v17 = vsub.f32 %v8139_v58, %v8145_v8 }
0x3752   :  { %v8142_v53 = vpop.xlane.xlu1 %8141 }
0x3753   :  { %v8150_v43 = vmul.f32 1.442695, %v8147_v17  ;;  %v8146_v19 = vsub.f32 %v8138_v9, %v8142_v53 }
0x3755   :  { %18409 = vpow2.f32 %v8150_v43  ;;  %v8148_v12 = vmul.f32 1.442695, %v8146_v19 }
0x3757   :  { %18411 = vpow2.f32 %v8148_v12 }
0x3762   :  { %v18410_v13 = vpop.eup %18409 }
0x3763   :  { %v8155_v52 = vsel %vm926_vm8, %v18410_v13, 0.0 }
0x3764   :  { %v18412_v35 = vpop.eup %18411  ;;  %8156 = vadd.xlane.f32.xlu0 %v8155_v52 }
0x3765   :  { %v8152_v37 = vsel %vm926_vm8, %v18412_v35, 0.0 }
0x3766   :  { %8153 = vadd.xlane.f32.xlu1 %v8152_v37 }
0x37ed   :  { %v8157_v1 = vpop.xlane.xlu0 %8156 }
0x37ee   :  { %18413 = vrcp.f32 %v8157_v1 }
0x37ef   :  { %v8154_v49 = vpop.xlane.xlu1 %8153 }
0x37f0   :  { %18415 = vrcp.f32 %v8154_v49 }
0x37fb   :  { %v18414_v50 = vpop.eup %18413 }
0x37fc   :  { %v8161_v55 = vmul.f32 %v18414_v50, %v18410_v13 }
0x37fd   :  { %v18416_v51 = vpop.eup %18415 }
0x37fe   :  { %v8159_v54 = vmul.f32 %v18416_v51, %v18412_v35 }
0x3800   :  { %17623 = vmatprep.mubr.msk.f32.mxu1 %vm926_vm8, %v8159_v54  ;;  %v15680_v54 = vld [vmem:[%s21234_s4 + $0x658] sm:$0xff] }
0x3801   :  { %17624 = vmatmul.mubr.msk.f32.vlgmr.msra.gmra.mxu1 %vm926_vm8, %v8161_v55  ;;  %v15674_v55 = vld [vmem:[%s21236_s6 + $0x88] sm:$0xff] }
0x3802   :  { %17632 = vmatpush3.msra.mxu1 %v15647_v39  ;;  %17639 = vmatprep.mubr.msk.f32.mxu1 %vm199_vm2, %v20053_v59 }
0x3803   :  { %17633 = vmatprep.subr.mxu1 %v15646_v14 }
0x3804   :  { %17634 = vmatpush3.msra.mxu1 %v15646_v14 }
0x3805   :  { %17635 = vmatprep.subr.mxu1 %v15645_v41 }
0x3806   :  { %17636 = vmatpush3.msra.mxu1 %v15645_v41 }
0x3807   :  { %17637 = vmatprep.subr.mxu1 %v15644_v45 }
0x3808   :  { %17638 = vmatpush3.msra.mxu1 %v15644_v45 }
0x3809   :  { %17640 = vmatmul.mubr.msk.f32.vlgmr.msra.gmra.mxu1 %vm199_vm2, %v20055_v57  ;;  %17653 = vmatprep.subr.mxu1 %v15663_v60 }
0x380a   :  { %17654 = vmatpush3.msra.mxu1 %v15663_v60  ;;  %17661 = vmatprep.mubr.msk.f32.mxu1 %vm199_vm2, %v20024_v38 }
0x380b   :  { %17655 = vmatprep.subr.mxu1 %v15662_v10 }
0x380c   :  { %17656 = vmatpush3.msra.mxu1 %v15662_v10 }
0x380d   :  { %17657 = vmatprep.subr.mxu1 %v15661_v48 }
0x380e   :  { %17658 = vmatpush3.msra.mxu1 %v15661_v48 }
0x380f   :  { %17659 = vmatprep.subr.mxu1 %v15660_v63 }
0x3810   :  { %17660 = vmatpush3.msra.mxu1 %v15660_v63  ;;  %v15679_v63 = vld [vmem:[%s21234_s4 + $0x650] sm:$0xff] }
0x3811   :  { %17662 = vmatmul.mubr.msk.f32.vlgmr.msra.gmra.mxu1 %vm199_vm2, %v20026_v34 }
0x38c1   :  { %v17625_v0 = vpop.f32.mrf.mxu1 }
0x38c3   :  { %v8234_v5 = vpop.f32.mrf.mxu1 }
0x38c4   :  { %17628 = vmatprep.mubr.msk.f32.mxu0 %vm284_vm3, %v8234_v5  ;;  %v15696_v5 = vld [vmem:[%s21234_s4 + $0x758] sm:$0xff] }
0x38c5   :  { %17629 = vmatmul.mubr.msk.f32.vlgmr.msra.gmra.mxu0 %vm284_vm3, %v17625_v0  ;;  %v15677_v0 = vld [vmem:[%s21234_s4 + $0x640] sm:$0xff] }
0x38c6   :  { %17643 = vmatpush3.msra.mxu0 %v15655_v2  ;;  %17650 = vmatprep.mubr.msk.f32.mxu0 %vm199_vm2, %v20024_v38  ;;  %v15678_v2 = vld [vmem:[%s21234_s4 + $0x648] sm:$0xff] }
0x38c7   :  { %17644 = vmatprep.subr.mxu0 %v15654_v11 }
0x38c8   :  { %17645 = vmatpush3.msra.mxu0 %v15654_v11  ;;  %v15695_v11 = vld [vmem:[%s21234_s4 + $0x750] sm:$0xff] }
0x38c9   :  { %v17641_v46 = vpop.f32.mrf.mxu1  ;;  %17646 = vmatprep.subr.mxu0 %v15653_v62 }
0x38ca   :  { %v8419_v22 = vadd.f32 %v17641_v46, %v15649_v61  ;;  %17647 = vmatpush3.msra.mxu0 %v15653_v62  ;;  %v15694_v62 = vld [vmem:[%s21234_s4 + $0x748] sm:$0xff] }
0x38cb   :  { %v8413_v24 = vpop.f32.mrf.mxu1  ;;  %17648 = vmatprep.subr.mxu0 %v15652_v20 }
0x38cc   :  { %v8414_v15 = vadd.f32 %v15649_v61, %v8413_v24  ;;  %17649 = vmatpush3.msra.mxu0 %v15652_v20  ;;  %v15693_v61 = vld [vmem:[%s21234_s4 + $0x740] sm:$0xff]  ;;  %v15688_v20 = vld [vmem:[%s21234_s4 + $0x6d8] sm:$0xff]  ;;  %v15687_v24 = vld [vmem:[%s21234_s4 + $0x6d0] sm:$0xff] }
0x38cd   :  { %17651 = vmatmul.mubr.msk.f32.vlgmr.msra.gmra.mxu0 %vm199_vm2, %v20026_v34 }
0x38ce   :  { %17668 = vmatprep.mubr.msk.f32.mxu0 %vm284_vm3, %v8414_v15  ;;  %v15686_v15 = vld [vmem:[%s21234_s4 + $0x6c8] sm:$0xff] }
0x38d1   :  { %v17663_v21 = vpop.f32.mrf.mxu1 }
0x38d2   :  { %v8595_v3 = vadd.f32 %v17663_v21, %v15665_v16  ;;  %v15685_v21 = vld [vmem:[%s21234_s4 + $0x6c0] sm:$0xff] }
0x38d3   :  { %v8589_v36 = vpop.f32.mrf.mxu1 }
0x38d4   :  { %v8590_v44 = vadd.f32 %v15665_v16, %v8589_v36  ;;  %17671 = vmatprep.subr.mxu1 %v8595_v3  ;;  %v15682_v16 = vld [vmem:[%s21235_s5 + $0x32] ss:$0 sm:$0xff] }
0x38d5   :  { %17672 = vmatpush3.msra.mxu1 %v8595_v3 }
0x38d6   :  { %17673 = vmatprep.subr.mxu1 %v8590_v44 }
0x38d7   :  { %17674 = vmatpush3.msra.mxu1 %v8590_v44 }
0x38d8   :  { %17683 = vmatprep.subr.mxu1 %v15680_v54 }
0x3985   :  { %v20186_v33 = vpop.f32.mrf.mxu0 }
0x3987   :  { %v20188_v27 = vpop.f32.mrf.mxu0 }
0x398d   :  { %v17652_v26 = vpop.f32.mrf.mxu0 }
0x398e   :  { %v8507_v23 = vadd.f32 %v17652_v26, %v15657_v47  ;;  %v15698_v26 = vld [vmem:[%s21235_s5 + $0x3a] ss:$0 sm:$0xff] }
0x398f   :  { %v8501_v7 = vpop.f32.mrf.mxu0 }
0x3990   :  { %v8502_v6 = vadd.f32 %v15657_v47, %v8501_v7  ;;  %17664 = vmatprep.subr.msk.mxu0 %vm284_vm3, %v8507_v23 }
0x3991   :  { %17665 = vmatpush3.xpose.msk.msra.mxu0 %vm284_vm3, %v8507_v23 }
0x3992   :  { %17666 = vmatprep.subr.msk.mxu0 %vm284_vm3, %v8502_v6 }
0x3995   :  { %17667 = vmatpush3.xpose.msk.msra.mxu0 %vm284_vm3, %v8502_v6 }
0x3996   :  { %17678 = vmatprep.subr.mxu0 %v15674_v55 }
0x3998   :  { %17669 = vmatmul.mubr.msk.f32.vlgmr.msra.gmra.mxu0 %vm284_vm3, %v8419_v22 }
0x3999   :  { %17679 = vmatpush3.msra.mxu0 %v15674_v55 }
0x399a   :  { %17694 = vmatprep.subr.mxu0 %v15688_v20 }
0x3a58   :  { %v17670_v58 = vpop.f32.mrf.mxu0 }
0x3a59   :  { %v8686_v29 = vmul.f32 0.35355338, %v17670_v58 }
0x3a5a   :  { %v8676_v9 = vpop.f32.mrf.mxu0 }
0x3a5b   :  { %v8688_v18 = vmul.f32 %v20107_v42, %v8686_v29  ;;  %v8685_v8 = vmul.f32 0.35355338, %v8676_v9  ;;  %v15643_v29 = vld [vmem:[%s21242_s12 + $0x18] ss:$0 sm:$0xff] }
0x3a5c   :  { %v8333_v9 = vadd.f32 %v20186_v33, %v15643_v29 }
0x3a5d   :  { %v8687_v17 = vmul.f32 %v20113_v25, %v8685_v8  ;;  %v8690_v53 = vadd.f32 %v8688_v18, %v20109_v56  ;;  %v8332_v8 = vadd.f32 %v15643_v29, %v20188_v27  ;;  %v15715_v29 = vld [vmem:[%s21235_s5 + $0x33] ss:$0 sm:$0xff] }
0x3a5f   :  { %v8694_v43 = vsel %vm926_vm8, %v8690_v53, -inf  ;;  %v8689_v19 = vadd.f32 %v8687_v17, %v20115_v4 }
0x3a60   :  { %8695 = vmax.xlane.f32.xlu0 %v8694_v43 }
0x3a61   :  { %v8691_v12 = vsel %vm926_vm8, %v8689_v19, -inf }
0x3a62   :  { %8692 = vmax.xlane.f32.xlu1 %v8691_v12 }
0x3ae9   :  { %v8696_v13 = vpop.xlane.xlu0 %8695 }
0x3aea   :  { %v8698_v52 = vsub.f32 %v8690_v53, %v8696_v13 }
0x3aeb   :  { %v8693_v35 = vpop.xlane.xlu1 %8692 }
0x3aec   :  { %v8701_v37 = vmul.f32 1.442695, %v8698_v52  ;;  %v8697_v39 = vsub.f32 %v8689_v19, %v8693_v35  ;;  %v15690_v19 = vld [vmem:[%s21235_s5 + $0x36] ss:$0 sm:$0xff] }
0x3aee   :  { %18417 = vpow2.f32 %v8701_v37  ;;  %v8699_v40 = vmul.f32 1.442695, %v8697_v39 }
0x3af0   :  { %18419 = vpow2.f32 %v8699_v40 }
0x3afb   :  { %v18418_v1 = vpop.eup %18417 }
0x3afc   :  { %v8706_v49 = vsel %vm926_vm8, %v18418_v1, 0.0 }
0x3afd   :  { %v18420_v50 = vpop.eup %18419  ;;  %8707 = vadd.xlane.f32.xlu0 %v8706_v49 }
0x3afe   :  { %v8703_v51 = vsel %vm926_vm8, %v18420_v50, 0.0 }
0x3aff   :  { %8704 = vadd.xlane.f32.xlu1 %v8703_v51 }
0x3b86   :  { %v8708_v14 = vpop.xlane.xlu0 %8707 }
0x3b87   :  { %18421 = vrcp.f32 %v8708_v14 }
0x3b88   :  { %v8705_v41 = vpop.xlane.xlu1 %8704 }
0x3b89   :  { %18423 = vrcp.f32 %v8705_v41 }
0x3b94   :  { %v18422_v45 = vpop.eup %18421 }
0x3b95   :  { %v8712_v48 = vmul.f32 %v18422_v45, %v18418_v1 }
0x3b96   :  { %v18424_v60 = vpop.eup %18423 }
0x3b97   :  { %v8710_v10 = vmul.f32 %v18424_v60, %v18420_v50 }
0x3b99   :  { %17675 = vmatprep.mubr.msk.f32.mxu1 %vm926_vm8, %v8710_v10 }
0x3b9a   :  { %17676 = vmatmul.mubr.msk.f32.vlgmr.msra.gmra.mxu1 %vm926_vm8, %v8712_v48 }
0x3b9b   :  { %17684 = vmatpush3.msra.mxu1 %v15680_v54  ;;  %17691 = vmatprep.mubr.msk.f32.mxu1 %vm199_vm2, %v20053_v59 }
0x3b9c   :  { %17685 = vmatprep.subr.mxu1 %v15679_v63 }
0x3b9d   :  { %17686 = vmatpush3.msra.mxu1 %v15679_v63 }
0x3b9e   :  { %17687 = vmatprep.subr.mxu1 %v15678_v2 }
0x3b9f   :  { %17688 = vmatpush3.msra.mxu1 %v15678_v2 }
0x3ba0   :  { %17689 = vmatprep.subr.mxu1 %v15677_v0 }
0x3ba1   :  { %17690 = vmatpush3.msra.mxu1 %v15677_v0 }
0x3ba2   :  { %17692 = vmatmul.mubr.msk.f32.vlgmr.msra.gmra.mxu1 %vm199_vm2, %v20055_v57  ;;  %17705 = vmatprep.subr.mxu1 %v15696_v5 }
0x3ba3   :  { %17706 = vmatpush3.msra.mxu1 %v15696_v5  ;;  %17713 = vmatprep.mubr.msk.f32.mxu1 %vm199_vm2, %v20024_v38  ;;  %v15713_v5 = vld [vmem:[%s21234_s4 + $0x678] sm:$0xff] }
0x3ba4   :  { %17707 = vmatprep.subr.mxu1 %v15695_v11 }
0x3ba5   :  { %17708 = vmatpush3.msra.mxu1 %v15695_v11  ;;  %v15707_v11 = vld [vmem:[%s21236_s6 + $0x90] sm:$0xff] }
0x3ba6   :  { %17709 = vmatprep.subr.mxu1 %v15694_v62 }
0x3ba7   :  { %17710 = vmatpush3.msra.mxu1 %v15694_v62 }
0x3ba8   :  { %17711 = vmatprep.subr.mxu1 %v15693_v61 }
0x3ba9   :  { %17712 = vmatpush3.msra.mxu1 %v15693_v61 }
0x3baa   :  { %17714 = vmatmul.mubr.msk.f32.vlgmr.msra.gmra.mxu1 %vm199_vm2, %v20026_v34 }
0x3c5a   :  { %v17677_v46 = vpop.f32.mrf.mxu1 }
0x3c5c   :  { %v8785_v22 = vpop.f32.mrf.mxu1 }
0x3c5d   :  { %17680 = vmatprep.mubr.msk.f32.mxu0 %vm284_vm3, %v8785_v22 }
0x3c5e   :  { %17681 = vmatmul.mubr.msk.f32.vlgmr.msra.gmra.mxu0 %vm284_vm3, %v17677_v46 }
0x3c5f   :  { %17695 = vmatpush3.msra.mxu0 %v15688_v20  ;;  %17702 = vmatprep.mubr.msk.f32.mxu0 %vm199_vm2, %v20024_v38 }
0x3c60   :  { %17696 = vmatprep.subr.mxu0 %v15687_v24 }
0x3c61   :  { %17697 = vmatpush3.msra.mxu0 %v15687_v24 }
0x3c62   :  { %v17693_v3 = vpop.f32.mrf.mxu1  ;;  %17698 = vmatprep.subr.mxu0 %v15686_v15 }
0x3c63   :  { %v8964_v36 = vadd.f32 %v17693_v3, %v15682_v16  ;;  %17699 = vmatpush3.msra.mxu0 %v15686_v15  ;;  %v15712_v15 = vld [vmem:[%s21234_s4 + $0x670] sm:$0xff]  ;;  %v15729_v3 = vld [vmem:[%s21234_s4 + $0x778] sm:$0xff] }
0x3c64   :  { %v8958_v44 = vpop.f32.mrf.mxu1  ;;  %17700 = vmatprep.subr.mxu0 %v15685_v21 }
0x3c65   :  { %v8959_v47 = vadd.f32 %v15682_v16, %v8958_v44  ;;  %17701 = vmatpush3.msra.mxu0 %v15685_v21  ;;  %v15711_v16 = vld [vmem:[%s21234_s4 + $0x668] sm:$0xff]  ;;  %v15710_v21 = vld [vmem:[%s21234_s4 + $0x660] sm:$0xff] }
0x3c66   :  { %17703 = vmatmul.mubr.msk.f32.vlgmr.msra.gmra.mxu0 %vm199_vm2, %v20026_v34  ;;  %v15727_v44 = vld [vmem:[%s21234_s4 + $0x768] sm:$0xff] }
0x3c67   :  { %17720 = vmatprep.mubr.msk.f32.mxu0 %vm284_vm3, %v8959_v47  ;;  %v15726_v47 = vld [vmem:[%s21234_s4 + $0x760] sm:$0xff] }
0x3c6a   :  { %v17715_v23 = vpop.f32.mrf.mxu1 }
0x3c6b   :  { %v9140_v7 = vadd.f32 %v17715_v23, %v15698_v26 }
0x3c6c   :  { %v9134_v6 = vpop.f32.mrf.mxu1 }
0x3c6d   :  { %v9135_v58 = vadd.f32 %v15698_v26, %v9134_v6  ;;  %17723 = vmatprep.subr.mxu1 %v9140_v7  ;;  %v15721_v26 = vld [vmem:[%s21234_s4 + $0x6f8] sm:$0xff]  ;;  %v15720_v6 = vld [vmem:[%s21234_s4 + $0x6f0] sm:$0xff] }
0x3c6e   :  { %17724 = vmatpush3.msra.mxu1 %v9140_v7 }
0x3c6f   :  { %17725 = vmatprep.subr.mxu1 %v9135_v58 }
0x3c70   :  { %17726 = vmatpush3.msra.mxu1 %v9135_v58  ;;  %v15719_v58 = vld [vmem:[%s21234_s4 + $0x6e8] sm:$0xff] }
0x3c71   :  { %17735 = vmatprep.subr.mxu1 %v15713_v5 }
0x3d1e   :  { %v17682_v18 = vpop.f32.mrf.mxu0 }
0x3d1f   :  { %v20273_v17 = vadd.f32 %v17682_v18, %v8333_v9  ;;  %v15718_v9 = vld [vmem:[%s21234_s4 + $0x6e0] sm:$0xff] }
0x3d20   :  { %v8868_v53 = vpop.f32.mrf.mxu0 }
0x3d21   :  { %v20275_v43 = vadd.f32 %v8868_v53, %v8332_v8 }
0x3d26   :  { %v17704_v12 = vpop.f32.mrf.mxu0 }
0x3d27   :  { %v9052_v13 = vadd.f32 %v17704_v12, %v15690_v19  ;;  %v15731_v12 = vld [vmem:[%s21235_s5 + $0x3b] ss:$0 sm:$0xff] }
0x3d28   :  { %v9046_v52 = vpop.f32.mrf.mxu0 }
0x3d29   :  { %v9047_v35 = vadd.f32 %v15690_v19, %v9046_v52  ;;  %17716 = vmatprep.subr.msk.mxu0 %vm284_vm3, %v9052_v13 }
0x3d2a   :  { %17717 = vmatpush3.xpose.msk.msra.mxu0 %vm284_vm3, %v9052_v13 }
0x3d2b   :  { %17718 = vmatprep.subr.msk.mxu0 %vm284_vm3, %v9047_v35 }
0x3d2e   :  { %17719 = vmatpush3.xpose.msk.msra.mxu0 %vm284_vm3, %v9047_v35 }
0x3d2f   :  { %17730 = vmatprep.subr.mxu0 %v15707_v11 }
0x3d31   :  { %17721 = vmatmul.mubr.msk.f32.vlgmr.msra.gmra.mxu0 %vm284_vm3, %v8964_v36  ;;  %v15728_v36 = vld [vmem:[%s21234_s4 + $0x770] sm:$0xff] }
0x3d32   :  { %17731 = vmatpush3.msra.mxu0 %v15707_v11 }
0x3d33   :  { %17746 = vmatprep.subr.mxu0 %v15721_v26 }
0x3df1   :  { %v17722_v33 = vpop.f32.mrf.mxu0 }
0x3df2   :  { %v9231_v27 = vmul.f32 0.35355338, %v17722_v33 }
0x3df3   :  { %v9221_v37 = vpop.f32.mrf.mxu0 }
0x3df4   :  { %v9233_v39 = vmul.f32 %v20107_v42, %v9231_v27  ;;  %v9230_v40 = vmul.f32 0.35355338, %v9221_v37 }
0x3df6   :  { %v9232_v1 = vmul.f32 %v20113_v25, %v9230_v40  ;;  %v9235_v49 = vadd.f32 %v9233_v39, %v20109_v56 }
0x3df8   :  { %v9239_v50 = vsel %vm926_vm8, %v9235_v49, -inf  ;;  %v9234_v51 = vadd.f32 %v9232_v1, %v20115_v4  ;;  %v15723_v1 = vld [vmem:[%s21235_s5 + $0x37] ss:$0 sm:$0xff] }
0x3df9   :  { %9240 = vmax.xlane.f32.xlu0 %v9239_v50 }
0x3dfa   :  { %v9236_v54 = vsel %vm926_vm8, %v9234_v51, -inf }
0x3dfb   :  { %9237 = vmax.xlane.f32.xlu1 %v9236_v54 }
0x3e82   :  { %v9241_v55 = vpop.xlane.xlu0 %9240 }
0x3e83   :  { %v9243_v14 = vsub.f32 %v9235_v49, %v9241_v55 }
0x3e84   :  { %v9238_v41 = vpop.xlane.xlu1 %9237 }
0x3e85   :  { %v9246_v45 = vmul.f32 1.442695, %v9243_v14  ;;  %v9242_v60 = vsub.f32 %v9234_v51, %v9238_v41 }
0x3e87   :  { %18425 = vpow2.f32 %v9246_v45  ;;  %v9244_v10 = vmul.f32 1.442695, %v9242_v60 }
0x3e89   :  { %18427 = vpow2.f32 %v9244_v10 }
0x3e94   :  { %v18426_v48 = vpop.eup %18425 }
0x3e95   :  { %v9251_v63 = vsel %vm926_vm8, %v18426_v48, 0.0 }
0x3e96   :  { %v18428_v2 = vpop.eup %18427  ;;  %9252 = vadd.xlane.f32.xlu0 %v9251_v63 }
0x3e97   :  { %v9248_v0 = vsel %vm926_vm8, %v18428_v2, 0.0 }
0x3e98   :  { %9249 = vadd.xlane.f32.xlu1 %v9248_v0 }
0x3f1f   :  { %v9253_v62 = vpop.xlane.xlu0 %9252 }
0x3f20   :  { %18429 = vrcp.f32 %v9253_v62 }
0x3f21   :  { %v9250_v61 = vpop.xlane.xlu1 %9249 }
0x3f22   :  { %18431 = vrcp.f32 %v9250_v61 }
0x3f2d   :  { %v18430_v20 = vpop.eup %18429 }
0x3f2e   :  { %v9257_v24 = vmul.f32 %v18430_v20, %v18426_v48 }
0x3f2f   :  { %v18432_v46 = vpop.eup %18431 }
0x3f30   :  { %v9255_v22 = vmul.f32 %v18432_v46, %v18428_v2 }
0x3f32   :  { %17727 = vmatprep.mubr.msk.f32.mxu1 %vm926_vm8, %v9255_v22 }
0x3f33   :  { %17728 = vmatmul.mubr.msk.f32.vlgmr.msra.gmra.mxu1 %vm926_vm8, %v9257_v24 }
0x3f34   :  { %17736 = vmatpush3.msra.mxu1 %v15713_v5  ;;  %17743 = vmatprep.mubr.msk.f32.mxu1 %vm199_vm2, %v20053_v59 }
0x3f35   :  { %17737 = vmatprep.subr.mxu1 %v15712_v15 }
0x3f36   :  { %17738 = vmatpush3.msra.mxu1 %v15712_v15  ;;  %v15740_v15 = vld [vmem:[%s21236_s6 + $0x98] sm:$0xff] }
0x3f37   :  { %17739 = vmatprep.subr.mxu1 %v15711_v16 }
0x3f38   :  { %17740 = vmatpush3.msra.mxu1 %v15711_v16 }
0x3f39   :  { %17741 = vmatprep.subr.mxu1 %v15710_v21 }
0x3f3a   :  { %17742 = vmatpush3.msra.mxu1 %v15710_v21 }
0x3f3b   :  { %17744 = vmatmul.mubr.msk.f32.vlgmr.msra.gmra.mxu1 %vm199_vm2, %v20055_v57  ;;  %17757 = vmatprep.subr.mxu1 %v15729_v3 }
0x3f3c   :  { %17758 = vmatpush3.msra.mxu1 %v15729_v3  ;;  %17765 = vmatprep.mubr.msk.f32.mxu1 %vm199_vm2, %v20024_v38 }
0x3f3d   :  { %17759 = vmatprep.subr.mxu1 %v15728_v36 }
0x3f3e   :  { %17760 = vmatpush3.msra.mxu1 %v15728_v36 }
0x3f3f   :  { %17761 = vmatprep.subr.mxu1 %v15727_v44 }
0x3f40   :  { %17762 = vmatpush3.msra.mxu1 %v15727_v44 }
0x3f41   :  { %17763 = vmatprep.subr.mxu1 %v15726_v47 }
0x3f42   :  { %17764 = vmatpush3.msra.mxu1 %v15726_v47 }
0x3f43   :  { %17766 = vmatmul.mubr.msk.f32.vlgmr.msra.gmra.mxu1 %vm199_vm2, %v20026_v34 }
0x3ff3   :  { %v17729_v23 = vpop.f32.mrf.mxu1 }
0x3ff5   :  { %v9330_v7 = vpop.f32.mrf.mxu1 }
0x3ff6   :  { %17732 = vmatprep.mubr.msk.f32.mxu0 %vm284_vm3, %v9330_v7 }
0x3ff7   :  { %17733 = vmatmul.mubr.msk.f32.vlgmr.msra.gmra.mxu0 %vm284_vm3, %v17729_v23 }
0x3ff8   :  { %17747 = vmatpush3.msra.mxu0 %v15721_v26  ;;  %17754 = vmatprep.mubr.msk.f32.mxu0 %vm199_vm2, %v20024_v38 }
0x3ff9   :  { %17748 = vmatprep.subr.mxu0 %v15720_v6 }
0x3ffa   :  { %17749 = vmatpush3.msra.mxu0 %v15720_v6 }
0x3ffb   :  { %v17745_v18 = vpop.f32.mrf.mxu1  ;;  %17750 = vmatprep.subr.mxu0 %v15719_v58 }
0x3ffc   :  { %v9509_v8 = vadd.f32 %v17745_v18, %v15715_v29  ;;  %17751 = vmatpush3.msra.mxu0 %v15719_v58 }
0x3ffd   :  { %v9503_v53 = vpop.f32.mrf.mxu1  ;;  %17752 = vmatprep.subr.mxu0 %v15718_v9 }
0x3ffe   :  { %v9504_v19 = vadd.f32 %v15715_v29, %v9503_v53  ;;  %17753 = vmatpush3.msra.mxu0 %v15718_v9 }
0x3fff   :  { %17755 = vmatmul.mubr.msk.f32.vlgmr.msra.gmra.mxu0 %vm199_vm2, %v20026_v34 }
0x4000   :  { %17772 = vmatprep.mubr.msk.f32.mxu0 %vm284_vm3, %v9504_v19 }
0x4003   :  { %v17767_v13 = vpop.f32.mrf.mxu1 }
0x4004   :  { %v9685_v52 = vadd.f32 %v17767_v13, %v15731_v12 }
0x4005   :  { %v9679_v35 = vpop.f32.mrf.mxu1 }
0x4006   :  { %v9680_v33 = vadd.f32 %v15731_v12, %v9679_v35  ;;  %17775 = vmatprep.subr.mxu1 %v9685_v52 }
0x4007   :  { %17776 = vmatpush3.msra.mxu1 %v9685_v52 }
0x4008   :  { %17777 = vmatprep.subr.mxu1 %v9680_v33 }
0x4009   :  { %17778 = vmatpush3.msra.mxu1 %v9680_v33 }
0x40b7   :  { %v17734_v27 = vpop.f32.mrf.mxu0 }
0x40b8   :  { %v9423_v37 = vadd.f32 %v17734_v27, %v20273_v17 }
0x40b9   :  { %v9413_v39 = vpop.f32.mrf.mxu0 }
0x40ba   :  { %v9422_v40 = vadd.f32 %v9413_v39, %v20275_v43 }
0x40bf   :  { %v17756_v49 = vpop.f32.mrf.mxu0 }
0x40c0   :  { %v9597_v50 = vadd.f32 %v17756_v49, %v15723_v1  ;;  %v15747_v49 = vld [vmem:[%s21237_s7 + $0x40] sm:$0xff] }
0x40c1   :  { %v9591_v51 = vpop.f32.mrf.mxu0 }
0x40c2   :  { %v9592_v54 = vadd.f32 %v15723_v1, %v9591_v51  ;;  %17768 = vmatprep.subr.msk.mxu0 %vm284_vm3, %v9597_v50  ;;  %v15748_v1 = vld [vmem:[%s21237_s7 + $0x48] sm:$0xff]  ;;  %v15761_v51 = vld [vmem:[%s21239_s9 + $0xb0] sm:$0xff] }
0x40c3   :  { %17769 = vmatpush3.xpose.msk.msra.mxu0 %vm284_vm3, %v9597_v50  ;;  %v15762_v50 = vld [vmem:[%s21239_s9 + $0xb8] sm:$0xff] }
0x40c4   :  { %17770 = vmatprep.subr.msk.mxu0 %vm284_vm3, %v9592_v54 }
0x40c7   :  { %17771 = vmatpush3.xpose.msk.msra.mxu0 %vm284_vm3, %v9592_v54  ;;  %v15760_v54 = vld [vmem:[%s21239_s9 + $0xa8] sm:$0xff] }
0x40c8   :  { %17782 = vmatprep.subr.mxu0 %v15740_v15 }
0x40ca   :  { %17773 = vmatmul.mubr.msk.f32.vlgmr.msra.gmra.mxu0 %vm284_vm3, %v9509_v8 }
0x40cb   :  { %17783 = vmatpush3.msra.mxu0 %v15740_v15  ;;  %v15755_v15 = vld [vmem:[%s21239_s9 + $0x80] sm:$0xff] }
0x40cc   :  { %17798 = vmatprep.subr.mxu0 %v15762_v50 }
0x418a   :  { %v17774_v17 = vpop.f32.mrf.mxu0 }
0x418b   :  { %v9776_v43 = vmul.f32 0.35355338, %v17774_v17  ;;  %v15759_v17 = vld [vmem:[%s21239_s9 + $0xa0] sm:$0xff] }
0x418c   :  { %v9766_v55 = vpop.f32.mrf.mxu0 }
0x418d   :  { %v9778_v14 = vmul.f32 %v20107_v42, %v9776_v43  ;;  %v9775_v41 = vmul.f32 0.35355338, %v9766_v55 }
0x418f   :  { %v9777_v45 = vmul.f32 %v20113_v25, %v9775_v41  ;;  %v9780_v60 = vadd.f32 %v9778_v14, %v20109_v56 }
0x4191   :  { %v9784_v10 = vsel %vm926_vm8, %v9780_v60, -inf  ;;  %v9779_v48 = vadd.f32 %v9777_v45, %v20115_v4 }
0x4192   :  { %9785 = vmax.xlane.f32.xlu0 %v9784_v10 }
0x4193   :  { %v9781_v63 = vsel %vm926_vm8, %v9779_v48, -inf }
0x4194   :  { %9782 = vmax.xlane.f32.xlu1 %v9781_v63  ;;  %v15744_v63 = vld [vmem:[%s21242_s12 + $0x5] ss:$0 sm:$0xff] }
0x421b   :  { %v9786_v2 = vpop.xlane.xlu0 %9785 }
0x421c   :  { %v9788_v0 = vsub.f32 %v9780_v60, %v9786_v2 }
0x421d   :  { %v9783_v5 = vpop.xlane.xlu1 %9782 }
0x421e   :  { %v9791_v11 = vmul.f32 1.442695, %v9788_v0  ;;  %v9787_v62 = vsub.f32 %v9779_v48, %v9783_v5 }
0x4220   :  { %18433 = vpow2.f32 %v9791_v11  ;;  %v9789_v61 = vmul.f32 1.442695, %v9787_v62  ;;  %v15746_v62 = vld [vmem:[%s21242_s12 + $0xf] ss:$0 sm:$0xff] }
0x4222   :  { %18435 = vpow2.f32 %v9789_v61 }
0x422d   :  { %v18434_v20 = vpop.eup %18433 }
0x422e   :  { %v9796_v46 = vsel %vm926_vm8, %v18434_v20, 0.0 }
0x422f   :  { %v18436_v22 = vpop.eup %18435  ;;  %9797 = vadd.xlane.f32.xlu0 %v9796_v46  ;;  %v15758_v46 = vld [vmem:[%s21239_s9 + $0x98] sm:$0xff] }
0x4230   :  { %v9793_v24 = vsel %vm926_vm8, %v18436_v22, 0.0 }
0x4231   :  { %9794 = vadd.xlane.f32.xlu1 %v9793_v24  ;;  %v15756_v24 = vld [vmem:[%s21239_s9 + $0x88] sm:$0xff] }
0x42b8   :  { %v9798_v16 = vpop.xlane.xlu0 %9797 }
0x42b9   :  { %18437 = vrcp.f32 %v9798_v16  ;;  %v15752_v16 = vld [vmem:[%s21238_s8 + $0x2] ss:$0 sm:$0xff] }
0x42ba   :  { %v9795_v21 = vpop.xlane.xlu1 %9794 }
0x42bb   :  { %18439 = vrcp.f32 %v9795_v21 }
0x42c6   :  { %v18438_v3 = vpop.eup %18437 }
0x42c7   :  { %v9802_v47 = vmul.f32 %v18438_v3, %v18434_v20 }
0x42c8   :  { %v18440_v36 = vpop.eup %18439 }
0x42c9   :  { %v9800_v44 = vmul.f32 %v18440_v36, %v18436_v22  ;;  %v15757_v22 = vld [vmem:[%s21239_s9 + $0x90] sm:$0xff] }
0x42cb   :  { %17779 = vmatprep.mubr.msk.f32.mxu1 %vm926_vm8, %v9800_v44 }
0x42cc   :  { %17780 = vmatmul.mubr.msk.f32.vlgmr.msra.gmra.mxu1 %vm926_vm8, %v9802_v47 }
0x438c   :  { %v17781_v26 = vpop.f32.mrf.mxu1 }
0x438e   :  { %v9875_v23 = vpop.f32.mrf.mxu1 }
0x438f   :  { %17784 = vmatprep.mubr.msk.f32.mxu0 %vm284_vm3, %v9875_v23  ;;  %v15764_v23 = vld [vmem:[%s21242_s12 + $0x1c] ss:$0 sm:$0xff] }
0x4390   :  { %17785 = vmatmul.mubr.msk.f32.vlgmr.msra.gmra.mxu0 %vm284_vm3, %v17781_v26 }
0x4391   :  { %17799 = vmatpush3.msra.mxu0 %v15762_v50  ;;  %v15773_v50 = vld [vmem:[%s21234_s4 + $0x488] sm:$0xff] }
0x4392   :  { %17800 = vmatprep.subr.mxu0 %v15761_v51 }
0x4393   :  { %17801 = vmatpush3.msra.mxu0 %v15761_v51  ;;  %v15789_v51 = vld [vmem:[%s21234_s4 + $0x588] sm:$0xff] }
0x4394   :  { %17802 = vmatprep.subr.mxu0 %v15760_v54 }
0x4395   :  { %17803 = vmatpush3.msra.mxu0 %v15760_v54  ;;  %v15772_v54 = vld [vmem:[%s21234_s4 + $0x480] sm:$0xff] }
0x4396   :  { %17804 = vmatprep.subr.mxu0 %v15759_v17 }
0x4397   :  { %17805 = vmatpush3.msra.mxu0 %v15759_v17  ;;  %v15788_v17 = vld [vmem:[%s21234_s4 + $0x580] sm:$0xff] }
0x4398   :  { %17806 = vmatprep.subr.mxu0 %v15758_v46 }
0x4399   :  { %17807 = vmatpush3.msra.mxu0 %v15758_v46 }
0x439a   :  { %17808 = vmatprep.subr.mxu0 %v15757_v22 }
0x439b   :  { %17809 = vmatpush3.msra.mxu0 %v15757_v22  ;;  %v15782_v22 = vld [vmem:[%s21234_s4 + $0x510] sm:$0xff] }
0x439c   :  { %17810 = vmatprep.subr.mxu0 %v15756_v24 }
0x439d   :  { %17811 = vmatpush3.msra.mxu0 %v15756_v24  ;;  %v15781_v24 = vld [vmem:[%s21234_s4 + $0x508] sm:$0xff] }
0x439e   :  { %17812 = vmatprep.subr.mxu0 %v15755_v15 }
0x439f   :  { %17813 = vmatpush3.msra.mxu0 %v15755_v15  ;;  %v15780_v15 = vld [vmem:[%s21234_s4 + $0x500] sm:$0xff] }
0x4450   :  { %v17786_v7 = vpop.f32.mrf.mxu0 }
0x4451   :  { %v9968_v6 = vadd.f32 %v17786_v7, %v9423_v37 }
0x4452   :  { %v9958_v58 = vpop.f32.mrf.mxu0 }
0x4453   :  { %v9967_v29 = vadd.f32 %v9958_v58, %v9422_v40  ;;  %v9970_v9 = vadd.f32 %v9968_v6, %v20055_v57  ;;  %v15749_v40 = vld [vmem:[%s21237_s7 + $0x50] sm:$0xff] }
0x4455   :  { %v9969_v18 = vadd.f32 %v9967_v29, %v20053_v59  ;;  %v9974_v8 = vsel %vm199_vm2, %v9970_v9, 0.0  ;;  %v15750_v59 = vld [vmem:[%s21237_s7 + $0x58] sm:$0xff] }
0x4456   :  { %9975 = vadd.xlane.f32.xlu0 %v9974_v8  ;;  %17787 = vmatprep.subr.mxu1 %v15750_v59 }
0x4457   :  { %v9971_v53 = vsel %vm199_vm2, %v9969_v18, 0.0  ;;  %17788 = vmatpush3.msra.mxu1 %v15750_v59  ;;  %v15775_v59 = vld [vmem:[%s21234_s4 + $0x498] sm:$0xff] }
0x4458   :  { %9972 = vadd.xlane.f32.xlu1 %v9971_v53  ;;  %17789 = vmatprep.subr.mxu1 %v15749_v40 }
0x4459   :  { %17790 = vmatpush3.msra.mxu1 %v15749_v40  ;;  %v15791_v40 = vld [vmem:[%s21234_s4 + $0x598] sm:$0xff] }
0x445a   :  { %17791 = vmatprep.subr.mxu1 %v15748_v1  ;;  %17839 = vmatprep.subr.mxu0 %v15791_v40 }
0x445b   :  { %17792 = vmatpush3.msra.mxu1 %v15748_v1  ;;  %v15774_v1 = vld [vmem:[%s21234_s4 + $0x490] sm:$0xff] }
0x445c   :  { %17793 = vmatprep.subr.mxu1 %v15747_v49 }
0x445d   :  { %17794 = vmatpush3.msra.mxu1 %v15747_v49  ;;  %v15790_v49 = vld [vmem:[%s21234_s4 + $0x590] sm:$0xff] }
0x445e   :  { %17817 = vmatprep.subr.mxu1 %v15775_v59 }
0x44df   :  { %v9976_v19 = vpop.xlane.xlu0 %9975 }
0x44e0   :  { %v9978_v12 = vmul.f32 0.03125, %v9976_v19 }
0x44e1   :  { %v9973_v13 = vpop.xlane.xlu1 %9972 }
0x44e2   :  { %v9980_v52 = vsub.f32 %v9970_v9, %v9978_v12  ;;  %v9977_v35 = vmul.f32 0.03125, %v9973_v13 }
0x44e4   :  { %v9979_v33 = vsub.f32 %v9969_v18, %v9977_v35  ;;  %v9982_v27 = vmul.f32 %v9980_v52, %v9980_v52 }
0x44e6   :  { %v9986_v37 = vsel %vm199_vm2, %v9982_v27, 0.0  ;;  %v9981_v39 = vmul.f32 %v9979_v33, %v9979_v33 }
0x44e7   :  { %9987 = vadd.xlane.f32.xlu0 %v9986_v37 }
0x44e8   :  { %v9983_v57 = vsel %vm199_vm2, %v9981_v39, 0.0 }
0x44e9   :  { %9984 = vadd.xlane.f32.xlu1 %v9983_v57 }
0x4570   :  { %v9988_v43 = vpop.xlane.xlu0 %9987 }
0x4571   :  { %v9990_v55 = vmul.f32 0.03125, %v9988_v43  ;;  %v15783_v43 = vld [vmem:[%s21234_s4 + $0x518] sm:$0xff] }
0x4572   :  { %v9985_v14 = vpop.xlane.xlu1 %9984 }
0x4573   :  { %v9992_v41 = vadd.f32 1e-05, %v9990_v55  ;;  %v9989_v45 = vmul.f32 0.03125, %v9985_v14 }
0x4575   :  { %18441 = vrsqrt.f32 %v9992_v41  ;;  %v9991_v60 = vadd.f32 1e-05, %v9989_v45 }
0x4577   :  { %18443 = vrsqrt.f32 %v9991_v60 }
0x4582   :  { %v18442_v10 = vpop.eup %18441 }
0x4583   :  { %v9996_v48 = vmul.f32 %v18442_v10, %v9980_v52 }
0x4584   :  { %v18444_v2 = vpop.eup %18443 }
0x4585   :  { %v9995_v0 = vmul.f32 %v18444_v2, %v9979_v33  ;;  %v10006_v5 = vmul.f32 %v15744_v63, %v9996_v48 }
0x4587   :  { %v10005_v11 = vmul.f32 %v15744_v63, %v9995_v0  ;;  %v10016_v20 = vadd.f32 %v15746_v62, %v10006_v5  ;;  %v15768_v63 = vld [vmem:[%s21242_s12 + $0x6] ss:$0 sm:$0xff] }
0x4589   :  { %v10015_v61 = vadd.f32 %v15746_v62, %v10005_v11  ;;  %v15770_v62 = vld [vmem:[%s21242_s12 + $0x10] ss:$0 sm:$0xff] }
0x458b   :  { %17795 = vmatprep.mubr.msk.f32.mxu1 %vm199_vm2, %v10015_v61 }
0x458c   :  { %17796 = vmatmul.mubr.msk.f32.vlgmr.msra.gmra.mxu1 %vm199_vm2, %v10016_v20 }
0x458d   :  { %17818 = vmatpush3.msra.mxu1 %v15775_v59 }
0x458e   :  { %17819 = vmatprep.subr.mxu1 %v15774_v1 }
0x458f   :  { %17820 = vmatpush3.msra.mxu1 %v15774_v1 }
0x4590   :  { %17821 = vmatprep.subr.mxu1 %v15773_v50 }
0x4591   :  { %17822 = vmatpush3.msra.mxu1 %v15773_v50  ;;  %v15811_v50 = vld [vmem:[%s21235_s5 + $0x25] ss:$0 sm:$0xff] }
0x4592   :  { %17823 = vmatprep.subr.mxu1 %v15772_v54 }
0x4593   :  { %17824 = vmatpush3.msra.mxu1 %v15772_v54 }
0x4594   :  { %17828 = vmatprep.subr.mxu1 %v15783_v43 }
0x464c   :  { %v17797_v21 = vpop.f32.mrf.mxu1 }
0x464d   :  { %v10108_v3 = vadd.f32 %v17797_v21, %v15752_v16 }
0x464e   :  { %v10102_v36 = vpop.f32.mrf.mxu1 }
0x464f   :  { %v10103_v44 = vadd.f32 %v15752_v16, %v10102_v36  ;;  %v10112_v26 = vmax.f32 %v10108_v3, 0.0  ;;  %v15793_v16 = vld [vmem:[%s21235_s5 + $0x2c] ss:$0 sm:$0xff] }
0x4651   :  { %v10111_v47 = vmax.f32 %v10103_v44, 0.0  ;;  %v15777_v44 = vld [vmem:[%s21235_s5 + $0x24] ss:$0 sm:$0xff] }
0x4653   :  { %17814 = vmatprep.mubr.msk.f32.mxu0 %vm21248_vm13, %v10111_v47 }
0x4654   :  { %17815 = vmatmul.mubr.msk.f32.vlgmr.msra.gmra.mxu0 %vm21249_vm0, %v10112_v26 }
0x4655   :  { %17840 = vmatpush3.msra.mxu0 %v15791_v40 }
0x4656   :  { %17841 = vmatprep.subr.mxu0 %v15790_v49 }
0x4657   :  { %17842 = vmatpush3.msra.mxu0 %v15790_v49 }
0x4658   :  { %17843 = vmatprep.subr.mxu0 %v15789_v51 }
0x4659   :  { %17844 = vmatpush3.msra.mxu0 %v15789_v51 }
0x465a   :  { %17845 = vmatprep.subr.mxu0 %v15788_v17 }
0x465b   :  { %17846 = vmatpush3.msra.mxu0 %v15788_v17 }
0x4714   :  { %v17816_v7 = vpop.f32.mrf.mxu0 }
0x4715   :  { %v10208_v6 = vadd.f32 %v17816_v7, %v15764_v23 }
0x4716   :  { %v10202_v58 = vpop.f32.mrf.mxu0 }
0x4717   :  { %v10212_v29 = vadd.f32 %v10208_v6, %v10016_v20  ;;  %v10203_v9 = vadd.f32 %v15764_v23, %v10202_v58  ;;  %v15785_v6 = vld [vmem:[%s21235_s5 + $0x28] ss:$0 sm:$0xff] }
0x4719   :  { %v10211_v18 = vadd.f32 %v10203_v9, %v10015_v61  ;;  %v10216_v8 = vsel %vm199_vm2, %v10212_v29, 0.0 }
0x471a   :  { %10217 = vadd.xlane.f32.xlu0 %v10216_v8  ;;  %v15809_v8 = vld [vmem:[%s21234_s4 + $0x4b8] sm:$0xff] }
0x471b   :  { %v10213_v53 = vsel %vm199_vm2, %v10211_v18, 0.0 }
0x471c   :  { %10214 = vadd.xlane.f32.xlu1 %v10213_v53 }
0x47a3   :  { %v10218_v19 = vpop.xlane.xlu0 %10217 }
0x47a4   :  { %v10220_v12 = vmul.f32 0.03125, %v10218_v19  ;;  %v15808_v19 = vld [vmem:[%s21234_s4 + $0x4b0] sm:$0xff] }
0x47a5   :  { %v10215_v13 = vpop.xlane.xlu1 %10214 }
0x47a6   :  { %v10222_v52 = vsub.f32 %v10212_v29, %v10220_v12  ;;  %v10219_v35 = vmul.f32 0.03125, %v10215_v13  ;;  %v15807_v12 = vld [vmem:[%s21234_s4 + $0x4a8] sm:$0xff]  ;;  %v15806_v13 = vld [vmem:[%s21234_s4 + $0x4a0] sm:$0xff] }
0x47a8   :  { %v10221_v33 = vsub.f32 %v10211_v18, %v10219_v35  ;;  %v10224_v27 = vmul.f32 %v10222_v52, %v10222_v52  ;;  %v15824_v35 = vld [vmem:[%s21234_s4 + $0x5b0] sm:$0xff] }
0x47aa   :  { %v10228_v37 = vsel %vm199_vm2, %v10224_v27, 0.0  ;;  %v10223_v39 = vmul.f32 %v10221_v33, %v10221_v33  ;;  %v15822_v27 = vld [vmem:[%s21234_s4 + $0x5a0] sm:$0xff] }
0x47ab   :  { %10229 = vadd.xlane.f32.xlu0 %v10228_v37 }
0x47ac   :  { %v10225_v57 = vsel %vm199_vm2, %v10223_v39, 0.0 }
0x47ad   :  { %10226 = vadd.xlane.f32.xlu1 %v10225_v57 }
0x4834   :  { %v10230_v55 = vpop.xlane.xlu0 %10229 }
0x4835   :  { %v10232_v14 = vmul.f32 0.03125, %v10230_v55 }
0x4836   :  { %v10227_v41 = vpop.xlane.xlu1 %10226 }
0x4837   :  { %v10234_v45 = vadd.f32 1e-05, %v10232_v14  ;;  %v10231_v60 = vmul.f32 0.03125, %v10227_v41  ;;  %v15827_v41 = vld [vmem:[%s21235_s5 + $0x2d] ss:$0 sm:$0xff] }
0x4839   :  { %18445 = vrsqrt.f32 %v10234_v45  ;;  %v10233_v10 = vadd.f32 1e-05, %v10231_v60 }
0x483b   :  { %18447 = vrsqrt.f32 %v10233_v10 }
0x4846   :  { %v18446_v48 = vpop.eup %18445 }
0x4847   :  { %v10238_v2 = vmul.f32 %v18446_v48, %v10222_v52  ;;  %v15825_v52 = vld [vmem:[%s21234_s4 + $0x5b8] sm:$0xff] }
0x4848   :  { %v18448_v0 = vpop.eup %18447 }
0x4849   :  { %v10237_v5 = vmul.f32 %v18448_v0, %v10221_v33  ;;  %v10248_v11 = vmul.f32 %v15768_v63, %v10238_v2  ;;  %v15823_v33 = vld [vmem:[%s21234_s4 + $0x5a8] sm:$0xff] }
0x484b   :  { %v10247_v61 = vmul.f32 %v15768_v63, %v10237_v5  ;;  %v20477_v46 = vadd.f32 %v15770_v62, %v10248_v11 }
0x484d   :  { %v20475_v20 = vadd.f32 %v15770_v62, %v10247_v61 }
0x484f   :  { %17825 = vmatprep.mubr.msk.f32.mxu1 %vm199_vm2, %v20475_v20  ;;  %17847 = vmatprep.mubr.msk.f32.mxu0 %vm199_vm2, %v20475_v20 }
0x4850   :  { %17826 = vmatmul.mubr.msk.f32.vlgmr.msra.gmra.mxu1 %vm199_vm2, %v20477_v46  ;;  %17848 = vmatmul.mubr.msk.f32.vlgmr.msra.gmra.mxu0 %vm199_vm2, %v20477_v46 }
0x4851   :  { %17829 = vmatpush3.msra.mxu1 %v15783_v43  ;;  %17836 = vmatprep.mubr.msk.f32.mxu1 %vm199_vm2, %v20475_v20 }
0x4852   :  { %17830 = vmatprep.subr.mxu1 %v15782_v22 }
0x4853   :  { %17831 = vmatpush3.msra.mxu1 %v15782_v22 }
0x4854   :  { %17832 = vmatprep.subr.mxu1 %v15781_v24 }
0x4855   :  { %17833 = vmatpush3.msra.mxu1 %v15781_v24 }
0x4856   :  { %17834 = vmatprep.subr.mxu1 %v15780_v15 }
0x4857   :  { %17835 = vmatpush3.msra.mxu1 %v15780_v15 }
0x4858   :  { %17837 = vmatmul.mubr.msk.f32.vlgmr.msra.gmra.mxu1 %vm199_vm2, %v20477_v46 }
0x4910   :  { %v17827_v21 = vpop.f32.mrf.mxu1  ;;  %v17849_v3 = vpop.f32.mrf.mxu0 }
0x4911   :  { %v10528_v36 = vadd.f32 %v17849_v3, %v15793_v16  ;;  %v10352_v53 = vadd.f32 %v17827_v21, %v15777_v44 }
0x4912   :  { %v10346_v47 = vpop.f32.mrf.mxu1  ;;  %v10522_v26 = vpop.f32.mrf.mxu0 }
0x4913   :  { %v10347_v23 = vadd.f32 %v15777_v44, %v10346_v47  ;;  %v10523_v7 = vadd.f32 %v15793_v16, %v10522_v26  ;;  %17857 = vmatprep.subr.mxu0 %v10528_v36  ;;  %v15802_v16 = vld [vmem:[%s21236_s6 + $0x60] sm:$0xff] }
0x4914   :  { %17858 = vmatpush3.msra.mxu0 %v10528_v36 }
0x4915   :  { %17854 = vmatprep.mubr.msk.f32.mxu1 %vm284_vm3, %v10347_v23  ;;  %17859 = vmatprep.subr.mxu0 %v10523_v7  ;;  %v15817_v23 = vld [vmem:[%s21234_s4 + $0x538] sm:$0xff] }
0x4916   :  { %17860 = vmatpush3.msra.mxu0 %v10523_v7 }
0x4917   :  { %17864 = vmatprep.subr.mxu0 %v15802_v16 }
0x4918   :  { %v17838_v58 = vpop.f32.mrf.mxu1 }
0x4919   :  { %v10440_v29 = vadd.f32 %v17838_v58, %v15785_v6  ;;  %v15816_v58 = vld [vmem:[%s21234_s4 + $0x530] sm:$0xff] }
0x491a   :  { %v10434_v9 = vpop.f32.mrf.mxu1 }
0x491b   :  { %v10435_v18 = vadd.f32 %v15785_v6, %v10434_v9  ;;  %17850 = vmatprep.subr.msk.mxu1 %vm284_vm3, %v10440_v29  ;;  %v15814_v9 = vld [vmem:[%s21234_s4 + $0x520] sm:$0xff] }
0x491c   :  { %17851 = vmatpush3.xpose.msk.msra.mxu1 %vm284_vm3, %v10440_v29  ;;  %v15815_v29 = vld [vmem:[%s21234_s4 + $0x528] sm:$0xff] }
0x491d   :  { %17852 = vmatprep.subr.msk.mxu1 %vm284_vm3, %v10435_v18 }
0x4920   :  { %17853 = vmatpush3.xpose.msk.msra.mxu1 %vm284_vm3, %v10435_v18 }
0x4921   :  { %17869 = vmatprep.subr.mxu1 %v15809_v8 }
0x4923   :  { %17855 = vmatmul.mubr.msk.f32.vlgmr.msra.gmra.mxu1 %vm284_vm3, %v10352_v53 }
0x4924   :  { %17870 = vmatpush3.msra.mxu1 %v15809_v8  ;;  %17877 = vmatprep.mubr.msk.f32.mxu1 %vm199_vm2, %v20475_v20 }
0x4925   :  { %17871 = vmatprep.subr.mxu1 %v15808_v19 }
0x4926   :  { %17872 = vmatpush3.msra.mxu1 %v15808_v19  ;;  %v15819_v19 = vld [vmem:[%s21235_s5 + $0x29] ss:$0 sm:$0xff] }
0x4927   :  { %17873 = vmatprep.subr.mxu1 %v15807_v12 }
0x4928   :  { %17874 = vmatpush3.msra.mxu1 %v15807_v12 }
0x4929   :  { %17875 = vmatprep.subr.mxu1 %v15806_v13 }
0x492a   :  { %17876 = vmatpush3.msra.mxu1 %v15806_v13 }
0x492b   :  { %17878 = vmatmul.mubr.msk.f32.vlgmr.msra.gmra.mxu1 %vm199_vm2, %v20477_v46  ;;  %17891 = vmatprep.subr.mxu1 %v15825_v52 }
0x492c   :  { %17892 = vmatpush3.msra.mxu1 %v15825_v52  ;;  %17899 = vmatprep.mubr.msk.f32.mxu1 %vm199_vm2, %v20475_v20 }
0x492d   :  { %17893 = vmatprep.subr.mxu1 %v15824_v35 }
0x492e   :  { %17894 = vmatpush3.msra.mxu1 %v15824_v35 }
0x492f   :  { %17895 = vmatprep.subr.mxu1 %v15823_v33 }
0x4930   :  { %17896 = vmatpush3.msra.mxu1 %v15823_v33 }
0x4931   :  { %17897 = vmatprep.subr.mxu1 %v15822_v27 }
0x4932   :  { %17898 = vmatpush3.msra.mxu1 %v15822_v27 }
0x4933   :  { %17900 = vmatmul.mubr.msk.f32.vlgmr.msra.gmra.mxu1 %vm199_vm2, %v20477_v46 }
0x49e3   :  { %v17856_v37 = vpop.f32.mrf.mxu1 }
0x49e4   :  { %v10619_v39 = vmul.f32 0.35355338, %v17856_v37 }
0x49e5   :  { %v10609_v57 = vpop.f32.mrf.mxu1 }
0x49e6   :  { %v10621_v59 = vmul.f32 %v19739_v28, %v10619_v39  ;;  %v10618_v40 = vmul.f32 0.35355338, %v10609_v57 }
0x49e8   :  { %v10620_v1 = vmul.f32 %v19745_v31, %v10618_v40  ;;  %v10623_v49 = vadd.f32 %v10621_v59, %v19741_v30 }
0x49ea   :  { %v10627_v51 = vsel %vm926_vm8, %v10623_v49, -inf  ;;  %v10622_v54 = vadd.f32 %v10620_v1, %v19747_v32 }
0x49eb   :  { %10628 = vmax.xlane.f32.xlu0 %v10627_v51  ;;  %v17879_v17 = vpop.f32.mrf.mxu1 }
0x49ec   :  { %v20555_v43 = vadd.f32 %v17879_v17, %v15811_v50  ;;  %v10624_v55 = vsel %vm926_vm8, %v10622_v54, -inf }
0x49ed   :  { %10625 = vmax.xlane.f32.xlu1 %v10624_v55  ;;  %v10897_v14 = vpop.f32.mrf.mxu1 }
0x49ee   :  { %v10898_v18 = vadd.f32 %v15811_v50, %v10897_v14 }
0x49f3   :  { %v17901_v45 = vpop.f32.mrf.mxu1 }
0x49f4   :  { %v11079_v60 = vadd.f32 %v17901_v45, %v15827_v41 }
0x49f5   :  { %v11073_v10 = vpop.f32.mrf.mxu1 }
0x49f6   :  { %v11074_v48 = vadd.f32 %v15827_v41, %v11073_v10  ;;  %17909 = vmatprep.subr.mxu1 %v11079_v60 }
0x49f7   :  { %17910 = vmatpush3.msra.mxu1 %v11079_v60 }
0x49f8   :  { %17911 = vmatprep.subr.mxu1 %v11074_v48 }
0x49f9   :  { %17912 = vmatpush3.msra.mxu1 %v11074_v48  ;;  %v15842_v48 = vld [vmem:[%s21234_s4 + $0x4d8] sm:$0xff] }
0x49fa   :  { %17921 = vmatprep.subr.mxu1 %v15842_v48 }
0x4a74   :  { %v10629_v63 = vpop.xlane.xlu0 %10628 }
0x4a75   :  { %v10631_v2 = vsub.f32 %v10623_v49, %v10629_v63  ;;  %v15836_v63 = vld [vmem:[%s21236_s6 + $0x68] sm:$0xff] }
0x4a76   :  { %v10626_v0 = vpop.xlane.xlu1 %10625 }
0x4a77   :  { %v10634_v5 = vmul.f32 1.442695, %v10631_v2  ;;  %v10630_v11 = vsub.f32 %v10622_v54, %v10626_v0 }
0x4a79   :  { %18449 = vpow2.f32 %v10634_v5  ;;  %v10632_v62 = vmul.f32 1.442695, %v10630_v11 }
0x4a7b   :  { %18451 = vpow2.f32 %v10632_v62 }
0x4a86   :  { %v18450_v61 = vpop.eup %18449 }
0x4a87   :  { %v10639_v22 = vsel %vm926_vm8, %v18450_v61, 0.0 }
0x4a88   :  { %v18452_v24 = vpop.eup %18451  ;;  %10640 = vadd.xlane.f32.xlu0 %v10639_v22  ;;  %v15841_v22 = vld [vmem:[%s21234_s4 + $0x4d0] sm:$0xff] }
0x4a89   :  { %v10636_v15 = vsel %vm926_vm8, %v18452_v24, 0.0 }
0x4a8a   :  { %10637 = vadd.xlane.f32.xlu1 %v10636_v15  ;;  %v15839_v15 = vld [vmem:[%s21234_s4 + $0x4c0] sm:$0xff] }
0x4b11   :  { %v10641_v21 = vpop.xlane.xlu0 %10640 }
0x4b12   :  { %18453 = vrcp.f32 %v10641_v21  ;;  %v15857_v21 = vld [vmem:[%s21234_s4 + $0x5d0] sm:$0xff] }
0x4b13   :  { %v10638_v3 = vpop.xlane.xlu1 %10637 }
0x4b14   :  { %18455 = vrcp.f32 %v10638_v3  ;;  %v15856_v3 = vld [vmem:[%s21234_s4 + $0x5c8] sm:$0xff] }
0x4b1f   :  { %v18454_v36 = vpop.eup %18453 }
0x4b20   :  { %v10645_v26 = vmul.f32 %v18454_v36, %v18450_v61  ;;  %v15855_v36 = vld [vmem:[%s21234_s4 + $0x5c0] sm:$0xff] }
0x4b21   :  { %v18456_v44 = vpop.eup %18455 }
0x4b22   :  { %v10643_v47 = vmul.f32 %v18456_v44, %v18452_v24  ;;  %v15840_v24 = vld [vmem:[%s21234_s4 + $0x4c8] sm:$0xff]  ;;  %v15850_v44 = vld [vmem:[%s21234_s4 + $0x558] sm:$0xff] }
0x4b24   :  { %17861 = vmatprep.mubr.msk.f32.mxu0 %vm926_vm8, %v10643_v47 }
0x4b25   :  { %17862 = vmatmul.mubr.msk.f32.vlgmr.msra.gmra.mxu0 %vm926_vm8, %v10645_v26 }
0x4b26   :  { %17865 = vmatpush3.msra.mxu0 %v15802_v16  ;;  %v15858_v16 = vld [vmem:[%s21234_s4 + $0x5d8] sm:$0xff] }
0x4b27   :  { %17880 = vmatprep.subr.mxu0 %v15817_v23 }
0x4be5   :  { %v17863_v7 = vpop.f32.mrf.mxu0 }
0x4be7   :  { %v10718_v6 = vpop.f32.mrf.mxu0 }
0x4be8   :  { %17866 = vmatprep.mubr.msk.f32.mxu0 %vm284_vm3, %v10718_v6  ;;  %v15844_v6 = vld [vmem:[%s21235_s5 + $0x26] ss:$0 sm:$0xff] }
0x4be9   :  { %17867 = vmatmul.mubr.msk.f32.vlgmr.msra.gmra.mxu0 %vm284_vm3, %v17863_v7  ;;  %v15848_v7 = vld [vmem:[%s21234_s4 + $0x548] sm:$0xff] }
0x4bea   :  { %17881 = vmatpush3.msra.mxu0 %v15817_v23  ;;  %17888 = vmatprep.mubr.msk.f32.mxu0 %vm199_vm2, %v20475_v20  ;;  %v15849_v23 = vld [vmem:[%s21234_s4 + $0x550] sm:$0xff] }
0x4beb   :  { %17882 = vmatprep.subr.mxu0 %v15816_v58 }
0x4bec   :  { %17883 = vmatpush3.msra.mxu0 %v15816_v58  ;;  %v15847_v58 = vld [vmem:[%s21234_s4 + $0x540] sm:$0xff] }
0x4bed   :  { %17884 = vmatprep.subr.mxu0 %v15815_v29 }
0x4bee   :  { %17885 = vmatpush3.msra.mxu0 %v15815_v29 }
0x4bef   :  { %17886 = vmatprep.subr.mxu0 %v15814_v9 }
0x4bf0   :  { %17887 = vmatpush3.msra.mxu0 %v15814_v9 }
0x4bf1   :  { %17889 = vmatmul.mubr.msk.f32.vlgmr.msra.gmra.mxu0 %vm199_vm2, %v20477_v46 }
0x4bf2   :  { %17906 = vmatprep.mubr.msk.f32.mxu0 %vm284_vm3, %v10898_v18 }
0x4ca9   :  { %v20587_v8 = vpop.f32.mrf.mxu0 }
0x4cab   :  { %v20589_v53 = vpop.f32.mrf.mxu0 }
0x4cb1   :  { %v17890_v12 = vpop.f32.mrf.mxu0 }
0x4cb2   :  { %v10991_v13 = vadd.f32 %v17890_v12, %v15819_v19  ;;  %v15860_v12 = vld [vmem:[%s21235_s5 + $0x2e] ss:$0 sm:$0xff] }
0x4cb3   :  { %v10985_v52 = vpop.f32.mrf.mxu0 }
0x4cb4   :  { %v10986_v35 = vadd.f32 %v15819_v19, %v10985_v52  ;;  %17902 = vmatprep.subr.msk.mxu0 %vm284_vm3, %v10991_v13 }
0x4cb5   :  { %17903 = vmatpush3.xpose.msk.msra.mxu0 %vm284_vm3, %v10991_v13 }
0x4cb6   :  { %17904 = vmatprep.subr.msk.mxu0 %vm284_vm3, %v10986_v35 }
0x4cb9   :  { %17905 = vmatpush3.xpose.msk.msra.mxu0 %vm284_vm3, %v10986_v35 }
0x4cba   :  { %17916 = vmatprep.subr.mxu0 %v15836_v63 }
0x4cbc   :  { %17907 = vmatmul.mubr.msk.f32.vlgmr.msra.gmra.mxu0 %vm284_vm3, %v20555_v43 }
0x4cbd   :  { %17917 = vmatpush3.msra.mxu0 %v15836_v63 }
0x4cbe   :  { %17932 = vmatprep.subr.mxu0 %v15850_v44 }
0x4d7c   :  { %v17908_v33 = vpop.f32.mrf.mxu0 }
0x4d7d   :  { %v11170_v27 = vmul.f32 0.35355338, %v17908_v33 }
0x4d7e   :  { %v11160_v37 = vpop.f32.mrf.mxu0 }
0x4d7f   :  { %v11172_v39 = vmul.f32 %v19739_v28, %v11170_v27  ;;  %v11169_v57 = vmul.f32 0.35355338, %v11160_v37  ;;  %v15805_v27 = vld [vmem:[%s21242_s12 + $0x17] ss:$0 sm:$0xff] }
0x4d80   :  { %v10817_v37 = vadd.f32 %v20587_v8, %v15805_v27 }
0x4d81   :  { %v11171_v59 = vmul.f32 %v19745_v31, %v11169_v57  ;;  %v11174_v40 = vadd.f32 %v11172_v39, %v19741_v30  ;;  %v10816_v57 = vadd.f32 %v15805_v27, %v20589_v53  ;;  %v15877_v27 = vld [vmem:[%s21235_s5 + $0x27] ss:$0 sm:$0xff] }
0x4d83   :  { %v11178_v1 = vsel %vm926_vm8, %v11174_v40, -inf  ;;  %v11173_v49 = vadd.f32 %v11171_v59, %v19747_v32 }
0x4d84   :  { %11179 = vmax.xlane.f32.xlu0 %v11178_v1 }
0x4d85   :  { %v11175_v50 = vsel %vm926_vm8, %v11173_v49, -inf }
0x4d86   :  { %11176 = vmax.xlane.f32.xlu1 %v11175_v50 }
0x4e0d   :  { %v11180_v51 = vpop.xlane.xlu0 %11179 }
0x4e0e   :  { %v11182_v54 = vsub.f32 %v11174_v40, %v11180_v51 }
0x4e0f   :  { %v11177_v17 = vpop.xlane.xlu1 %11176 }
0x4e10   :  { %v11185_v43 = vmul.f32 1.442695, %v11182_v54  ;;  %v11181_v55 = vsub.f32 %v11173_v49, %v11177_v17  ;;  %v15852_v49 = vld [vmem:[%s21235_s5 + $0x2a] ss:$0 sm:$0xff] }
0x4e12   :  { %18457 = vpow2.f32 %v11185_v43  ;;  %v11183_v14 = vmul.f32 1.442695, %v11181_v55 }
0x4e14   :  { %18459 = vpow2.f32 %v11183_v14 }
0x4e1f   :  { %v18458_v41 = vpop.eup %18457 }
0x4e20   :  { %v11190_v45 = vsel %vm926_vm8, %v18458_v41, 0.0 }
0x4e21   :  { %v18460_v60 = vpop.eup %18459  ;;  %11191 = vadd.xlane.f32.xlu0 %v11190_v45 }
0x4e22   :  { %v11187_v10 = vsel %vm926_vm8, %v18460_v60, 0.0 }
0x4e23   :  { %11188 = vadd.xlane.f32.xlu1 %v11187_v10 }
0x4eaa   :  { %v11192_v2 = vpop.xlane.xlu0 %11191 }
0x4eab   :  { %18461 = vrcp.f32 %v11192_v2 }
0x4eac   :  { %v11189_v0 = vpop.xlane.xlu1 %11188 }
0x4ead   :  { %18463 = vrcp.f32 %v11189_v0 }
0x4eb8   :  { %v18462_v5 = vpop.eup %18461 }
0x4eb9   :  { %v11196_v61 = vmul.f32 %v18462_v5, %v18458_v41 }
0x4eba   :  { %v18464_v11 = vpop.eup %18463 }
0x4ebb   :  { %v11194_v62 = vmul.f32 %v18464_v11, %v18460_v60 }
0x4ebd   :  { %17913 = vmatprep.mubr.msk.f32.mxu1 %vm926_vm8, %v11194_v62 }
0x4ebe   :  { %17914 = vmatmul.mubr.msk.f32.vlgmr.msra.gmra.mxu1 %vm926_vm8, %v11196_v61 }
0x4ebf   :  { %17922 = vmatpush3.msra.mxu1 %v15842_v48  ;;  %17929 = vmatprep.mubr.msk.f32.mxu1 %vm199_vm2, %v20475_v20 }
0x4ec0   :  { %17923 = vmatprep.subr.mxu1 %v15841_v22 }
0x4ec1   :  { %17924 = vmatpush3.msra.mxu1 %v15841_v22 }
0x4ec2   :  { %17925 = vmatprep.subr.mxu1 %v15840_v24 }
0x4ec3   :  { %17926 = vmatpush3.msra.mxu1 %v15840_v24 }
0x4ec4   :  { %17927 = vmatprep.subr.mxu1 %v15839_v15 }
0x4ec5   :  { %17928 = vmatpush3.msra.mxu1 %v15839_v15 }
0x4ec6   :  { %17930 = vmatmul.mubr.msk.f32.vlgmr.msra.gmra.mxu1 %vm199_vm2, %v20477_v46  ;;  %17943 = vmatprep.subr.mxu1 %v15858_v16 }
0x4ec7   :  { %17944 = vmatpush3.msra.mxu1 %v15858_v16  ;;  %17951 = vmatprep.mubr.msk.f32.mxu1 %vm199_vm2, %v20475_v20  ;;  %v15875_v16 = vld [vmem:[%s21234_s4 + $0x4f8] sm:$0xff] }
0x4ec8   :  { %17945 = vmatprep.subr.mxu1 %v15857_v21 }
0x4ec9   :  { %17946 = vmatpush3.msra.mxu1 %v15857_v21  ;;  %v15869_v21 = vld [vmem:[%s21236_s6 + $0x70] sm:$0xff] }
0x4eca   :  { %17947 = vmatprep.subr.mxu1 %v15856_v3 }
0x4ecb   :  { %17948 = vmatpush3.msra.mxu1 %v15856_v3 }
0x4ecc   :  { %17949 = vmatprep.subr.mxu1 %v15855_v36 }
0x4ecd   :  { %17950 = vmatpush3.msra.mxu1 %v15855_v36 }
0x4ece   :  { %17952 = vmatmul.mubr.msk.f32.vlgmr.msra.gmra.mxu1 %vm199_vm2, %v20477_v46 }
0x4f7e   :  { %v17915_v47 = vpop.f32.mrf.mxu1 }
0x4f80   :  { %v11269_v26 = vpop.f32.mrf.mxu1 }
0x4f81   :  { %17918 = vmatprep.mubr.msk.f32.mxu0 %vm284_vm3, %v11269_v26 }
0x4f82   :  { %17919 = vmatmul.mubr.msk.f32.vlgmr.msra.gmra.mxu0 %vm284_vm3, %v17915_v47 }
0x4f83   :  { %17933 = vmatpush3.msra.mxu0 %v15850_v44  ;;  %17940 = vmatprep.mubr.msk.f32.mxu0 %vm199_vm2, %v20475_v20 }
0x4f84   :  { %17934 = vmatprep.subr.mxu0 %v15849_v23 }
0x4f85   :  { %17935 = vmatpush3.msra.mxu0 %v15849_v23 }
0x4f86   :  { %v17931_v29 = vpop.f32.mrf.mxu1  ;;  %17936 = vmatprep.subr.mxu0 %v15848_v7 }
0x4f87   :  { %v11448_v9 = vadd.f32 %v17931_v29, %v15844_v6  ;;  %17937 = vmatpush3.msra.mxu0 %v15848_v7  ;;  %v15874_v7 = vld [vmem:[%s21234_s4 + $0x4f0] sm:$0xff]  ;;  %v15891_v29 = vld [vmem:[%s21234_s4 + $0x5f8] sm:$0xff] }
0x4f88   :  { %v11442_v18 = vpop.f32.mrf.mxu1  ;;  %17938 = vmatprep.subr.mxu0 %v15847_v58 }
0x4f89   :  { %v11443_v19 = vadd.f32 %v15844_v6, %v11442_v18  ;;  %17939 = vmatpush3.msra.mxu0 %v15847_v58  ;;  %v15873_v6 = vld [vmem:[%s21234_s4 + $0x4e8] sm:$0xff]  ;;  %v15872_v58 = vld [vmem:[%s21234_s4 + $0x4e0] sm:$0xff] }
0x4f8a   :  { %17941 = vmatmul.mubr.msk.f32.vlgmr.msra.gmra.mxu0 %vm199_vm2, %v20477_v46  ;;  %v15889_v18 = vld [vmem:[%s21234_s4 + $0x5e8] sm:$0xff] }
0x4f8b   :  { %17958 = vmatprep.mubr.msk.f32.mxu0 %vm284_vm3, %v11443_v19  ;;  %v15888_v19 = vld [vmem:[%s21234_s4 + $0x5e0] sm:$0xff] }
0x4f8e   :  { %v17953_v13 = vpop.f32.mrf.mxu1 }
0x4f8f   :  { %v11624_v52 = vadd.f32 %v17953_v13, %v15860_v12 }
0x4f90   :  { %v11618_v35 = vpop.f32.mrf.mxu1 }
0x4f91   :  { %v11619_v33 = vadd.f32 %v15860_v12, %v11618_v35  ;;  %17961 = vmatprep.subr.mxu1 %v11624_v52  ;;  %v15883_v12 = vld [vmem:[%s21234_s4 + $0x578] sm:$0xff]  ;;  %v15882_v35 = vld [vmem:[%s21234_s4 + $0x570] sm:$0xff] }
0x4f92   :  { %17962 = vmatpush3.msra.mxu1 %v11624_v52 }
0x4f93   :  { %17963 = vmatprep.subr.mxu1 %v11619_v33 }
0x4f94   :  { %17964 = vmatpush3.msra.mxu1 %v11619_v33  ;;  %v15881_v33 = vld [vmem:[%s21234_s4 + $0x568] sm:$0xff] }
0x4f95   :  { %17973 = vmatprep.subr.mxu1 %v15875_v16 }
0x5042   :  { %v17920_v39 = vpop.f32.mrf.mxu0 }
0x5043   :  { %v20675_v59 = vadd.f32 %v17920_v39, %v10817_v37  ;;  %v15880_v37 = vld [vmem:[%s21234_s4 + $0x560] sm:$0xff] }
0x5044   :  { %v11352_v40 = vpop.f32.mrf.mxu0 }
0x5045   :  { %v20677_v1 = vadd.f32 %v11352_v40, %v10816_v57 }
0x504a   :  { %v17942_v50 = vpop.f32.mrf.mxu0 }
0x504b   :  { %v11536_v51 = vadd.f32 %v17942_v50, %v15852_v49  ;;  %v15893_v50 = vld [vmem:[%s21235_s5 + $0x2f] ss:$0 sm:$0xff] }
0x504c   :  { %v11530_v54 = vpop.f32.mrf.mxu0 }
0x504d   :  { %v11531_v17 = vadd.f32 %v15852_v49, %v11530_v54  ;;  %17954 = vmatprep.subr.msk.mxu0 %vm284_vm3, %v11536_v51 }
0x504e   :  { %17955 = vmatpush3.xpose.msk.msra.mxu0 %vm284_vm3, %v11536_v51 }
0x504f   :  { %17956 = vmatprep.subr.msk.mxu0 %vm284_vm3, %v11531_v17 }
0x5052   :  { %17957 = vmatpush3.xpose.msk.msra.mxu0 %vm284_vm3, %v11531_v17 }
0x5053   :  { %17968 = vmatprep.subr.mxu0 %v15869_v21 }
0x5055   :  { %17959 = vmatmul.mubr.msk.f32.vlgmr.msra.gmra.mxu0 %vm284_vm3, %v11448_v9  ;;  %v15890_v9 = vld [vmem:[%s21234_s4 + $0x5f0] sm:$0xff] }
0x5056   :  { %17969 = vmatpush3.msra.mxu0 %v15869_v21 }
0x5057   :  { %17984 = vmatprep.subr.mxu0 %v15883_v12 }
0x5115   :  { %v17960_v8 = vpop.f32.mrf.mxu0 }
0x5116   :  { %v11715_v53 = vmul.f32 0.35355338, %v17960_v8 }
0x5117   :  { %v11705_v43 = vpop.f32.mrf.mxu0 }
0x5118   :  { %v11717_v55 = vmul.f32 %v19739_v28, %v11715_v53  ;;  %v11714_v14 = vmul.f32 0.35355338, %v11705_v43 }
0x511a   :  { %v11716_v41 = vmul.f32 %v19745_v31, %v11714_v14  ;;  %v11719_v45 = vadd.f32 %v11717_v55, %v19741_v30 }
0x511c   :  { %v11723_v60 = vsel %vm926_vm8, %v11719_v45, -inf  ;;  %v11718_v10 = vadd.f32 %v11716_v41, %v19747_v32  ;;  %v15885_v41 = vld [vmem:[%s21235_s5 + $0x2b] ss:$0 sm:$0xff] }
0x511d   :  { %11724 = vmax.xlane.f32.xlu0 %v11723_v60 }
0x511e   :  { %v11720_v48 = vsel %vm926_vm8, %v11718_v10, -inf }
0x511f   :  { %11721 = vmax.xlane.f32.xlu1 %v11720_v48 }
0x51a6   :  { %v11725_v63 = vpop.xlane.xlu0 %11724 }
0x51a7   :  { %v11727_v2 = vsub.f32 %v11719_v45, %v11725_v63 }
0x51a8   :  { %v11722_v0 = vpop.xlane.xlu1 %11721 }
0x51a9   :  { %v11730_v5 = vmul.f32 1.442695, %v11727_v2  ;;  %v11726_v11 = vsub.f32 %v11718_v10, %v11722_v0 }
0x51ab   :  { %18465 = vpow2.f32 %v11730_v5  ;;  %v11728_v62 = vmul.f32 1.442695, %v11726_v11 }
0x51ad   :  { %18467 = vpow2.f32 %v11728_v62 }
0x51b8   :  { %v18466_v61 = vpop.eup %18465 }
0x51b9   :  { %v11735_v22 = vsel %vm926_vm8, %v18466_v61, 0.0 }
0x51ba   :  { %v18468_v24 = vpop.eup %18467  ;;  %11736 = vadd.xlane.f32.xlu0 %v11735_v22 }
0x51bb   :  { %v11732_v15 = vsel %vm926_vm8, %v18468_v24, 0.0 }
0x51bc   :  { %11733 = vadd.xlane.f32.xlu1 %v11732_v15 }
0x5243   :  { %v11737_v3 = vpop.xlane.xlu0 %11736 }
0x5244   :  { %18469 = vrcp.f32 %v11737_v3 }
0x5245   :  { %v11734_v36 = vpop.xlane.xlu1 %11733 }
0x5246   :  { %18471 = vrcp.f32 %v11734_v36 }
0x5251   :  { %v18470_v44 = vpop.eup %18469 }
0x5252   :  { %v11741_v23 = vmul.f32 %v18470_v44, %v18466_v61 }
0x5253   :  { %v18472_v47 = vpop.eup %18471 }
0x5254   :  { %v11739_v26 = vmul.f32 %v18472_v47, %v18468_v24 }
0x5256   :  { %17965 = vmatprep.mubr.msk.f32.mxu1 %vm926_vm8, %v11739_v26 }
0x5257   :  { %17966 = vmatmul.mubr.msk.f32.vlgmr.msra.gmra.mxu1 %vm926_vm8, %v11741_v23 }
0x5258   :  { %17974 = vmatpush3.msra.mxu1 %v15875_v16  ;;  %17981 = vmatprep.mubr.msk.f32.mxu1 %vm199_vm2, %v20475_v20 }
0x5259   :  { %17975 = vmatprep.subr.mxu1 %v15874_v7 }
0x525a   :  { %17976 = vmatpush3.msra.mxu1 %v15874_v7 }
0x525b   :  { %17977 = vmatprep.subr.mxu1 %v15873_v6 }
0x525c   :  { %17978 = vmatpush3.msra.mxu1 %v15873_v6 }
0x525d   :  { %17979 = vmatprep.subr.mxu1 %v15872_v58 }
0x525e   :  { %17980 = vmatpush3.msra.mxu1 %v15872_v58 }
0x525f   :  { %17982 = vmatmul.mubr.msk.f32.vlgmr.msra.gmra.mxu1 %vm199_vm2, %v20477_v46  ;;  %17995 = vmatprep.subr.mxu1 %v15891_v29 }
0x5260   :  { %17996 = vmatpush3.msra.mxu1 %v15891_v29  ;;  %18003 = vmatprep.mubr.msk.f32.mxu1 %vm199_vm2, %v20475_v20  ;;  %v15921_v29 = vld [vmem:[%s21234_s4 + $0x818] sm:$0xff] }
0x5261   :  { %17997 = vmatprep.subr.mxu1 %v15890_v9 }
0x5262   :  { %17998 = vmatpush3.msra.mxu1 %v15890_v9 }
0x5263   :  { %17999 = vmatprep.subr.mxu1 %v15889_v18 }
0x5264   :  { %18000 = vmatpush3.msra.mxu1 %v15889_v18 }
0x5265   :  { %18001 = vmatprep.subr.mxu1 %v15888_v19 }
0x5266   :  { %18002 = vmatpush3.msra.mxu1 %v15888_v19  ;;  %v15920_v19 = vld [vmem:[%s21234_s4 + $0x810] sm:$0xff] }
0x5267   :  { %18004 = vmatmul.mubr.msk.f32.vlgmr.msra.gmra.mxu1 %vm199_vm2, %v20477_v46 }
0x5317   :  { %v17967_v13 = vpop.f32.mrf.mxu1 }
0x5319   :  { %v11814_v52 = vpop.f32.mrf.mxu1 }
0x531a   :  { %17970 = vmatprep.mubr.msk.f32.mxu0 %vm284_vm3, %v11814_v52 }
0x531b   :  { %17971 = vmatmul.mubr.msk.f32.vlgmr.msra.gmra.mxu0 %vm284_vm3, %v17967_v13  ;;  %v15918_v13 = vld [vmem:[%s21234_s4 + $0x800] sm:$0xff] }
0x531c   :  { %17985 = vmatpush3.msra.mxu0 %v15883_v12  ;;  %17992 = vmatprep.mubr.msk.f32.mxu0 %vm199_vm2, %v20475_v20  ;;  %v15919_v12 = vld [vmem:[%s21234_s4 + $0x808] sm:$0xff] }
0x531d   :  { %17986 = vmatprep.subr.mxu0 %v15882_v35 }
0x531e   :  { %17987 = vmatpush3.msra.mxu0 %v15882_v35 }
0x531f   :  { %v17983_v39 = vpop.f32.mrf.mxu1  ;;  %17988 = vmatprep.subr.mxu0 %v15881_v33 }
0x5320   :  { %v11993_v57 = vadd.f32 %v17983_v39, %v15877_v27  ;;  %17989 = vmatpush3.msra.mxu0 %v15881_v33 }
0x5321   :  { %v11987_v40 = vpop.f32.mrf.mxu1  ;;  %17990 = vmatprep.subr.mxu0 %v15880_v37 }
0x5322   :  { %v11988_v49 = vadd.f32 %v15877_v27, %v11987_v40  ;;  %17991 = vmatpush3.msra.mxu0 %v15880_v37  ;;  %v15923_v40 = vld [vmem:[%s21235_s5 + $0x40] ss:$0 sm:$0xff] }
0x5323   :  { %17993 = vmatmul.mubr.msk.f32.vlgmr.msra.gmra.mxu0 %vm199_vm2, %v20477_v46 }
0x5324   :  { %18010 = vmatprep.mubr.msk.f32.mxu0 %vm284_vm3, %v11988_v49 }
0x5327   :  { %v18005_v51 = vpop.f32.mrf.mxu1 }
0x5328   :  { %v12169_v54 = vadd.f32 %v18005_v51, %v15893_v50 }
0x5329   :  { %v12163_v17 = vpop.f32.mrf.mxu1 }
0x532a   :  { %v12164_v8 = vadd.f32 %v15893_v50, %v12163_v17  ;;  %18013 = vmatprep.subr.mxu1 %v12169_v54 }
0x532b   :  { %18014 = vmatpush3.msra.mxu1 %v12169_v54 }
0x532c   :  { %18015 = vmatprep.subr.mxu1 %v12164_v8 }
0x532d   :  { %18016 = vmatpush3.msra.mxu1 %v12164_v8 }
0x53db   :  { %v17972_v53 = vpop.f32.mrf.mxu0 }
0x53dc   :  { %v20758_v43 = vadd.f32 %v17972_v53, %v20675_v59 }
0x53dd   :  { %v11897_v55 = vpop.f32.mrf.mxu0 }
0x53de   :  { %v20761_v14 = vadd.f32 %v11897_v55, %v20677_v1 }
0x53e3   :  { %v17994_v45 = vpop.f32.mrf.mxu0 }
0x53e4   :  { %v12081_v60 = vadd.f32 %v17994_v45, %v15885_v41 }
0x53e5   :  { %v12075_v10 = vpop.f32.mrf.mxu0 }
0x53e6   :  { %v12076_v48 = vadd.f32 %v15885_v41, %v12075_v10  ;;  %18006 = vmatprep.subr.msk.mxu0 %vm284_vm3, %v12081_v60  ;;  %v15913_v10 = vld [vmem:[%s21234_s4 + $0x798] sm:$0xff] }
0x53e7   :  { %18007 = vmatpush3.xpose.msk.msra.mxu0 %vm284_vm3, %v12081_v60  ;;  %18025 = vmatprep.subr.mxu1 %v15913_v10 }
0x53e8   :  { %18008 = vmatprep.subr.msk.mxu0 %vm284_vm3, %v12076_v48 }
0x53eb   :  { %18009 = vmatpush3.xpose.msk.msra.mxu0 %vm284_vm3, %v12076_v48  ;;  %v15912_v48 = vld [vmem:[%s21234_s4 + $0x790] sm:$0xff] }
0x53ee   :  { %18011 = vmatmul.mubr.msk.f32.vlgmr.msra.gmra.mxu0 %vm284_vm3, %v11993_v57 }
0x54ae   :  { %v18012_v59 = vpop.f32.mrf.mxu0 }
0x54af   :  { %v12260_v1 = vmul.f32 0.35355338, %v18012_v59  ;;  %v15911_v59 = vld [vmem:[%s21234_s4 + $0x788] sm:$0xff] }
0x54b0   :  { %v12250_v63 = vpop.f32.mrf.mxu0 }
0x54b1   :  { %v12262_v2 = vmul.f32 %v19739_v28, %v12260_v1  ;;  %v12259_v0 = vmul.f32 0.35355338, %v12250_v63  ;;  %v15910_v1 = vld [vmem:[%s21234_s4 + $0x780] sm:$0xff]  ;;  %v15929_v63 = vld [vmem:[%s21234_s4 + $0x898] sm:$0xff] }
0x54b3   :  { %v12261_v5 = vmul.f32 %v19745_v31, %v12259_v0  ;;  %v12264_v11 = vadd.f32 %v12262_v2, %v19741_v30 }
0x54b5   :  { %v12268_v62 = vsel %vm926_vm8, %v12264_v11, -inf  ;;  %v12263_v61 = vadd.f32 %v12261_v5, %v19747_v32  ;;  %v15902_v32 = vld [vmem:[%s21236_s6 + $0x78] sm:$0xff] }
0x54b6   :  { %12269 = vmax.xlane.f32.xlu0 %v12268_v62  ;;  %18020 = vmatprep.subr.mxu0 %v15902_v32 }
0x54b7   :  { %v12265_v22 = vsel %vm926_vm8, %v12263_v61, -inf  ;;  %18021 = vmatpush3.msra.mxu0 %v15902_v32  ;;  %v15927_v32 = vld [vmem:[%s21234_s4 + $0x888] sm:$0xff] }
0x54b8   :  { %12266 = vmax.xlane.f32.xlu1 %v12265_v22  ;;  %18036 = vmatprep.subr.mxu0 %v15921_v29 }
0x553f   :  { %v12270_v24 = vpop.xlane.xlu0 %12269 }
0x5540   :  { %v12272_v15 = vsub.f32 %v12264_v11, %v12270_v24 }
0x5541   :  { %v12267_v16 = vpop.xlane.xlu1 %12266 }
0x5542   :  { %v12275_v21 = vmul.f32 1.442695, %v12272_v15  ;;  %v12271_v3 = vsub.f32 %v12263_v61, %v12267_v16  ;;  %v15906_v15 = vld [vmem:[%s21242_s12 + $0x7] ss:$0 sm:$0xff] }
0x5544   :  { %18473 = vpow2.f32 %v12275_v21  ;;  %v12273_v28 = vmul.f32 1.442695, %v12271_v3 }
0x5546   :  { %18475 = vpow2.f32 %v12273_v28 }
0x5551   :  { %v18474_v36 = vpop.eup %18473 }
0x5552   :  { %v12280_v31 = vsel %vm926_vm8, %v18474_v36, 0.0 }
0x5553   :  { %v18476_v30 = vpop.eup %18475  ;;  %12281 = vadd.xlane.f32.xlu0 %v12280_v31 }
0x5554   :  { %v12277_v44 = vsel %vm926_vm8, %v18476_v30, 0.0 }
0x5555   :  { %12278 = vadd.xlane.f32.xlu1 %v12277_v44  ;;  %v15928_v44 = vld [vmem:[%s21234_s4 + $0x890] sm:$0xff] }
0x55dc   :  { %v12282_v47 = vpop.xlane.xlu0 %12281 }
0x55dd   :  { %18477 = vrcp.f32 %v12282_v47  ;;  %v15926_v47 = vld [vmem:[%s21234_s4 + $0x880] sm:$0xff] }
0x55de   :  { %v12279_v26 = vpop.xlane.xlu1 %12278 }
0x55df   :  { %18479 = vrcp.f32 %v12279_v26 }
0x55ea   :  { %v18478_v23 = vpop.eup %18477 }
0x55eb   :  { %v12286_v58 = vmul.f32 %v18478_v23, %v18474_v36  ;;  %v15908_v36 = vld [vmem:[%s21242_s12 + $0x11] ss:$0 sm:$0xff]  ;;  %v15915_v23 = vld [vmem:[%s21235_s5 + $0x3c] ss:$0 sm:$0xff] }
0x55ec   :  { %v18480_v7 = vpop.eup %18479 }
0x55ed   :  { %v12284_v6 = vmul.f32 %v18480_v7, %v18476_v30 }
0x55ef   :  { %18017 = vmatprep.mubr.msk.f32.mxu1 %vm926_vm8, %v12284_v6 }
0x55f0   :  { %18018 = vmatmul.mubr.msk.f32.vlgmr.msra.gmra.mxu1 %vm926_vm8, %v12286_v58 }
0x55f1   :  { %18026 = vmatpush3.msra.mxu1 %v15913_v10 }
0x55f2   :  { %18027 = vmatprep.subr.mxu1 %v15912_v48 }
0x55f3   :  { %18028 = vmatpush3.msra.mxu1 %v15912_v48 }
0x55f4   :  { %18029 = vmatprep.subr.mxu1 %v15911_v59 }
0x55f5   :  { %18030 = vmatpush3.msra.mxu1 %v15911_v59 }
0x55f6   :  { %18031 = vmatprep.subr.mxu1 %v15910_v1 }
0x55f7   :  { %18032 = vmatpush3.msra.mxu1 %v15910_v1 }
0x55f8   :  { %18047 = vmatprep.subr.mxu1 %v15929_v63 }
0x56b0   :  { %v18019_v9 = vpop.f32.mrf.mxu1 }
0x56b2   :  { %v12359_v18 = vpop.f32.mrf.mxu1 }
0x56b3   :  { %18022 = vmatprep.mubr.msk.f32.mxu0 %vm284_vm3, %v12359_v18 }
0x56b4   :  { %18023 = vmatmul.mubr.msk.f32.vlgmr.msra.gmra.mxu0 %vm284_vm3, %v18019_v9 }
0x56b5   :  { %18037 = vmatpush3.msra.mxu0 %v15921_v29  ;;  %18044 = vmatprep.mubr.msk.f32.mxu0 %vm199_vm2, %v20024_v38  ;;  %v15931_v29 = vld [vmem:[%s21235_s5 + $0x44] ss:$0 sm:$0xff] }
0x56b6   :  { %18038 = vmatprep.subr.mxu0 %v15920_v19 }
0x56b7   :  { %18039 = vmatpush3.msra.mxu0 %v15920_v19 }
0x56b8   :  { %18040 = vmatprep.subr.mxu0 %v15919_v12 }
0x56b9   :  { %18041 = vmatpush3.msra.mxu0 %v15919_v12 }
0x56ba   :  { %18042 = vmatprep.subr.mxu0 %v15918_v13 }
0x56bb   :  { %18043 = vmatpush3.msra.mxu0 %v15918_v13 }
0x56bc   :  { %18045 = vmatmul.mubr.msk.f32.vlgmr.msra.gmra.mxu0 %vm199_vm2, %v20026_v34 }
0x5774   :  { %v18024_v52 = vpop.f32.mrf.mxu0 }
0x5775   :  { %v12452_v35 = vadd.f32 %v18024_v52, %v20758_v43 }
0x5776   :  { %v12442_v33 = vpop.f32.mrf.mxu0 }
0x5777   :  { %v12454_v27 = vadd.f32 %v12452_v35, %v20477_v46  ;;  %v12451_v37 = vadd.f32 %v12442_v33, %v20761_v14 }
0x5779   :  { %v12453_v39 = vadd.f32 %v12451_v37, %v20475_v20  ;;  %v12458_v57 = vsel %vm199_vm2, %v12454_v27, 0.0 }
0x577a   :  { %12459 = vadd.xlane.f32.xlu0 %v12458_v57 }
0x577b   :  { %v12455_v49 = vsel %vm199_vm2, %v12453_v39, 0.0 }
0x577c   :  { %v18046_v50 = vpop.f32.mrf.mxu0  ;;  %12456 = vadd.xlane.f32.xlu1 %v12455_v49 }
0x577d   :  { %v12682_v51 = vadd.f32 %v18046_v50, %v15923_v40 }
0x577e   :  { %v12676_v54 = vpop.f32.mrf.mxu0 }
0x577f   :  { %v12677_v17 = vadd.f32 %v15923_v40, %v12676_v54  ;;  %18058 = vmatprep.subr.msk.mxu0 %vm284_vm3, %v12682_v51 }
0x5780   :  { %18059 = vmatpush3.xpose.msk.msra.mxu0 %vm284_vm3, %v12682_v51 }
0x5781   :  { %18060 = vmatprep.subr.msk.mxu0 %vm284_vm3, %v12677_v17 }
0x5784   :  { %18061 = vmatpush3.xpose.msk.msra.mxu0 %vm284_vm3, %v12677_v17 }
0x5803   :  { %v12460_v20 = vpop.xlane.xlu0 %12459 }
0x5804   :  { %v12462_v46 = vmul.f32 0.03125, %v12460_v20 }
0x5805   :  { %v12457_v8 = vpop.xlane.xlu1 %12456 }
0x5806   :  { %v12464_v53 = vsub.f32 %v12454_v27, %v12462_v46  ;;  %v12461_v43 = vmul.f32 0.03125, %v12457_v8 }
0x5808   :  { %v12463_v55 = vsub.f32 %v12453_v39, %v12461_v43  ;;  %v12466_v14 = vmul.f32 %v12464_v53, %v12464_v53 }
0x580a   :  { %v12470_v41 = vsel %vm199_vm2, %v12466_v14, 0.0  ;;  %v12465_v45 = vmul.f32 %v12463_v55, %v12463_v55  ;;  %v15947_v14 = vld [vmem:[%s21234_s4 + $0x7b8] sm:$0xff] }
0x580b   :  { %12471 = vadd.xlane.f32.xlu0 %v12470_v41  ;;  %v15940_v41 = vld [vmem:[%s21236_s6 + $0xa0] sm:$0xff] }
0x580c   :  { %v12467_v60 = vsel %vm199_vm2, %v12465_v45, 0.0  ;;  %18072 = vmatprep.subr.mxu0 %v15940_v41 }
0x580d   :  { %12468 = vadd.xlane.f32.xlu1 %v12467_v60 }
0x5894   :  { %v12472_v2 = vpop.xlane.xlu0 %12471 }
0x5895   :  { %v12474_v0 = vmul.f32 0.03125, %v12472_v2  ;;  %v15945_v2 = vld [vmem:[%s21234_s4 + $0x7a8] sm:$0xff] }
0x5896   :  { %v12469_v5 = vpop.xlane.xlu1 %12468 }
0x5897   :  { %v12476_v11 = vadd.f32 1e-05, %v12474_v0  ;;  %v12473_v62 = vmul.f32 0.03125, %v12469_v5  ;;  %v15944_v0 = vld [vmem:[%s21234_s4 + $0x7a0] sm:$0xff]  ;;  %v15963_v5 = vld [vmem:[%s21234_s4 + $0x8b8] sm:$0xff] }
0x5899   :  { %18481 = vrsqrt.f32 %v12476_v11  ;;  %v12475_v61 = vadd.f32 1e-05, %v12473_v62  ;;  %v15962_v11 = vld [vmem:[%s21234_s4 + $0x8b0] sm:$0xff]  ;;  %v15961_v62 = vld [vmem:[%s21234_s4 + $0x8a8] sm:$0xff] }
0x589b   :  { %18483 = vrsqrt.f32 %v12475_v61  ;;  %v15960_v61 = vld [vmem:[%s21234_s4 + $0x8a0] sm:$0xff] }
0x58a6   :  { %v18482_v22 = vpop.eup %18481 }
0x58a7   :  { %v12480_v24 = vmul.f32 %v18482_v22, %v12464_v53  ;;  %v15955_v22 = vld [vmem:[%s21234_s4 + $0x838] sm:$0xff] }
0x58a8   :  { %v18484_v16 = vpop.eup %18483 }
0x58a9   :  { %v12479_v21 = vmul.f32 %v18484_v16, %v12463_v55  ;;  %v12490_v3 = vmul.f32 %v15906_v15, %v12480_v24  ;;  %v15954_v16 = vld [vmem:[%s21234_s4 + $0x830] sm:$0xff] }
0x58ab   :  { %v12489_v28 = vmul.f32 %v15906_v15, %v12479_v21  ;;  %v20840_v30 = vadd.f32 %v15908_v36, %v12490_v3  ;;  %v15953_v21 = vld [vmem:[%s21234_s4 + $0x828] sm:$0xff]  ;;  %v15949_v3 = vld [vmem:[%s21235_s5 + $0x3d] ss:$0 sm:$0xff] }
0x58ad   :  { %v20838_v31 = vadd.f32 %v15908_v36, %v12489_v28  ;;  %v15952_v28 = vld [vmem:[%s21234_s4 + $0x820] sm:$0xff] }
0x58af   :  { %18033 = vmatprep.mubr.msk.f32.mxu1 %vm199_vm2, %v20838_v31 }
0x58b0   :  { %18034 = vmatmul.mubr.msk.f32.vlgmr.msra.gmra.mxu1 %vm199_vm2, %v20840_v30 }
0x58b1   :  { %18048 = vmatpush3.msra.mxu1 %v15929_v63  ;;  %18055 = vmatprep.mubr.msk.f32.mxu1 %vm199_vm2, %v20024_v38  ;;  %v15946_v63 = vld [vmem:[%s21234_s4 + $0x7b0] sm:$0xff] }
0x58b2   :  { %18049 = vmatprep.subr.mxu1 %v15928_v44 }
0x58b3   :  { %18050 = vmatpush3.msra.mxu1 %v15928_v44 }
0x58b4   :  { %18051 = vmatprep.subr.mxu1 %v15927_v32 }
0x58b5   :  { %18052 = vmatpush3.msra.mxu1 %v15927_v32 }
0x58b6   :  { %18053 = vmatprep.subr.mxu1 %v15926_v47 }
0x58b7   :  { %18054 = vmatpush3.msra.mxu1 %v15926_v47 }
0x58b8   :  { %18056 = vmatmul.mubr.msk.f32.vlgmr.msra.gmra.mxu1 %vm199_vm2, %v20026_v34 }
0x5970   :  { %v18035_v26 = vpop.f32.mrf.mxu1 }
0x5971   :  { %v12594_v58 = vadd.f32 %v18035_v26, %v15915_v23  ;;  %v15965_v26 = vld [vmem:[%s21235_s5 + $0x45] ss:$0 sm:$0xff] }
0x5972   :  { %v12588_v7 = vpop.f32.mrf.mxu1 }
0x5973   :  { %v12589_v6 = vadd.f32 %v15915_v23, %v12588_v7 }
0x5975   :  { %18062 = vmatprep.mubr.msk.f32.mxu0 %vm284_vm3, %v12589_v6 }
0x5976   :  { %18063 = vmatmul.mubr.msk.f32.vlgmr.msra.gmra.mxu0 %vm284_vm3, %v12594_v58 }
0x5977   :  { %18073 = vmatpush3.msra.mxu0 %v15940_v41 }
0x5978   :  { %v18057_v9 = vpop.f32.mrf.mxu1  ;;  %18088 = vmatprep.subr.mxu0 %v15955_v22 }
0x5979   :  { %v12770_v18 = vadd.f32 %v18057_v9, %v15931_v29 }
0x597a   :  { %v12764_v19 = vpop.f32.mrf.mxu1 }
0x597b   :  { %v12765_v12 = vadd.f32 %v15931_v29, %v12764_v19  ;;  %18065 = vmatprep.subr.mxu1 %v12770_v18 }
0x597c   :  { %18066 = vmatpush3.msra.mxu1 %v12770_v18  ;;  %v15957_v18 = vld [vmem:[%s21235_s5 + $0x41] ss:$0 sm:$0xff] }
0x597d   :  { %18067 = vmatprep.subr.mxu1 %v12765_v12 }
0x597e   :  { %18068 = vmatpush3.msra.mxu1 %v12765_v12 }
0x597f   :  { %18077 = vmatprep.subr.mxu1 %v15947_v14 }
0x5a36   :  { %v18064_v13 = vpop.f32.mrf.mxu0 }
0x5a37   :  { %v12861_v52 = vmul.f32 0.35355338, %v18064_v13 }
0x5a38   :  { %v12851_v35 = vpop.f32.mrf.mxu0 }
0x5a39   :  { %v12863_v33 = vmul.f32 %v20107_v42, %v12861_v52  ;;  %v12860_v27 = vmul.f32 0.35355338, %v12851_v35 }
0x5a3b   :  { %v12862_v37 = vmul.f32 %v20113_v25, %v12860_v27  ;;  %v12865_v39 = vadd.f32 %v12863_v33, %v20109_v56 }
0x5a3d   :  { %v12869_v57 = vsel %vm926_vm8, %v12865_v39, -inf  ;;  %v12864_v40 = vadd.f32 %v12862_v37, %v20115_v4 }
0x5a3e   :  { %12870 = vmax.xlane.f32.xlu0 %v12869_v57 }
0x5a3f   :  { %v12866_v49 = vsel %vm926_vm8, %v12864_v40, -inf }
0x5a40   :  { %12867 = vmax.xlane.f32.xlu1 %v12866_v49 }
0x5ac7   :  { %v12871_v50 = vpop.xlane.xlu0 %12870 }
0x5ac8   :  { %v12873_v51 = vsub.f32 %v12865_v39, %v12871_v50 }
0x5ac9   :  { %v12868_v54 = vpop.xlane.xlu1 %12867 }
0x5aca   :  { %v12876_v17 = vmul.f32 1.442695, %v12873_v51  ;;  %v12872_v20 = vsub.f32 %v12864_v40, %v12868_v54 }
0x5acc   :  { %18485 = vpow2.f32 %v12876_v17  ;;  %v12874_v46 = vmul.f32 1.442695, %v12872_v20 }
0x5ace   :  { %18487 = vpow2.f32 %v12874_v46 }
0x5ad9   :  { %v18486_v8 = vpop.eup %18485 }
0x5ada   :  { %v12881_v53 = vsel %vm926_vm8, %v18486_v8, 0.0 }
0x5adb   :  { %v18488_v43 = vpop.eup %18487  ;;  %12882 = vadd.xlane.f32.xlu0 %v12881_v53 }
0x5adc   :  { %v12878_v55 = vsel %vm926_vm8, %v18488_v43, 0.0 }
0x5add   :  { %12879 = vadd.xlane.f32.xlu1 %v12878_v55 }
0x5b64   :  { %v12883_v45 = vpop.xlane.xlu0 %12882 }
0x5b65   :  { %18489 = vrcp.f32 %v12883_v45  ;;  %v15980_v45 = vld [vmem:[%s21234_s4 + $0x7d8] sm:$0xff] }
0x5b66   :  { %v12880_v60 = vpop.xlane.xlu1 %12879 }
0x5b67   :  { %18491 = vrcp.f32 %v12880_v60  ;;  %v15974_v60 = vld [vmem:[%s21236_s6 + $0xa8] sm:$0xff] }
0x5b72   :  { %v18490_v10 = vpop.eup %18489 }
0x5b73   :  { %v12887_v1 = vmul.f32 %v18490_v10, %v18486_v8 }
0x5b74   :  { %v18492_v48 = vpop.eup %18491 }
0x5b75   :  { %v12885_v59 = vmul.f32 %v18492_v48, %v18488_v43 }
0x5b77   :  { %18069 = vmatprep.mubr.msk.f32.mxu1 %vm926_vm8, %v12885_v59 }
0x5b78   :  { %18070 = vmatmul.mubr.msk.f32.vlgmr.msra.gmra.mxu1 %vm926_vm8, %v12887_v1 }
0x5b79   :  { %18078 = vmatpush3.msra.mxu1 %v15947_v14  ;;  %18085 = vmatprep.mubr.msk.f32.mxu1 %vm199_vm2, %v20838_v31 }
0x5b7a   :  { %18079 = vmatprep.subr.mxu1 %v15946_v63 }
0x5b7b   :  { %18080 = vmatpush3.msra.mxu1 %v15946_v63 }
0x5b7c   :  { %18081 = vmatprep.subr.mxu1 %v15945_v2 }
0x5b7d   :  { %18082 = vmatpush3.msra.mxu1 %v15945_v2 }
0x5b7e   :  { %18083 = vmatprep.subr.mxu1 %v15944_v0 }
0x5b7f   :  { %18084 = vmatpush3.msra.mxu1 %v15944_v0  ;;  %v15979_v0 = vld [vmem:[%s21234_s4 + $0x7d0] sm:$0xff] }
0x5b80   :  { %18086 = vmatmul.mubr.msk.f32.vlgmr.msra.gmra.mxu1 %vm199_vm2, %v20840_v30  ;;  %18099 = vmatprep.subr.mxu1 %v15963_v5 }
0x5b81   :  { %18100 = vmatpush3.msra.mxu1 %v15963_v5  ;;  %18107 = vmatprep.mubr.msk.f32.mxu1 %vm199_vm2, %v20024_v38  ;;  %v15978_v5 = vld [vmem:[%s21234_s4 + $0x7c8] sm:$0xff] }
0x5b82   :  { %18101 = vmatprep.subr.mxu1 %v15962_v11 }
0x5b83   :  { %18102 = vmatpush3.msra.mxu1 %v15962_v11  ;;  %v15977_v11 = vld [vmem:[%s21234_s4 + $0x7c0] sm:$0xff] }
0x5b84   :  { %18103 = vmatprep.subr.mxu1 %v15961_v62 }
0x5b85   :  { %18104 = vmatpush3.msra.mxu1 %v15961_v62  ;;  %v15996_v62 = vld [vmem:[%s21234_s4 + $0x8d8] sm:$0xff] }
0x5b86   :  { %18105 = vmatprep.subr.mxu1 %v15960_v61 }
0x5b87   :  { %18106 = vmatpush3.msra.mxu1 %v15960_v61  ;;  %v15995_v61 = vld [vmem:[%s21234_s4 + $0x8d0] sm:$0xff] }
0x5b88   :  { %18108 = vmatmul.mubr.msk.f32.vlgmr.msra.gmra.mxu1 %vm199_vm2, %v20026_v34 }
0x5c38   :  { %v18071_v24 = vpop.f32.mrf.mxu1 }
0x5c3a   :  { %v12960_v15 = vpop.f32.mrf.mxu1 }
0x5c3b   :  { %18074 = vmatprep.mubr.msk.f32.mxu0 %vm284_vm3, %v12960_v15  ;;  %v15988_v15 = vld [vmem:[%s21234_s4 + $0x858] sm:$0xff] }
0x5c3c   :  { %18075 = vmatmul.mubr.msk.f32.vlgmr.msra.gmra.mxu0 %vm284_vm3, %v18071_v24  ;;  %v15993_v24 = vld [vmem:[%s21234_s4 + $0x8c0] sm:$0xff] }
0x5c3d   :  { %18089 = vmatpush3.msra.mxu0 %v15955_v22  ;;  %18096 = vmatprep.mubr.msk.f32.mxu0 %vm199_vm2, %v20024_v38  ;;  %v15994_v22 = vld [vmem:[%s21234_s4 + $0x8c8] sm:$0xff] }
0x5c3e   :  { %18090 = vmatprep.subr.mxu0 %v15954_v16 }
0x5c3f   :  { %18091 = vmatpush3.msra.mxu0 %v15954_v16 }
0x5c40   :  { %v18087_v36 = vpop.f32.mrf.mxu1  ;;  %18092 = vmatprep.subr.mxu0 %v15953_v21 }
0x5c41   :  { %v13145_v44 = vadd.f32 %v18087_v36, %v15949_v3  ;;  %18093 = vmatpush3.msra.mxu0 %v15953_v21  ;;  %v15982_v36 = vld [vmem:[%s21235_s5 + $0x3e] ss:$0 sm:$0xff] }
0x5c42   :  { %v13139_v32 = vpop.f32.mrf.mxu1  ;;  %18094 = vmatprep.subr.mxu0 %v15952_v28 }
0x5c43   :  { %v13140_v47 = vadd.f32 %v15949_v3, %v13139_v32  ;;  %18095 = vmatpush3.msra.mxu0 %v15952_v28  ;;  %v15987_v3 = vld [vmem:[%s21234_s4 + $0x850] sm:$0xff]  ;;  %v15986_v28 = vld [vmem:[%s21234_s4 + $0x848] sm:$0xff] }
0x5c44   :  { %18097 = vmatmul.mubr.msk.f32.vlgmr.msra.gmra.mxu0 %vm199_vm2, %v20026_v34 }
0x5c45   :  { %18114 = vmatprep.mubr.msk.f32.mxu0 %vm284_vm3, %v13140_v47 }
0x5c48   :  { %v18109_v23 = vpop.f32.mrf.mxu1 }
0x5c49   :  { %v13321_v7 = vadd.f32 %v18109_v23, %v15965_v26 }
0x5c4a   :  { %v13315_v6 = vpop.f32.mrf.mxu1 }
0x5c4b   :  { %v13316_v58 = vadd.f32 %v15965_v26, %v13315_v6  ;;  %18117 = vmatprep.subr.mxu1 %v13321_v7 }
0x5c4c   :  { %18118 = vmatpush3.msra.mxu1 %v13321_v7  ;;  %v15998_v7 = vld [vmem:[%s21235_s5 + $0x46] ss:$0 sm:$0xff] }
0x5c4d   :  { %18119 = vmatprep.subr.mxu1 %v13316_v58 }
0x5c4e   :  { %18120 = vmatpush3.msra.mxu1 %v13316_v58 }
0x5c4f   :  { %18129 = vmatprep.subr.mxu1 %v15980_v45 }
0x5cfc   :  { %v20937_v29 = vpop.f32.mrf.mxu0 }
0x5cfe   :  { %v20939_v9 = vpop.f32.mrf.mxu0 }
0x5d04   :  { %v18098_v19 = vpop.f32.mrf.mxu0 }
0x5d05   :  { %v13233_v12 = vadd.f32 %v18098_v19, %v15957_v18 }
0x5d06   :  { %v13227_v13 = vpop.f32.mrf.mxu0 }
0x5d07   :  { %v13228_v52 = vadd.f32 %v15957_v18, %v13227_v13  ;;  %18110 = vmatprep.subr.msk.mxu0 %vm284_vm3, %v13233_v12 }
0x5d08   :  { %18111 = vmatpush3.xpose.msk.msra.mxu0 %vm284_vm3, %v13233_v12  ;;  %v15943_v12 = vld [vmem:[%s21242_s12 + $0x19] ss:$0 sm:$0xff] }
0x5d09   :  { %18112 = vmatprep.subr.msk.mxu0 %vm284_vm3, %v13228_v52  ;;  %v13059_v13 = vadd.f32 %v20937_v29, %v15943_v12 }
0x5d0c   :  { %18113 = vmatpush3.xpose.msk.msra.mxu0 %vm284_vm3, %v13228_v52 }
0x5d0d   :  { %18124 = vmatprep.subr.mxu0 %v15974_v60 }
0x5d0f   :  { %18115 = vmatmul.mubr.msk.f32.vlgmr.msra.gmra.mxu0 %vm284_vm3, %v13145_v44  ;;  %v15985_v44 = vld [vmem:[%s21234_s4 + $0x840] sm:$0xff] }
0x5d10   :  { %18125 = vmatpush3.msra.mxu0 %v15974_v60 }
0x5d11   :  { %18140 = vmatprep.subr.mxu0 %v15988_v15 }
0x5dcf   :  { %v18116_v35 = vpop.f32.mrf.mxu0 }
0x5dd0   :  { %v13412_v33 = vmul.f32 0.35355338, %v18116_v35  ;;  %v13058_v35 = vadd.f32 %v15943_v12, %v20939_v9 }
0x5dd1   :  { %v13402_v27 = vpop.f32.mrf.mxu0 }
0x5dd2   :  { %v13414_v37 = vmul.f32 %v20107_v42, %v13412_v33  ;;  %v13411_v39 = vmul.f32 0.35355338, %v13402_v27 }
0x5dd4   :  { %v13413_v57 = vmul.f32 %v20113_v25, %v13411_v39  ;;  %v13416_v40 = vadd.f32 %v13414_v37, %v20109_v56  ;;  %v15990_v39 = vld [vmem:[%s21235_s5 + $0x42] ss:$0 sm:$0xff] }
0x5dd6   :  { %v13420_v49 = vsel %vm926_vm8, %v13416_v40, -inf  ;;  %v13415_v50 = vadd.f32 %v13413_v57, %v20115_v4 }
0x5dd7   :  { %13421 = vmax.xlane.f32.xlu0 %v13420_v49 }
0x5dd8   :  { %v13417_v51 = vsel %vm926_vm8, %v13415_v50, -inf }
0x5dd9   :  { %13418 = vmax.xlane.f32.xlu1 %v13417_v51 }
0x5e60   :  { %v13422_v54 = vpop.xlane.xlu0 %13421 }
0x5e61   :  { %v13424_v17 = vsub.f32 %v13416_v40, %v13422_v54 }
0x5e62   :  { %v13419_v20 = vpop.xlane.xlu1 %13418 }
0x5e63   :  { %v13427_v46 = vmul.f32 1.442695, %v13424_v17  ;;  %v13423_v8 = vsub.f32 %v13415_v50, %v13419_v20 }
0x5e65   :  { %18493 = vpow2.f32 %v13427_v46  ;;  %v13425_v53 = vmul.f32 1.442695, %v13423_v8 }
0x5e67   :  { %18495 = vpow2.f32 %v13425_v53 }
0x5e72   :  { %v18494_v43 = vpop.eup %18493 }
0x5e73   :  { %v13432_v55 = vsel %vm926_vm8, %v18494_v43, 0.0 }
0x5e74   :  { %v18496_v14 = vpop.eup %18495  ;;  %13433 = vadd.xlane.f32.xlu0 %v13432_v55 }
0x5e75   :  { %v13429_v41 = vsel %vm926_vm8, %v18496_v14, 0.0 }
0x5e76   :  { %13430 = vadd.xlane.f32.xlu1 %v13429_v41 }
0x5efd   :  { %v13434_v10 = vpop.xlane.xlu0 %13433 }
0x5efe   :  { %18497 = vrcp.f32 %v13434_v10 }
0x5eff   :  { %v13431_v48 = vpop.xlane.xlu1 %13430 }
0x5f00   :  { %18499 = vrcp.f32 %v13431_v48 }
0x5f0b   :  { %v18498_v59 = vpop.eup %18497 }
0x5f0c   :  { %v13438_v2 = vmul.f32 %v18498_v59, %v18494_v43 }
0x5f0d   :  { %v18500_v1 = vpop.eup %18499 }
0x5f0e   :  { %v13436_v63 = vmul.f32 %v18500_v1, %v18496_v14 }
0x5f10   :  { %18121 = vmatprep.mubr.msk.f32.mxu1 %vm926_vm8, %v13436_v63 }
0x5f11   :  { %18122 = vmatmul.mubr.msk.f32.vlgmr.msra.gmra.mxu1 %vm926_vm8, %v13438_v2  ;;  %v16013_v2 = vld [vmem:[%s21234_s4 + $0x7f8] sm:$0xff] }
0x5f12   :  { %18130 = vmatpush3.msra.mxu1 %v15980_v45  ;;  %18137 = vmatprep.mubr.msk.f32.mxu1 %vm199_vm2, %v20838_v31 }
0x5f13   :  { %18131 = vmatprep.subr.mxu1 %v15979_v0 }
0x5f14   :  { %18132 = vmatpush3.msra.mxu1 %v15979_v0  ;;  %v16007_v0 = vld [vmem:[%s21236_s6 + $0xb0] sm:$0xff] }
0x5f15   :  { %18133 = vmatprep.subr.mxu1 %v15978_v5 }
0x5f16   :  { %18134 = vmatpush3.msra.mxu1 %v15978_v5 }
0x5f17   :  { %18135 = vmatprep.subr.mxu1 %v15977_v11 }
0x5f18   :  { %18136 = vmatpush3.msra.mxu1 %v15977_v11 }
0x5f19   :  { %18138 = vmatmul.mubr.msk.f32.vlgmr.msra.gmra.mxu1 %vm199_vm2, %v20840_v30  ;;  %18151 = vmatprep.subr.mxu1 %v15996_v62 }
0x5f1a   :  { %18152 = vmatpush3.msra.mxu1 %v15996_v62  ;;  %18159 = vmatprep.mubr.msk.f32.mxu1 %vm199_vm2, %v20024_v38 }
0x5f1b   :  { %18153 = vmatprep.subr.mxu1 %v15995_v61 }
0x5f1c   :  { %18154 = vmatpush3.msra.mxu1 %v15995_v61 }
0x5f1d   :  { %18155 = vmatprep.subr.mxu1 %v15994_v22 }
0x5f1e   :  { %18156 = vmatpush3.msra.mxu1 %v15994_v22 }
0x5f1f   :  { %18157 = vmatprep.subr.mxu1 %v15993_v24 }
0x5f20   :  { %18158 = vmatpush3.msra.mxu1 %v15993_v24 }
0x5f21   :  { %18160 = vmatmul.mubr.msk.f32.vlgmr.msra.gmra.mxu1 %vm199_vm2, %v20026_v34 }
0x5fd1   :  { %v18123_v16 = vpop.f32.mrf.mxu1 }
0x5fd3   :  { %v13511_v21 = vpop.f32.mrf.mxu1 }
0x5fd4   :  { %18126 = vmatprep.mubr.msk.f32.mxu0 %vm284_vm3, %v13511_v21  ;;  %v16010_v21 = vld [vmem:[%s21234_s4 + $0x7e0] sm:$0xff] }
0x5fd5   :  { %18127 = vmatmul.mubr.msk.f32.vlgmr.msra.gmra.mxu0 %vm284_vm3, %v18123_v16  ;;  %v16011_v16 = vld [vmem:[%s21234_s4 + $0x7e8] sm:$0xff] }
0x5fd6   :  { %18141 = vmatpush3.msra.mxu0 %v15988_v15  ;;  %18148 = vmatprep.mubr.msk.f32.mxu0 %vm199_vm2, %v20024_v38  ;;  %v16012_v15 = vld [vmem:[%s21234_s4 + $0x7f0] sm:$0xff] }
0x5fd7   :  { %18142 = vmatprep.subr.mxu0 %v15987_v3 }
0x5fd8   :  { %18143 = vmatpush3.msra.mxu0 %v15987_v3  ;;  %v16029_v3 = vld [vmem:[%s21234_s4 + $0x8f8] sm:$0xff] }
0x5fd9   :  { %v18139_v32 = vpop.f32.mrf.mxu1  ;;  %18144 = vmatprep.subr.mxu0 %v15986_v28 }
0x5fda   :  { %v13690_v47 = vadd.f32 %v18139_v32, %v15982_v36  ;;  %18145 = vmatpush3.msra.mxu0 %v15986_v28  ;;  %v16028_v28 = vld [vmem:[%s21234_s4 + $0x8f0] sm:$0xff]  ;;  %v16021_v32 = vld [vmem:[%s21234_s4 + $0x878] sm:$0xff] }
0x5fdb   :  { %v13684_v26 = vpop.f32.mrf.mxu1  ;;  %18146 = vmatprep.subr.mxu0 %v15985_v44 }
0x5fdc   :  { %v13685_v23 = vadd.f32 %v15982_v36, %v13684_v26  ;;  %18147 = vmatpush3.msra.mxu0 %v15985_v44  ;;  %v16027_v36 = vld [vmem:[%s21234_s4 + $0x8e8] sm:$0xff]  ;;  %v16026_v44 = vld [vmem:[%s21234_s4 + $0x8e0] sm:$0xff] }
0x5fdd   :  { %18149 = vmatmul.mubr.msk.f32.vlgmr.msra.gmra.mxu0 %vm199_vm2, %v20026_v34 }
0x5fde   :  { %18166 = vmatprep.mubr.msk.f32.mxu0 %vm284_vm3, %v13685_v23  ;;  %v16020_v23 = vld [vmem:[%s21234_s4 + $0x870] sm:$0xff] }
0x5fe1   :  { %v18161_v6 = vpop.f32.mrf.mxu1 }
0x5fe2   :  { %v13866_v58 = vadd.f32 %v18161_v6, %v15998_v7  ;;  %v16015_v6 = vld [vmem:[%s21235_s5 + $0x3f] ss:$0 sm:$0xff] }
0x5fe3   :  { %v13860_v18 = vpop.f32.mrf.mxu1 }
0x5fe4   :  { %v13861_v19 = vadd.f32 %v15998_v7, %v13860_v18  ;;  %18169 = vmatprep.subr.mxu1 %v13866_v58  ;;  %v16019_v7 = vld [vmem:[%s21234_s4 + $0x868] sm:$0xff] }
0x5fe5   :  { %18170 = vmatpush3.msra.mxu1 %v13866_v58  ;;  %v16018_v58 = vld [vmem:[%s21234_s4 + $0x860] sm:$0xff] }
0x5fe6   :  { %18171 = vmatprep.subr.mxu1 %v13861_v19 }
0x5fe7   :  { %18172 = vmatpush3.msra.mxu1 %v13861_v19 }
0x5fe8   :  { %18181 = vmatprep.subr.mxu1 %v16013_v2 }
0x6095   :  { %v18128_v52 = vpop.f32.mrf.mxu0 }
0x6096   :  { %v21024_v33 = vadd.f32 %v18128_v52, %v13059_v13  ;;  %v16031_v13 = vld [vmem:[%s21235_s5 + $0x47] ss:$0 sm:$0xff] }
0x6097   :  { %v13594_v27 = vpop.f32.mrf.mxu0 }
0x6098   :  { %v21026_v37 = vadd.f32 %v13594_v27, %v13058_v35 }
0x609d   :  { %v18150_v57 = vpop.f32.mrf.mxu0 }
0x609e   :  { %v13778_v40 = vadd.f32 %v18150_v57, %v15990_v39 }
0x609f   :  { %v13772_v49 = vpop.f32.mrf.mxu0 }
0x60a0   :  { %v13773_v50 = vadd.f32 %v15990_v39, %v13772_v49  ;;  %18162 = vmatprep.subr.msk.mxu0 %vm284_vm3, %v13778_v40 }
0x60a1   :  { %18163 = vmatpush3.xpose.msk.msra.mxu0 %vm284_vm3, %v13778_v40 }
0x60a2   :  { %18164 = vmatprep.subr.msk.mxu0 %vm284_vm3, %v13773_v50 }
0x60a5   :  { %18165 = vmatpush3.xpose.msk.msra.mxu0 %vm284_vm3, %v13773_v50  ;;  %v16023_v50 = vld [vmem:[%s21235_s5 + $0x43] ss:$0 sm:$0xff] }
0x60a6   :  { %18176 = vmatprep.subr.mxu0 %v16007_v0 }
0x60a8   :  { %18167 = vmatmul.mubr.msk.f32.vlgmr.msra.gmra.mxu0 %vm284_vm3, %v13690_v47 }
0x60a9   :  { %18177 = vmatpush3.msra.mxu0 %v16007_v0 }
0x60aa   :  { %18192 = vmatprep.subr.mxu0 %v16021_v32 }
0x6168   :  { %v18168_v29 = vpop.f32.mrf.mxu0 }
0x6169   :  { %v13957_v9 = vmul.f32 0.35355338, %v18168_v29 }
0x616a   :  { %v13947_v51 = vpop.f32.mrf.mxu0 }
0x616b   :  { %v13959_v54 = vmul.f32 %v20107_v42, %v13957_v9  ;;  %v13956_v17 = vmul.f32 0.35355338, %v13947_v51 }
0x616d   :  { %v13958_v20 = vmul.f32 %v20113_v25, %v13956_v17  ;;  %v13961_v46 = vadd.f32 %v13959_v54, %v20109_v56 }
0x616f   :  { %v13965_v8 = vsel %vm926_vm8, %v13961_v46, -inf  ;;  %v13960_v53 = vadd.f32 %v13958_v20, %v20115_v4 }
0x6170   :  { %13966 = vmax.xlane.f32.xlu0 %v13965_v8 }
0x6171   :  { %v13962_v43 = vsel %vm926_vm8, %v13960_v53, -inf }
0x6172   :  { %13963 = vmax.xlane.f32.xlu1 %v13962_v43 }
0x61f9   :  { %v13967_v55 = vpop.xlane.xlu0 %13966 }
0x61fa   :  { %v13969_v14 = vsub.f32 %v13961_v46, %v13967_v55 }
0x61fb   :  { %v13964_v41 = vpop.xlane.xlu1 %13963 }
0x61fc   :  { %v13972_v45 = vmul.f32 1.442695, %v13969_v14  ;;  %v13968_v60 = vsub.f32 %v13960_v53, %v13964_v41 }
0x61fe   :  { %18501 = vpow2.f32 %v13972_v45  ;;  %v13970_v10 = vmul.f32 1.442695, %v13968_v60 }
0x6200   :  { %18503 = vpow2.f32 %v13970_v10 }
0x620b   :  { %v18502_v48 = vpop.eup %18501 }
0x620c   :  { %v13977_v59 = vsel %vm926_vm8, %v18502_v48, 0.0 }
0x620d   :  { %v18504_v1 = vpop.eup %18503  ;;  %13978 = vadd.xlane.f32.xlu0 %v13977_v59 }
0x620e   :  { %v13974_v63 = vsel %vm926_vm8, %v18504_v1, 0.0 }
0x620f   :  { %13975 = vadd.xlane.f32.xlu1 %v13974_v63 }
0x6296   :  { %v13979_v5 = vpop.xlane.xlu0 %13978 }
0x6297   :  { %18505 = vrcp.f32 %v13979_v5 }
0x6298   :  { %v13976_v11 = vpop.xlane.xlu1 %13975 }
0x6299   :  { %18507 = vrcp.f32 %v13976_v11 }
0x62a4   :  { %v18506_v62 = vpop.eup %18505 }
0x62a5   :  { %v13983_v24 = vmul.f32 %v18506_v62, %v18502_v48 }
0x62a6   :  { %v18508_v61 = vpop.eup %18507 }
0x62a7   :  { %v13981_v22 = vmul.f32 %v18508_v61, %v18504_v1 }
0x62a9   :  { %18173 = vmatprep.mubr.msk.f32.mxu1 %vm926_vm8, %v13981_v22 }
0x62aa   :  { %18174 = vmatmul.mubr.msk.f32.vlgmr.msra.gmra.mxu1 %vm926_vm8, %v13983_v24 }
0x62ab   :  { %18182 = vmatpush3.msra.mxu1 %v16013_v2  ;;  %18189 = vmatprep.mubr.msk.f32.mxu1 %vm199_vm2, %v20838_v31 }
0x62ac   :  { %18183 = vmatprep.subr.mxu1 %v16012_v15 }
0x62ad   :  { %18184 = vmatpush3.msra.mxu1 %v16012_v15 }
0x62ae   :  { %18185 = vmatprep.subr.mxu1 %v16011_v16 }
0x62af   :  { %18186 = vmatpush3.msra.mxu1 %v16011_v16 }
0x62b0   :  { %18187 = vmatprep.subr.mxu1 %v16010_v21 }
0x62b1   :  { %18188 = vmatpush3.msra.mxu1 %v16010_v21 }
0x62b2   :  { %18190 = vmatmul.mubr.msk.f32.vlgmr.msra.gmra.mxu1 %vm199_vm2, %v20840_v30  ;;  %18203 = vmatprep.subr.mxu1 %v16029_v3 }
0x62b3   :  { %18204 = vmatpush3.msra.mxu1 %v16029_v3  ;;  %18211 = vmatprep.mubr.msk.f32.mxu1 %vm199_vm2, %v20024_v38 }
0x62b4   :  { %18205 = vmatprep.subr.mxu1 %v16028_v28 }
0x62b5   :  { %18206 = vmatpush3.msra.mxu1 %v16028_v28 }
0x62b6   :  { %18207 = vmatprep.subr.mxu1 %v16027_v36 }
0x62b7   :  { %18208 = vmatpush3.msra.mxu1 %v16027_v36 }
0x62b8   :  { %18209 = vmatprep.subr.mxu1 %v16026_v44 }
0x62b9   :  { %18210 = vmatpush3.msra.mxu1 %v16026_v44 }
0x62ba   :  { %18212 = vmatmul.mubr.msk.f32.vlgmr.msra.gmra.mxu1 %vm199_vm2, %v20026_v34 }
0x636a   :  { %v18175_v47 = vpop.f32.mrf.mxu1 }
0x636c   :  { %v14056_v26 = vpop.f32.mrf.mxu1 }
0x636d   :  { %18178 = vmatprep.mubr.msk.f32.mxu0 %vm284_vm3, %v14056_v26 }
0x636e   :  { %18179 = vmatmul.mubr.msk.f32.vlgmr.msra.gmra.mxu0 %vm284_vm3, %v18175_v47 }
0x636f   :  { %18193 = vmatpush3.msra.mxu0 %v16021_v32  ;;  %18200 = vmatprep.mubr.msk.f32.mxu0 %vm199_vm2, %v20024_v38 }
0x6370   :  { %18194 = vmatprep.subr.mxu0 %v16020_v23 }
0x6371   :  { %18195 = vmatpush3.msra.mxu0 %v16020_v23 }
0x6372   :  { %v18191_v18 = vpop.f32.mrf.mxu1  ;;  %18196 = vmatprep.subr.mxu0 %v16019_v7 }
0x6373   :  { %v14235_v19 = vadd.f32 %v18191_v18, %v16015_v6  ;;  %18197 = vmatpush3.msra.mxu0 %v16019_v7 }
0x6374   :  { %v14229_v12 = vpop.f32.mrf.mxu1  ;;  %18198 = vmatprep.subr.mxu0 %v16018_v58 }
0x6375   :  { %v14230_v38 = vadd.f32 %v16015_v6, %v14229_v12  ;;  %18199 = vmatpush3.msra.mxu0 %v16018_v58  ;;  %v16049_v12 = vld [vmem:[%s21237_s7 + $0x70] sm:$0xff] }
0x6376   :  { %18201 = vmatmul.mubr.msk.f32.vlgmr.msra.gmra.mxu0 %vm199_vm2, %v20026_v34 }
0x6377   :  { %18218 = vmatprep.mubr.msk.f32.mxu0 %vm284_vm3, %v14230_v38  ;;  %v16048_v38 = vld [vmem:[%s21237_s7 + $0x68] sm:$0xff] }
0x637a   :  { %v18213_v52 = vpop.f32.mrf.mxu1 }
0x637b   :  { %v14411_v35 = vadd.f32 %v18213_v52, %v16031_v13  ;;  %v16062_v52 = vld [vmem:[%s21239_s9 + $0xf8] sm:$0xff] }
0x637c   :  { %v14405_v27 = vpop.f32.mrf.mxu1 }
0x637d   :  { %v14406_v39 = vadd.f32 %v16031_v13, %v14405_v27  ;;  %18221 = vmatprep.subr.mxu1 %v14411_v35  ;;  %v16047_v13 = vld [vmem:[%s21237_s7 + $0x60] sm:$0xff]  ;;  %v16060_v27 = vld [vmem:[%s21239_s9 + $0xe8] sm:$0xff] }
0x637e   :  { %18222 = vmatpush3.msra.mxu1 %v14411_v35  ;;  %v16061_v35 = vld [vmem:[%s21239_s9 + $0xf0] sm:$0xff] }
0x637f   :  { %18223 = vmatprep.subr.mxu1 %v14406_v39 }
0x6380   :  { %18224 = vmatpush3.msra.mxu1 %v14406_v39  ;;  %v16059_v39 = vld [vmem:[%s21239_s9 + $0xe0] sm:$0xff] }
0x642e   :  { %v18180_v57 = vpop.f32.mrf.mxu0 }
0x642f   :  { %v14149_v40 = vadd.f32 %v18180_v57, %v21024_v33 }
0x6430   :  { %v14139_v49 = vpop.f32.mrf.mxu0 }
0x6431   :  { %v14148_v34 = vadd.f32 %v14139_v49, %v21026_v37 }
0x6436   :  { %v18202_v29 = vpop.f32.mrf.mxu0 }
0x6437   :  { %v14323_v9 = vadd.f32 %v18202_v29, %v16023_v50 }
0x6438   :  { %v14317_v51 = vpop.f32.mrf.mxu0 }
0x6439   :  { %v14318_v54 = vadd.f32 %v16023_v50, %v14317_v51  ;;  %18214 = vmatprep.subr.msk.mxu0 %vm284_vm3, %v14323_v9 }
0x643a   :  { %18215 = vmatpush3.xpose.msk.msra.mxu0 %vm284_vm3, %v14323_v9 }
0x643b   :  { %18216 = vmatprep.subr.msk.mxu0 %vm284_vm3, %v14318_v54 }
0x643e   :  { %18217 = vmatpush3.xpose.msk.msra.mxu0 %vm284_vm3, %v14318_v54  ;;  %v16044_v54 = vld [vmem:[%s21242_s12 + $0x8] ss:$0 sm:$0xff] }
0x6441   :  { %18219 = vmatmul.mubr.msk.f32.vlgmr.msra.gmra.mxu0 %vm284_vm3, %v14235_v19 }
0x6501   :  { %v18220_v33 = vpop.f32.mrf.mxu0 }
0x6502   :  { %v14502_v37 = vmul.f32 0.35355338, %v18220_v33 }
0x6503   :  { %v14492_v17 = vpop.f32.mrf.mxu0 }
0x6504   :  { %v14504_v20 = vmul.f32 %v20107_v42, %v14502_v37  ;;  %v14501_v46 = vmul.f32 0.35355338, %v14492_v17 }
0x6506   :  { %v14503_v8 = vmul.f32 %v20113_v25, %v14501_v46  ;;  %v14506_v53 = vadd.f32 %v14504_v20, %v20109_v56  ;;  %v16046_v46 = vld [vmem:[%s21242_s12 + $0x12] ss:$0 sm:$0xff] }
0x6508   :  { %v14510_v43 = vsel %vm926_vm8, %v14506_v53, -inf  ;;  %v14505_v55 = vadd.f32 %v14503_v8, %v20115_v4  ;;  %v16040_v4 = vld [vmem:[%s21236_s6 + $0xb8] sm:$0xff] }
0x6509   :  { %14511 = vmax.xlane.f32.xlu0 %v14510_v43  ;;  %18228 = vmatprep.subr.mxu0 %v16040_v4  ;;  %v16058_v43 = vld [vmem:[%s21239_s9 + $0xd8] sm:$0xff] }
0x650a   :  { %v14507_v14 = vsel %vm926_vm8, %v14505_v55, -inf  ;;  %18229 = vmatpush3.msra.mxu0 %v16040_v4 }
0x650b   :  { %14508 = vmax.xlane.f32.xlu1 %v14507_v14  ;;  %18244 = vmatprep.subr.mxu0 %v16062_v52  ;;  %v16056_v14 = vld [vmem:[%s21239_s9 + $0xc8] sm:$0xff] }
0x6592   :  { %v14512_v41 = vpop.xlane.xlu0 %14511 }
0x6593   :  { %v14514_v45 = vsub.f32 %v14506_v53, %v14512_v41  ;;  %v16055_v41 = vld [vmem:[%s21239_s9 + $0xc0] sm:$0xff] }
0x6594   :  { %v14509_v60 = vpop.xlane.xlu1 %14508 }
0x6595   :  { %v14517_v10 = vmul.f32 1.442695, %v14514_v45  ;;  %v14513_v48 = vsub.f32 %v14505_v55, %v14509_v60  ;;  %v16057_v55 = vld [vmem:[%s21239_s9 + $0xd0] sm:$0xff]  ;;  %v16052_v45 = vld [vmem:[%s21238_s8 + $0x3] ss:$0 sm:$0xff] }
0x6597   :  { %18509 = vpow2.f32 %v14517_v10  ;;  %v14515_v42 = vmul.f32 1.442695, %v14513_v48 }
0x6599   :  { %18511 = vpow2.f32 %v14515_v42 }
0x65a4   :  { %v18510_v59 = vpop.eup %18509 }
0x65a5   :  { %v14522_v25 = vsel %vm926_vm8, %v18510_v59, 0.0 }
0x65a6   :  { %v18512_v56 = vpop.eup %18511  ;;  %14523 = vadd.xlane.f32.xlu0 %v14522_v25 }
0x65a7   :  { %v14519_v1 = vsel %vm926_vm8, %v18512_v56, 0.0 }
0x65a8   :  { %14520 = vadd.xlane.f32.xlu1 %v14519_v1 }
0x662f   :  { %v14524_v63 = vpop.xlane.xlu0 %14523 }
0x6630   :  { %18513 = vrcp.f32 %v14524_v63 }
0x6631   :  { %v14521_v2 = vpop.xlane.xlu1 %14520 }
0x6632   :  { %18515 = vrcp.f32 %v14521_v2 }
0x663d   :  { %v18514_v0 = vpop.eup %18513 }
0x663e   :  { %v14528_v62 = vmul.f32 %v18514_v0, %v18510_v59 }
0x663f   :  { %v18516_v5 = vpop.eup %18515 }
0x6640   :  { %v14526_v11 = vmul.f32 %v18516_v5, %v18512_v56  ;;  %v16064_v56 = vld [vmem:[%s21242_s12 + $0x1d] ss:$0 sm:$0xff] }
0x6642   :  { %18225 = vmatprep.mubr.msk.f32.mxu1 %vm926_vm8, %v14526_v11 }
0x6643   :  { %18226 = vmatmul.mubr.msk.f32.vlgmr.msra.gmra.mxu1 %vm926_vm8, %v14528_v62  ;;  %vm21251_vm8 = vmmov %vm21249_vm0 }
0x6703   :  { %v18227_v61 = vpop.f32.mrf.mxu1 }
0x6705   :  { %v14601_v22 = vpop.f32.mrf.mxu1 }
0x6706   :  { %18230 = vmatprep.mubr.msk.f32.mxu0 %vm284_vm3, %v14601_v22 }
0x6707   :  { %18231 = vmatmul.mubr.msk.f32.vlgmr.msra.gmra.mxu0 %vm284_vm3, %v18227_v61  ;;  %vm21250_vm3 = vmmov %vm21249_vm0 }
0x6708   :  { %18245 = vmatpush3.msra.mxu0 %v16062_v52  ;;  %v16070_v52 = vld [vmem:[%s21242_s12 + $0x13] ss:$0 sm:$0xff] }
0x6709   :  { %18246 = vmatprep.subr.mxu0 %v16061_v35 }
0x670a   :  { %18247 = vmatpush3.msra.mxu0 %v16061_v35 }
0x670b   :  { %18248 = vmatprep.subr.mxu0 %v16060_v27 }
0x670c   :  { %18249 = vmatpush3.msra.mxu0 %v16060_v27 }
0x670d   :  { %18250 = vmatprep.subr.mxu0 %v16059_v39 }
0x670e   :  { %18251 = vmatpush3.msra.mxu0 %v16059_v39 }
0x670f   :  { %18252 = vmatprep.subr.mxu0 %v16058_v43 }
0x6710   :  { %18253 = vmatpush3.msra.mxu0 %v16058_v43 }
0x6711   :  { %18254 = vmatprep.subr.mxu0 %v16057_v55 }
0x6712   :  { %18255 = vmatpush3.msra.mxu0 %v16057_v55 }
0x6713   :  { %18256 = vmatprep.subr.mxu0 %v16056_v14 }
0x6714   :  { %18257 = vmatpush3.msra.mxu0 %v16056_v14 }
0x6715   :  { %18258 = vmatprep.subr.mxu0 %v16055_v41 }
0x6716   :  { %18259 = vmatpush3.msra.mxu0 %v16055_v41 }
0x67c7   :  { %v18232_v24 = vpop.f32.mrf.mxu0 }
0x67c8   :  { %v14694_v15 = vadd.f32 %v18232_v24, %v14149_v40 }
0x67c9   :  { %v14684_v16 = vpop.f32.mrf.mxu0 }
0x67ca   :  { %v14696_v21 = vadd.f32 %v14694_v15, %v20840_v30  ;;  %v14693_v3 = vadd.f32 %v14684_v16, %v14148_v34 }
0x67cc   :  { %v14695_v28 = vadd.f32 %v14693_v3, %v20838_v31  ;;  %v14700_v36 = vsel %vm199_vm2, %v14696_v21, 0.0  ;;  %v16050_v31 = vld [vmem:[%s21237_s7 + $0x78] sm:$0xff] }
0x67cd   :  { %14701 = vadd.xlane.f32.xlu0 %v14700_v36  ;;  %18233 = vmatprep.subr.mxu1 %v16050_v31 }
0x67ce   :  { %v14697_v44 = vsel %vm199_vm2, %v14695_v28, 0.0  ;;  %18234 = vmatpush3.msra.mxu1 %v16050_v31 }
0x67cf   :  { %14698 = vadd.xlane.f32.xlu1 %v14697_v44  ;;  %18235 = vmatprep.subr.mxu1 %v16049_v12 }
0x67d0   :  { %18236 = vmatpush3.msra.mxu1 %v16049_v12  ;;  %v16068_v12 = vld [vmem:[%s21242_s12 + $0x9] ss:$0 sm:$0xff] }
0x67d1   :  { %18237 = vmatprep.subr.mxu1 %v16048_v38 }
0x67d2   :  { %18238 = vmatpush3.msra.mxu1 %v16048_v38 }
0x67d3   :  { %18239 = vmatprep.subr.mxu1 %v16047_v13 }
0x67d4   :  { %18240 = vmatpush3.msra.mxu1 %v16047_v13 }
0x6856   :  { %v14702_v32 = vpop.xlane.xlu0 %14701 }
0x6857   :  { %v14704_v47 = vmul.f32 0.03125, %v14702_v32  ;;  %v16074_v32 = vld [vmem:[%s21240_s10 + $0x58] sm:$0xff] }
0x6858   :  { %v14699_v26 = vpop.xlane.xlu1 %14698  ;;  %18263 = vmatprep.subr.mxu1 %v16074_v32 }
0x6859   :  { %v14706_v23 = vsub.f32 %v14696_v21, %v14704_v47  ;;  %v14703_v7 = vmul.f32 0.03125, %v14699_v26  ;;  %v16073_v47 = vld [vmem:[%s21240_s10 + $0x50] sm:$0xff]  ;;  %v16072_v26 = vld [vmem:[%s21240_s10 + $0x48] sm:$0xff] }
0x685b   :  { %v14705_v6 = vsub.f32 %v14695_v28, %v14703_v7  ;;  %v14708_v58 = vmul.f32 %v14706_v23, %v14706_v23 }
0x685d   :  { %v14712_v18 = vsel %vm199_vm2, %v14708_v58, 0.0  ;;  %v14707_v19 = vmul.f32 %v14705_v6, %v14705_v6 }
0x685e   :  { %14713 = vadd.xlane.f32.xlu0 %v14712_v18 }
0x685f   :  { %v14709_v30 = vsel %vm199_vm2, %v14707_v19, 0.0 }
0x6860   :  { %14710 = vadd.xlane.f32.xlu1 %v14709_v30 }
0x68e7   :  { %v14714_v57 = vpop.xlane.xlu0 %14713 }
0x68e8   :  { %v14716_v40 = vmul.f32 0.03125, %v14714_v57 }
0x68e9   :  { %v14711_v49 = vpop.xlane.xlu1 %14710 }
0x68ea   :  { %v14718_v34 = vadd.f32 1e-05, %v14716_v40  ;;  %v14715_v50 = vmul.f32 0.03125, %v14711_v49  ;;  %v16076_v49 = vld [vmem:[%s21242_s12 + $0x1e] ss:$0 sm:$0xff]  ;;  %s18585_s12 = smov [#allocation4]  }
0x68eb   :  { %s15124_s3 = sshll.u32 %s18585_s12, 4  ;;  %s15125_s3 = int_to_ptr.vmem [resolvable:$true] %s15124_s3 }
0x68ec   :  { %18517 = vrsqrt.f32 %v14718_v34  ;;  %v14717_v29 = vadd.f32 1e-05, %v14715_v50  ;;  %s18536_s25 = scalar_lea.vmem %s15125_s3, 256  ;;  %p18541_p1 = scmp.lt.s32.totalorder %s15125_s3, %s15125_s3 }
0x68ed   :  { %p18537_p0 = scmp.ne.s32.totalorder %s15125_s3, %s18536_s25  ;;  %p18542_p2 = scmp.lt.s32.totalorder %s18536_s25, %s18536_s25 }
0x68ee   :  { %18519 = vrsqrt.f32 %v14717_v29 }
0x68ef   :  { %p18543_p3 = por %p18542_p2, %p18541_p1 }
0x68f1   :  { %p18544_p4 = pnand %p18543_p3, %p18537_p0 }
0x68f9   :  { %v18518_v9 = vpop.eup %18517 }
0x68fa   :  { %v14722_v51 = vmul.f32 %v18518_v9, %v14706_v23  ;;  %v16071_v23 = vld [vmem:[%s21240_s10 + $0x40] sm:$0xff] }
0x68fb   :  { %v18520_v33 = vpop.eup %18519 }
0x68fc   :  { %v14721_v37 = vmul.f32 %v18520_v33, %v14705_v6  ;;  %v14732_v17 = vmul.f32 %v16044_v54, %v14722_v51 }
0x68fe   :  { %v14731_v20 = vmul.f32 %v16044_v54, %v14721_v37  ;;  %v14742_v53 = vadd.f32 %v16046_v46, %v14732_v17 }
0x6900   :  { %v14741_v8 = vadd.f32 %v16046_v46, %v14731_v20 }
0x6902   :  { %18241 = vmatprep.mubr.msk.f32.mxu1 %vm199_vm2, %v14741_v8 }
0x6903   :  { %18242 = vmatmul.mubr.msk.f32.vlgmr.msra.gmra.mxu1 %vm199_vm2, %v14742_v53 }
0x6904   :  { %18264 = vmatpush3.msra.mxu1 %v16074_v32 }
0x6905   :  { %18265 = vmatprep.subr.mxu1 %v16073_v47 }
0x6906   :  { %18266 = vmatpush3.msra.mxu1 %v16073_v47 }
0x6907   :  { %18267 = vmatprep.subr.mxu1 %v16072_v26 }
0x6908   :  { %18268 = vmatpush3.msra.mxu1 %v16072_v26 }
0x6909   :  { %18269 = vmatprep.subr.mxu1 %v16071_v23 }
0x690a   :  { %18270 = vmatpush3.msra.mxu1 %v16071_v23 }
0x69c3   :  { %v18243_v60 = vpop.f32.mrf.mxu1 }
0x69c4   :  { %v14834_v10 = vadd.f32 %v18243_v60, %v16052_v45 }
0x69c5   :  { %v14828_v48 = vpop.f32.mrf.mxu1 }
0x69c6   :  { %v14829_v42 = vadd.f32 %v16052_v45, %v14828_v48  ;;  %v14838_v25 = vmax.f32 %v14834_v10, 0.0 }
0x69c8   :  { %v14837_v59 = vmax.f32 %v14829_v42, 0.0 }
0x69ca   :  { %18260 = vmatprep.mubr.msk.f32.mxu0 %vm21250_vm3, %v14837_v59 }
0x69cb   :  { %18261 = vmatmul.mubr.msk.f32.vlgmr.msra.gmra.mxu0 %vm21251_vm8, %v14838_v25 }
0x6a8b   :  { %v18262_v1 = vpop.f32.mrf.mxu0 }
0x6a8c   :  { %v14934_v4 = vadd.f32 %v18262_v1, %v16064_v56 }
0x6a8d   :  { %v14928_v63 = vpop.f32.mrf.mxu0 }
0x6a8e   :  { %v14938_v2 = vadd.f32 %v14934_v4, %v14742_v53  ;;  %v14929_v0 = vadd.f32 %v16064_v56, %v14928_v63 }
0x6a90   :  { %v14937_v5 = vadd.f32 %v14929_v0, %v14741_v8  ;;  %v14942_v11 = vsel %vm199_vm2, %v14938_v2, 0.0 }
0x6a91   :  { %14943 = vadd.xlane.f32.xlu0 %v14942_v11 }
0x6a92   :  { %v14939_v62 = vsel %vm199_vm2, %v14937_v5, 0.0 }
0x6a93   :  { %14940 = vadd.xlane.f32.xlu1 %v14939_v62 }
0x6b1a   :  { %v14944_v61 = vpop.xlane.xlu0 %14943 }
0x6b1b   :  { %v14946_v22 = vmul.f32 0.03125, %v14944_v61 }
0x6b1c   :  { %v14941_v24 = vpop.xlane.xlu1 %14940 }
0x6b1d   :  { %v14948_v15 = vsub.f32 %v14938_v2, %v14946_v22  ;;  %v14945_v16 = vmul.f32 0.03125, %v14941_v24 }
0x6b1f   :  { %v14947_v21 = vsub.f32 %v14937_v5, %v14945_v16  ;;  %v14950_v3 = vmul.f32 %v14948_v15, %v14948_v15 }
0x6b21   :  { %v14954_v28 = vsel %vm199_vm2, %v14950_v3, 0.0  ;;  %v14949_v36 = vmul.f32 %v14947_v21, %v14947_v21 }
0x6b22   :  { %14955 = vadd.xlane.f32.xlu0 %v14954_v28 }
0x6b23   :  { %v14951_v44 = vsel %vm199_vm2, %v14949_v36, 0.0 }
0x6b24   :  { %14952 = vadd.xlane.f32.xlu1 %v14951_v44 }
0x6bab   :  { %v14956_v7 = vpop.xlane.xlu0 %14955 }
0x6bac   :  { %v14958_v6 = vmul.f32 0.03125, %v14956_v7 }
0x6bad   :  { %v14953_v58 = vpop.xlane.xlu1 %14952 }
0x6bae   :  { %v14960_v18 = vadd.f32 1e-05, %v14958_v6  ;;  %v14957_v19 = vmul.f32 0.03125, %v14953_v58 }
0x6bb0   :  { %18521 = vrsqrt.f32 %v14960_v18  ;;  %v14959_v30 = vadd.f32 1e-05, %v14957_v19 }
0x6bb2   :  { %18523 = vrsqrt.f32 %v14959_v30 }
0x6bbd   :  { %v18522_v31 = vpop.eup %18521 }
0x6bbe   :  { %v14964_v38 = vmul.f32 %v18522_v31, %v14948_v15 }
0x6bbf   :  { %v18524_v13 = vpop.eup %18523 }
0x6bc0   :  { %v14963_v35 = vmul.f32 %v18524_v13, %v14947_v21  ;;  %v14974_v27 = vmul.f32 %v16068_v12, %v14964_v38 }
0x6bc2   :  { %v14973_v39 = vmul.f32 %v16068_v12, %v14963_v35  ;;  %v14984_v57 = vadd.f32 %v16070_v52, %v14974_v27 }
0x6bc4   :  { %v14983_v40 = vadd.f32 %v16070_v52, %v14973_v39  ;;  %14986 = vst.msk [vmem:[#allocation4 + $0x8] sm:$0xff] %vm199_vm2, %v14984_v57 }
0x6bc6   :  { %18271 = vmatprep.mubr.msk.f32.mxu1 %vm199_vm2, %v14983_v40  ;;  %14985 = vst.msk [vmem:[#allocation4] sm:$0xff] %vm199_vm2, %v14983_v40 }
0x6bc7   :  { %18272 = vmatmul.mubr.msk.f32.vlgmr.msra.gmra.mxu1 %vm199_vm2, %v14984_v57 }
0x6c87   :  { %v18273_v34 = vpop.f32.mrf.mxu1 }
0x6c88   :  { %v15078_v50 = vadd.f32 %v18273_v34, %v16076_v49 }
0x6c89   :  { %v15072_v29 = vpop.f32.mrf.mxu1 }
0x6c8a   :  { %v15073_v9 = vadd.f32 %v16076_v49, %v15072_v29  ;;  %v15084_v51 = vsel %vm199_vm2, %v15078_v50, -inf }
0x6c8b   :  { %15085 = vmax.xlane.f32.xlu0 %v15084_v51 }
0x6c8c   :  { %v15081_v54 = vsel %vm199_vm2, %v15073_v9, -inf }
0x6c8d   :  { %15082 = vmax.xlane.f32.xlu1 %v15081_v54 }
0x6d14   :  { %v15086_v33 = vpop.xlane.xlu0 %15085 }
0x6d15   :  { %v15088_v37 = vsub.f32 %v15078_v50, %v15086_v33 }
0x6d16   :  { %v15083_v17 = vpop.xlane.xlu1 %15082 }
0x6d17   :  { %v15091_v20 = vmul.f32 1.442695, %v15088_v37  ;;  %v15087_v46 = vsub.f32 %v15073_v9, %v15083_v17 }
0x6d19   :  { %18525 = vpow2.f32 %v15091_v20  ;;  %v15089_v8 = vmul.f32 1.442695, %v15087_v46 }
0x6d1b   :  { %18527 = vpow2.f32 %v15089_v8 }
0x6d26   :  { %v18526_v53 = vpop.eup %18525 }
0x6d27   :  { %v15096_v43 = vsel %vm199_vm2, %v18526_v53, 0.0 }
0x6d28   :  { %v18528_v55 = vpop.eup %18527  ;;  %15097 = vadd.xlane.f32.xlu0 %v15096_v43 }
0x6d29   :  { %v15093_v14 = vsel %vm199_vm2, %v18528_v55, 0.0 }
0x6d2a   :  { %15094 = vadd.xlane.f32.xlu1 %v15093_v14 }
0x6d2b   :  { %18547 = shalt.err (!%p18544_p4)
}
0x6d2c   :  { %s18586_s26 = smov 128   ;;  %s18587_s4 = smov 8  }
0x6d2d   :  { %15130 = dma.vmem_to_hbm [thread:$0]  %s15125_s3, 256, %s21244_s14, [#allocation5], %s18586_s26, %s18586_s26, %s18587_s4  }
0x6d2e   :  { %s18588_s0 = smov [#allocation2]  }
0x6d2f   :  { %s15112_s6 = sshll.u32 %s18588_s0, 4  ;;  %s15113_s6 = int_to_ptr.vmem [resolvable:$true] %s15112_s6 }
0x6d30   :  { %s18556_s27 = scalar_lea.vmem %s15113_s6, 256  ;;  %p18561_p6 = scmp.lt.s32.totalorder %s15113_s6, %s15113_s6 }
0x6d31   :  { %p18557_p5 = scmp.ne.s32.totalorder %s15113_s6, %s18556_s27  ;;  %p18562_p7 = scmp.lt.s32.totalorder %s18556_s27, %s18556_s27 }
0x6d33   :  { %p18563_p8 = por %p18562_p7, %p18561_p6 }
0x6d35   :  { %p18564_p9 = pnand %p18563_p8, %p18557_p5 }
0x6db1   :  { %v15098_v41 = vpop.xlane.xlu0 %15097 }
0x6db2   :  { %18529 = vlog2.f32 %v15098_v41 }
0x6db3   :  { %v15095_v45 = vpop.xlane.xlu1 %15094 }
0x6db4   :  { %18531 = vlog2.f32 %v15095_v45 }
0x6dbf   :  { %v18530_v60 = vpop.eup %18529 }
0x6dc0   :  { %v15102_v10 = vmul.f32 0.6931472, %v18530_v60 }
0x6dc1   :  { %v18532_v48 = vpop.eup %18531 }
0x6dc2   :  { %v15104_v42 = vsub.f32 %v15088_v37, %v15102_v10  ;;  %v15100_v59 = vmul.f32 0.6931472, %v18532_v48 }
0x6dc4   :  { %15106 = vst.msk [vmem:[#allocation2 + $0x8] sm:$0xff] %vm199_vm2, %v15104_v42  ;;  %v15103_v25 = vsub.f32 %v15087_v46, %v15100_v59 }
0x6dc6   :  { %15105 = vst.msk [vmem:[#allocation2] sm:$0xff] %vm199_vm2, %v15103_v25 }
0x6dc7   :  { %18567 = shalt.err (!%p18564_p9)
}
0x6dc8   :  { %15118 = dma.vmem_to_hbm [thread:$0]  %s15113_s6, 256, %s21243_s13, [#allocation3], %s18586_s26, %s18586_s26, %s18587_s4  }
0x6dc9   :  { %18576 = dma.done.wait [#allocation3], 256  }
0x6dca   :  { %18577 = vsyncadd [#allocation3], 4294967040 }
0x6dcb   :  { %18578 = dma.done.wait [#allocation5], 256  }
0x6dcc   :  { %18579 = vsyncadd [#allocation5], 4294967040 }
0x6dcd   :  { %15137 = vsyncpa [#allocation3], 1 }
0x6dce   :  { %15138 = vsyncpa [#allocation5], 1 }

</bundles_post_ra>
